<compile_context>
chip_gen: v5e
topology: v5e:2x2
jax: 0.10.0
libtpu: 0.0.40
codegen_flags: <defaults>
</compile_context>

<pallas_src>
import functools

import jax
import jax.numpy as jnp
from jax.experimental import pallas as pl
from jax.experimental.pallas import tpu as pltpu

FIG = 64
BN_EPS = 1e-5
LRELU_SLOPE = 0.2
VMEM_LIMIT = 32 * 1024 * 1024  # fits v7x's 64 MiB physical VMEM with headroom


# ----------------------------------------------------------------------------
# Pallas kernels
# ----------------------------------------------------------------------------
def _matmul_kernel(p_ref, w_ref, b_ref, o_ref, acc_ref, *, add_bias, fuse_act):
    # Tiled conv-as-matmul: p [TM,TK] @ w [TK,TN] accumulated over the K grid axis.
    k = pl.program_id(2)

    @pl.when(k == 0)
    def _():
        acc_ref[...] = jnp.zeros_like(acc_ref)

    acc_ref[...] += jnp.dot(p_ref[...], w_ref[...],
                            preferred_element_type=jnp.float32)

    @pl.when(k == pl.num_programs(2) - 1)
    def _():
        y = acc_ref[...]
        if add_bias:
            y = y + b_ref[...]
        if fuse_act:
            y = jnp.maximum(y, LRELU_SLOPE * y)  # LeakyReLU(0.2)
        o_ref[...] = y.astype(o_ref.dtype)


def _bn_stats_kernel(y_ref, sum_ref, sq_ref):
    # Per-channel sum / sum-of-squares accumulated across the M grid axis.
    @pl.when(pl.program_id(0) == 0)
    def _():
        sum_ref[...] = jnp.zeros_like(sum_ref)
        sq_ref[...] = jnp.zeros_like(sq_ref)

    y = y_ref[...]
    sum_ref[...] += jnp.sum(y, axis=0, keepdims=True)
    sq_ref[...] += jnp.sum(y * y, axis=0, keepdims=True)


def _bn_apply_kernel(y_ref, sum_ref, sq_ref, g_ref, bt_ref, o_ref, *, m_total):
    # BatchNorm2d (training-mode batch stats, biased var) + LeakyReLU(0.2).
    inv_m = 1.0 / m_total
    mean = sum_ref[...] * inv_m
    var = sq_ref[...] * inv_m - mean * mean          # E[y^2] - mean^2
    scale = g_ref[...] * jax.lax.rsqrt(var + BN_EPS)
    shift = bt_ref[...] - mean * scale
    y = y_ref[...] * scale + shift
    o_ref[...] = jnp.maximum(y, LRELU_SLOPE * y).astype(o_ref.dtype)


def _final_heads_kernel(p_ref, w_ref, b_ref, wh_ref, bh_ref, o_ref, acc_ref):
    # Last conv (K accumulated over grid axis 0) fused with fc_dis/fc_aux + sigmoid.
    k = pl.program_id(0)

    @pl.when(k == 0)
    def _():
        acc_ref[...] = jnp.zeros_like(acc_ref)

    acc_ref[...] += jnp.dot(p_ref[...], w_ref[...],
                            preferred_element_type=jnp.float32)

    @pl.when(k == pl.num_programs(0) - 1)
    def _():
        flat = acc_ref[...] + b_ref[...]                       # [N, 64]
        z = jnp.dot(flat, wh_ref[...],
                    preferred_element_type=jnp.float32) + bh_ref[...]
        o_ref[...] = (1.0 / (1.0 + jnp.exp(-z))).astype(o_ref.dtype)  # sigmoid


# ----------------------------------------------------------------------------
# pallas_call wrappers
# ----------------------------------------------------------------------------
def conv_matmul(patches, w_mat, bias, *, add_bias, fuse_act,
                tm=256, tn=256, tk=1024):
    M, K = patches.shape
    Cout = w_mat.shape[1]
    tm, tn, tk = min(tm, M), min(tn, Cout), min(tk, K)
    assert M % tm == 0 and Cout % tn == 0 and K % tk == 0

    kernel = functools.partial(_matmul_kernel, add_bias=add_bias,
                               fuse_act=fuse_act)
    cost = pl.CostEstimate(flops=2 * M * K * Cout, transcendentals=0,
                           bytes_accessed=4 * (M * K + K * Cout + M * Cout))
    return pl.pallas_call(
        kernel,
        out_shape=jax.ShapeDtypeStruct((M, Cout), jnp.float32),
        grid_spec=pltpu.PrefetchScalarGridSpec(
            num_scalar_prefetch=0,
            grid=(M // tm, Cout // tn, K // tk),
            in_specs=[
                pl.BlockSpec((tm, tk), lambda i, j, k: (i, k)),
                pl.BlockSpec((tk, tn), lambda i, j, k: (k, j)),
                pl.BlockSpec((1, tn), lambda i, j, k: (0, j)),
            ],
            out_specs=pl.BlockSpec((tm, tn), lambda i, j, k: (i, j)),
            scratch_shapes=[pltpu.VMEM((tm, tn), jnp.float32)],
        ),
        compiler_params=pltpu.CompilerParams(
            dimension_semantics=("parallel", "parallel", "arbitrary"),
            vmem_limit_bytes=VMEM_LIMIT,
        ),
        cost_estimate=cost,
    )(patches, w_mat, bias)


def bn_stats(y, *, tm=256):
    M, C = y.shape
    tm = min(tm, M)
    assert M % tm == 0
    return pl.pallas_call(
        _bn_stats_kernel,
        out_shape=(jax.ShapeDtypeStruct((1, C), jnp.float32),
                   jax.ShapeDtypeStruct((1, C), jnp.float32)),
        grid_spec=pltpu.PrefetchScalarGridSpec(
            num_scalar_prefetch=0,
            grid=(M // tm,),
            in_specs=[pl.BlockSpec((tm, C), lambda i: (i, 0))],
            out_specs=(pl.BlockSpec((1, C), lambda i: (0, 0)),
                       pl.BlockSpec((1, C), lambda i: (0, 0))),
        ),
        compiler_params=pltpu.CompilerParams(
            dimension_semantics=("arbitrary",),
            vmem_limit_bytes=VMEM_LIMIT,
        ),
    )(y)


def bn_lrelu_apply(y, ysum, ysq, gamma, beta, *, tm=256, tn=256):
    M, C = y.shape
    tm, tn = min(tm, M), min(tn, C)
    assert M % tm == 0 and C % tn == 0
    kernel = functools.partial(_bn_apply_kernel, m_total=float(M))
    return pl.pallas_call(
        kernel,
        out_shape=jax.ShapeDtypeStruct((M, C), jnp.float32),
        grid_spec=pltpu.PrefetchScalarGridSpec(
            num_scalar_prefetch=0,
            grid=(M // tm, C // tn),
            in_specs=[
                pl.BlockSpec((tm, tn), lambda i, j: (i, j)),
                pl.BlockSpec((1, tn), lambda i, j: (0, j)),
                pl.BlockSpec((1, tn), lambda i, j: (0, j)),
                pl.BlockSpec((1, tn), lambda i, j: (0, j)),
                pl.BlockSpec((1, tn), lambda i, j: (0, j)),
            ],
            out_specs=pl.BlockSpec((tm, tn), lambda i, j: (i, j)),
        ),
        compiler_params=pltpu.CompilerParams(
            dimension_semantics=("parallel", "parallel"),
            vmem_limit_bytes=VMEM_LIMIT,
        ),
    )(y, ysum, ysq, gamma, beta)


def final_conv_heads(patches, w_mat, bias, w_heads, b_heads, *, tk=1024):
    M, K = patches.shape
    Cout = w_mat.shape[1]
    tk = min(tk, K)
    assert K % tk == 0
    cost = pl.CostEstimate(flops=2 * M * K * Cout + 4 * M * Cout,
                           transcendentals=2 * M,
                           bytes_accessed=4 * (M * K + K * Cout + 2 * M))
    return pl.pallas_call(
        _final_heads_kernel,
        out_shape=jax.ShapeDtypeStruct((M, 2), jnp.float32),
        grid_spec=pltpu.PrefetchScalarGridSpec(
            num_scalar_prefetch=0,
            grid=(K // tk,),
            in_specs=[
                pl.BlockSpec((M, tk), lambda k: (0, k)),
                pl.BlockSpec((tk, Cout), lambda k: (k, 0)),
                pl.BlockSpec((1, Cout), lambda k: (0, 0)),
                pl.BlockSpec((Cout, 2), lambda k: (0, 0)),
                pl.BlockSpec((1, 2), lambda k: (0, 0)),
            ],
            out_specs=pl.BlockSpec((M, 2), lambda k: (0, 0)),
            scratch_shapes=[pltpu.VMEM((M, Cout), jnp.float32)],
        ),
        compiler_params=pltpu.CompilerParams(
            dimension_semantics=("arbitrary",),
            vmem_limit_bytes=VMEM_LIMIT,
        ),
        cost_estimate=cost,
    )(patches, w_mat, bias, w_heads, b_heads)


# ----------------------------------------------------------------------------
# Glue: im2col, parameter setup, forward
# ----------------------------------------------------------------------------
def im2col_nhwc(x, k, stride, pad):
    """x: [N, H, W, C] -> patches [N*Ho*Wo, k*k*C] ordered (kh, kw, cin)."""
    N, H, W, C = x.shape
    xp = jnp.pad(x, ((0, 0), (pad, pad), (pad, pad), (0, 0)))
    Ho = (H + 2 * pad - k) // stride + 1
    Wo = (W + 2 * pad - k) // stride + 1
    cols = []
    for kh in range(k):
        for kw in range(k):
            patch = jax.lax.slice(
                xp,
                (0, kh, kw, 0),
                (N, kh + (Ho - 1) * stride + 1, kw + (Wo - 1) * stride + 1, C),
                (1, stride, stride, 1),
            )
            cols.append(patch)
    patches = jnp.concatenate(cols, axis=-1)
    return patches.reshape(N * Ho * Wo, k * k * C), (N, Ho, Wo)


def init_params(key, figsize=FIG):
    ks = jax.random.split(key, 20)
    f = figsize

    def conv(kw, cout, cin):
        return jax.random.normal(kw, (cout, cin, 4, 4), jnp.float32) * 0.02

    def vec(kv, n, scale=0.02, offset=0.0):
        return jax.random.normal(kv, (n,), jnp.float32) * scale + offset

    params = {
        # (weight [Cout,Cin,kh,kw], bias, gamma, beta, stride, pad, use_bn, use_act)
        "layers": [
            (conv(ks[0], f, 3), vec(ks[1], f), jnp.ones((f,)), jnp.zeros((f,)), 2, 1, False, True),
            (conv(ks[2], 2 * f, f), vec(ks[3], 2 * f), vec(ks[4], 2 * f, 0.02, 1.0), vec(ks[5], 2 * f), 2, 1, True, True),
            (conv(ks[6], 4 * f, 2 * f), vec(ks[7], 4 * f), vec(ks[8], 4 * f, 0.02, 1.0), vec(ks[9], 4 * f), 2, 1, True, True),
            (conv(ks[10], 8 * f, 4 * f), vec(ks[11], 8 * f), vec(ks[12], 8 * f, 0.02, 1.0), vec(ks[13], 8 * f), 2, 1, True, True),
            (conv(ks[14], f, 8 * f), vec(ks[15], f), jnp.ones((f,)), jnp.zeros((f,)), 1, 0, False, False),
        ],
        "fc_dis_w": jax.random.normal(ks[16], (1, f), jnp.float32) * 0.02,
        "fc_dis_b": vec(ks[17], 1),
        "fc_aux_w": jax.random.normal(ks[18], (1, f), jnp.float32) * 0.02,
        "fc_aux_b": vec(ks[19], 1),
    }
    return params


def _weight_to_matmul(w):
    # PyTorch weight [Cout,Cin,kh,kw] -> [kh*kw*Cin, Cout] to match patch order.
    cout, cin, k, _ = w.shape
    return jnp.transpose(w, (2, 3, 1, 0)).reshape(k * k * cin, cout)


def discriminator_forward(params, x_nchw):
    x = jnp.transpose(x_nchw, (0, 2, 3, 1)).astype(jnp.float32)  # NCHW -> NHWC
    layers = params["layers"]

    # Layers 1-4: conv (+ bias / BN) + LeakyReLU.
    for (w, b, gamma, beta, stride, pad, use_bn, use_act) in layers[:-1]:
        cout, cin, k, _ = w.shape
        patches, (N, Ho, Wo) = im2col_nhwc(x, k, stride, pad)
        w_mat = _weight_to_matmul(w)
        # Bias is dropped under BN (exactly cancelled by the batch-mean subtraction);
        # LeakyReLU is fused into the matmul epilogue when there is no BN.
        y = conv_matmul(patches, w_mat, b.reshape(1, cout),
                        add_bias=not use_bn, fuse_act=(use_act and not use_bn))
        if use_bn:
            ysum, ysq = bn_stats(y)
            y = bn_lrelu_apply(y, ysum, ysq,
                               gamma.reshape(1, cout), beta.reshape(1, cout))
        x = y.reshape(N, Ho, Wo, cout)

    # Final conv (512->64, spatial 1x1) fused with fc_dis/fc_aux + sigmoid.
    w, b, gamma, beta, stride, pad, use_bn, use_act = layers[-1]
    cout, cin, k, _ = w.shape
    patches, (N, Ho, Wo) = im2col_nhwc(x, k, stride, pad)  # Ho = Wo = 1 -> flat rows = N
    w_mat = _weight_to_matmul(w)
    w_heads = jnp.concatenate([params["fc_dis_w"], params["fc_aux_w"]], axis=0).T  # [64, 2]
    b_heads = jnp.concatenate([params["fc_dis_b"], params["fc_aux_b"]], axis=0).reshape(1, 2)
    out = final_conv_heads(patches, w_mat, b.reshape(1, cout), w_heads, b_heads)

    realfake = out[:, 0:1]
    classes = out[:, 1:2]
    # TODO(synk): self.softmax is defined in __init__ but never used in forward; omitted.
    return realfake, classes


if __name__ == "__main__":
    key = jax.random.PRNGKey(0)
    pkey, xkey = jax.random.split(key)
    params = init_params(pkey)

    # batch=2, 3-channel 64x64 images (64x64 is implied by the conv stack -> 1x1 output)
    x = jax.random.normal(xkey, (2, 3, 64, 64), jnp.float32)

    fwd = jax.jit(functools.partial(discriminator_forward, params))
    realfake, classes = fwd(x)
    jax.block_until_ready((realfake, classes))

    assert realfake.shape == (2, 1) and classes.shape == (2, 1)
    assert bool(jnp.all(jnp.isfinite(realfake))) and bool(jnp.all(jnp.isfinite(classes)))
    print("KERNEL_OK")
</pallas_src>

<mosaic_0001>
module attributes {stable_mosaic.version = 11 : i64} {
  func.func @_matmul_kernel(%arg0: i32, %arg1: i32, %arg2: i32, %arg3: memref<256x48xf32, #tpu.memory_space<vmem>>, %arg4: memref<48x64xf32, #tpu.memory_space<vmem>>, %arg5: memref<1x64xf32, #tpu.memory_space<vmem>>, %arg6: memref<256x64xf32, #tpu.memory_space<vmem>>, %arg7: memref<256x64xf32, #tpu.memory_space<vmem>>) attributes {dimension_semantics = [#tpu.dimension_semantics<parallel>, #tpu.dimension_semantics<parallel>, #tpu.dimension_semantics<arbitrary>], iteration_bounds = array<i64: 8, 1, 1>, scalar_prefetch = 0 : i64, scratch_operands = 1 : i64, tpu.core_type = #tpu.core_type<tc>, window_params = [{transform_indices = @transform_0, window_bounds = array<i64: 256, 48>}, {transform_indices = @transform_1, window_bounds = array<i64: 48, 64>}, {transform_indices = @transform_2, window_bounds = array<i64: 1, 64>}, {transform_indices = @transform_3, window_bounds = array<i64: 256, 64>}]} {
    %c0_i32 = arith.constant 0 : i32
    %0 = arith.cmpi eq, %arg2, %c0_i32 : i32
    %1 = arith.extui %0 : i1 to i32
    %c0_i32_0 = arith.constant 0 : i32
    %2 = arith.cmpi ne, %1, %c0_i32_0 : i32
    scf.if %2 {
      %cst_10 = arith.constant 0.000000e+00 : f32
      %12 = vector.broadcast %cst_10 : f32 to vector<256x64xf32>
      %c0_11 = arith.constant 0 : index
      %c0_12 = arith.constant 0 : index
      %13 = vector.load %arg7[%c0_11, %c0_12] : memref<256x64xf32, #tpu.memory_space<vmem>>, vector<256x64xf32>
      tpu.vector_store %arg7[%c0_11, %c0_12], %12 {strides = array<i32>} : memref<256x64xf32, #tpu.memory_space<vmem>>, vector<256x64xf32>,
    } else {
    }
    %c0 = arith.constant 0 : index
    %c0_1 = arith.constant 0 : index
    %3 = vector.load %arg7[%c0, %c0_1] : memref<256x64xf32, #tpu.memory_space<vmem>>, vector<256x64xf32>
    %c0_2 = arith.constant 0 : index
    %c0_3 = arith.constant 0 : index
    %4 = vector.load %arg3[%c0_2, %c0_3] : memref<256x48xf32, #tpu.memory_space<vmem>>, vector<256x48xf32>
    %c0_4 = arith.constant 0 : index
    %c0_5 = arith.constant 0 : index
    %5 = vector.load %arg4[%c0_4, %c0_5] : memref<48x64xf32, #tpu.memory_space<vmem>>, vector<48x64xf32>
    %cst = arith.constant dense<0.000000e+00> : vector<256x64xf32>
    %6 = tpu.matmul %4, %5, %cst {dimension_numbers = #tpu.dot_dimension_numbers<[1], [0], [0], [1], [0, 0, 1, 1], [], []>} : vector<256x48xf32>, vector<48x64xf32>, vector<256x64xf32> -> vector<256x64xf32>
    %7 = arith.addf %3, %6 : vector<256x64xf32>
    %c0_6 = arith.constant 0 : index
    %c0_7 = arith.constant 0 : index
    %8 = vector.load %arg7[%c0_6, %c0_7] : memref<256x64xf32, #tpu.memory_space<vmem>>, vector<256x64xf32>
    tpu.vector_store %arg7[%c0_6, %c0_7], %7 {strides = array<i32>} : memref<256x64xf32, #tpu.memory_space<vmem>>, vector<256x64xf32>,
    %c0_i32_8 = arith.constant 0 : i32
    %9 = arith.cmpi eq, %arg2, %c0_i32_8 : i32
    %10 = arith.extui %9 : i1 to i32
    %c0_i32_9 = arith.constant 0 : i32
    %11 = arith.cmpi ne, %10, %c0_i32_9 : i32
    scf.if %11 {
      %c0_10 = arith.constant 0 : index
      %c0_11 = arith.constant 0 : index
      %12 = vector.load %arg7[%c0_10, %c0_11] : memref<256x64xf32, #tpu.memory_space<vmem>>, vector<256x64xf32>
      %c0_12 = arith.constant 0 : index
      %c0_13 = arith.constant 0 : index
      %13 = vector.load %arg5[%c0_12, %c0_13] : memref<1x64xf32, #tpu.memory_space<vmem>>, vector<1x64xf32>
      %14 = vector.broadcast %13 : vector<1x64xf32> to vector<256x64xf32>
      %15 = arith.addf %12, %14 : vector<256x64xf32>
      %cst_14 = arith.constant 2.000000e-01 : f32
      %16 = vector.broadcast %cst_14 : f32 to vector<256x64xf32>
      %17 = arith.mulf %16, %15 : vector<256x64xf32>
      %18 = arith.maximumf %15, %17 : vector<256x64xf32>
      %c0_15 = arith.constant 0 : index
      %c0_16 = arith.constant 0 : index
      %19 = vector.load %arg6[%c0_15, %c0_16] : memref<256x64xf32, #tpu.memory_space<vmem>>, vector<256x64xf32>
      tpu.vector_store %arg6[%c0_15, %c0_16], %18 {strides = array<i32>} : memref<256x64xf32, #tpu.memory_space<vmem>>, vector<256x64xf32>,
    } else {
    }
    return
  }
  func.func @transform_0(%arg0: i32, %arg1: i32, %arg2: i32) -> (i32, i32) {
    %c0_i32 = arith.constant 0 : i32
    return %arg0, %arg2 : i32, i32
  }
  func.func @transform_1(%arg0: i32, %arg1: i32, %arg2: i32) -> (i32, i32) {
    %c0_i32 = arith.constant 0 : i32
    return %arg2, %arg1 : i32, i32
  }
  func.func @transform_2(%arg0: i32, %arg1: i32, %arg2: i32) -> (i32, i32) {
    %c0_i32 = arith.constant 0 : i32
    %c0_i32_0 = arith.constant 0 : i32
    return %c0_i32, %arg1 : i32, i32
  }
  func.func @transform_3(%arg0: i32, %arg1: i32, %arg2: i32) -> (i32, i32) {
    %c0_i32 = arith.constant 0 : i32
    return %arg0, %arg1 : i32, i32
  }
}

module attributes {stable_mosaic.version = 11 : i64} {
  func.func @_matmul_kernel(%arg0: i32, %arg1: i32, %arg2: i32, %arg3: memref<256x1024xf32, #tpu.memory_space<vmem>>, %arg4: memref<1024x128xf32, #tpu.memory_space<vmem>>, %arg5: memref<1x128xf32, #tpu.memory_space<vmem>>, %arg6: memref<256x128xf32, #tpu.memory_space<vmem>>, %arg7: memref<256x128xf32, #tpu.memory_space<vmem>>) attributes {dimension_semantics = [#tpu.dimension_semantics<parallel>, #tpu.dimension_semantics<parallel>, #tpu.dimension_semantics<arbitrary>], iteration_bounds = array<i64: 2, 1, 1>, scalar_prefetch = 0 : i64, scratch_operands = 1 : i64, tpu.core_type = #tpu.core_type<tc>, window_params = [{transform_indices = @transform_0, window_bounds = array<i64: 256, 1024>}, {transform_indices = @transform_1, window_bounds = array<i64: 1024, 128>}, {transform_indices = @transform_2, window_bounds = array<i64: 1, 128>}, {transform_indices = @transform_3, window_bounds = array<i64: 256, 128>}]} {
    %c0_i32 = arith.constant 0 : i32
    %0 = arith.cmpi eq, %arg2, %c0_i32 : i32
    %1 = arith.extui %0 : i1 to i32
    %c0_i32_0 = arith.constant 0 : i32
    %2 = arith.cmpi ne, %1, %c0_i32_0 : i32
    scf.if %2 {
      %cst_10 = arith.constant 0.000000e+00 : f32
      %12 = vector.broadcast %cst_10 : f32 to vector<256x128xf32>
      %c0_11 = arith.constant 0 : index
      %c0_12 = arith.constant 0 : index
      %13 = vector.load %arg7[%c0_11, %c0_12] : memref<256x128xf32, #tpu.memory_space<vmem>>, vector<256x128xf32>
      tpu.vector_store %arg7[%c0_11, %c0_12], %12 {strides = array<i32>} : memref<256x128xf32, #tpu.memory_space<vmem>>, vector<256x128xf32>,
    } else {
    }
    %c0 = arith.constant 0 : index
    %c0_1 = arith.constant 0 : index
    %3 = vector.load %arg7[%c0, %c0_1] : memref<256x128xf32, #tpu.memory_space<vmem>>, vector<256x128xf32>
    %c0_2 = arith.constant 0 : index
    %c0_3 = arith.constant 0 : index
    %4 = vector.load %arg3[%c0_2, %c0_3] : memref<256x1024xf32, #tpu.memory_space<vmem>>, vector<256x1024xf32>
    %c0_4 = arith.constant 0 : index
    %c0_5 = arith.constant 0 : index
    %5 = vector.load %arg4[%c0_4, %c0_5] : memref<1024x128xf32, #tpu.memory_space<vmem>>, vector<1024x128xf32>
    %cst = arith.constant dense<0.000000e+00> : vector<256x128xf32>
    %6 = tpu.matmul %4, %5, %cst {dimension_numbers = #tpu.dot_dimension_numbers<[1], [0], [0], [1], [0, 0, 1, 1], [], []>} : vector<256x1024xf32>, vector<1024x128xf32>, vector<256x128xf32> -> vector<256x128xf32>
    %7 = arith.addf %3, %6 : vector<256x128xf32>
    %c0_6 = arith.constant 0 : index
    %c0_7 = arith.constant 0 : index
    %8 = vector.load %arg7[%c0_6, %c0_7] : memref<256x128xf32, #tpu.memory_space<vmem>>, vector<256x128xf32>
    tpu.vector_store %arg7[%c0_6, %c0_7], %7 {strides = array<i32>} : memref<256x128xf32, #tpu.memory_space<vmem>>, vector<256x128xf32>,
    %c0_i32_8 = arith.constant 0 : i32
    %9 = arith.cmpi eq, %arg2, %c0_i32_8 : i32
    %10 = arith.extui %9 : i1 to i32
    %c0_i32_9 = arith.constant 0 : i32
    %11 = arith.cmpi ne, %10, %c0_i32_9 : i32
    scf.if %11 {
      %c0_10 = arith.constant 0 : index
      %c0_11 = arith.constant 0 : index
      %12 = vector.load %arg7[%c0_10, %c0_11] : memref<256x128xf32, #tpu.memory_space<vmem>>, vector<256x128xf32>
      %c0_12 = arith.constant 0 : index
      %c0_13 = arith.constant 0 : index
      %13 = vector.load %arg6[%c0_12, %c0_13] : memref<256x128xf32, #tpu.memory_space<vmem>>, vector<256x128xf32>
      tpu.vector_store %arg6[%c0_12, %c0_13], %12 {strides = array<i32>} : memref<256x128xf32, #tpu.memory_space<vmem>>, vector<256x128xf32>,
    } else {
    }
    return
  }
  func.func @transform_0(%arg0: i32, %arg1: i32, %arg2: i32) -> (i32, i32) {
    %c0_i32 = arith.constant 0 : i32
    return %arg0, %arg2 : i32, i32
  }
  func.func @transform_1(%arg0: i32, %arg1: i32, %arg2: i32) -> (i32, i32) {
    %c0_i32 = arith.constant 0 : i32
    return %arg2, %arg1 : i32, i32
  }
  func.func @transform_2(%arg0: i32, %arg1: i32, %arg2: i32) -> (i32, i32) {
    %c0_i32 = arith.constant 0 : i32
    %c0_i32_0 = arith.constant 0 : i32
    return %c0_i32, %arg1 : i32, i32
  }
  func.func @transform_3(%arg0: i32, %arg1: i32, %arg2: i32) -> (i32, i32) {
    %c0_i32 = arith.constant 0 : i32
    return %arg0, %arg1 : i32, i32
  }
}

module attributes {stable_mosaic.version = 11 : i64} {
  func.func @_bn_stats_kernel(%arg0: i32, %arg1: memref<256x128xf32, #tpu.memory_space<vmem>>, %arg2: memref<1x128xf32, #tpu.memory_space<vmem>>, %arg3: memref<1x128xf32, #tpu.memory_space<vmem>>) attributes {dimension_semantics = [#tpu.dimension_semantics<arbitrary>], iteration_bounds = array<i64: 2>, scalar_prefetch = 0 : i64, scratch_operands = 0 : i64, tpu.core_type = #tpu.core_type<tc>, window_params = [{transform_indices = @transform_0, window_bounds = array<i64: 256, 128>}, {pipeline_mode = #tpu.pipeline_mode<synchronous>, transform_indices = @transform_1, window_bounds = array<i64: 1, 128>}, {pipeline_mode = #tpu.pipeline_mode<synchronous>, transform_indices = @transform_2, window_bounds = array<i64: 1, 128>}]} {
    %c0_i32 = arith.constant 0 : i32
    %0 = arith.cmpi eq, %arg0, %c0_i32 : i32
    %1 = arith.extui %0 : i1 to i32
    %c0_i32_0 = arith.constant 0 : i32
    %2 = arith.cmpi ne, %1, %c0_i32_0 : i32
    scf.if %2 {
      %cst_11 = arith.constant 0.000000e+00 : f32
      %15 = vector.broadcast %cst_11 : f32 to vector<1x128xf32>
      %c0_12 = arith.constant 0 : index
      %c0_13 = arith.constant 0 : index
      %16 = vector.load %arg2[%c0_12, %c0_13] : memref<1x128xf32, #tpu.memory_space<vmem>>, vector<1x128xf32>
      tpu.vector_store %arg2[%c0_12, %c0_13], %15 {strides = array<i32>} : memref<1x128xf32, #tpu.memory_space<vmem>>, vector<1x128xf32>,
      %cst_14 = arith.constant 0.000000e+00 : f32
      %17 = vector.broadcast %cst_14 : f32 to vector<1x128xf32>
      %c0_15 = arith.constant 0 : index
      %c0_16 = arith.constant 0 : index
      %18 = vector.load %arg3[%c0_15, %c0_16] : memref<1x128xf32, #tpu.memory_space<vmem>>, vector<1x128xf32>
      tpu.vector_store %arg3[%c0_15, %c0_16], %17 {strides = array<i32>} : memref<1x128xf32, #tpu.memory_space<vmem>>, vector<1x128xf32>,
    } else {
    }
    %c0 = arith.constant 0 : index
    %c0_1 = arith.constant 0 : index
    %3 = vector.load %arg1[%c0, %c0_1] : memref<256x128xf32, #tpu.memory_space<vmem>>, vector<256x128xf32>
    %c0_2 = arith.constant 0 : index
    %c0_3 = arith.constant 0 : index
    %4 = vector.load %arg2[%c0_2, %c0_3] : memref<1x128xf32, #tpu.memory_space<vmem>>, vector<1x128xf32>
    %cst = arith.constant dense<0.000000e+00> : vector<128xf32>
    %5 = vector.multi_reduction <add>, %3, %cst [0] : vector<256x128xf32> to vector<128xf32>
    %6 = vector.shape_cast %5 : vector<128xf32> to vector<1x128xf32>
    %7 = arith.addf %4, %6 : vector<1x128xf32>
    %c0_4 = arith.constant 0 : index
    %c0_5 = arith.constant 0 : index
    %8 = vector.load %arg2[%c0_4, %c0_5] : memref<1x128xf32, #tpu.memory_space<vmem>>, vector<1x128xf32>
    tpu.vector_store %arg2[%c0_4, %c0_5], %7 {strides = array<i32>} : memref<1x128xf32, #tpu.memory_space<vmem>>, vector<1x128xf32>,
    %c0_6 = arith.constant 0 : index
    %c0_7 = arith.constant 0 : index
    %9 = vector.load %arg3[%c0_6, %c0_7] : memref<1x128xf32, #tpu.memory_space<vmem>>, vector<1x128xf32>
    %10 = arith.mulf %3, %3 : vector<256x128xf32>
    %cst_8 = arith.constant dense<0.000000e+00> : vector<128xf32>
    %11 = vector.multi_reduction <add>, %10, %cst_8 [0] : vector<256x128xf32> to vector<128xf32>
    %12 = vector.shape_cast %11 : vector<128xf32> to vector<1x128xf32>
    %13 = arith.addf %9, %12 : vector<1x128xf32>
    %c0_9 = arith.constant 0 : index
    %c0_10 = arith.constant 0 : index
    %14 = vector.load %arg3[%c0_9, %c0_10] : memref<1x128xf32, #tpu.memory_space<vmem>>, vector<1x128xf32>
    tpu.vector_store %arg3[%c0_9, %c0_10], %13 {strides = array<i32>} : memref<1x128xf32, #tpu.memory_space<vmem>>, vector<1x128xf32>,
    return
  }
  func.func @transform_0(%arg0: i32) -> (i32, i32) {
    %c0_i32 = arith.constant 0 : i32
    %c0_i32_0 = arith.constant 0 : i32
    return %arg0, %c0_i32 : i32, i32
  }
  func.func @transform_1(%arg0: i32) -> (i32, i32) {
    %c0_i32 = arith.constant 0 : i32
    %c0_i32_0 = arith.constant 0 : i32
    %c0_i32_1 = arith.constant 0 : i32
    return %c0_i32, %c0_i32_0 : i32, i32
  }
  func.func @transform_2(%arg0: i32) -> (i32, i32) {
    %c0_i32 = arith.constant 0 : i32
    %c0_i32_0 = arith.constant 0 : i32
    %c0_i32_1 = arith.constant 0 : i32
    return %c0_i32, %c0_i32_0 : i32, i32
  }
}

module attributes {stable_mosaic.version = 11 : i64} {
  func.func @_bn_apply_kernel(%arg0: i32, %arg1: i32, %arg2: memref<256x128xf32, #tpu.memory_space<vmem>>, %arg3: memref<1x128xf32, #tpu.memory_space<vmem>>, %arg4: memref<1x128xf32, #tpu.memory_space<vmem>>, %arg5: memref<1x128xf32, #tpu.memory_space<vmem>>, %arg6: memref<1x128xf32, #tpu.memory_space<vmem>>, %arg7: memref<256x128xf32, #tpu.memory_space<vmem>>) attributes {dimension_semantics = [#tpu.dimension_semantics<parallel>, #tpu.dimension_semantics<parallel>], iteration_bounds = array<i64: 2, 1>, scalar_prefetch = 0 : i64, scratch_operands = 0 : i64, tpu.core_type = #tpu.core_type<tc>, window_params = [{transform_indices = @transform_0, window_bounds = array<i64: 256, 128>}, {transform_indices = @transform_1, window_bounds = array<i64: 1, 128>}, {transform_indices = @transform_2, window_bounds = array<i64: 1, 128>}, {transform_indices = @transform_3, window_bounds = array<i64: 1, 128>}, {transform_indices = @transform_4, window_bounds = array<i64: 1, 128>}, {transform_indices = @transform_5, window_bounds = array<i64: 256, 128>}]} {
    %c0 = arith.constant 0 : index
    %c0_0 = arith.constant 0 : index
    %0 = vector.load %arg3[%c0, %c0_0] : memref<1x128xf32, #tpu.memory_space<vmem>>, vector<1x128xf32>
    %cst = arith.constant 0.001953125 : f32
    %1 = vector.broadcast %cst : f32 to vector<1x128xf32>
    %2 = arith.mulf %0, %1 : vector<1x128xf32>
    %c0_1 = arith.constant 0 : index
    %c0_2 = arith.constant 0 : index
    %3 = vector.load %arg4[%c0_1, %c0_2] : memref<1x128xf32, #tpu.memory_space<vmem>>, vector<1x128xf32>
    %cst_3 = arith.constant 0.001953125 : f32
    %4 = vector.broadcast %cst_3 : f32 to vector<1x128xf32>
    %5 = arith.mulf %3, %4 : vector<1x128xf32>
    %6 = arith.mulf %2, %2 : vector<1x128xf32>
    %7 = arith.subf %5, %6 : vector<1x128xf32>
    %c0_4 = arith.constant 0 : index
    %c0_5 = arith.constant 0 : index
    %8 = vector.load %arg5[%c0_4, %c0_5] : memref<1x128xf32, #tpu.memory_space<vmem>>, vector<1x128xf32>
    %cst_6 = arith.constant 9.99999974E-6 : f32
    %9 = vector.broadcast %cst_6 : f32 to vector<1x128xf32>
    %10 = arith.addf %7, %9 : vector<1x128xf32>
    %11 = math.rsqrt %10 : vector<1x128xf32>
    %12 = arith.mulf %8, %11 : vector<1x128xf32>
    %c0_7 = arith.constant 0 : index
    %c0_8 = arith.constant 0 : index
    %13 = vector.load %arg6[%c0_7, %c0_8] : memref<1x128xf32, #tpu.memory_space<vmem>>, vector<1x128xf32>
    %14 = arith.mulf %2, %12 : vector<1x128xf32>
    %15 = arith.subf %13, %14 : vector<1x128xf32>
    %c0_9 = arith.constant 0 : index
    %c0_10 = arith.constant 0 : index
    %16 = vector.load %arg2[%c0_9, %c0_10] : memref<256x128xf32, #tpu.memory_space<vmem>>, vector<256x128xf32>
    %17 = vector.broadcast %12 : vector<1x128xf32> to vector<256x128xf32>
    %18 = arith.mulf %16, %17 : vector<256x128xf32>
    %19 = vector.broadcast %15 : vector<1x128xf32> to vector<256x128xf32>
    %20 = arith.addf %18, %19 : vector<256x128xf32>
    %cst_11 = arith.constant 2.000000e-01 : f32
    %21 = vector.broadcast %cst_11 : f32 to vector<256x128xf32>
    %22 = arith.mulf %21, %20 : vector<256x128xf32>
    %23 = arith.maximumf %20, %22 : vector<256x128xf32>
    %c0_12 = arith.constant 0 : index
    %c0_13 = arith.constant 0 : index
    %24 = vector.load %arg7[%c0_12, %c0_13] : memref<256x128xf32, #tpu.memory_space<vmem>>, vector<256x128xf32>
    tpu.vector_store %arg7[%c0_12, %c0_13], %23 {strides = array<i32>} : memref<256x128xf32, #tpu.memory_space<vmem>>, vector<256x128xf32>,
    return
  }
  func.func @transform_0(%arg0: i32, %arg1: i32) -> (i32, i32) {
    %c0_i32 = arith.constant 0 : i32
    return %arg0, %arg1 : i32, i32
  }
  func.func @transform_1(%arg0: i32, %arg1: i32) -> (i32, i32) {
    %c0_i32 = arith.constant 0 : i32
    %c0_i32_0 = arith.constant 0 : i32
    return %c0_i32, %arg1 : i32, i32
  }
  func.func @transform_2(%arg0: i32, %arg1: i32) -> (i32, i32) {
    %c0_i32 = arith.constant 0 : i32
    %c0_i32_0 = arith.constant 0 : i32
    return %c0_i32, %arg1 : i32, i32
  }
  func.func @transform_3(%arg0: i32, %arg1: i32) -> (i32, i32) {
    %c0_i32 = arith.constant 0 : i32
    %c0_i32_0 = arith.constant 0 : i32
    return %c0_i32, %arg1 : i32, i32
  }
  func.func @transform_4(%arg0: i32, %arg1: i32) -> (i32, i32) {
    %c0_i32 = arith.constant 0 : i32
    %c0_i32_0 = arith.constant 0 : i32
    return %c0_i32, %arg1 : i32, i32
  }
  func.func @transform_5(%arg0: i32, %arg1: i32) -> (i32, i32) {
    %c0_i32 = arith.constant 0 : i32
    return %arg0, %arg1 : i32, i32
  }
}

module attributes {stable_mosaic.version = 11 : i64} {
  func.func @_matmul_kernel(%arg0: i32, %arg1: i32, %arg2: i32, %arg3: memref<128x1024xf32, #tpu.memory_space<vmem>>, %arg4: memref<1024x256xf32, #tpu.memory_space<vmem>>, %arg5: memref<1x256xf32, #tpu.memory_space<vmem>>, %arg6: memref<128x256xf32, #tpu.memory_space<vmem>>, %arg7: memref<128x256xf32, #tpu.memory_space<vmem>>) attributes {dimension_semantics = [#tpu.dimension_semantics<parallel>, #tpu.dimension_semantics<parallel>, #tpu.dimension_semantics<arbitrary>], iteration_bounds = array<i64: 1, 1, 2>, scalar_prefetch = 0 : i64, scratch_operands = 1 : i64, tpu.core_type = #tpu.core_type<tc>, window_params = [{transform_indices = @transform_0, window_bounds = array<i64: 128, 1024>}, {transform_indices = @transform_1, window_bounds = array<i64: 1024, 256>}, {transform_indices = @transform_2, window_bounds = array<i64: 1, 256>}, {transform_indices = @transform_3, window_bounds = array<i64: 128, 256>}]} {
    %c0_i32 = arith.constant 0 : i32
    %0 = arith.cmpi eq, %arg2, %c0_i32 : i32
    %1 = arith.extui %0 : i1 to i32
    %c0_i32_0 = arith.constant 0 : i32
    %2 = arith.cmpi ne, %1, %c0_i32_0 : i32
    scf.if %2 {
      %cst_9 = arith.constant 0.000000e+00 : f32
      %12 = vector.broadcast %cst_9 : f32 to vector<128x256xf32>
      %c0_10 = arith.constant 0 : index
      %c0_11 = arith.constant 0 : index
      %13 = vector.load %arg7[%c0_10, %c0_11] : memref<128x256xf32, #tpu.memory_space<vmem>>, vector<128x256xf32>
      tpu.vector_store %arg7[%c0_10, %c0_11], %12 {strides = array<i32>} : memref<128x256xf32, #tpu.memory_space<vmem>>, vector<128x256xf32>,
    } else {
    }
    %c0 = arith.constant 0 : index
    %c0_1 = arith.constant 0 : index
    %3 = vector.load %arg7[%c0, %c0_1] : memref<128x256xf32, #tpu.memory_space<vmem>>, vector<128x256xf32>
    %c0_2 = arith.constant 0 : index
    %c0_3 = arith.constant 0 : index
    %4 = vector.load %arg3[%c0_2, %c0_3] : memref<128x1024xf32, #tpu.memory_space<vmem>>, vector<128x1024xf32>
    %c0_4 = arith.constant 0 : index
    %c0_5 = arith.constant 0 : index
    %5 = vector.load %arg4[%c0_4, %c0_5] : memref<1024x256xf32, #tpu.memory_space<vmem>>, vector<1024x256xf32>
    %cst = arith.constant dense<0.000000e+00> : vector<128x256xf32>
    %6 = tpu.matmul %4, %5, %cst {dimension_numbers = #tpu.dot_dimension_numbers<[1], [0], [0], [1], [0, 0, 1, 1], [], []>} : vector<128x1024xf32>, vector<1024x256xf32>, vector<128x256xf32> -> vector<128x256xf32>
    %7 = arith.addf %3, %6 : vector<128x256xf32>
    %c0_6 = arith.constant 0 : index
    %c0_7 = arith.constant 0 : index
    %8 = vector.load %arg7[%c0_6, %c0_7] : memref<128x256xf32, #tpu.memory_space<vmem>>, vector<128x256xf32>
    tpu.vector_store %arg7[%c0_6, %c0_7], %7 {strides = array<i32>} : memref<128x256xf32, #tpu.memory_space<vmem>>, vector<128x256xf32>,
    %c1_i32 = arith.constant 1 : i32
    %9 = arith.cmpi eq, %arg2, %c1_i32 : i32
    %10 = arith.extui %9 : i1 to i32
    %c0_i32_8 = arith.constant 0 : i32
    %11 = arith.cmpi ne, %10, %c0_i32_8 : i32
    scf.if %11 {
      %c0_9 = arith.constant 0 : index
      %c0_10 = arith.constant 0 : index
      %12 = vector.load %arg7[%c0_9, %c0_10] : memref<128x256xf32, #tpu.memory_space<vmem>>, vector<128x256xf32>
      %c0_11 = arith.constant 0 : index
      %c0_12 = arith.constant 0 : index
      %13 = vector.load %arg6[%c0_11, %c0_12] : memref<128x256xf32, #tpu.memory_space<vmem>>, vector<128x256xf32>
      tpu.vector_store %arg6[%c0_11, %c0_12], %12 {strides = array<i32>} : memref<128x256xf32, #tpu.memory_space<vmem>>, vector<128x256xf32>,
    } else {
    }
    return
  }
  func.func @transform_0(%arg0: i32, %arg1: i32, %arg2: i32) -> (i32, i32) {
    %c0_i32 = arith.constant 0 : i32
    return %arg0, %arg2 : i32, i32
  }
  func.func @transform_1(%arg0: i32, %arg1: i32, %arg2: i32) -> (i32, i32) {
    %c0_i32 = arith.constant 0 : i32
    return %arg2, %arg1 : i32, i32
  }
  func.func @transform_2(%arg0: i32, %arg1: i32, %arg2: i32) -> (i32, i32) {
    %c0_i32 = arith.constant 0 : i32
    %c0_i32_0 = arith.constant 0 : i32
    return %c0_i32, %arg1 : i32, i32
  }
  func.func @transform_3(%arg0: i32, %arg1: i32, %arg2: i32) -> (i32, i32) {
    %c0_i32 = arith.constant 0 : i32
    return %arg0, %arg1 : i32, i32
  }
}

module attributes {stable_mosaic.version = 11 : i64} {
  func.func @_bn_apply_kernel(%arg0: i32, %arg1: i32, %arg2: memref<128x256xf32, #tpu.memory_space<vmem>>, %arg3: memref<1x256xf32, #tpu.memory_space<vmem>>, %arg4: memref<1x256xf32, #tpu.memory_space<vmem>>, %arg5: memref<1x256xf32, #tpu.memory_space<vmem>>, %arg6: memref<1x256xf32, #tpu.memory_space<vmem>>, %arg7: memref<128x256xf32, #tpu.memory_space<vmem>>) attributes {dimension_semantics = [#tpu.dimension_semantics<parallel>, #tpu.dimension_semantics<parallel>], iteration_bounds = array<i64: 1, 1>, scalar_prefetch = 0 : i64, scratch_operands = 0 : i64, tpu.core_type = #tpu.core_type<tc>, window_params = [{transform_indices = @transform_0, window_bounds = array<i64: 128, 256>}, {transform_indices = @transform_1, window_bounds = array<i64: 1, 256>}, {transform_indices = @transform_2, window_bounds = array<i64: 1, 256>}, {transform_indices = @transform_3, window_bounds = array<i64: 1, 256>}, {transform_indices = @transform_4, window_bounds = array<i64: 1, 256>}, {transform_indices = @transform_5, window_bounds = array<i64: 128, 256>}]} {
    %c0 = arith.constant 0 : index
    %c0_0 = arith.constant 0 : index
    %0 = vector.load %arg3[%c0, %c0_0] : memref<1x256xf32, #tpu.memory_space<vmem>>, vector<1x256xf32>
    %cst = arith.constant 7.812500e-03 : f32
    %1 = vector.broadcast %cst : f32 to vector<1x256xf32>
    %2 = arith.mulf %0, %1 : vector<1x256xf32>
    %c0_1 = arith.constant 0 : index
    %c0_2 = arith.constant 0 : index
    %3 = vector.load %arg4[%c0_1, %c0_2] : memref<1x256xf32, #tpu.memory_space<vmem>>, vector<1x256xf32>
    %cst_3 = arith.constant 7.812500e-03 : f32
    %4 = vector.broadcast %cst_3 : f32 to vector<1x256xf32>
    %5 = arith.mulf %3, %4 : vector<1x256xf32>
    %6 = arith.mulf %2, %2 : vector<1x256xf32>
    %7 = arith.subf %5, %6 : vector<1x256xf32>
    %c0_4 = arith.constant 0 : index
    %c0_5 = arith.constant 0 : index
    %8 = vector.load %arg5[%c0_4, %c0_5] : memref<1x256xf32, #tpu.memory_space<vmem>>, vector<1x256xf32>
    %cst_6 = arith.constant 9.99999974E-6 : f32
    %9 = vector.broadcast %cst_6 : f32 to vector<1x256xf32>
    %10 = arith.addf %7, %9 : vector<1x256xf32>
    %11 = math.rsqrt %10 : vector<1x256xf32>
    %12 = arith.mulf %8, %11 : vector<1x256xf32>
    %c0_7 = arith.constant 0 : index
    %c0_8 = arith.constant 0 : index
    %13 = vector.load %arg6[%c0_7, %c0_8] : memref<1x256xf32, #tpu.memory_space<vmem>>, vector<1x256xf32>
    %14 = arith.mulf %2, %12 : vector<1x256xf32>
    %15 = arith.subf %13, %14 : vector<1x256xf32>
    %c0_9 = arith.constant 0 : index
    %c0_10 = arith.constant 0 : index
    %16 = vector.load %arg2[%c0_9, %c0_10] : memref<128x256xf32, #tpu.memory_space<vmem>>, vector<128x256xf32>
    %17 = vector.broadcast %12 : vector<1x256xf32> to vector<128x256xf32>
    %18 = arith.mulf %16, %17 : vector<128x256xf32>
    %19 = vector.broadcast %15 : vector<1x256xf32> to vector<128x256xf32>
    %20 = arith.addf %18, %19 : vector<128x256xf32>
    %cst_11 = arith.constant 2.000000e-01 : f32
    %21 = vector.broadcast %cst_11 : f32 to vector<128x256xf32>
    %22 = arith.mulf %21, %20 : vector<128x256xf32>
    %23 = arith.maximumf %20, %22 : vector<128x256xf32>
    %c0_12 = arith.constant 0 : index
    %c0_13 = arith.constant 0 : index
    %24 = vector.load %arg7[%c0_12, %c0_13] : memref<128x256xf32, #tpu.memory_space<vmem>>, vector<128x256xf32>
    tpu.vector_store %arg7[%c0_12, %c0_13], %23 {strides = array<i32>} : memref<128x256xf32, #tpu.memory_space<vmem>>, vector<128x256xf32>,
    return
  }
  func.func @transform_0(%arg0: i32, %arg1: i32) -> (i32, i32) {
    %c0_i32 = arith.constant 0 : i32
    return %arg0, %arg1 : i32, i32
  }
  func.func @transform_1(%arg0: i32, %arg1: i32) -> (i32, i32) {
    %c0_i32 = arith.constant 0 : i32
    %c0_i32_0 = arith.constant 0 : i32
    return %c0_i32, %arg1 : i32, i32
  }
  func.func @transform_2(%arg0: i32, %arg1: i32) -> (i32, i32) {
    %c0_i32 = arith.constant 0 : i32
    %c0_i32_0 = arith.constant 0 : i32
    return %c0_i32, %arg1 : i32, i32
  }
  func.func @transform_3(%arg0: i32, %arg1: i32) -> (i32, i32) {
    %c0_i32 = arith.constant 0 : i32
    %c0_i32_0 = arith.constant 0 : i32
    return %c0_i32, %arg1 : i32, i32
  }
  func.func @transform_4(%arg0: i32, %arg1: i32) -> (i32, i32) {
    %c0_i32 = arith.constant 0 : i32
    %c0_i32_0 = arith.constant 0 : i32
    return %c0_i32, %arg1 : i32, i32
  }
  func.func @transform_5(%arg0: i32, %arg1: i32) -> (i32, i32) {
    %c0_i32 = arith.constant 0 : i32
    return %arg0, %arg1 : i32, i32
  }
}

module attributes {stable_mosaic.version = 11 : i64} {
  func.func @_bn_stats_kernel(%arg0: i32, %arg1: memref<128x256xf32, #tpu.memory_space<vmem>>, %arg2: memref<1x256xf32, #tpu.memory_space<vmem>>, %arg3: memref<1x256xf32, #tpu.memory_space<vmem>>) attributes {dimension_semantics = [#tpu.dimension_semantics<arbitrary>], iteration_bounds = array<i64: 1>, scalar_prefetch = 0 : i64, scratch_operands = 0 : i64, tpu.core_type = #tpu.core_type<tc>, window_params = [{transform_indices = @transform_0, window_bounds = array<i64: 128, 256>}, {pipeline_mode = #tpu.pipeline_mode<synchronous>, transform_indices = @transform_1, window_bounds = array<i64: 1, 256>}, {pipeline_mode = #tpu.pipeline_mode<synchronous>, transform_indices = @transform_2, window_bounds = array<i64: 1, 256>}]} {
    %c0_i32 = arith.constant 0 : i32
    %0 = arith.cmpi eq, %arg0, %c0_i32 : i32
    %1 = arith.extui %0 : i1 to i32
    %c0_i32_0 = arith.constant 0 : i32
    %2 = arith.cmpi ne, %1, %c0_i32_0 : i32
    scf.if %2 {
      %cst_11 = arith.constant 0.000000e+00 : f32
      %15 = vector.broadcast %cst_11 : f32 to vector<1x256xf32>
      %c0_12 = arith.constant 0 : index
      %c0_13 = arith.constant 0 : index
      %16 = vector.load %arg2[%c0_12, %c0_13] : memref<1x256xf32, #tpu.memory_space<vmem>>, vector<1x256xf32>
      tpu.vector_store %arg2[%c0_12, %c0_13], %15 {strides = array<i32>} : memref<1x256xf32, #tpu.memory_space<vmem>>, vector<1x256xf32>,
      %cst_14 = arith.constant 0.000000e+00 : f32
      %17 = vector.broadcast %cst_14 : f32 to vector<1x256xf32>
      %c0_15 = arith.constant 0 : index
      %c0_16 = arith.constant 0 : index
      %18 = vector.load %arg3[%c0_15, %c0_16] : memref<1x256xf32, #tpu.memory_space<vmem>>, vector<1x256xf32>
      tpu.vector_store %arg3[%c0_15, %c0_16], %17 {strides = array<i32>} : memref<1x256xf32, #tpu.memory_space<vmem>>, vector<1x256xf32>,
    } else {
    }
    %c0 = arith.constant 0 : index
    %c0_1 = arith.constant 0 : index
    %3 = vector.load %arg1[%c0, %c0_1] : memref<128x256xf32, #tpu.memory_space<vmem>>, vector<128x256xf32>
    %c0_2 = arith.constant 0 : index
    %c0_3 = arith.constant 0 : index
    %4 = vector.load %arg2[%c0_2, %c0_3] : memref<1x256xf32, #tpu.memory_space<vmem>>, vector<1x256xf32>
    %cst = arith.constant dense<0.000000e+00> : vector<256xf32>
    %5 = vector.multi_reduction <add>, %3, %cst [0] : vector<128x256xf32> to vector<256xf32>
    %6 = vector.shape_cast %5 : vector<256xf32> to vector<1x256xf32>
    %7 = arith.addf %4, %6 : vector<1x256xf32>
    %c0_4 = arith.constant 0 : index
    %c0_5 = arith.constant 0 : index
    %8 = vector.load %arg2[%c0_4, %c0_5] : memref<1x256xf32, #tpu.memory_space<vmem>>, vector<1x256xf32>
    tpu.vector_store %arg2[%c0_4, %c0_5], %7 {strides = array<i32>} : memref<1x256xf32, #tpu.memory_space<vmem>>, vector<1x256xf32>,
    %c0_6 = arith.constant 0 : index
    %c0_7 = arith.constant 0 : index
    %9 = vector.load %arg3[%c0_6, %c0_7] : memref<1x256xf32, #tpu.memory_space<vmem>>, vector<1x256xf32>
    %10 = arith.mulf %3, %3 : vector<128x256xf32>
    %cst_8 = arith.constant dense<0.000000e+00> : vector<256xf32>
    %11 = vector.multi_reduction <add>, %10, %cst_8 [0] : vector<128x256xf32> to vector<256xf32>
    %12 = vector.shape_cast %11 : vector<256xf32> to vector<1x256xf32>
    %13 = arith.addf %9, %12 : vector<1x256xf32>
    %c0_9 = arith.constant 0 : index
    %c0_10 = arith.constant 0 : index
    %14 = vector.load %arg3[%c0_9, %c0_10] : memref<1x256xf32, #tpu.memory_space<vmem>>, vector<1x256xf32>
    tpu.vector_store %arg3[%c0_9, %c0_10], %13 {strides = array<i32>} : memref<1x256xf32, #tpu.memory_space<vmem>>, vector<1x256xf32>,
    return
  }
  func.func @transform_0(%arg0: i32) -> (i32, i32) {
    %c0_i32 = arith.constant 0 : i32
    %c0_i32_0 = arith.constant 0 : i32
    return %arg0, %c0_i32 : i32, i32
  }
  func.func @transform_1(%arg0: i32) -> (i32, i32) {
    %c0_i32 = arith.constant 0 : i32
    %c0_i32_0 = arith.constant 0 : i32
    %c0_i32_1 = arith.constant 0 : i32
    return %c0_i32, %c0_i32_0 : i32, i32
  }
  func.func @transform_2(%arg0: i32) -> (i32, i32) {
    %c0_i32 = arith.constant 0 : i32
    %c0_i32_0 = arith.constant 0 : i32
    %c0_i32_1 = arith.constant 0 : i32
    return %c0_i32, %c0_i32_0 : i32, i32
  }
}

module attributes {stable_mosaic.version = 11 : i64} {
  func.func @_bn_stats_kernel(%arg0: i32, %arg1: memref<32x512xf32, #tpu.memory_space<vmem>>, %arg2: memref<1x512xf32, #tpu.memory_space<vmem>>, %arg3: memref<1x512xf32, #tpu.memory_space<vmem>>) attributes {dimension_semantics = [#tpu.dimension_semantics<arbitrary>], iteration_bounds = array<i64: 1>, scalar_prefetch = 0 : i64, scratch_operands = 0 : i64, tpu.core_type = #tpu.core_type<tc>, window_params = [{transform_indices = @transform_0, window_bounds = array<i64: 32, 512>}, {pipeline_mode = #tpu.pipeline_mode<synchronous>, transform_indices = @transform_1, window_bounds = array<i64: 1, 512>}, {pipeline_mode = #tpu.pipeline_mode<synchronous>, transform_indices = @transform_2, window_bounds = array<i64: 1, 512>}]} {
    %c0_i32 = arith.constant 0 : i32
    %0 = arith.cmpi eq, %arg0, %c0_i32 : i32
    %1 = arith.extui %0 : i1 to i32
    %c0_i32_0 = arith.constant 0 : i32
    %2 = arith.cmpi ne, %1, %c0_i32_0 : i32
    scf.if %2 {
      %cst_11 = arith.constant 0.000000e+00 : f32
      %15 = vector.broadcast %cst_11 : f32 to vector<1x512xf32>
      %c0_12 = arith.constant 0 : index
      %c0_13 = arith.constant 0 : index
      %16 = vector.load %arg2[%c0_12, %c0_13] : memref<1x512xf32, #tpu.memory_space<vmem>>, vector<1x512xf32>
      tpu.vector_store %arg2[%c0_12, %c0_13], %15 {strides = array<i32>} : memref<1x512xf32, #tpu.memory_space<vmem>>, vector<1x512xf32>,
      %cst_14 = arith.constant 0.000000e+00 : f32
      %17 = vector.broadcast %cst_14 : f32 to vector<1x512xf32>
      %c0_15 = arith.constant 0 : index
      %c0_16 = arith.constant 0 : index
      %18 = vector.load %arg3[%c0_15, %c0_16] : memref<1x512xf32, #tpu.memory_space<vmem>>, vector<1x512xf32>
      tpu.vector_store %arg3[%c0_15, %c0_16], %17 {strides = array<i32>} : memref<1x512xf32, #tpu.memory_space<vmem>>, vector<1x512xf32>,
    } else {
    }
    %c0 = arith.constant 0 : index
    %c0_1 = arith.constant 0 : index
    %3 = vector.load %arg1[%c0, %c0_1] : memref<32x512xf32, #tpu.memory_space<vmem>>, vector<32x512xf32>
    %c0_2 = arith.constant 0 : index
    %c0_3 = arith.constant 0 : index
    %4 = vector.load %arg2[%c0_2, %c0_3] : memref<1x512xf32, #tpu.memory_space<vmem>>, vector<1x512xf32>
    %cst = arith.constant dense<0.000000e+00> : vector<512xf32>
    %5 = vector.multi_reduction <add>, %3, %cst [0] : vector<32x512xf32> to vector<512xf32>
    %6 = vector.shape_cast %5 : vector<512xf32> to vector<1x512xf32>
    %7 = arith.addf %4, %6 : vector<1x512xf32>
    %c0_4 = arith.constant 0 : index
    %c0_5 = arith.constant 0 : index
    %8 = vector.load %arg2[%c0_4, %c0_5] : memref<1x512xf32, #tpu.memory_space<vmem>>, vector<1x512xf32>
    tpu.vector_store %arg2[%c0_4, %c0_5], %7 {strides = array<i32>} : memref<1x512xf32, #tpu.memory_space<vmem>>, vector<1x512xf32>,
    %c0_6 = arith.constant 0 : index
    %c0_7 = arith.constant 0 : index
    %9 = vector.load %arg3[%c0_6, %c0_7] : memref<1x512xf32, #tpu.memory_space<vmem>>, vector<1x512xf32>
    %10 = arith.mulf %3, %3 : vector<32x512xf32>
    %cst_8 = arith.constant dense<0.000000e+00> : vector<512xf32>
    %11 = vector.multi_reduction <add>, %10, %cst_8 [0] : vector<32x512xf32> to vector<512xf32>
    %12 = vector.shape_cast %11 : vector<512xf32> to vector<1x512xf32>
    %13 = arith.addf %9, %12 : vector<1x512xf32>
    %c0_9 = arith.constant 0 : index
    %c0_10 = arith.constant 0 : index
    %14 = vector.load %arg3[%c0_9, %c0_10] : memref<1x512xf32, #tpu.memory_space<vmem>>, vector<1x512xf32>
    tpu.vector_store %arg3[%c0_9, %c0_10], %13 {strides = array<i32>} : memref<1x512xf32, #tpu.memory_space<vmem>>, vector<1x512xf32>,
    return
  }
  func.func @transform_0(%arg0: i32) -> (i32, i32) {
    %c0_i32 = arith.constant 0 : i32
    %c0_i32_0 = arith.constant 0 : i32
    return %arg0, %c0_i32 : i32, i32
  }
  func.func @transform_1(%arg0: i32) -> (i32, i32) {
    %c0_i32 = arith.constant 0 : i32
    %c0_i32_0 = arith.constant 0 : i32
    %c0_i32_1 = arith.constant 0 : i32
    return %c0_i32, %c0_i32_0 : i32, i32
  }
  func.func @transform_2(%arg0: i32) -> (i32, i32) {
    %c0_i32 = arith.constant 0 : i32
    %c0_i32_0 = arith.constant 0 : i32
    %c0_i32_1 = arith.constant 0 : i32
    return %c0_i32, %c0_i32_0 : i32, i32
  }
}

module attributes {stable_mosaic.version = 11 : i64} {
  func.func @_matmul_kernel(%arg0: i32, %arg1: i32, %arg2: i32, %arg3: memref<32x1024xf32, #tpu.memory_space<vmem>>, %arg4: memref<1024x256xf32, #tpu.memory_space<vmem>>, %arg5: memref<1x256xf32, #tpu.memory_space<vmem>>, %arg6: memref<32x256xf32, #tpu.memory_space<vmem>>, %arg7: memref<32x256xf32, #tpu.memory_space<vmem>>) attributes {dimension_semantics = [#tpu.dimension_semantics<parallel>, #tpu.dimension_semantics<parallel>, #tpu.dimension_semantics<arbitrary>], iteration_bounds = array<i64: 1, 2, 4>, scalar_prefetch = 0 : i64, scratch_operands = 1 : i64, tpu.core_type = #tpu.core_type<tc>, window_params = [{transform_indices = @transform_0, window_bounds = array<i64: 32, 1024>}, {transform_indices = @transform_1, window_bounds = array<i64: 1024, 256>}, {transform_indices = @transform_2, window_bounds = array<i64: 1, 256>}, {transform_indices = @transform_3, window_bounds = array<i64: 32, 256>}]} {
    %c0_i32 = arith.constant 0 : i32
    %0 = arith.cmpi eq, %arg2, %c0_i32 : i32
    %1 = arith.extui %0 : i1 to i32
    %c0_i32_0 = arith.constant 0 : i32
    %2 = arith.cmpi ne, %1, %c0_i32_0 : i32
    scf.if %2 {
      %cst_9 = arith.constant 0.000000e+00 : f32
      %12 = vector.broadcast %cst_9 : f32 to vector<32x256xf32>
      %c0_10 = arith.constant 0 : index
      %c0_11 = arith.constant 0 : index
      %13 = vector.load %arg7[%c0_10, %c0_11] : memref<32x256xf32, #tpu.memory_space<vmem>>, vector<32x256xf32>
      tpu.vector_store %arg7[%c0_10, %c0_11], %12 {strides = array<i32>} : memref<32x256xf32, #tpu.memory_space<vmem>>, vector<32x256xf32>,
    } else {
    }
    %c0 = arith.constant 0 : index
    %c0_1 = arith.constant 0 : index
    %3 = vector.load %arg7[%c0, %c0_1] : memref<32x256xf32, #tpu.memory_space<vmem>>, vector<32x256xf32>
    %c0_2 = arith.constant 0 : index
    %c0_3 = arith.constant 0 : index
    %4 = vector.load %arg3[%c0_2, %c0_3] : memref<32x1024xf32, #tpu.memory_space<vmem>>, vector<32x1024xf32>
    %c0_4 = arith.constant 0 : index
    %c0_5 = arith.constant 0 : index
    %5 = vector.load %arg4[%c0_4, %c0_5] : memref<1024x256xf32, #tpu.memory_space<vmem>>, vector<1024x256xf32>
    %cst = arith.constant dense<0.000000e+00> : vector<32x256xf32>
    %6 = tpu.matmul %4, %5, %cst {dimension_numbers = #tpu.dot_dimension_numbers<[1], [0], [0], [1], [0, 0, 1, 1], [], []>} : vector<32x1024xf32>, vector<1024x256xf32>, vector<32x256xf32> -> vector<32x256xf32>
    %7 = arith.addf %3, %6 : vector<32x256xf32>
    %c0_6 = arith.constant 0 : index
    %c0_7 = arith.constant 0 : index
    %8 = vector.load %arg7[%c0_6, %c0_7] : memref<32x256xf32, #tpu.memory_space<vmem>>, vector<32x256xf32>
    tpu.vector_store %arg7[%c0_6, %c0_7], %7 {strides = array<i32>} : memref<32x256xf32, #tpu.memory_space<vmem>>, vector<32x256xf32>,
    %c3_i32 = arith.constant 3 : i32
    %9 = arith.cmpi eq, %arg2, %c3_i32 : i32
    %10 = arith.extui %9 : i1 to i32
    %c0_i32_8 = arith.constant 0 : i32
    %11 = arith.cmpi ne, %10, %c0_i32_8 : i32
    scf.if %11 {
      %c0_9 = arith.constant 0 : index
      %c0_10 = arith.constant 0 : index
      %12 = vector.load %arg7[%c0_9, %c0_10] : memref<32x256xf32, #tpu.memory_space<vmem>>, vector<32x256xf32>
      %c0_11 = arith.constant 0 : index
      %c0_12 = arith.constant 0 : index
      %13 = vector.load %arg6[%c0_11, %c0_12] : memref<32x256xf32, #tpu.memory_space<vmem>>, vector<32x256xf32>
      tpu.vector_store %arg6[%c0_11, %c0_12], %12 {strides = array<i32>} : memref<32x256xf32, #tpu.memory_space<vmem>>, vector<32x256xf32>,
    } else {
    }
    return
  }
  func.func @transform_0(%arg0: i32, %arg1: i32, %arg2: i32) -> (i32, i32) {
    %c0_i32 = arith.constant 0 : i32
    return %arg0, %arg2 : i32, i32
  }
  func.func @transform_1(%arg0: i32, %arg1: i32, %arg2: i32) -> (i32, i32) {
    %c0_i32 = arith.constant 0 : i32
    return %arg2, %arg1 : i32, i32
  }
  func.func @transform_2(%arg0: i32, %arg1: i32, %arg2: i32) -> (i32, i32) {
    %c0_i32 = arith.constant 0 : i32
    %c0_i32_0 = arith.constant 0 : i32
    return %c0_i32, %arg1 : i32, i32
  }
  func.func @transform_3(%arg0: i32, %arg1: i32, %arg2: i32) -> (i32, i32) {
    %c0_i32 = arith.constant 0 : i32
    return %arg0, %arg1 : i32, i32
  }
}

module attributes {stable_mosaic.version = 11 : i64} {
  func.func @_bn_apply_kernel(%arg0: i32, %arg1: i32, %arg2: memref<32x256xf32, #tpu.memory_space<vmem>>, %arg3: memref<1x256xf32, #tpu.memory_space<vmem>>, %arg4: memref<1x256xf32, #tpu.memory_space<vmem>>, %arg5: memref<1x256xf32, #tpu.memory_space<vmem>>, %arg6: memref<1x256xf32, #tpu.memory_space<vmem>>, %arg7: memref<32x256xf32, #tpu.memory_space<vmem>>) attributes {dimension_semantics = [#tpu.dimension_semantics<parallel>, #tpu.dimension_semantics<parallel>], iteration_bounds = array<i64: 1, 2>, scalar_prefetch = 0 : i64, scratch_operands = 0 : i64, tpu.core_type = #tpu.core_type<tc>, window_params = [{transform_indices = @transform_0, window_bounds = array<i64: 32, 256>}, {transform_indices = @transform_1, window_bounds = array<i64: 1, 256>}, {transform_indices = @transform_2, window_bounds = array<i64: 1, 256>}, {transform_indices = @transform_3, window_bounds = array<i64: 1, 256>}, {transform_indices = @transform_4, window_bounds = array<i64: 1, 256>}, {transform_indices = @transform_5, window_bounds = array<i64: 32, 256>}]} {
    %c0 = arith.constant 0 : index
    %c0_0 = arith.constant 0 : index
    %0 = vector.load %arg3[%c0, %c0_0] : memref<1x256xf32, #tpu.memory_space<vmem>>, vector<1x256xf32>
    %cst = arith.constant 3.125000e-02 : f32
    %1 = vector.broadcast %cst : f32 to vector<1x256xf32>
    %2 = arith.mulf %0, %1 : vector<1x256xf32>
    %c0_1 = arith.constant 0 : index
    %c0_2 = arith.constant 0 : index
    %3 = vector.load %arg4[%c0_1, %c0_2] : memref<1x256xf32, #tpu.memory_space<vmem>>, vector<1x256xf32>
    %cst_3 = arith.constant 3.125000e-02 : f32
    %4 = vector.broadcast %cst_3 : f32 to vector<1x256xf32>
    %5 = arith.mulf %3, %4 : vector<1x256xf32>
    %6 = arith.mulf %2, %2 : vector<1x256xf32>
    %7 = arith.subf %5, %6 : vector<1x256xf32>
    %c0_4 = arith.constant 0 : index
    %c0_5 = arith.constant 0 : index
    %8 = vector.load %arg5[%c0_4, %c0_5] : memref<1x256xf32, #tpu.memory_space<vmem>>, vector<1x256xf32>
    %cst_6 = arith.constant 9.99999974E-6 : f32
    %9 = vector.broadcast %cst_6 : f32 to vector<1x256xf32>
    %10 = arith.addf %7, %9 : vector<1x256xf32>
    %11 = math.rsqrt %10 : vector<1x256xf32>
    %12 = arith.mulf %8, %11 : vector<1x256xf32>
    %c0_7 = arith.constant 0 : index
    %c0_8 = arith.constant 0 : index
    %13 = vector.load %arg6[%c0_7, %c0_8] : memref<1x256xf32, #tpu.memory_space<vmem>>, vector<1x256xf32>
    %14 = arith.mulf %2, %12 : vector<1x256xf32>
    %15 = arith.subf %13, %14 : vector<1x256xf32>
    %c0_9 = arith.constant 0 : index
    %c0_10 = arith.constant 0 : index
    %16 = vector.load %arg2[%c0_9, %c0_10] : memref<32x256xf32, #tpu.memory_space<vmem>>, vector<32x256xf32>
    %17 = vector.broadcast %12 : vector<1x256xf32> to vector<32x256xf32>
    %18 = arith.mulf %16, %17 : vector<32x256xf32>
    %19 = vector.broadcast %15 : vector<1x256xf32> to vector<32x256xf32>
    %20 = arith.addf %18, %19 : vector<32x256xf32>
    %cst_11 = arith.constant 2.000000e-01 : f32
    %21 = vector.broadcast %cst_11 : f32 to vector<32x256xf32>
    %22 = arith.mulf %21, %20 : vector<32x256xf32>
    %23 = arith.maximumf %20, %22 : vector<32x256xf32>
    %c0_12 = arith.constant 0 : index
    %c0_13 = arith.constant 0 : index
    %24 = vector.load %arg7[%c0_12, %c0_13] : memref<32x256xf32, #tpu.memory_space<vmem>>, vector<32x256xf32>
    tpu.vector_store %arg7[%c0_12, %c0_13], %23 {strides = array<i32>} : memref<32x256xf32, #tpu.memory_space<vmem>>, vector<32x256xf32>,
    return
  }
  func.func @transform_0(%arg0: i32, %arg1: i32) -> (i32, i32) {
    %c0_i32 = arith.constant 0 : i32
    return %arg0, %arg1 : i32, i32
  }
  func.func @transform_1(%arg0: i32, %arg1: i32) -> (i32, i32) {
    %c0_i32 = arith.constant 0 : i32
    %c0_i32_0 = arith.constant 0 : i32
    return %c0_i32, %arg1 : i32, i32
  }
  func.func @transform_2(%arg0: i32, %arg1: i32) -> (i32, i32) {
    %c0_i32 = arith.constant 0 : i32
    %c0_i32_0 = arith.constant 0 : i32
    return %c0_i32, %arg1 : i32, i32
  }
  func.func @transform_3(%arg0: i32, %arg1: i32) -> (i32, i32) {
    %c0_i32 = arith.constant 0 : i32
    %c0_i32_0 = arith.constant 0 : i32
    return %c0_i32, %arg1 : i32, i32
  }
  func.func @transform_4(%arg0: i32, %arg1: i32) -> (i32, i32) {
    %c0_i32 = arith.constant 0 : i32
    %c0_i32_0 = arith.constant 0 : i32
    return %c0_i32, %arg1 : i32, i32
  }
  func.func @transform_5(%arg0: i32, %arg1: i32) -> (i32, i32) {
    %c0_i32 = arith.constant 0 : i32
    return %arg0, %arg1 : i32, i32
  }
}

module attributes {stable_mosaic.version = 11 : i64} {
  func.func @_final_heads_kernel(%arg0: i32, %arg1: memref<2x1024xf32, #tpu.memory_space<vmem>>, %arg2: memref<1024x64xf32, #tpu.memory_space<vmem>>, %arg3: memref<1x64xf32, #tpu.memory_space<vmem>>, %arg4: memref<64x2xf32, #tpu.memory_space<vmem>>, %arg5: memref<1x2xf32, #tpu.memory_space<vmem>>, %arg6: memref<2x2xf32, #tpu.memory_space<vmem>>, %arg7: memref<2x64xf32, #tpu.memory_space<vmem>>) attributes {dimension_semantics = [#tpu.dimension_semantics<arbitrary>], iteration_bounds = array<i64: 8>, scalar_prefetch = 0 : i64, scratch_operands = 1 : i64, tpu.core_type = #tpu.core_type<tc>, window_params = [{transform_indices = @transform_0, window_bounds = array<i64: 2, 1024>}, {transform_indices = @transform_1, window_bounds = array<i64: 1024, 64>}, {pipeline_mode = #tpu.pipeline_mode<synchronous>, transform_indices = @transform_2, window_bounds = array<i64: 1, 64>}, {pipeline_mode = #tpu.pipeline_mode<synchronous>, transform_indices = @transform_3, window_bounds = array<i64: 64, 2>}, {pipeline_mode = #tpu.pipeline_mode<synchronous>, transform_indices = @transform_4, window_bounds = array<i64: 1, 2>}, {pipeline_mode = #tpu.pipeline_mode<synchronous>, transform_indices = @transform_5, window_bounds = array<i64: 2, 2>}]} {
    %c0_i32 = arith.constant 0 : i32
    %0 = arith.cmpi eq, %arg0, %c0_i32 : i32
    %1 = arith.extui %0 : i1 to i32
    %c0_i32_0 = arith.constant 0 : i32
    %2 = arith.cmpi ne, %1, %c0_i32_0 : i32
    scf.if %2 {
      %cst_9 = arith.constant 0.000000e+00 : f32
      %12 = vector.broadcast %cst_9 : f32 to vector<2x64xf32>
      %c0_10 = arith.constant 0 : index
      %c0_11 = arith.constant 0 : index
      %13 = vector.load %arg7[%c0_10, %c0_11] : memref<2x64xf32, #tpu.memory_space<vmem>>, vector<2x64xf32>
      tpu.vector_store %arg7[%c0_10, %c0_11], %12 {strides = array<i32>} : memref<2x64xf32, #tpu.memory_space<vmem>>, vector<2x64xf32>,
    } else {
    }
    %c0 = arith.constant 0 : index
    %c0_1 = arith.constant 0 : index
    %3 = vector.load %arg7[%c0, %c0_1] : memref<2x64xf32, #tpu.memory_space<vmem>>, vector<2x64xf32>
    %c0_2 = arith.constant 0 : index
    %c0_3 = arith.constant 0 : index
    %4 = vector.load %arg1[%c0_2, %c0_3] : memref<2x1024xf32, #tpu.memory_space<vmem>>, vector<2x1024xf32>
    %c0_4 = arith.constant 0 : index
    %c0_5 = arith.constant 0 : index
    %5 = vector.load %arg2[%c0_4, %c0_5] : memref<1024x64xf32, #tpu.memory_space<vmem>>, vector<1024x64xf32>
    %cst = arith.constant dense<0.000000e+00> : vector<2x64xf32>
    %6 = tpu.matmul %4, %5, %cst {dimension_numbers = #tpu.dot_dimension_numbers<[1], [0], [0], [1], [0, 0, 1, 1], [], []>} : vector<2x1024xf32>, vector<1024x64xf32>, vector<2x64xf32> -> vector<2x64xf32>
    %7 = arith.addf %3, %6 : vector<2x64xf32>
    %c0_6 = arith.constant 0 : index
    %c0_7 = arith.constant 0 : index
    %8 = vector.load %arg7[%c0_6, %c0_7] : memref<2x64xf32, #tpu.memory_space<vmem>>, vector<2x64xf32>
    tpu.vector_store %arg7[%c0_6, %c0_7], %7 {strides = array<i32>} : memref<2x64xf32, #tpu.memory_space<vmem>>, vector<2x64xf32>,
    %c7_i32 = arith.constant 7 : i32
    %9 = arith.cmpi eq, %arg0, %c7_i32 : i32
    %10 = arith.extui %9 : i1 to i32
    %c0_i32_8 = arith.constant 0 : i32
    %11 = arith.cmpi ne, %10, %c0_i32_8 : i32
    scf.if %11 {
      %c0_9 = arith.constant 0 : index
      %c0_10 = arith.constant 0 : index
      %12 = vector.load %arg7[%c0_9, %c0_10] : memref<2x64xf32, #tpu.memory_space<vmem>>, vector<2x64xf32>
      %c0_11 = arith.constant 0 : index
      %c0_12 = arith.constant 0 : index
      %13 = vector.load %arg3[%c0_11, %c0_12] : memref<1x64xf32, #tpu.memory_space<vmem>>, vector<1x64xf32>
      %14 = vector.broadcast %13 : vector<1x64xf32> to vector<2x64xf32>
      %15 = arith.addf %12, %14 : vector<2x64xf32>
      %c0_13 = arith.constant 0 : index
      %c0_14 = arith.constant 0 : index
      %16 = vector.load %arg4[%c0_13, %c0_14] : memref<64x2xf32, #tpu.memory_space<vmem>>, vector<64x2xf32>
      %cst_15 = arith.constant dense<0.000000e+00> : vector<2x2xf32>
      %17 = tpu.matmul %15, %16, %cst_15 {dimension_numbers = #tpu.dot_dimension_numbers<[1], [0], [0], [1], [0, 0, 1, 1], [], []>} : vector<2x64xf32>, vector<64x2xf32>, vector<2x2xf32> -> vector<2x2xf32>
      %c0_16 = arith.constant 0 : index
      %c0_17 = arith.constant 0 : index
      %18 = vector.load %arg5[%c0_16, %c0_17] : memref<1x2xf32, #tpu.memory_space<vmem>>, vector<1x2xf32>
      %19 = vector.broadcast %18 : vector<1x2xf32> to vector<2x2xf32>
      %20 = arith.addf %17, %19 : vector<2x2xf32>
      %cst_18 = arith.constant 0.000000e+00 : f32
      %21 = vector.broadcast %cst_18 : f32 to vector<2x2xf32>
      %22 = arith.subf %21, %20 : vector<2x2xf32>
      %23 = math.exp %22 : vector<2x2xf32>
      %cst_19 = arith.constant 1.000000e+00 : f32
      %24 = vector.broadcast %cst_19 : f32 to vector<2x2xf32>
      %25 = arith.addf %24, %23 : vector<2x2xf32>
      %cst_20 = arith.constant 1.000000e+00 : f32
      %26 = vector.broadcast %cst_20 : f32 to vector<2x2xf32>
      %27 = arith.divf %26, %25 : vector<2x2xf32>
      %c0_21 = arith.constant 0 : index
      %c0_22 = arith.constant 0 : index
      %28 = vector.load %arg6[%c0_21, %c0_22] : memref<2x2xf32, #tpu.memory_space<vmem>>, vector<2x2xf32>
      tpu.vector_store %arg6[%c0_21, %c0_22], %27 {strides = array<i32>} : memref<2x2xf32, #tpu.memory_space<vmem>>, vector<2x2xf32>,
    } else {
    }
    return
  }
  func.func @transform_0(%arg0: i32) -> (i32, i32) {
    %c0_i32 = arith.constant 0 : i32
    %c0_i32_0 = arith.constant 0 : i32
    return %c0_i32, %arg0 : i32, i32
  }
  func.func @transform_1(%arg0: i32) -> (i32, i32) {
    %c0_i32 = arith.constant 0 : i32
    %c0_i32_0 = arith.constant 0 : i32
    return %arg0, %c0_i32 : i32, i32
  }
  func.func @transform_2(%arg0: i32) -> (i32, i32) {
    %c0_i32 = arith.constant 0 : i32
    %c0_i32_0 = arith.constant 0 : i32
    %c0_i32_1 = arith.constant 0 : i32
    return %c0_i32, %c0_i32_0 : i32, i32
  }
  func.func @transform_3(%arg0: i32) -> (i32, i32) {
    %c0_i32 = arith.constant 0 : i32
    %c0_i32_0 = arith.constant 0 : i32
    %c0_i32_1 = arith.constant 0 : i32
    return %c0_i32, %c0_i32_0 : i32, i32
  }
  func.func @transform_4(%arg0: i32) -> (i32, i32) {
    %c0_i32 = arith.constant 0 : i32
    %c0_i32_0 = arith.constant 0 : i32
    %c0_i32_1 = arith.constant 0 : i32
    return %c0_i32, %c0_i32_0 : i32, i32
  }
  func.func @transform_5(%arg0: i32) -> (i32, i32) {
    %c0_i32 = arith.constant 0 : i32
    %c0_i32_0 = arith.constant 0 : i32
    %c0_i32_1 = arith.constant 0 : i32
    return %c0_i32, %c0_i32_0 : i32, i32
  }
}

</mosaic_0001>

<bundles_post_ra>
// kernel: discriminator_forward.11
= control target key start
LH: loop header
LB: loop body
LE: loop exit
PB: predicated region body
PF: predicated region fallthrough
CT: control target
= control target key end

     0   :  { %s1053_s12 = smov 0   ;;  %s1055_s13 = smov 0   ;;  %s1376_s0 = inlined_call_operand.vmem [shape: f32[2048,48], index: 0, kind: input, shape index: {}]   ;;  %s1377_s1 = inlined_call_operand.vmem [shape: f32[48,64], index: 1, kind: input, shape index: {}]   ;;  %s1378_s2 = inlined_call_operand.vmem [shape: f32[1,64], index: 2, kind: input, shape index: {}]   ;;  %s1379_s3 = inlined_call_operand.vmem [shape: f32[2048,64], index: 3, kind: output, shape index: {}]  }
   0x1   :  { %s1057_s14 = smov 0  }
   0x2 LB: > { %s32_s15 = sadd.s32 1, %s1026_s13  ;;  %p925_p0 = scmp.ge.s32.totalorder %s1030_s14, 1  ;;  %s1030_s14 = sphi %s1057_s14, %s13_s14   ;;  %s1026_s13 = sphi %s1055_s13, %s1381_s13   ;;  %s1022_s12 = sphi %s1053_s12, %s1380_s12  }
   0x3   : > { %p34_p1 = scmp.ge.s32.totalorder %s32_s15, 8  ;;  %p188_p2 = scmp.lt.s32.totalorder %s1030_s14, 9 }
   0x5   : > { %s1383_s15 = smov (%p34_p1, %s32_s15), 0  ;;  %p189_p3 = pnand %p925_p0, %p188_p2 }
   0x6   : > { %s926_s20 = sshll.u32 (!%p189_p3), %s1022_s12, 5 }
   0x7   : > { %192 = sbr.rel (%p189_p3) target bundleno = 230 (0xe6), region = 32  ;;  %p230_p4 = scmp.lt.s32.totalorder (!%p189_p3), %s926_s20, 255 }
   0xc   : > { %v365_v0 = vld [vmem:[%s1377_s1 + $0x28] sm:$0xff]  ;;  %v364_v1 = vld [vmem:[%s1377_s1 + $0x20] sm:$0xff]  ;;  %v363_v2 = vld [vmem:[%s1377_s1 + $0x18] sm:$0xff]  ;;  %s1385_s20 = smov (!%p230_p4, %s926_s20), 255  ;;  %vm366_vm0 = vcmask 392192   ;;  %vm263_vm1 = vcmask 523264  }
   0xd   : > { %965 = vmatpush.msra.mxu2 %v365_v0  ;;  %966 = vmatpush.msra.mxu3 %v365_v0  ;;  %v362_v3 = vld [vmem:[%s1377_s1 + $0x10] sm:$0xff]  ;;  %s927_s25 = sshll.u32 %s1385_s20, 3  ;;  %v361_v4 = vld [vmem:[%s1377_s1 + $0x8] sm:$0xff]  ;;  %v360_v5 = vld [vmem:[%s1377_s1] sm:$0xff]  ;;  %v1032_v22 = vmov 0.0  }
   0xe   : > { %473 = vmatpush.msra.mxu0 %v365_v0  ;;  %964 = vmatpush.msra.mxu1 %v365_v0  ;;  %s1094_s30 = scalar_lea.vmem %s1376_s0, %s927_s25  ;;  %264 = vst.msk [vmem:[#allocation2] sm:$0xff] %vm263_vm1, %v1032_v22  ;;  %v1232_v53 = vld [vmem:[%s1378_s2] ss:$0 sm:$0xff]  ;;  %s1245_s10 = scalar_lea.vmem %s1379_s3, %s927_s25 }
   0xf   : > { %968 = vmatpush.msra.mxu2 %v364_v1  ;;  %969 = vmatpush.msra.mxu3 %v364_v1  ;;  %v344_v6 = vld [vmem:[%s1094_s30 + $0x80] sm:$0xff]  ;;  %v345_v10 = vld [vmem:[%s1094_s30 + $0x88] sm:$0xff]  ;;  %v346_v14 = vld [vmem:[%s1094_s30 + $0x90] sm:$0xff]  ;;  %265 = vst.msk [vmem:[#allocation2 + $0x8] sm:$0xff] %vm263_vm1, %v1032_v22 }
  0x10   : > { %474 = vmatpush.msra.mxu0 %v364_v1  ;;  %967 = vmatpush.msra.mxu1 %v364_v1  ;;  %v352_v7 = vld [vmem:[%s1094_s30 + $0xc0] sm:$0xff]  ;;  %v353_v11 = vld [vmem:[%s1094_s30 + $0xc8] sm:$0xff]  ;;  %v354_v15 = vld [vmem:[%s1094_s30 + $0xd0] sm:$0xff]  ;;  %266 = vst.msk [vmem:[#allocation2 + $0x10] sm:$0xff] %vm263_vm1, %v1032_v22 }
  0x11   : > { %971 = vmatpush.msra.mxu2 %v363_v2  ;;  %972 = vmatpush.msra.mxu3 %v363_v2  ;;  %v328_v8 = vld [vmem:[%s1094_s30] sm:$0xff]  ;;  %v329_v12 = vld [vmem:[%s1094_s30 + $0x8] sm:$0xff]  ;;  %v330_v16 = vld [vmem:[%s1094_s30 + $0x10] sm:$0xff]  ;;  %267 = vst.msk [vmem:[#allocation2 + $0x18] sm:$0xff] %vm263_vm1, %v1032_v22 }
  0x12   : > { %475 = vmatpush.msra.mxu0 %v363_v2  ;;  %970 = vmatpush.msra.mxu1 %v363_v2  ;;  %v336_v9 = vld [vmem:[%s1094_s30 + $0x40] sm:$0xff]  ;;  %v337_v13 = vld [vmem:[%s1094_s30 + $0x48] sm:$0xff]  ;;  %v338_v17 = vld [vmem:[%s1094_s30 + $0x50] sm:$0xff]  ;;  %268 = vst.msk [vmem:[#allocation2 + $0x20] sm:$0xff] %vm263_vm1, %v1032_v22 }
  0x13   : > { %974 = vmatpush.msra.mxu2 %v362_v3  ;;  %975 = vmatpush.msra.mxu3 %v362_v3  ;;  %v347_v18 = vld [vmem:[%s1094_s30 + $0x98] sm:$0xff]  ;;  %v348_v23 = vld [vmem:[%s1094_s30 + $0xa0] sm:$0xff]  ;;  %269 = vst.msk [vmem:[#allocation2 + $0x28] sm:$0xff] %vm263_vm1, %v1032_v22  ;;  %v349_v27 = vld [vmem:[%s1094_s30 + $0xa8] sm:$0xff] }
  0x14   : > { %476 = vmatpush.msra.mxu0 %v362_v3  ;;  %973 = vmatpush.msra.mxu1 %v362_v3  ;;  %v355_v19 = vld [vmem:[%s1094_s30 + $0xd8] sm:$0xff]  ;;  %v356_v24 = vld [vmem:[%s1094_s30 + $0xe0] sm:$0xff]  ;;  %270 = vst.msk [vmem:[#allocation2 + $0x30] sm:$0xff] %vm263_vm1, %v1032_v22  ;;  %v357_v28 = vld [vmem:[%s1094_s30 + $0xe8] sm:$0xff] }
  0x15   : > { %977 = vmatpush.msra.mxu2 %v361_v4  ;;  %978 = vmatpush.msra.mxu3 %v361_v4  ;;  %v331_v20 = vld [vmem:[%s1094_s30 + $0x18] sm:$0xff]  ;;  %v332_v25 = vld [vmem:[%s1094_s30 + $0x20] sm:$0xff]  ;;  %271 = vst.msk [vmem:[#allocation2 + $0x38] sm:$0xff] %vm263_vm1, %v1032_v22  ;;  %v333_v29 = vld [vmem:[%s1094_s30 + $0x28] sm:$0xff] }
  0x16   : > { %477 = vmatpush.msra.mxu0 %v361_v4  ;;  %976 = vmatpush.msra.mxu1 %v361_v4  ;;  %v339_v21 = vld [vmem:[%s1094_s30 + $0x58] sm:$0xff]  ;;  %v340_v26 = vld [vmem:[%s1094_s30 + $0x60] sm:$0xff]  ;;  %272 = vst.msk [vmem:[#allocation2 + $0x40] sm:$0xff] %vm263_vm1, %v1032_v22  ;;  %v341_v30 = vld [vmem:[%s1094_s30 + $0x68] sm:$0xff] }
  0x17   : > { %980 = vmatpush.msra.mxu2 %v360_v5  ;;  %981 = vmatpush.msra.mxu3 %v360_v5  ;;  %273 = vst.msk [vmem:[#allocation2 + $0x48] sm:$0xff] %vm263_vm1, %v1032_v22  ;;  %v350_v31 = vld [vmem:[%s1094_s30 + $0xb0] sm:$0xff]  ;;  %v351_v35 = vld [vmem:[%s1094_s30 + $0xb8] sm:$0xff]  ;;  %v296_v39 = vld [vmem:[#allocation2] sm:$0xff] }
  0x18   : > { %946 = vmatmul.msk.f32.vlgmr.msra.gmra.mxu2 %vm366_vm0, %v344_v6  ;;  %954 = vmatmul.msk.f32.vlgmr.msra.gmra.mxu3 %vm366_vm0, %v352_v7  ;;  %274 = vst.msk [vmem:[#allocation2 + $0x50] sm:$0xff] %vm263_vm1, %v1032_v22  ;;  %v358_v32 = vld [vmem:[%s1094_s30 + $0xf0] sm:$0xff]  ;;  %v359_v36 = vld [vmem:[%s1094_s30 + $0xf8] sm:$0xff]  ;;  %v297_v51 = vld [vmem:[#allocation2 + $0x8] sm:$0xff] }
  0x19   : > { %478 = vmatpush.msra.mxu0 %v360_v5  ;;  %979 = vmatpush.msra.mxu1 %v360_v5  ;;  %275 = vst.msk [vmem:[#allocation2 + $0x58] sm:$0xff] %vm263_vm1, %v1032_v22  ;;  %v334_v33 = vld [vmem:[%s1094_s30 + $0x30] sm:$0xff]  ;;  %v335_v37 = vld [vmem:[%s1094_s30 + $0x38] sm:$0xff] }
  0x1a   : > { %930 = vmatmul.msk.f32.vlgmr.msra.gmra.mxu0 %vm366_vm0, %v328_v8  ;;  %938 = vmatmul.msk.f32.vlgmr.msra.gmra.mxu1 %vm366_vm0, %v336_v9  ;;  %276 = vst.msk [vmem:[#allocation2 + $0x60] sm:$0xff] %vm263_vm1, %v1032_v22  ;;  %v342_v34 = vld [vmem:[%s1094_s30 + $0x70] sm:$0xff]  ;;  %v343_v38 = vld [vmem:[%s1094_s30 + $0x78] sm:$0xff] }
  0x1b   : > { %277 = vst.msk [vmem:[#allocation2 + $0x68] sm:$0xff] %vm263_vm1, %v1032_v22  ;;  %v298_v7 = vld [vmem:[#allocation2 + $0x10] sm:$0xff] }
  0x1c   : > { %278 = vst.msk [vmem:[#allocation2 + $0x70] sm:$0xff] %vm263_vm1, %v1032_v22 }
  0x1d   : > { %279 = vst.msk [vmem:[#allocation2 + $0x78] sm:$0xff] %vm263_vm1, %v1032_v22  ;;  %v304_v40 = vld [vmem:[#allocation2 + $0x40] sm:$0xff] }
  0x1e   : > { %280 = vst.msk [vmem:[#allocation2 + $0x80] sm:$0xff] %vm263_vm1, %v1032_v22  ;;  %v305_v52 = vld [vmem:[#allocation2 + $0x48] sm:$0xff] }
  0x1f   : > { %281 = vst.msk [vmem:[#allocation2 + $0x88] sm:$0xff] %vm263_vm1, %v1032_v22  ;;  %v306_v8 = vld [vmem:[#allocation2 + $0x50] sm:$0xff] }
  0x20   : > { %947 = vmatmul.msk.f32.gmra.mxu2 %vm366_vm0, %v345_v10  ;;  %955 = vmatmul.msk.f32.gmra.mxu3 %vm366_vm0, %v353_v11  ;;  %282 = vst.msk [vmem:[#allocation2 + $0x90] sm:$0xff] %vm263_vm1, %v1032_v22 }
  0x21   : > { %283 = vst.msk [vmem:[#allocation2 + $0x98] sm:$0xff] %vm263_vm1, %v1032_v22 }
  0x22   : > { %931 = vmatmul.msk.f32.gmra.mxu0 %vm366_vm0, %v329_v12  ;;  %939 = vmatmul.msk.f32.gmra.mxu1 %vm366_vm0, %v337_v13  ;;  %284 = vst.msk [vmem:[#allocation2 + $0xa0] sm:$0xff] %vm263_vm1, %v1032_v22 }
  0x23   : > { %285 = vst.msk [vmem:[#allocation2 + $0xa8] sm:$0xff] %vm263_vm1, %v1032_v22 }
  0x24   : > { %286 = vst.msk [vmem:[#allocation2 + $0xb0] sm:$0xff] %vm263_vm1, %v1032_v22 }
  0x25   : > { %287 = vst.msk [vmem:[#allocation2 + $0xb8] sm:$0xff] %vm263_vm1, %v1032_v22  ;;  %v312_v45 = vld [vmem:[#allocation2 + $0x80] sm:$0xff] }
  0x26   : > { %288 = vst.msk [vmem:[#allocation2 + $0xc0] sm:$0xff] %vm263_vm1, %v1032_v22  ;;  %v313_v59 = vld [vmem:[#allocation2 + $0x88] sm:$0xff] }
  0x27   : > { %289 = vst.msk [vmem:[#allocation2 + $0xc8] sm:$0xff] %vm263_vm1, %v1032_v22 }
  0x28   : > { %948 = vmatmul.msk.f32.gmra.mxu2 %vm366_vm0, %v346_v14  ;;  %956 = vmatmul.msk.f32.gmra.mxu3 %vm366_vm0, %v354_v15  ;;  %290 = vst.msk [vmem:[#allocation2 + $0xd0] sm:$0xff] %vm263_vm1, %v1032_v22 }
  0x29   : > { %291 = vst.msk [vmem:[#allocation2 + $0xd8] sm:$0xff] %vm263_vm1, %v1032_v22 }
  0x2a   : > { %932 = vmatmul.msk.f32.gmra.mxu0 %vm366_vm0, %v330_v16  ;;  %940 = vmatmul.msk.f32.gmra.mxu1 %vm366_vm0, %v338_v17  ;;  %292 = vst.msk [vmem:[#allocation2 + $0xe0] sm:$0xff] %vm263_vm1, %v1032_v22 }
  0x2b   : > { %293 = vst.msk [vmem:[#allocation2 + $0xe8] sm:$0xff] %vm263_vm1, %v1032_v22 }
  0x2c   : > { %294 = vst.msk [vmem:[#allocation2 + $0xf0] sm:$0xff] %vm263_vm1, %v1032_v22 }
  0x2d   : > { %295 = vst.msk [vmem:[#allocation2 + $0xf8] sm:$0xff] %vm263_vm1, %v1032_v22  ;;  %v320_v46 = vld [vmem:[#allocation2 + $0xc0] sm:$0xff] }
  0x2e   : > { %v321_v60 = vld [vmem:[#allocation2 + $0xc8] sm:$0xff] }
  0x2f   : > { %v322_v22 = vld [vmem:[#allocation2 + $0xd0] sm:$0xff] }
  0x30   : > { %949 = vmatmul.msk.f32.gmra.mxu2 %vm366_vm0, %v347_v18  ;;  %957 = vmatmul.msk.f32.gmra.mxu3 %vm366_vm0, %v355_v19 }
  0x32   : > { %933 = vmatmul.msk.f32.gmra.mxu0 %vm366_vm0, %v331_v20  ;;  %941 = vmatmul.msk.f32.gmra.mxu1 %vm366_vm0, %v339_v21  ;;  %v314_v21 = vld [vmem:[#allocation2 + $0x90] sm:$0xff] }
  0x38   : > { %950 = vmatmul.msk.f32.gmra.mxu2 %vm366_vm0, %v348_v23  ;;  %958 = vmatmul.msk.f32.gmra.mxu3 %vm366_vm0, %v356_v24 }
  0x3a   : > { %934 = vmatmul.msk.f32.gmra.mxu0 %vm366_vm0, %v332_v25  ;;  %942 = vmatmul.msk.f32.gmra.mxu1 %vm366_vm0, %v340_v26 }
  0x40   : > { %951 = vmatmul.msk.f32.gmra.mxu2 %vm366_vm0, %v349_v27  ;;  %959 = vmatmul.msk.f32.gmra.mxu3 %vm366_vm0, %v357_v28 }
  0x42   : > { %935 = vmatmul.msk.f32.gmra.mxu0 %vm366_vm0, %v333_v29  ;;  %943 = vmatmul.msk.f32.gmra.mxu1 %vm366_vm0, %v341_v30 }
  0x48   : > { %952 = vmatmul.msk.f32.gmra.mxu2 %vm366_vm0, %v350_v31  ;;  %960 = vmatmul.msk.f32.gmra.mxu3 %vm366_vm0, %v358_v32 }
  0x4a   : > { %936 = vmatmul.msk.f32.gmra.mxu0 %vm366_vm0, %v334_v33  ;;  %944 = vmatmul.msk.f32.gmra.mxu1 %vm366_vm0, %v342_v34 }
  0x50   : > { %953 = vmatmul.msk.f32.gmra.mxu2 %vm366_vm0, %v351_v35  ;;  %961 = vmatmul.msk.f32.gmra.mxu3 %vm366_vm0, %v359_v36  ;;  %v299_v35 = vld [vmem:[#allocation2 + $0x18] sm:$0xff] }
  0x51   : > { %v307_v36 = vld [vmem:[#allocation2 + $0x58] sm:$0xff] }
  0x52   : > { %937 = vmatmul.msk.f32.gmra.mxu0 %vm366_vm0, %v335_v37  ;;  %945 = vmatmul.msk.f32.gmra.mxu1 %vm366_vm0, %v343_v38 }
  0x97   : > { %v480_v41 = vpop.f32.mrf.mxu0  ;;  %v504_v42 = vpop.f32.mrf.mxu1 }
  0x98   : > { %v576_v43 = vadd.f32 %v480_v41, %v296_v39  ;;  %v584_v44 = vadd.f32 %v504_v42, %v304_v40 }
  0x9a   : > { %609 = vst.msk [vmem:[#allocation2] sm:$0xff] %vm263_vm1, %v576_v43 }
  0x9b   : > { %617 = vst.msk [vmem:[#allocation2 + $0x40] sm:$0xff] %vm263_vm1, %v584_v44  ;;  %v528_v47 = vpop.f32.mrf.mxu2  ;;  %v552_v48 = vpop.f32.mrf.mxu3 }
  0x9c   : > { %v592_v49 = vadd.f32 %v528_v47, %v312_v45  ;;  %v600_v50 = vadd.f32 %v552_v48, %v320_v46 }
  0x9e   : > { %625 = vst.msk [vmem:[#allocation2 + $0x80] sm:$0xff] %vm263_vm1, %v592_v49  ;;  %v315_v49 = vld [vmem:[#allocation2 + $0x98] sm:$0xff] }
  0x9f   : > { %633 = vst.msk [vmem:[#allocation2 + $0xc0] sm:$0xff] %vm263_vm1, %v600_v50  ;;  %v483_v54 = vpop.f32.mrf.mxu0  ;;  %v507_v55 = vpop.f32.mrf.mxu1  ;;  %v323_v50 = vld [vmem:[#allocation2 + $0xd8] sm:$0xff] }
  0xa0   : > { %v577_v56 = vadd.f32 %v483_v54, %v297_v51  ;;  %v585_v57 = vadd.f32 %v507_v55, %v305_v52 }
  0xa1   : > { %v644_v58 = vld [vmem:[#allocation2] sm:$0xff] }
  0xa2   : > { %v680_v61 = vadd.f32 %v1232_v53, %v644_v58  ;;  %v652_v62 = vld [vmem:[#allocation2 + $0x40] sm:$0xff]  ;;  %610 = vst.msk [vmem:[#allocation2 + $0x8] sm:$0xff] %vm263_vm1, %v577_v56 }
  0xa3   : > { %v688_v63 = vadd.f32 %v1232_v53, %v652_v62  ;;  %618 = vst.msk [vmem:[#allocation2 + $0x48] sm:$0xff] %vm263_vm1, %v585_v57  ;;  %v531_v0 = vpop.f32.mrf.mxu2  ;;  %v555_v1 = vpop.f32.mrf.mxu3 }
  0xa4   : > { %v712_v2 = vmul.f32 0.2, %v680_v61  ;;  %v593_v3 = vadd.f32 %v531_v0, %v313_v59  ;;  %v601_v4 = vadd.f32 %v555_v1, %v321_v60  ;;  %v300_v0 = vld [vmem:[#allocation2 + $0x20] sm:$0xff] }
  0xa5   : > { %v720_v5 = vmul.f32 0.2, %v688_v63  ;;  %v660_v6 = vld [vmem:[#allocation2 + $0x80] sm:$0xff] }
  0xa6   : > { %v744_v9 = vmax.f32 %v680_v61, %v712_v2  ;;  %v696_v10 = vadd.f32 %v1232_v53, %v660_v6  ;;  %v668_v11 = vld [vmem:[#allocation2 + $0xc0] sm:$0xff]  ;;  %626 = vst.msk [vmem:[#allocation2 + $0x88] sm:$0xff] %vm263_vm1, %v593_v3 }
  0xa7   : > { %v752_v12 = vmax.f32 %v688_v63, %v720_v5  ;;  %v704_v13 = vadd.f32 %v1232_v53, %v668_v11  ;;  %634 = vst.msk [vmem:[#allocation2 + $0xc8] sm:$0xff] %vm263_vm1, %v601_v4  ;;  %v486_v14 = vpop.f32.mrf.mxu0  ;;  %v510_v15 = vpop.f32.mrf.mxu1  ;;  %v308_v1 = vld [vmem:[#allocation2 + $0x60] sm:$0xff] }
  0xa8   : > { %776 = vst.msk [vmem:[%s1245_s10] sm:$0xff] %vm263_vm1, %v744_v9  ;;  %v728_v16 = vmul.f32 0.2, %v696_v10  ;;  %v578_v17 = vadd.f32 %v486_v14, %v298_v7  ;;  %v586_v18 = vadd.f32 %v510_v15, %v306_v8  ;;  %v316_v14 = vld [vmem:[#allocation2 + $0xa0] sm:$0xff] }
  0xa9   : > { %784 = vst.msk [vmem:[%s1245_s10 + $0x40] sm:$0xff] %vm263_vm1, %v752_v12  ;;  %v736_v19 = vmul.f32 0.2, %v704_v13  ;;  %v645_v20 = vld [vmem:[#allocation2 + $0x8] sm:$0xff]  ;;  %v324_v15 = vld [vmem:[#allocation2 + $0xe0] sm:$0xff] }
  0xaa   : > { %v760_v23 = vmax.f32 %v696_v10, %v728_v16  ;;  %v681_v24 = vadd.f32 %v1232_v53, %v645_v20  ;;  %v653_v25 = vld [vmem:[#allocation2 + $0x48] sm:$0xff]  ;;  %611 = vst.msk [vmem:[#allocation2 + $0x10] sm:$0xff] %vm263_vm1, %v578_v17 }
  0xab   : > { %v768_v26 = vmax.f32 %v704_v13, %v736_v19  ;;  %v689_v27 = vadd.f32 %v1232_v53, %v653_v25  ;;  %619 = vst.msk [vmem:[#allocation2 + $0x50] sm:$0xff] %vm263_vm1, %v586_v18  ;;  %v534_v28 = vpop.f32.mrf.mxu2  ;;  %v558_v29 = vpop.f32.mrf.mxu3 }
  0xac   : > { %792 = vst.msk [vmem:[%s1245_s10 + $0x80] sm:$0xff] %vm263_vm1, %v760_v23  ;;  %v713_v30 = vmul.f32 0.2, %v681_v24  ;;  %v594_v31 = vadd.f32 %v534_v28, %v314_v21  ;;  %v602_v32 = vadd.f32 %v558_v29, %v322_v22  ;;  %v301_v28 = vld [vmem:[#allocation2 + $0x28] sm:$0xff] }
  0xad   : > { %800 = vst.msk [vmem:[%s1245_s10 + $0xc0] sm:$0xff] %vm263_vm1, %v768_v26  ;;  %v721_v33 = vmul.f32 0.2, %v689_v27  ;;  %v661_v34 = vld [vmem:[#allocation2 + $0x88] sm:$0xff] }
  0xae   : > { %v745_v37 = vmax.f32 %v681_v24, %v713_v30  ;;  %v697_v38 = vadd.f32 %v1232_v53, %v661_v34  ;;  %v669_v39 = vld [vmem:[#allocation2 + $0xc8] sm:$0xff]  ;;  %627 = vst.msk [vmem:[#allocation2 + $0x90] sm:$0xff] %vm263_vm1, %v594_v31 }
  0xaf   : > { %v753_v40 = vmax.f32 %v689_v27, %v721_v33  ;;  %v705_v41 = vadd.f32 %v1232_v53, %v669_v39  ;;  %635 = vst.msk [vmem:[#allocation2 + $0xd0] sm:$0xff] %vm263_vm1, %v602_v32  ;;  %v489_v42 = vpop.f32.mrf.mxu0  ;;  %v513_v43 = vpop.f32.mrf.mxu1  ;;  %v309_v29 = vld [vmem:[#allocation2 + $0x68] sm:$0xff] }
  0xb0   : > { %777 = vst.msk [vmem:[%s1245_s10 + $0x8] sm:$0xff] %vm263_vm1, %v745_v37  ;;  %v729_v44 = vmul.f32 0.2, %v697_v38  ;;  %v579_v45 = vadd.f32 %v489_v42, %v299_v35  ;;  %v587_v46 = vadd.f32 %v513_v43, %v307_v36  ;;  %v317_v42 = vld [vmem:[#allocation2 + $0xa8] sm:$0xff] }
  0xb1   : > { %785 = vst.msk [vmem:[%s1245_s10 + $0x48] sm:$0xff] %vm263_vm1, %v753_v40  ;;  %v737_v47 = vmul.f32 0.2, %v705_v41  ;;  %v646_v48 = vld [vmem:[#allocation2 + $0x10] sm:$0xff]  ;;  %v325_v43 = vld [vmem:[#allocation2 + $0xe8] sm:$0xff] }
  0xb2   : > { %v761_v51 = vmax.f32 %v697_v38, %v729_v44  ;;  %v682_v52 = vadd.f32 %v1232_v53, %v646_v48  ;;  %v654_v54 = vld [vmem:[#allocation2 + $0x50] sm:$0xff]  ;;  %612 = vst.msk [vmem:[#allocation2 + $0x18] sm:$0xff] %vm263_vm1, %v579_v45 }
  0xb3   : > { %v769_v55 = vmax.f32 %v705_v41, %v737_v47  ;;  %v690_v56 = vadd.f32 %v1232_v53, %v654_v54  ;;  %620 = vst.msk [vmem:[#allocation2 + $0x58] sm:$0xff] %vm263_vm1, %v587_v46  ;;  %v537_v57 = vpop.f32.mrf.mxu2  ;;  %v561_v58 = vpop.f32.mrf.mxu3 }
  0xb4   : > { %793 = vst.msk [vmem:[%s1245_s10 + $0x88] sm:$0xff] %vm263_vm1, %v761_v51  ;;  %v714_v59 = vmul.f32 0.2, %v682_v52  ;;  %v595_v60 = vadd.f32 %v537_v57, %v315_v49  ;;  %v603_v61 = vadd.f32 %v561_v58, %v323_v50  ;;  %v302_v57 = vld [vmem:[#allocation2 + $0x30] sm:$0xff] }
  0xb5   : > { %801 = vst.msk [vmem:[%s1245_s10 + $0xc8] sm:$0xff] %vm263_vm1, %v769_v55  ;;  %v722_v62 = vmul.f32 0.2, %v690_v56  ;;  %v662_v63 = vld [vmem:[#allocation2 + $0x90] sm:$0xff] }
  0xb6   : > { %v746_v2 = vmax.f32 %v682_v52, %v714_v59  ;;  %v698_v3 = vadd.f32 %v1232_v53, %v662_v63  ;;  %v670_v4 = vld [vmem:[#allocation2 + $0xd0] sm:$0xff]  ;;  %628 = vst.msk [vmem:[#allocation2 + $0x98] sm:$0xff] %vm263_vm1, %v595_v60 }
  0xb7   : > { %v754_v5 = vmax.f32 %v690_v56, %v722_v62  ;;  %v706_v6 = vadd.f32 %v1232_v53, %v670_v4  ;;  %636 = vst.msk [vmem:[#allocation2 + $0xd8] sm:$0xff] %vm263_vm1, %v603_v61  ;;  %v492_v7 = vpop.f32.mrf.mxu0  ;;  %v516_v8 = vpop.f32.mrf.mxu1  ;;  %v310_v58 = vld [vmem:[#allocation2 + $0x70] sm:$0xff] }
  0xb8   : > { %778 = vst.msk [vmem:[%s1245_s10 + $0x10] sm:$0xff] %vm263_vm1, %v746_v2  ;;  %v730_v9 = vmul.f32 0.2, %v698_v3  ;;  %v580_v10 = vadd.f32 %v492_v7, %v300_v0  ;;  %v588_v11 = vadd.f32 %v516_v8, %v308_v1  ;;  %v318_v7 = vld [vmem:[#allocation2 + $0xb0] sm:$0xff] }
  0xb9   : > { %786 = vst.msk [vmem:[%s1245_s10 + $0x50] sm:$0xff] %vm263_vm1, %v754_v5  ;;  %v738_v12 = vmul.f32 0.2, %v706_v6  ;;  %v647_v13 = vld [vmem:[#allocation2 + $0x18] sm:$0xff]  ;;  %v326_v8 = vld [vmem:[#allocation2 + $0xf0] sm:$0xff] }
  0xba   : > { %v762_v16 = vmax.f32 %v698_v3, %v730_v9  ;;  %v683_v17 = vadd.f32 %v1232_v53, %v647_v13  ;;  %v655_v18 = vld [vmem:[#allocation2 + $0x58] sm:$0xff]  ;;  %613 = vst.msk [vmem:[#allocation2 + $0x20] sm:$0xff] %vm263_vm1, %v580_v10 }
  0xbb   : > { %v770_v19 = vmax.f32 %v706_v6, %v738_v12  ;;  %v691_v20 = vadd.f32 %v1232_v53, %v655_v18  ;;  %621 = vst.msk [vmem:[#allocation2 + $0x60] sm:$0xff] %vm263_vm1, %v588_v11  ;;  %v540_v21 = vpop.f32.mrf.mxu2  ;;  %v564_v22 = vpop.f32.mrf.mxu3 }
  0xbc   : > { %794 = vst.msk [vmem:[%s1245_s10 + $0x90] sm:$0xff] %vm263_vm1, %v762_v16  ;;  %v715_v23 = vmul.f32 0.2, %v683_v17  ;;  %v596_v24 = vadd.f32 %v540_v21, %v316_v14  ;;  %v604_v25 = vadd.f32 %v564_v22, %v324_v15  ;;  %v303_v21 = vld [vmem:[#allocation2 + $0x38] sm:$0xff] }
  0xbd   : > { %802 = vst.msk [vmem:[%s1245_s10 + $0xd0] sm:$0xff] %vm263_vm1, %v770_v19  ;;  %v723_v26 = vmul.f32 0.2, %v691_v20  ;;  %v663_v27 = vld [vmem:[#allocation2 + $0x98] sm:$0xff] }
  0xbe   : > { %v747_v30 = vmax.f32 %v683_v17, %v715_v23  ;;  %v699_v31 = vadd.f32 %v1232_v53, %v663_v27  ;;  %v671_v32 = vld [vmem:[#allocation2 + $0xd8] sm:$0xff]  ;;  %629 = vst.msk [vmem:[#allocation2 + $0xa0] sm:$0xff] %vm263_vm1, %v596_v24 }
  0xbf   : > { %v755_v33 = vmax.f32 %v691_v20, %v723_v26  ;;  %v707_v34 = vadd.f32 %v1232_v53, %v671_v32  ;;  %637 = vst.msk [vmem:[#allocation2 + $0xe0] sm:$0xff] %vm263_vm1, %v604_v25  ;;  %v495_v35 = vpop.f32.mrf.mxu0  ;;  %v519_v36 = vpop.f32.mrf.mxu1  ;;  %v311_v22 = vld [vmem:[#allocation2 + $0x78] sm:$0xff] }
  0xc0   : > { %779 = vst.msk [vmem:[%s1245_s10 + $0x18] sm:$0xff] %vm263_vm1, %v747_v30  ;;  %v731_v37 = vmul.f32 0.2, %v699_v31  ;;  %v581_v38 = vadd.f32 %v495_v35, %v301_v28  ;;  %v589_v39 = vadd.f32 %v519_v36, %v309_v29  ;;  %v319_v35 = vld [vmem:[#allocation2 + $0xb8] sm:$0xff] }
  0xc1   : > { %787 = vst.msk [vmem:[%s1245_s10 + $0x58] sm:$0xff] %vm263_vm1, %v755_v33  ;;  %v739_v40 = vmul.f32 0.2, %v707_v34  ;;  %v648_v41 = vld [vmem:[#allocation2 + $0x20] sm:$0xff]  ;;  %v327_v36 = vld [vmem:[#allocation2 + $0xf8] sm:$0xff] }
  0xc2   : > { %v763_v44 = vmax.f32 %v699_v31, %v731_v37  ;;  %v684_v45 = vadd.f32 %v1232_v53, %v648_v41  ;;  %v656_v46 = vld [vmem:[#allocation2 + $0x60] sm:$0xff]  ;;  %614 = vst.msk [vmem:[#allocation2 + $0x28] sm:$0xff] %vm263_vm1, %v581_v38 }
  0xc3   : > { %v771_v47 = vmax.f32 %v707_v34, %v739_v40  ;;  %v692_v48 = vadd.f32 %v1232_v53, %v656_v46  ;;  %622 = vst.msk [vmem:[#allocation2 + $0x68] sm:$0xff] %vm263_vm1, %v589_v39  ;;  %v543_v49 = vpop.f32.mrf.mxu2  ;;  %v567_v50 = vpop.f32.mrf.mxu3 }
  0xc4   : > { %795 = vst.msk [vmem:[%s1245_s10 + $0x98] sm:$0xff] %vm263_vm1, %v763_v44  ;;  %v716_v51 = vmul.f32 0.2, %v684_v45  ;;  %v597_v52 = vadd.f32 %v543_v49, %v317_v42  ;;  %v605_v54 = vadd.f32 %v567_v50, %v325_v43 }
  0xc5   : > { %803 = vst.msk [vmem:[%s1245_s10 + $0xd8] sm:$0xff] %vm263_vm1, %v771_v47  ;;  %v724_v55 = vmul.f32 0.2, %v692_v48  ;;  %v664_v56 = vld [vmem:[#allocation2 + $0xa0] sm:$0xff] }
  0xc6   : > { %v748_v59 = vmax.f32 %v684_v45, %v716_v51  ;;  %v700_v60 = vadd.f32 %v1232_v53, %v664_v56  ;;  %v672_v61 = vld [vmem:[#allocation2 + $0xe0] sm:$0xff]  ;;  %630 = vst.msk [vmem:[#allocation2 + $0xa8] sm:$0xff] %vm263_vm1, %v597_v52 }
  0xc7   : > { %v756_v62 = vmax.f32 %v692_v48, %v724_v55  ;;  %v708_v63 = vadd.f32 %v1232_v53, %v672_v61  ;;  %638 = vst.msk [vmem:[#allocation2 + $0xe8] sm:$0xff] %vm263_vm1, %v605_v54  ;;  %v498_v0 = vpop.f32.mrf.mxu0  ;;  %v522_v1 = vpop.f32.mrf.mxu1 }
  0xc8   : > { %780 = vst.msk [vmem:[%s1245_s10 + $0x20] sm:$0xff] %vm263_vm1, %v748_v59  ;;  %v732_v2 = vmul.f32 0.2, %v700_v60  ;;  %v582_v3 = vadd.f32 %v498_v0, %v302_v57  ;;  %v590_v4 = vadd.f32 %v522_v1, %v310_v58 }
  0xc9   : > { %788 = vst.msk [vmem:[%s1245_s10 + $0x60] sm:$0xff] %vm263_vm1, %v756_v62  ;;  %v740_v5 = vmul.f32 0.2, %v708_v63  ;;  %v649_v6 = vld [vmem:[#allocation2 + $0x28] sm:$0xff] }
  0xca   : > { %v764_v9 = vmax.f32 %v700_v60, %v732_v2  ;;  %v685_v10 = vadd.f32 %v1232_v53, %v649_v6  ;;  %v657_v11 = vld [vmem:[#allocation2 + $0x68] sm:$0xff]  ;;  %615 = vst.msk [vmem:[#allocation2 + $0x30] sm:$0xff] %vm263_vm1, %v582_v3 }
  0xcb   : > { %v772_v12 = vmax.f32 %v708_v63, %v740_v5  ;;  %v693_v13 = vadd.f32 %v1232_v53, %v657_v11  ;;  %623 = vst.msk [vmem:[#allocation2 + $0x70] sm:$0xff] %vm263_vm1, %v590_v4  ;;  %v546_v14 = vpop.f32.mrf.mxu2  ;;  %v570_v15 = vpop.f32.mrf.mxu3 }
  0xcc   : > { %796 = vst.msk [vmem:[%s1245_s10 + $0xa0] sm:$0xff] %vm263_vm1, %v764_v9  ;;  %v717_v16 = vmul.f32 0.2, %v685_v10  ;;  %v598_v17 = vadd.f32 %v546_v14, %v318_v7  ;;  %v606_v18 = vadd.f32 %v570_v15, %v326_v8 }
  0xcd   : > { %804 = vst.msk [vmem:[%s1245_s10 + $0xe0] sm:$0xff] %vm263_vm1, %v772_v12  ;;  %v725_v19 = vmul.f32 0.2, %v693_v13  ;;  %v665_v20 = vld [vmem:[#allocation2 + $0xa8] sm:$0xff] }
  0xce   : > { %v749_v23 = vmax.f32 %v685_v10, %v717_v16  ;;  %v701_v24 = vadd.f32 %v1232_v53, %v665_v20  ;;  %v673_v25 = vld [vmem:[#allocation2 + $0xe8] sm:$0xff]  ;;  %631 = vst.msk [vmem:[#allocation2 + $0xb0] sm:$0xff] %vm263_vm1, %v598_v17 }
  0xcf   : > { %v757_v26 = vmax.f32 %v693_v13, %v725_v19  ;;  %v709_v27 = vadd.f32 %v1232_v53, %v673_v25  ;;  %639 = vst.msk [vmem:[#allocation2 + $0xf0] sm:$0xff] %vm263_vm1, %v606_v18  ;;  %v501_v28 = vpop.f32.mrf.mxu0  ;;  %v525_v29 = vpop.f32.mrf.mxu1 }
  0xd0   : > { %781 = vst.msk [vmem:[%s1245_s10 + $0x28] sm:$0xff] %vm263_vm1, %v749_v23  ;;  %v733_v30 = vmul.f32 0.2, %v701_v24  ;;  %v583_v31 = vadd.f32 %v501_v28, %v303_v21  ;;  %v591_v32 = vadd.f32 %v525_v29, %v311_v22 }
  0xd1   : > { %789 = vst.msk [vmem:[%s1245_s10 + $0x68] sm:$0xff] %vm263_vm1, %v757_v26  ;;  %v741_v33 = vmul.f32 0.2, %v709_v27  ;;  %v650_v34 = vld [vmem:[#allocation2 + $0x30] sm:$0xff] }
  0xd2   : > { %v765_v37 = vmax.f32 %v701_v24, %v733_v30  ;;  %v686_v38 = vadd.f32 %v1232_v53, %v650_v34  ;;  %v658_v39 = vld [vmem:[#allocation2 + $0x70] sm:$0xff]  ;;  %616 = vst.msk [vmem:[#allocation2 + $0x38] sm:$0xff] %vm263_vm1, %v583_v31 }
  0xd3   : > { %v773_v40 = vmax.f32 %v709_v27, %v741_v33  ;;  %v694_v41 = vadd.f32 %v1232_v53, %v658_v39  ;;  %624 = vst.msk [vmem:[#allocation2 + $0x78] sm:$0xff] %vm263_vm1, %v591_v32  ;;  %v549_v42 = vpop.f32.mrf.mxu2  ;;  %v573_v43 = vpop.f32.mrf.mxu3 }
  0xd4   : > { %797 = vst.msk [vmem:[%s1245_s10 + $0xa8] sm:$0xff] %vm263_vm1, %v765_v37  ;;  %v718_v44 = vmul.f32 0.2, %v686_v38  ;;  %v599_v45 = vadd.f32 %v549_v42, %v319_v35  ;;  %v607_v46 = vadd.f32 %v573_v43, %v327_v36 }
  0xd5   : > { %805 = vst.msk [vmem:[%s1245_s10 + $0xe8] sm:$0xff] %vm263_vm1, %v773_v40  ;;  %v726_v47 = vmul.f32 0.2, %v694_v41  ;;  %v666_v48 = vld [vmem:[#allocation2 + $0xb0] sm:$0xff] }
  0xd6   : > { %v750_v49 = vmax.f32 %v686_v38, %v718_v44  ;;  %v702_v50 = vadd.f32 %v1232_v53, %v666_v48  ;;  %v674_v51 = vld [vmem:[#allocation2 + $0xf0] sm:$0xff]  ;;  %632 = vst.msk [vmem:[#allocation2 + $0xb8] sm:$0xff] %vm263_vm1, %v599_v45 }
  0xd7   : > { %v758_v52 = vmax.f32 %v694_v41, %v726_v47  ;;  %v710_v54 = vadd.f32 %v1232_v53, %v674_v51  ;;  %640 = vst.msk [vmem:[#allocation2 + $0xf8] sm:$0xff] %vm263_vm1, %v607_v46 }
  0xd8   : > { %782 = vst.msk [vmem:[%s1245_s10 + $0x30] sm:$0xff] %vm263_vm1, %v750_v49  ;;  %v734_v55 = vmul.f32 0.2, %v702_v50 }
  0xd9   : > { %790 = vst.msk [vmem:[%s1245_s10 + $0x70] sm:$0xff] %vm263_vm1, %v758_v52  ;;  %v742_v56 = vmul.f32 0.2, %v710_v54  ;;  %v651_v57 = vld [vmem:[#allocation2 + $0x38] sm:$0xff] }
  0xda   : > { %v766_v58 = vmax.f32 %v702_v50, %v734_v55  ;;  %v687_v59 = vadd.f32 %v1232_v53, %v651_v57  ;;  %v659_v60 = vld [vmem:[#allocation2 + $0x78] sm:$0xff] }
  0xdb   : > { %v774_v61 = vmax.f32 %v710_v54, %v742_v56  ;;  %v695_v62 = vadd.f32 %v1232_v53, %v659_v60 }
  0xdc   : > { %798 = vst.msk [vmem:[%s1245_s10 + $0xb0] sm:$0xff] %vm263_vm1, %v766_v58  ;;  %v719_v63 = vmul.f32 0.2, %v687_v59 }
  0xdd   : > { %806 = vst.msk [vmem:[%s1245_s10 + $0xf0] sm:$0xff] %vm263_vm1, %v774_v61  ;;  %v727_v0 = vmul.f32 0.2, %v695_v62  ;;  %v667_v1 = vld [vmem:[#allocation2 + $0xb8] sm:$0xff] }
  0xde   : > { %v751_v2 = vmax.f32 %v687_v59, %v719_v63  ;;  %v703_v3 = vadd.f32 %v1232_v53, %v667_v1  ;;  %v675_v4 = vld [vmem:[#allocation2 + $0xf8] sm:$0xff] }
  0xdf   : > { %v759_v5 = vmax.f32 %v695_v62, %v727_v0  ;;  %v711_v6 = vadd.f32 %v1232_v53, %v675_v4 }
  0xe0   : > { %783 = vst.msk [vmem:[%s1245_s10 + $0x38] sm:$0xff] %vm263_vm1, %v751_v2  ;;  %v735_v7 = vmul.f32 0.2, %v703_v3 }
  0xe1   : > { %791 = vst.msk [vmem:[%s1245_s10 + $0x78] sm:$0xff] %vm263_vm1, %v759_v5  ;;  %v743_v8 = vmul.f32 0.2, %v711_v6 }
  0xe2   : > { %v767_v9 = vmax.f32 %v703_v3, %v735_v7 }
  0xe3   : > { %v775_v10 = vmax.f32 %v711_v6, %v743_v8 }
  0xe4   : > { %799 = vst.msk [vmem:[%s1245_s10 + $0xb8] sm:$0xff] %vm263_vm1, %v767_v9 }
  0xe5   : > { %807 = vst.msk [vmem:[%s1245_s10 + $0xf8] sm:$0xff] %vm263_vm1, %v775_v10 }
  0xe6 PF: > { %s13_s14 = sadd.s32 1, %s1030_s14   ;;  %s1380_s12 = smov %s1026_s13 }
  0xe7   : > { %p10_p5 = scmp.ge.s32.totalorder %s13_s14, 10   ;;  %s1381_s13 = smov %s1383_s15 }
  0xe9   :  { %12 = sbr.rel (!%p10_p5) target bundleno = 2 (0x2), region = 76 }

// kernel: discriminator_forward.13
= control target key start
LH: loop header
LB: loop body
LE: loop exit
PB: predicated region body
PF: predicated region fallthrough
CT: control target
= control target key end

     0   :  { %s355_s9 = smov 0   ;;  %s421_s0 = inlined_call_operand.vmem [shape: f32[512,128], index: 0, kind: input, shape index: {}]   ;;  %s422_s1 = inlined_call_operand.vmem [shape: f32[1,128], index: 1, kind: output, shape index: {0}]   ;;  %s423_s2 = inlined_call_operand.vmem [shape: f32[1,128], index: 2, kind: output, shape index: {1}]  }
   0x1 LB: > { %s313_s10 = sadd.s32 4294967295, %s337_s9   ;;  %p316_p0 = scmp.ge.s32.totalorder %s337_s9, 1  ;;  %s337_s9 = sphi %s355_s9, %s13_s9  }
   0x2   : > { %p106_p1 = scmp.lt.s32.totalorder %s337_s9, 3 }
   0x4   : > { %p107_p2 = pnand %p316_p0, %p106_p1 }
   0x5   : > { %s317_s11 = sshll.u32 (!%p107_p2), %s313_s10, 5  ;;  %p319_p4 = scmp.ne.s32.totalorder (!%p107_p2), %s313_s10, 0 }
   0x6   : > { %110 = sbr.rel (%p107_p2) target bundleno = 99 (0x63), region = 24  ;;  %p124_p3 = scmp.lt.s32.totalorder (!%p107_p2), %s317_s11, 63 }
   0xb   : > { %s425_s11 = smov (!%p124_p3, %s317_s11), 63  ;;  %132 = sbr.rel (%p319_p4) target bundleno = 19 (0x13), region = 28 }
   0xc   : > { %s318_s12 = sshll.u32 %s425_s11, 3 }
   0xd   : > { %s366_s15 = scalar_lea.vmem %s421_s0, %s318_s12 }
  0x10   : > { %v339_v0 = vmov 0.0  }
  0x11   : > { %133 = vst [vmem:[%s422_s1] sm:$0x1] %v339_v0 }
  0x12   : > { %134 = vst [vmem:[%s423_s2] sm:$0x1] %v339_v0 }
  0x13 PF: > { %v135_v1 = vld [vmem:[%s366_s15] sm:$0xff]  ;;  %v136_v2 = vld [vmem:[%s366_s15 + $0x8] sm:$0xff]  ;;  %v137_v3 = vld [vmem:[%s366_s15 + $0x10] sm:$0xff] }
  0x14   : > { %v138_v4 = vld [vmem:[%s366_s15 + $0x18] sm:$0xff]  ;;  %v168_v5 = vadd.f32 %v136_v2, %v135_v1  ;;  %v208_v6 = vmul.f32 %v135_v1, %v135_v1  ;;  %v209_v7 = vmul.f32 %v136_v2, %v136_v2  ;;  %v210_v8 = vmul.f32 %v137_v3, %v137_v3  ;;  %v139_v9 = vld [vmem:[%s366_s15 + $0x20] sm:$0xff]  ;;  %v140_v13 = vld [vmem:[%s366_s15 + $0x28] sm:$0xff] }
  0x15   : > { %v211_v11 = vmul.f32 %v138_v4, %v138_v4  ;;  %v212_v15 = vmul.f32 %v139_v9, %v139_v9  ;;  %v141_v17 = vld [vmem:[%s366_s15 + $0x30] sm:$0xff]  ;;  %v213_v19 = vmul.f32 %v140_v13, %v140_v13  ;;  %v142_v21 = vld [vmem:[%s366_s15 + $0x38] sm:$0xff]  ;;  %v143_v25 = vld [vmem:[%s366_s15 + $0x40] sm:$0xff] }
  0x16   : > { %v169_v10 = vadd.f32 %v168_v5, %v137_v3  ;;  %v240_v12 = vadd.f32 %v209_v7, %v208_v6  ;;  %v214_v23 = vmul.f32 %v141_v17, %v141_v17  ;;  %v215_v27 = vmul.f32 %v142_v21, %v142_v21  ;;  %v144_v29 = vld [vmem:[%s366_s15 + $0x48] sm:$0xff]  ;;  %v145_v33 = vld [vmem:[%s366_s15 + $0x50] sm:$0xff]  ;;  %v146_v37 = vld [vmem:[%s366_s15 + $0x58] sm:$0xff] }
  0x17   : > { %v216_v31 = vmul.f32 %v143_v25, %v143_v25  ;;  %v217_v35 = vmul.f32 %v144_v29, %v144_v29  ;;  %v218_v39 = vmul.f32 %v145_v33, %v145_v33  ;;  %v147_v41 = vld [vmem:[%s366_s15 + $0x60] sm:$0xff]  ;;  %v219_v43 = vmul.f32 %v146_v37, %v146_v37  ;;  %v148_v45 = vld [vmem:[%s366_s15 + $0x68] sm:$0xff]  ;;  %v149_v49 = vld [vmem:[%s366_s15 + $0x70] sm:$0xff] }
  0x18   : > { %v170_v14 = vadd.f32 %v169_v10, %v138_v4  ;;  %v241_v16 = vadd.f32 %v240_v12, %v210_v8  ;;  %v220_v47 = vmul.f32 %v147_v41, %v147_v41  ;;  %v221_v51 = vmul.f32 %v148_v45, %v148_v45  ;;  %v150_v53 = vld [vmem:[%s366_s15 + $0x78] sm:$0xff]  ;;  %v151_v57 = vld [vmem:[%s366_s15 + $0x80] sm:$0xff]  ;;  %v152_v61 = vld [vmem:[%s366_s15 + $0x88] sm:$0xff] }
  0x19   : > { %v222_v55 = vmul.f32 %v149_v49, %v149_v49  ;;  %v223_v59 = vmul.f32 %v150_v53, %v150_v53  ;;  %v224_v63 = vmul.f32 %v151_v57, %v151_v57  ;;  %v153_v1 = vld [vmem:[%s366_s15 + $0x90] sm:$0xff]  ;;  %v225_v3 = vmul.f32 %v152_v61, %v152_v61  ;;  %v154_v5 = vld [vmem:[%s366_s15 + $0x98] sm:$0xff] }
  0x1a   : > { %v171_v18 = vadd.f32 %v170_v14, %v139_v9  ;;  %v242_v20 = vadd.f32 %v241_v16, %v211_v11  ;;  %v226_v7 = vmul.f32 %v153_v1, %v153_v1  ;;  %v155_v9 = vld [vmem:[%s366_s15 + $0xa0] sm:$0xff]  ;;  %v227_v11 = vmul.f32 %v154_v5, %v154_v5 }
  0x1c   : > { %v172_v22 = vadd.f32 %v171_v18, %v140_v13  ;;  %v243_v24 = vadd.f32 %v242_v20, %v212_v15  ;;  %v156_v13 = vld [vmem:[%s366_s15 + $0xa8] sm:$0xff]  ;;  %v228_v15 = vmul.f32 %v155_v9, %v155_v9 }
  0x1e   : > { %v173_v26 = vadd.f32 %v172_v22, %v141_v17  ;;  %v244_v28 = vadd.f32 %v243_v24, %v213_v19  ;;  %v157_v17 = vld [vmem:[%s366_s15 + $0xb0] sm:$0xff]  ;;  %v229_v19 = vmul.f32 %v156_v13, %v156_v13 }
  0x20   : > { %v174_v30 = vadd.f32 %v173_v26, %v142_v21  ;;  %v245_v32 = vadd.f32 %v244_v28, %v214_v23  ;;  %v158_v21 = vld [vmem:[%s366_s15 + $0xb8] sm:$0xff]  ;;  %v230_v23 = vmul.f32 %v157_v17, %v157_v17 }
  0x22   : > { %v175_v34 = vadd.f32 %v174_v30, %v143_v25  ;;  %v246_v36 = vadd.f32 %v245_v32, %v215_v27  ;;  %v159_v25 = vld [vmem:[%s366_s15 + $0xc0] sm:$0xff]  ;;  %v231_v27 = vmul.f32 %v158_v21, %v158_v21 }
  0x24   : > { %v176_v38 = vadd.f32 %v175_v34, %v144_v29  ;;  %v247_v40 = vadd.f32 %v246_v36, %v216_v31  ;;  %v160_v29 = vld [vmem:[%s366_s15 + $0xc8] sm:$0xff]  ;;  %v232_v31 = vmul.f32 %v159_v25, %v159_v25 }
  0x26   : > { %v177_v42 = vadd.f32 %v176_v38, %v145_v33  ;;  %v248_v44 = vadd.f32 %v247_v40, %v217_v35  ;;  %v161_v33 = vld [vmem:[%s366_s15 + $0xd0] sm:$0xff]  ;;  %v233_v35 = vmul.f32 %v160_v29, %v160_v29 }
  0x28   : > { %v178_v46 = vadd.f32 %v177_v42, %v146_v37  ;;  %v249_v48 = vadd.f32 %v248_v44, %v218_v39  ;;  %v162_v37 = vld [vmem:[%s366_s15 + $0xd8] sm:$0xff]  ;;  %v234_v39 = vmul.f32 %v161_v33, %v161_v33 }
  0x2a   : > { %v179_v50 = vadd.f32 %v178_v46, %v147_v41  ;;  %v250_v52 = vadd.f32 %v249_v48, %v219_v43  ;;  %v163_v41 = vld [vmem:[%s366_s15 + $0xe0] sm:$0xff]  ;;  %v235_v43 = vmul.f32 %v162_v37, %v162_v37 }
  0x2c   : > { %v180_v54 = vadd.f32 %v179_v50, %v148_v45  ;;  %v251_v56 = vadd.f32 %v250_v52, %v220_v47  ;;  %v164_v45 = vld [vmem:[%s366_s15 + $0xe8] sm:$0xff]  ;;  %v236_v47 = vmul.f32 %v163_v41, %v163_v41 }
  0x2e   : > { %v181_v58 = vadd.f32 %v180_v54, %v149_v49  ;;  %v252_v60 = vadd.f32 %v251_v56, %v221_v51  ;;  %v165_v49 = vld [vmem:[%s366_s15 + $0xf0] sm:$0xff]  ;;  %v237_v51 = vmul.f32 %v164_v45, %v164_v45 }
  0x30   : > { %v182_v62 = vadd.f32 %v181_v58, %v150_v53  ;;  %v253_v0 = vadd.f32 %v252_v60, %v222_v55  ;;  %v166_v53 = vld [vmem:[%s366_s15 + $0xf8] sm:$0xff]  ;;  %v238_v55 = vmul.f32 %v165_v49, %v165_v49 }
  0x31   : > { %v239_v58 = vmul.f32 %v166_v53, %v166_v53 }
  0x32   : > { %v183_v2 = vadd.f32 %v182_v62, %v151_v57  ;;  %v254_v4 = vadd.f32 %v253_v0, %v223_v59 }
  0x34   : > { %v184_v6 = vadd.f32 %v183_v2, %v152_v61  ;;  %v255_v8 = vadd.f32 %v254_v4, %v224_v63 }
  0x36   : > { %v185_v10 = vadd.f32 %v184_v6, %v153_v1  ;;  %v256_v12 = vadd.f32 %v255_v8, %v225_v3 }
  0x38   : > { %v186_v14 = vadd.f32 %v185_v10, %v154_v5  ;;  %v257_v16 = vadd.f32 %v256_v12, %v226_v7  ;;  %v167_v7 = vld [vmem:[%s422_s1] sm:$0x1] }
  0x39   : > { %v207_v12 = vld [vmem:[%s423_s2] sm:$0x1] }
  0x3a   : > { %v187_v18 = vadd.f32 %v186_v14, %v155_v9  ;;  %v258_v20 = vadd.f32 %v257_v16, %v227_v11 }
  0x3c   : > { %v188_v22 = vadd.f32 %v187_v18, %v156_v13  ;;  %v259_v24 = vadd.f32 %v258_v20, %v228_v15 }
  0x3e   : > { %v189_v26 = vadd.f32 %v188_v22, %v157_v17  ;;  %v260_v28 = vadd.f32 %v259_v24, %v229_v19 }
  0x40   : > { %v190_v30 = vadd.f32 %v189_v26, %v158_v21  ;;  %v261_v32 = vadd.f32 %v260_v28, %v230_v23 }
  0x42   : > { %v191_v34 = vadd.f32 %v190_v30, %v159_v25  ;;  %v262_v36 = vadd.f32 %v261_v32, %v231_v27 }
  0x44   : > { %v192_v38 = vadd.f32 %v191_v34, %v160_v29  ;;  %v263_v40 = vadd.f32 %v262_v36, %v232_v31 }
  0x46   : > { %v193_v42 = vadd.f32 %v192_v38, %v161_v33  ;;  %v264_v44 = vadd.f32 %v263_v40, %v233_v35 }
  0x48   : > { %v194_v46 = vadd.f32 %v193_v42, %v162_v37  ;;  %v265_v48 = vadd.f32 %v264_v44, %v234_v39 }
  0x4a   : > { %v195_v50 = vadd.f32 %v194_v46, %v163_v41  ;;  %v266_v52 = vadd.f32 %v265_v48, %v235_v43 }
  0x4c   : > { %v196_v54 = vadd.f32 %v195_v50, %v164_v45  ;;  %v267_v56 = vadd.f32 %v266_v52, %v236_v47 }
  0x4e   : > { %v197_v57 = vadd.f32 %v196_v54, %v165_v49  ;;  %v268_v59 = vadd.f32 %v267_v56, %v237_v51 }
  0x50   : > { %v198_v60 = vadd.f32 %v197_v57, %v166_v53  ;;  %v269_v61 = vadd.f32 %v268_v59, %v238_v55 }
  0x52   : > { %v199_v62 = vrot.slane %v198_v60, 4  ;;  %v270_v63 = vadd.f32 %v269_v61, %v239_v58 }
  0x54   : > { %v200_v0 = vadd.f32 %v199_v62, %v198_v60  ;;  %v271_v1 = vrot.slane %v270_v63, 4 }
  0x56   : > { %v201_v2 = vrot.slane %v200_v0, 2  ;;  %v272_v3 = vadd.f32 %v271_v1, %v270_v63 }
  0x58   : > { %v202_v4 = vadd.f32 %v201_v2, %v200_v0  ;;  %v273_v5 = vrot.slane %v272_v3, 2 }
  0x5a   : > { %v203_v6 = vrot.slane %v202_v4, 1  ;;  %v274_v8 = vadd.f32 %v273_v5, %v272_v3 }
  0x5c   : > { %v204_v9 = vadd.f32 %v203_v6, %v202_v4  ;;  %v275_v10 = vrot.slane %v274_v8, 1 }
  0x5e   : > { %v205_v11 = vadd.f32 %v204_v9, %v167_v7  ;;  %v276_v13 = vadd.f32 %v275_v10, %v274_v8 }
  0x60   : > { %206 = vst [vmem:[%s422_s1] sm:$0x1] %v205_v11  ;;  %v277_v14 = vadd.f32 %v276_v13, %v207_v12 }
  0x62   : > { %278 = vst [vmem:[%s423_s2] sm:$0x1] %v277_v14 }
  0x63 PF: > { %s13_s9 = sadd.s32 1, %s337_s9  }
  0x64   : > { %p10_p5 = scmp.ge.s32.totalorder %s13_s9, 4  }
  0x66   :  { %12 = sbr.rel (!%p10_p5) target bundleno = 1 (0x1), region = 62 }

// kernel: discriminator_forward.12
= control target key start
LH: loop header
LB: loop body
LE: loop exit
PB: predicated region body
PF: predicated region fallthrough
CT: control target
= control target key end

     0   :  { %s1951_s12 = smov 0   ;;  %s1953_s13 = smov 0   ;;  %s2773_s0 = inlined_call_operand.vmem [shape: f32[512,1024], index: 0, kind: input, shape index: {}]   ;;  %s2774_s1 = inlined_call_operand.vmem [shape: f32[1024,128], index: 1, kind: input, shape index: {}]   ;;  %s2775_s2 = inlined_call_operand.vmem [shape: f32[1,128], index: 2, kind: input, shape index: {}]   ;;  %s2776_s3 = inlined_call_operand.vmem [shape: f32[512,128], index: 3, kind: output, shape index: {}]  }
   0x1   :  { %s1955_s14 = smov 0  }
   0x2 LB: > { %s32_s2 = sadd.s32 1, %s1925_s13  ;;  %p1874_p0 = scmp.ge.s32.totalorder %s1929_s14, 1  ;;  %s1929_s14 = sphi %s1955_s14, %s13_s14   ;;  %s1925_s13 = sphi %s1953_s13, %s2779_s13   ;;  %s1921_s12 = sphi %s1951_s12, %s2778_s12  }
   0x3   : > { %p34_p1 = scmp.ge.s32.totalorder %s32_s2, 2  ;;  %p191_p2 = scmp.lt.s32.totalorder %s1929_s14, 3 }
   0x5   : > { %s2781_s2 = smov (%p34_p1, %s32_s2), 0  ;;  %p192_p3 = pnand %p1874_p0, %p191_p2 }
   0x6   : > { %s1875_s27 = sshll.u32 (!%p192_p3), %s1921_s12, 5 }
   0x7   : > { %195 = sbr.rel (%p192_p3) target bundleno = 687 (0x2af), region = 32  ;;  %p2082_p4 = scmp.lt.s32.totalorder (!%p192_p3), %s1875_s27, 63 }
   0xc   : > { %v606_v0 = vld [vmem:[%s2774_s1 + $0x78] sm:$0xff]  ;;  %v605_v2 = vld [vmem:[%s2774_s1 + $0x70] sm:$0xff]  ;;  %v604_v6 = vld [vmem:[%s2774_s1 + $0x68] sm:$0xff]  ;;  %s2783_s27 = smov (!%p2082_p4, %s1875_s27), 63 }
   0xd   : > { %v638_v1 = vld [vmem:[%s2774_s1 + $0x178] sm:$0xff]  ;;  %719 = vmatpush.msra.mxu0 %v606_v0  ;;  %v637_v4 = vld [vmem:[%s2774_s1 + $0x170] sm:$0xff]  ;;  %v636_v8 = vld [vmem:[%s2774_s1 + $0x168] sm:$0xff]  ;;  %s1882_s25 = sshll.u32 %s2783_s27, 6  ;;  %s1879_s19 = sshll.u32 %s2783_s27, 3 }
   0xe   : > { %945 = vmatpush.msra.mxu2 %v638_v1  ;;  %v622_v3 = vld [vmem:[%s2774_s1 + $0xf8] sm:$0xff]  ;;  %v621_v7 = vld [vmem:[%s2774_s1 + $0xf0] sm:$0xff]  ;;  %v620_v10 = vld [vmem:[%s2774_s1 + $0xe8] sm:$0xff]  ;;  %s2162_s16 = scalar_lea.vmem %s2773_s0, %s1882_s25  ;;  %s2642_s22 = scalar_lea.vmem %s2776_s3, %s1879_s19 }
   0xf   : > { %v654_v5 = vld [vmem:[%s2774_s1 + $0x1f8] sm:$0xff]  ;;  %832 = vmatpush.msra.mxu1 %v622_v3  ;;  %720 = vmatpush.msra.mxu0 %v605_v2  ;;  %v653_v9 = vld [vmem:[%s2774_s1 + $0x1f0] sm:$0xff]  ;;  %v603_v11 = vld [vmem:[%s2774_s1 + $0x60] sm:$0xff] }
  0x10   : > { %1058 = vmatpush.msra.mxu3 %v654_v5  ;;  %946 = vmatpush.msra.mxu2 %v637_v4  ;;  %v635_v12 = vld [vmem:[%s2774_s1 + $0x160] sm:$0xff]  ;;  %v652_v13 = vld [vmem:[%s2774_s1 + $0x1e8] sm:$0xff]  ;;  %v602_v16 = vld [vmem:[%s2774_s1 + $0x58] sm:$0xff] }
  0x11   : > { %833 = vmatpush.msra.mxu1 %v621_v7  ;;  %721 = vmatpush.msra.mxu0 %v604_v6  ;;  %v619_v14 = vld [vmem:[%s2774_s1 + $0xe0] sm:$0xff]  ;;  %v634_v17 = vld [vmem:[%s2774_s1 + $0x158] sm:$0xff]  ;;  %v601_v20 = vld [vmem:[%s2774_s1 + $0x50] sm:$0xff] }
  0x12   : > { %1059 = vmatpush.msra.mxu3 %v653_v9  ;;  %947 = vmatpush.msra.mxu2 %v636_v8  ;;  %v651_v15 = vld [vmem:[%s2774_s1 + $0x1e0] sm:$0xff]  ;;  %v618_v18 = vld [vmem:[%s2774_s1 + $0xd8] sm:$0xff]  ;;  %v633_v21 = vld [vmem:[%s2774_s1 + $0x150] sm:$0xff] }
  0x13   : > { %834 = vmatpush.msra.mxu1 %v620_v10  ;;  %722 = vmatpush.msra.mxu0 %v603_v11  ;;  %v650_v19 = vld [vmem:[%s2774_s1 + $0x1d8] sm:$0xff]  ;;  %v617_v22 = vld [vmem:[%s2774_s1 + $0xd0] sm:$0xff]  ;;  %v600_v24 = vld [vmem:[%s2774_s1 + $0x48] sm:$0xff] }
  0x14   : > { %1060 = vmatpush.msra.mxu3 %v652_v13  ;;  %948 = vmatpush.msra.mxu2 %v635_v12  ;;  %v649_v23 = vld [vmem:[%s2774_s1 + $0x1d0] sm:$0xff]  ;;  %v632_v25 = vld [vmem:[%s2774_s1 + $0x148] sm:$0xff]  ;;  %v599_v28 = vld [vmem:[%s2774_s1 + $0x40] sm:$0xff] }
  0x15   : > { %835 = vmatpush.msra.mxu1 %v619_v14  ;;  %723 = vmatpush.msra.mxu0 %v602_v16  ;;  %v616_v26 = vld [vmem:[%s2774_s1 + $0xc8] sm:$0xff]  ;;  %v631_v29 = vld [vmem:[%s2774_s1 + $0x140] sm:$0xff]  ;;  %v598_v32 = vld [vmem:[%s2774_s1 + $0x38] sm:$0xff] }
  0x16   : > { %1061 = vmatpush.msra.mxu3 %v651_v15  ;;  %949 = vmatpush.msra.mxu2 %v634_v17  ;;  %v648_v27 = vld [vmem:[%s2774_s1 + $0x1c8] sm:$0xff]  ;;  %v615_v30 = vld [vmem:[%s2774_s1 + $0xc0] sm:$0xff]  ;;  %v630_v33 = vld [vmem:[%s2774_s1 + $0x138] sm:$0xff] }
  0x17   : > { %836 = vmatpush.msra.mxu1 %v618_v18  ;;  %724 = vmatpush.msra.mxu0 %v601_v20  ;;  %v647_v31 = vld [vmem:[%s2774_s1 + $0x1c0] sm:$0xff]  ;;  %v614_v34 = vld [vmem:[%s2774_s1 + $0xb8] sm:$0xff]  ;;  %v597_v36 = vld [vmem:[%s2774_s1 + $0x30] sm:$0xff] }
  0x18   : > { %1062 = vmatpush.msra.mxu3 %v650_v19  ;;  %950 = vmatpush.msra.mxu2 %v633_v21  ;;  %v646_v35 = vld [vmem:[%s2774_s1 + $0x1b8] sm:$0xff]  ;;  %v629_v37 = vld [vmem:[%s2774_s1 + $0x130] sm:$0xff]  ;;  %v596_v40 = vld [vmem:[%s2774_s1 + $0x28] sm:$0xff] }
  0x19   : > { %837 = vmatpush.msra.mxu1 %v617_v22  ;;  %725 = vmatpush.msra.mxu0 %v600_v24  ;;  %v613_v38 = vld [vmem:[%s2774_s1 + $0xb0] sm:$0xff]  ;;  %v628_v41 = vld [vmem:[%s2774_s1 + $0x128] sm:$0xff]  ;;  %v595_v44 = vld [vmem:[%s2774_s1 + $0x20] sm:$0xff] }
  0x1a   : > { %1063 = vmatpush.msra.mxu3 %v649_v23  ;;  %951 = vmatpush.msra.mxu2 %v632_v25  ;;  %v645_v39 = vld [vmem:[%s2774_s1 + $0x1b0] sm:$0xff]  ;;  %v612_v42 = vld [vmem:[%s2774_s1 + $0xa8] sm:$0xff]  ;;  %v627_v45 = vld [vmem:[%s2774_s1 + $0x120] sm:$0xff] }
  0x1b   : > { %838 = vmatpush.msra.mxu1 %v616_v26  ;;  %726 = vmatpush.msra.mxu0 %v599_v28  ;;  %v644_v43 = vld [vmem:[%s2774_s1 + $0x1a8] sm:$0xff]  ;;  %v611_v46 = vld [vmem:[%s2774_s1 + $0xa0] sm:$0xff]  ;;  %v594_v48 = vld [vmem:[%s2774_s1 + $0x18] sm:$0xff] }
  0x1c   : > { %1064 = vmatpush.msra.mxu3 %v648_v27  ;;  %952 = vmatpush.msra.mxu2 %v631_v29  ;;  %v643_v47 = vld [vmem:[%s2774_s1 + $0x1a0] sm:$0xff]  ;;  %v626_v49 = vld [vmem:[%s2774_s1 + $0x118] sm:$0xff]  ;;  %v593_v52 = vld [vmem:[%s2774_s1 + $0x10] sm:$0xff] }
  0x1d   : > { %839 = vmatpush.msra.mxu1 %v615_v30  ;;  %727 = vmatpush.msra.mxu0 %v598_v32  ;;  %v610_v50 = vld [vmem:[%s2774_s1 + $0x98] sm:$0xff]  ;;  %v625_v53 = vld [vmem:[%s2774_s1 + $0x110] sm:$0xff]  ;;  %v592_v56 = vld [vmem:[%s2774_s1 + $0x8] sm:$0xff] }
  0x1e   : > { %1065 = vmatpush.msra.mxu3 %v647_v31  ;;  %953 = vmatpush.msra.mxu2 %v630_v33  ;;  %v642_v51 = vld [vmem:[%s2774_s1 + $0x198] sm:$0xff]  ;;  %v609_v54 = vld [vmem:[%s2774_s1 + $0x90] sm:$0xff]  ;;  %v624_v57 = vld [vmem:[%s2774_s1 + $0x108] sm:$0xff] }
  0x1f   : > { %840 = vmatpush.msra.mxu1 %v614_v34  ;;  %728 = vmatpush.msra.mxu0 %v597_v36  ;;  %v641_v55 = vld [vmem:[%s2774_s1 + $0x190] sm:$0xff]  ;;  %v608_v58 = vld [vmem:[%s2774_s1 + $0x88] sm:$0xff]  ;;  %v591_v60 = vld [vmem:[%s2774_s1] sm:$0xff] }
  0x20   : > { %1066 = vmatpush.msra.mxu3 %v646_v35  ;;  %954 = vmatpush.msra.mxu2 %v629_v37  ;;  %v640_v59 = vld [vmem:[%s2774_s1 + $0x188] sm:$0xff]  ;;  %v623_v61 = vld [vmem:[%s2774_s1 + $0x100] sm:$0xff]  ;;  %v337_v63 = vld [vmem:[%s2162_s16 + $0x10] sm:$0xff] }
  0x21   : > { %841 = vmatpush.msra.mxu1 %v613_v38  ;;  %729 = vmatpush.msra.mxu0 %v596_v40  ;;  %v335_v62 = vld [vmem:[%s2162_s16] sm:$0xff]  ;;  %v702_v0 = vld [vmem:[%s2774_s1 + $0x378] sm:$0xff]  ;;  %v336_v3 = vld [vmem:[%s2162_s16 + $0x8] sm:$0xff] }
  0x22   : > { %1067 = vmatpush.msra.mxu3 %v645_v39  ;;  %955 = vmatpush.msra.mxu2 %v628_v41  ;;  %v607_v1 = vld [vmem:[%s2774_s1 + $0x80] sm:$0xff]  ;;  %v338_v4 = vld [vmem:[%s2162_s16 + $0x18] sm:$0xff]  ;;  %v701_v8 = vld [vmem:[%s2774_s1 + $0x370] sm:$0xff] }
  0x23   : > { %842 = vmatpush.msra.mxu1 %v612_v42  ;;  %730 = vmatpush.msra.mxu0 %v595_v44  ;;  %v639_v2 = vld [vmem:[%s2774_s1 + $0x180] sm:$0xff]  ;;  %v670_v5 = vld [vmem:[%s2774_s1 + $0x278] sm:$0xff]  ;;  %v669_v9 = vld [vmem:[%s2774_s1 + $0x270] sm:$0xff] }
  0x24   : > { %1068 = vmatpush.msra.mxu3 %v644_v43  ;;  %956 = vmatpush.msra.mxu2 %v627_v45  ;;  %v718_v6 = vld [vmem:[%s2774_s1 + $0x3f8] sm:$0xff]  ;;  %v717_v10 = vld [vmem:[%s2774_s1 + $0x3f0] sm:$0xff]  ;;  %v700_v12 = vld [vmem:[%s2774_s1 + $0x368] sm:$0xff] }
  0x25   : > { %843 = vmatpush.msra.mxu1 %v611_v46  ;;  %731 = vmatpush.msra.mxu0 %v594_v48  ;;  %v686_v7 = vld [vmem:[%s2774_s1 + $0x2f8] sm:$0xff]  ;;  %v685_v11 = vld [vmem:[%s2774_s1 + $0x2f0] sm:$0xff]  ;;  %v668_v13 = vld [vmem:[%s2774_s1 + $0x268] sm:$0xff] }
  0x26   : > { %1069 = vmatpush.msra.mxu3 %v643_v47  ;;  %957 = vmatpush.msra.mxu2 %v626_v49  ;;  %v343_v14 = vld [vmem:[%s2162_s16 + $0x40] sm:$0xff]  ;;  %v345_v15 = vld [vmem:[%s2162_s16 + $0x50] sm:$0xff]  ;;  %v716_v16 = vld [vmem:[%s2774_s1 + $0x3e8] sm:$0xff] }
  0x27   : > { %844 = vmatpush.msra.mxu1 %v610_v50  ;;  %732 = vmatpush.msra.mxu0 %v593_v52  ;;  %v684_v17 = vld [vmem:[%s2774_s1 + $0x2e8] sm:$0xff]  ;;  %v346_v19 = vld [vmem:[%s2162_s16 + $0x58] sm:$0xff]  ;;  %v351_v20 = vld [vmem:[%s2162_s16 + $0x80] sm:$0xff] }
  0x28   : > { %1070 = vmatpush.msra.mxu3 %v642_v51  ;;  %958 = vmatpush.msra.mxu2 %v625_v53  ;;  %v344_v18 = vld [vmem:[%s2162_s16 + $0x48] sm:$0xff]  ;;  %v353_v21 = vld [vmem:[%s2162_s16 + $0x90] sm:$0xff]  ;;  %v354_v23 = vld [vmem:[%s2162_s16 + $0x98] sm:$0xff] }
  0x29   : > { %845 = vmatpush.msra.mxu1 %v609_v54  ;;  %733 = vmatpush.msra.mxu0 %v592_v56  ;;  %v352_v22 = vld [vmem:[%s2162_s16 + $0x88] sm:$0xff]  ;;  %v699_v24 = vld [vmem:[%s2774_s1 + $0x360] sm:$0xff]  ;;  %v361_v29 = vld [vmem:[%s2162_s16 + $0xd0] sm:$0xff] }
  0x2a   : > { %1071 = vmatpush.msra.mxu3 %v641_v55  ;;  %959 = vmatpush.msra.mxu2 %v624_v57  ;;  %v667_v25 = vld [vmem:[%s2774_s1 + $0x260] sm:$0xff]  ;;  %v360_v30 = vld [vmem:[%s2162_s16 + $0xc8] sm:$0xff]  ;;  %v362_v31 = vld [vmem:[%s2162_s16 + $0xd8] sm:$0xff] }
  0x2b   : > { %846 = vmatpush.msra.mxu1 %v608_v58  ;;  %734 = vmatpush.msra.mxu0 %v591_v60  ;;  %v715_v26 = vld [vmem:[%s2774_s1 + $0x3e0] sm:$0xff]  ;;  %v369_v33 = vld [vmem:[%s2162_s16 + $0x110] sm:$0xff]  ;;  %v368_v34 = vld [vmem:[%s2162_s16 + $0x108] sm:$0xff] }
  0x2c   : > { %1072 = vmatpush.msra.mxu3 %v640_v59  ;;  %960 = vmatpush.msra.mxu2 %v623_v61  ;;  %v683_v27 = vld [vmem:[%s2774_s1 + $0x2e0] sm:$0xff]  ;;  %v370_v35 = vld [vmem:[%s2162_s16 + $0x118] sm:$0xff]  ;;  %v377_v41 = vld [vmem:[%s2162_s16 + $0x150] sm:$0xff] }
  0x2d   : > { %735 = vmatmul.f32.vlgmr.msra.gmra.mxu0 %v335_v62  ;;  %961 = vmatmul.f32.vlgmr.msra.gmra.mxu2 %v337_v63  ;;  %v359_v28 = vld [vmem:[%s2162_s16 + $0xc0] sm:$0xff]  ;;  %v698_v36 = vld [vmem:[%s2774_s1 + $0x358] sm:$0xff]  ;;  %v376_v42 = vld [vmem:[%s2162_s16 + $0x148] sm:$0xff] }
  0x2e   : > { %1397 = vmatpush.msrb.mxu2 %v702_v0  ;;  %847 = vmatpush.msra.mxu1 %v607_v1  ;;  %v367_v32 = vld [vmem:[%s2162_s16 + $0x100] sm:$0xff]  ;;  %v666_v37 = vld [vmem:[%s2774_s1 + $0x258] sm:$0xff]  ;;  %v385_v45 = vld [vmem:[%s2162_s16 + $0x190] sm:$0xff] }
  0x2f   : > { %1073 = vmatpush.msra.mxu3 %v639_v2  ;;  %848 = vmatmul.f32.vlgmr.msra.gmra.mxu1 %v336_v3  ;;  %v714_v38 = vld [vmem:[%s2774_s1 + $0x3d8] sm:$0xff]  ;;  %v375_v40 = vld [vmem:[%s2162_s16 + $0x140] sm:$0xff]  ;;  %v384_v46 = vld [vmem:[%s2162_s16 + $0x188] sm:$0xff] }
  0x30   : > { %1074 = vmatmul.f32.vlgmr.msra.gmra.mxu3 %v338_v4  ;;  %1171 = vmatpush.msrb.mxu0 %v670_v5  ;;  %v682_v39 = vld [vmem:[%s2774_s1 + $0x2d8] sm:$0xff]  ;;  %v383_v44 = vld [vmem:[%s2162_s16 + $0x180] sm:$0xff]  ;;  %v697_v48 = vld [vmem:[%s2774_s1 + $0x350] sm:$0xff] }
  0x31   : > { %1510 = vmatpush.msrb.mxu3 %v718_v6  ;;  %1284 = vmatpush.msrb.mxu1 %v686_v7  ;;  %v378_v43 = vld [vmem:[%s2162_s16 + $0x158] sm:$0xff]  ;;  %v665_v49 = vld [vmem:[%s2774_s1 + $0x250] sm:$0xff]  ;;  %v391_v52 = vld [vmem:[%s2162_s16 + $0x1c0] sm:$0xff] }
  0x32   : > { %1398 = vmatpush.msrb.mxu2 %v701_v8  ;;  %1172 = vmatpush.msrb.mxu0 %v669_v9  ;;  %v386_v47 = vld [vmem:[%s2162_s16 + $0x198] sm:$0xff]  ;;  %v713_v50 = vld [vmem:[%s2774_s1 + $0x3d0] sm:$0xff]  ;;  %v392_v54 = vld [vmem:[%s2162_s16 + $0x1c8] sm:$0xff] }
  0x33   : > { %1511 = vmatpush.msrb.mxu3 %v717_v10  ;;  %1285 = vmatpush.msrb.mxu1 %v685_v11  ;;  %v681_v51 = vld [vmem:[%s2774_s1 + $0x2d0] sm:$0xff]  ;;  %v394_v55 = vld [vmem:[%s2162_s16 + $0x1d8] sm:$0xff]  ;;  %v399_v56 = vld [vmem:[%s2162_s16 + $0x200] sm:$0xff] }
  0x34   : > { %1399 = vmatpush.msrb.mxu2 %v700_v12  ;;  %1173 = vmatpush.msrb.mxu0 %v668_v13  ;;  %v393_v53 = vld [vmem:[%s2162_s16 + $0x1d0] sm:$0xff]  ;;  %v400_v58 = vld [vmem:[%s2162_s16 + $0x208] sm:$0xff]  ;;  %v402_v59 = vld [vmem:[%s2162_s16 + $0x218] sm:$0xff] }
  0x35   : > { %738 = vmatmul.f32.gmra.mxu0 %v343_v14  ;;  %964 = vmatmul.f32.gmra.mxu2 %v345_v15  ;;  %v401_v57 = vld [vmem:[%s2162_s16 + $0x210] sm:$0xff]  ;;  %v696_v60 = vld [vmem:[%s2774_s1 + $0x348] sm:$0xff]  ;;  %v407_v0 = vld [vmem:[%s2162_s16 + $0x240] sm:$0xff] }
  0x36   : > { %1512 = vmatpush.msrb.mxu3 %v716_v16  ;;  %1286 = vmatpush.msrb.mxu1 %v684_v17  ;;  %v664_v61 = vld [vmem:[%s2774_s1 + $0x248] sm:$0xff]  ;;  %v409_v1 = vld [vmem:[%s2162_s16 + $0x250] sm:$0xff]  ;;  %v410_v3 = vld [vmem:[%s2162_s16 + $0x258] sm:$0xff] }
  0x37   : > { %851 = vmatmul.f32.gmra.mxu1 %v344_v18  ;;  %1400 = vmatpush.msrb.mxu2 %v699_v24  ;;  %v712_v62 = vld [vmem:[%s2774_s1 + $0x3c8] sm:$0xff]  ;;  %v415_v4 = vld [vmem:[%s2162_s16 + $0x280] sm:$0xff]  ;;  %v417_v5 = vld [vmem:[%s2162_s16 + $0x290] sm:$0xff] }
  0x38   : > { %1077 = vmatmul.f32.gmra.mxu3 %v346_v19  ;;  %1174 = vmatpush.msrb.mxu0 %v667_v25  ;;  %v680_v63 = vld [vmem:[%s2774_s1 + $0x2c8] sm:$0xff]  ;;  %v418_v7 = vld [vmem:[%s2162_s16 + $0x298] sm:$0xff]  ;;  %v695_v8 = vld [vmem:[%s2774_s1 + $0x340] sm:$0xff] }
  0x39   : > { %1513 = vmatpush.msrb.mxu3 %v715_v26  ;;  %1287 = vmatpush.msrb.mxu1 %v683_v27  ;;  %v408_v2 = vld [vmem:[%s2162_s16 + $0x248] sm:$0xff]  ;;  %v663_v9 = vld [vmem:[%s2774_s1 + $0x240] sm:$0xff]  ;;  %v425_v13 = vld [vmem:[%s2162_s16 + $0x2d0] sm:$0xff] }
  0x3a   : > { %1401 = vmatpush.msrb.mxu2 %v698_v36  ;;  %1175 = vmatpush.msrb.mxu0 %v666_v37  ;;  %v416_v6 = vld [vmem:[%s2162_s16 + $0x288] sm:$0xff]  ;;  %v711_v10 = vld [vmem:[%s2774_s1 + $0x3c0] sm:$0xff]  ;;  %v426_v15 = vld [vmem:[%s2162_s16 + $0x2d8] sm:$0xff] }
  0x3b   : > { %1514 = vmatpush.msrb.mxu3 %v714_v38  ;;  %1288 = vmatpush.msrb.mxu1 %v682_v39  ;;  %v679_v11 = vld [vmem:[%s2774_s1 + $0x2c0] sm:$0xff]  ;;  %v424_v14 = vld [vmem:[%s2162_s16 + $0x2c8] sm:$0xff]  ;;  %v433_v17 = vld [vmem:[%s2162_s16 + $0x310] sm:$0xff] }
  0x3c   : > { %1402 = vmatpush.msrb.mxu2 %v697_v48  ;;  %1176 = vmatpush.msrb.mxu0 %v665_v49  ;;  %v423_v12 = vld [vmem:[%s2162_s16 + $0x2c0] sm:$0xff]  ;;  %v432_v18 = vld [vmem:[%s2162_s16 + $0x308] sm:$0xff]  ;;  %v434_v19 = vld [vmem:[%s2162_s16 + $0x318] sm:$0xff] }
  0x3d   : > { %741 = vmatmul.f32.gmra.mxu0 %v351_v20  ;;  %967 = vmatmul.f32.gmra.mxu2 %v353_v21  ;;  %v431_v16 = vld [vmem:[%s2162_s16 + $0x300] sm:$0xff]  ;;  %v694_v20 = vld [vmem:[%s2774_s1 + $0x338] sm:$0xff]  ;;  %v441_v25 = vld [vmem:[%s2162_s16 + $0x350] sm:$0xff] }
  0x3e   : > { %1515 = vmatpush.msrb.mxu3 %v713_v50  ;;  %1289 = vmatpush.msrb.mxu1 %v681_v51  ;;  %v662_v21 = vld [vmem:[%s2774_s1 + $0x238] sm:$0xff]  ;;  %v439_v24 = vld [vmem:[%s2162_s16 + $0x340] sm:$0xff]  ;;  %v440_v26 = vld [vmem:[%s2162_s16 + $0x348] sm:$0xff] }
  0x3f   : > { %854 = vmatmul.f32.gmra.mxu1 %v352_v22  ;;  %1403 = vmatpush.msrb.mxu2 %v696_v60  ;;  %v710_v22 = vld [vmem:[%s2774_s1 + $0x3b8] sm:$0xff]  ;;  %v455_v36 = vld [vmem:[%s2162_s16 + $0x3c0] sm:$0xff]  ;;  %v457_v37 = vld [vmem:[%s2162_s16 + $0x3d0] sm:$0xff] }
  0x40   : > { %1080 = vmatmul.f32.gmra.mxu3 %v354_v23  ;;  %1177 = vmatpush.msrb.mxu0 %v664_v61  ;;  %v678_v23 = vld [vmem:[%s2774_s1 + $0x2b8] sm:$0xff]  ;;  %v456_v38 = vld [vmem:[%s2162_s16 + $0x3c8] sm:$0xff] }
  0x41   : > { %1516 = vmatpush.msrb.mxu3 %v712_v62  ;;  %1290 = vmatpush.msrb.mxu1 %v680_v63  ;;  %v442_v27 = vld [vmem:[%s2162_s16 + $0x358] sm:$0xff]  ;;  %v660_v49 = vld [vmem:[%s2774_s1 + $0x228] sm:$0xff] }
  0x42   : > { %1404 = vmatpush.msrb.mxu2 %v695_v8  ;;  %1178 = vmatpush.msrb.mxu0 %v663_v9  ;;  %v458_v39 = vld [vmem:[%s2162_s16 + $0x3d8] sm:$0xff]  ;;  %v708_v50 = vld [vmem:[%s2774_s1 + $0x3a8] sm:$0xff]  ;;  %v691_v8 = vld [vmem:[%s2774_s1 + $0x320] sm:$0xff] }
  0x43   : > { %1517 = vmatpush.msrb.mxu3 %v711_v10  ;;  %1291 = vmatpush.msrb.mxu1 %v679_v11  ;;  %v474_v60 = vld [vmem:[%s2162_s16 + $0x458] sm:$0xff]  ;;  %v659_v11 = vld [vmem:[%s2774_s1 + $0x220] sm:$0xff] }
  0x44   : > { %1405 = vmatpush.msrb.mxu2 %v694_v20  ;;  %1179 = vmatpush.msrb.mxu0 %v662_v21  ;;  %v488_v21 = vld [vmem:[%s2162_s16 + $0x4c8] sm:$0xff] }
  0x45   : > { %744 = vmatmul.f32.gmra.mxu0 %v359_v28  ;;  %970 = vmatmul.f32.gmra.mxu2 %v361_v29  ;;  %v447_v28 = vld [vmem:[%s2162_s16 + $0x380] sm:$0xff]  ;;  %v449_v29 = vld [vmem:[%s2162_s16 + $0x390] sm:$0xff] }
  0x46   : > { %1518 = vmatpush.msrb.mxu3 %v710_v22  ;;  %1292 = vmatpush.msrb.mxu1 %v678_v23  ;;  %v490_v22 = vld [vmem:[%s2162_s16 + $0x4d8] sm:$0xff] }
  0x47   : > { %857 = vmatmul.f32.gmra.mxu1 %v360_v30  ;;  %v448_v30 = vld [vmem:[%s2162_s16 + $0x388] sm:$0xff] }
  0x48   : > { %1083 = vmatmul.f32.gmra.mxu3 %v362_v31  ;;  %v450_v31 = vld [vmem:[%s2162_s16 + $0x398] sm:$0xff] }
  0x4d   : > { %747 = vmatmul.f32.gmra.mxu0 %v367_v32  ;;  %973 = vmatmul.f32.gmra.mxu2 %v369_v33  ;;  %v693_v32 = vld [vmem:[%s2774_s1 + $0x330] sm:$0xff] }
  0x4e   : > { %1406 = vmatpush.msrb.mxu2 %v693_v32  ;;  %v661_v33 = vld [vmem:[%s2774_s1 + $0x230] sm:$0xff]  ;;  %v496_v32 = vld [vmem:[%s2162_s16 + $0x508] sm:$0xff] }
  0x4f   : > { %860 = vmatmul.f32.gmra.mxu1 %v368_v34  ;;  %v709_v34 = vld [vmem:[%s2774_s1 + $0x3b0] sm:$0xff]  ;;  %1180 = vmatpush.msrb.mxu0 %v661_v33  ;;  %v498_v33 = vld [vmem:[%s2162_s16 + $0x518] sm:$0xff] }
  0x50   : > { %1086 = vmatmul.f32.gmra.mxu3 %v370_v35  ;;  %v677_v35 = vld [vmem:[%s2774_s1 + $0x2b0] sm:$0xff] }
  0x51   : > { %1519 = vmatpush.msrb.mxu3 %v709_v34  ;;  %1293 = vmatpush.msrb.mxu1 %v677_v35  ;;  %v690_v34 = vld [vmem:[%s2774_s1 + $0x318] sm:$0xff] }
  0x52   : > { %1181 = vmatpush.msrb.mxu0 %v660_v49 }
  0x53   : > { %1520 = vmatpush.msrb.mxu3 %v708_v50 }
  0x54   : > { %1182 = vmatpush.msrb.mxu0 %v659_v11  ;;  %v520_v11 = vld [vmem:[%s2162_s16 + $0x5c8] sm:$0xff] }
  0x55   : > { %750 = vmatmul.f32.gmra.mxu0 %v375_v40  ;;  %976 = vmatmul.f32.gmra.mxu2 %v377_v41  ;;  %v463_v41 = vld [vmem:[%s2162_s16 + $0x400] sm:$0xff] }
  0x57   : > { %863 = vmatmul.f32.gmra.mxu1 %v376_v42  ;;  %v465_v42 = vld [vmem:[%s2162_s16 + $0x410] sm:$0xff] }
  0x58   : > { %1089 = vmatmul.f32.gmra.mxu3 %v378_v43 }
  0x5d   : > { %753 = vmatmul.f32.gmra.mxu0 %v383_v44  ;;  %979 = vmatmul.f32.gmra.mxu2 %v385_v45  ;;  %v464_v44 = vld [vmem:[%s2162_s16 + $0x408] sm:$0xff]  ;;  %v466_v45 = vld [vmem:[%s2162_s16 + $0x418] sm:$0xff] }
  0x5f   : > { %866 = vmatmul.f32.gmra.mxu1 %v384_v46  ;;  %v692_v46 = vld [vmem:[%s2774_s1 + $0x328] sm:$0xff] }
  0x60   : > { %1092 = vmatmul.f32.gmra.mxu3 %v386_v47  ;;  %1407 = vmatpush.msrb.mxu2 %v692_v46 }
  0x62   : > { %1408 = vmatpush.msrb.mxu2 %v691_v8 }
  0x64   : > { %1409 = vmatpush.msrb.mxu2 %v690_v34  ;;  %v535_v34 = vld [vmem:[%s2162_s16 + $0x640] sm:$0xff] }
  0x65   : > { %756 = vmatmul.f32.gmra.mxu0 %v391_v52  ;;  %982 = vmatmul.f32.gmra.mxu2 %v393_v53  ;;  %v676_v52 = vld [vmem:[%s2774_s1 + $0x2a8] sm:$0xff] }
  0x66   : > { %1294 = vmatpush.msrb.mxu1 %v676_v52 }
  0x67   : > { %869 = vmatmul.f32.gmra.mxu1 %v392_v54  ;;  %v471_v54 = vld [vmem:[%s2162_s16 + $0x440] sm:$0xff] }
  0x68   : > { %1095 = vmatmul.f32.gmra.mxu3 %v394_v55  ;;  %v473_v55 = vld [vmem:[%s2162_s16 + $0x450] sm:$0xff] }
  0x6d   : > { %759 = vmatmul.f32.gmra.mxu0 %v399_v56  ;;  %985 = vmatmul.f32.gmra.mxu2 %v401_v57 }
  0x6f   : > { %872 = vmatmul.f32.gmra.mxu1 %v400_v58 }
  0x70   : > { %1098 = vmatmul.f32.gmra.mxu3 %v402_v59  ;;  %v472_v59 = vld [vmem:[%s2162_s16 + $0x448] sm:$0xff] }
  0x75   : > { %762 = vmatmul.f32.gmra.mxu0 %v407_v0  ;;  %988 = vmatmul.f32.gmra.mxu2 %v409_v1  ;;  %v479_v1 = vld [vmem:[%s2162_s16 + $0x480] sm:$0xff] }
  0x77   : > { %875 = vmatmul.f32.gmra.mxu1 %v408_v2  ;;  %v481_v2 = vld [vmem:[%s2162_s16 + $0x490] sm:$0xff] }
  0x78   : > { %1101 = vmatmul.f32.gmra.mxu3 %v410_v3 }
  0x7d   : > { %765 = vmatmul.f32.gmra.mxu0 %v415_v4  ;;  %991 = vmatmul.f32.gmra.mxu2 %v417_v5 }
  0x7f   : > { %878 = vmatmul.f32.gmra.mxu1 %v416_v6  ;;  %v480_v6 = vld [vmem:[%s2162_s16 + $0x488] sm:$0xff] }
  0x80   : > { %1104 = vmatmul.f32.gmra.mxu3 %v418_v7  ;;  %v482_v7 = vld [vmem:[%s2162_s16 + $0x498] sm:$0xff] }
  0x85   : > { %768 = vmatmul.f32.gmra.mxu0 %v423_v12  ;;  %994 = vmatmul.f32.gmra.mxu2 %v425_v13  ;;  %v707_v12 = vld [vmem:[%s2774_s1 + $0x3a0] sm:$0xff] }
  0x86   : > { %1521 = vmatpush.msrb.mxu3 %v707_v12  ;;  %v522_v12 = vld [vmem:[%s2162_s16 + $0x5d8] sm:$0xff] }
  0x87   : > { %881 = vmatmul.f32.gmra.mxu1 %v424_v14  ;;  %v675_v14 = vld [vmem:[%s2774_s1 + $0x2a0] sm:$0xff] }
  0x88   : > { %1107 = vmatmul.f32.gmra.mxu3 %v426_v15  ;;  %1295 = vmatpush.msrb.mxu1 %v675_v14 }
  0x8d   : > { %771 = vmatmul.f32.gmra.mxu0 %v431_v16  ;;  %997 = vmatmul.f32.gmra.mxu2 %v433_v17  ;;  %v487_v16 = vld [vmem:[%s2162_s16 + $0x4c0] sm:$0xff]  ;;  %v489_v17 = vld [vmem:[%s2162_s16 + $0x4d0] sm:$0xff] }
  0x8f   : > { %884 = vmatmul.f32.gmra.mxu1 %v432_v18 }
  0x90   : > { %1110 = vmatmul.f32.gmra.mxu3 %v434_v19 }
  0x95   : > { %774 = vmatmul.f32.gmra.mxu0 %v439_v24  ;;  %1000 = vmatmul.f32.gmra.mxu2 %v441_v25 }
  0x97   : > { %887 = vmatmul.f32.gmra.mxu1 %v440_v26 }
  0x98   : > { %1113 = vmatmul.f32.gmra.mxu3 %v442_v27  ;;  %v495_v27 = vld [vmem:[%s2162_s16 + $0x500] sm:$0xff] }
  0x9d   : > { %777 = vmatmul.f32.gmra.mxu0 %v447_v28  ;;  %1003 = vmatmul.f32.gmra.mxu2 %v449_v29  ;;  %v497_v28 = vld [vmem:[%s2162_s16 + $0x510] sm:$0xff] }
  0x9f   : > { %890 = vmatmul.f32.gmra.mxu1 %v448_v30 }
  0xa0   : > { %1116 = vmatmul.f32.gmra.mxu3 %v450_v31 }
  0xa5   : > { %780 = vmatmul.f32.gmra.mxu0 %v455_v36  ;;  %1006 = vmatmul.f32.gmra.mxu2 %v457_v37  ;;  %v658_v37 = vld [vmem:[%s2774_s1 + $0x218] sm:$0xff] }
  0xa6   : > { %1183 = vmatpush.msrb.mxu0 %v658_v37 }
  0xa7   : > { %893 = vmatmul.f32.gmra.mxu1 %v456_v38  ;;  %v706_v38 = vld [vmem:[%s2774_s1 + $0x398] sm:$0xff] }
  0xa8   : > { %1119 = vmatmul.f32.gmra.mxu3 %v458_v39 }
  0xa9   : > { %1522 = vmatpush.msrb.mxu3 %v706_v38 }
  0xaa   : > { %v736_v40 = vpop.f32.mrf.mxu0 }
  0xac   : > { %v849_v43 = vpop.f32.mrf.mxu1 }
  0xad   : > { %783 = vmatmul.f32.gmra.mxu0 %v463_v41  ;;  %1009 = vmatmul.f32.gmra.mxu2 %v465_v42  ;;  %v850_v47 = vadd.f32 %v849_v43, %v736_v40  ;;  %v674_v40 = vld [vmem:[%s2774_s1 + $0x298] sm:$0xff]  ;;  %v503_v42 = vld [vmem:[%s2162_s16 + $0x540] sm:$0xff]  ;;  %v505_v43 = vld [vmem:[%s2162_s16 + $0x550] sm:$0xff] }
  0xae   : > { %1296 = vmatpush.msrb.mxu1 %v674_v40  ;;  %v538_v40 = vld [vmem:[%s2162_s16 + $0x658] sm:$0xff] }
  0xaf   : > { %896 = vmatmul.f32.gmra.mxu1 %v464_v44 }
  0xb0   : > { %1122 = vmatmul.f32.gmra.mxu3 %v466_v45  ;;  %v962_v48 = vpop.f32.mrf.mxu2 }
  0xb1   : > { %v963_v51 = vadd.f32 %v962_v48, %v850_v47  ;;  %v504_v47 = vld [vmem:[%s2162_s16 + $0x548] sm:$0xff]  ;;  %v506_v48 = vld [vmem:[%s2162_s16 + $0x558] sm:$0xff] }
  0xb2   : > { %v739_v53 = vpop.f32.mrf.mxu0 }
  0xb3   : > { %v1075_v56 = vpop.f32.mrf.mxu3 }
  0xb4   : > { %v2384_v57 = vadd.f32 %v1075_v56, %v963_v51  ;;  %v852_v58 = vpop.f32.mrf.mxu1 }
  0xb5   : > { %786 = vmatmul.f32.gmra.mxu0 %v471_v54  ;;  %1012 = vmatmul.f32.gmra.mxu2 %v473_v55  ;;  %v853_v61 = vadd.f32 %v852_v58, %v739_v53  ;;  %v511_v53 = vld [vmem:[%s2162_s16 + $0x580] sm:$0xff]  ;;  %v513_v54 = vld [vmem:[%s2162_s16 + $0x590] sm:$0xff] }
  0xb7   : > { %899 = vmatmul.f32.gmra.mxu1 %v472_v59  ;;  %v512_v59 = vld [vmem:[%s2162_s16 + $0x588] sm:$0xff] }
  0xb8   : > { %1125 = vmatmul.f32.gmra.mxu3 %v474_v60  ;;  %v965_v62 = vpop.f32.mrf.mxu2  ;;  %v514_v60 = vld [vmem:[%s2162_s16 + $0x598] sm:$0xff] }
  0xb9   : > { %v966_v63 = vadd.f32 %v965_v62, %v853_v61  ;;  %v689_v61 = vld [vmem:[%s2774_s1 + $0x310] sm:$0xff] }
  0xba   : > { %v742_v0 = vpop.f32.mrf.mxu0  ;;  %1410 = vmatpush.msrb.mxu2 %v689_v61  ;;  %v671_v61 = vld [vmem:[%s2774_s1 + $0x280] sm:$0xff] }
  0xbb   : > { %v1078_v3 = vpop.f32.mrf.mxu3 }
  0xbc   : > { %v2390_v4 = vadd.f32 %v1078_v3, %v966_v63  ;;  %v855_v5 = vpop.f32.mrf.mxu1  ;;  %v673_v3 = vld [vmem:[%s2774_s1 + $0x290] sm:$0xff] }
  0xbd   : > { %789 = vmatmul.f32.gmra.mxu0 %v479_v1  ;;  %1015 = vmatmul.f32.gmra.mxu2 %v481_v2  ;;  %v856_v9 = vadd.f32 %v855_v5, %v742_v0  ;;  %v657_v0 = vld [vmem:[%s2774_s1 + $0x210] sm:$0xff] }
  0xbe   : > { %v705_v1 = vld [vmem:[%s2774_s1 + $0x390] sm:$0xff]  ;;  %1184 = vmatpush.msrb.mxu0 %v657_v0  ;;  %1297 = vmatpush.msrb.mxu1 %v673_v3 }
  0xbf   : > { %902 = vmatmul.f32.gmra.mxu1 %v480_v6  ;;  %1523 = vmatpush.msrb.mxu3 %v705_v1  ;;  %v519_v6 = vld [vmem:[%s2162_s16 + $0x5c0] sm:$0xff]  ;;  %v553_v0 = vld [vmem:[%s2162_s16 + $0x6d0] sm:$0xff] }
  0xc0   : > { %1128 = vmatmul.f32.gmra.mxu3 %v482_v7  ;;  %v968_v10 = vpop.f32.mrf.mxu2  ;;  %v521_v7 = vld [vmem:[%s2162_s16 + $0x5d0] sm:$0xff] }
  0xc1   : > { %v969_v13 = vadd.f32 %v968_v10, %v856_v9 }
  0xc2   : > { %v745_v15 = vpop.f32.mrf.mxu0 }
  0xc3   : > { %v1081_v18 = vpop.f32.mrf.mxu3 }
  0xc4   : > { %v2408_v19 = vadd.f32 %v1081_v18, %v969_v13  ;;  %v858_v20 = vpop.f32.mrf.mxu1  ;;  %v529_v18 = vld [vmem:[%s2162_s16 + $0x610] sm:$0xff] }
  0xc5   : > { %792 = vmatmul.f32.gmra.mxu0 %v487_v16  ;;  %1018 = vmatmul.f32.gmra.mxu2 %v489_v17  ;;  %v859_v23 = vadd.f32 %v858_v20, %v745_v15  ;;  %v527_v17 = vld [vmem:[%s2162_s16 + $0x600] sm:$0xff] }
  0xc7   : > { %905 = vmatmul.f32.gmra.mxu1 %v488_v21 }
  0xc8   : > { %1131 = vmatmul.f32.gmra.mxu3 %v490_v22  ;;  %v971_v24 = vpop.f32.mrf.mxu2 }
  0xc9   : > { %v972_v25 = vadd.f32 %v971_v24, %v859_v23  ;;  %v528_v23 = vld [vmem:[%s2162_s16 + $0x608] sm:$0xff]  ;;  %v530_v24 = vld [vmem:[%s2162_s16 + $0x618] sm:$0xff] }
  0xca   : > { %v748_v26 = vpop.f32.mrf.mxu0 }
  0xcb   : > { %v1084_v29 = vpop.f32.mrf.mxu3 }
  0xcc   : > { %v2414_v30 = vadd.f32 %v1084_v29, %v972_v25  ;;  %v861_v31 = vpop.f32.mrf.mxu1  ;;  %v688_v25 = vld [vmem:[%s2774_s1 + $0x308] sm:$0xff] }
  0xcd   : > { %795 = vmatmul.f32.gmra.mxu0 %v495_v27  ;;  %1021 = vmatmul.f32.gmra.mxu2 %v497_v28  ;;  %v862_v35 = vadd.f32 %v861_v31, %v748_v26  ;;  %v656_v28 = vld [vmem:[%s2774_s1 + $0x208] sm:$0xff] }
  0xce   : > { %1411 = vmatpush.msrb.mxu2 %v688_v25  ;;  %v704_v29 = vld [vmem:[%s2774_s1 + $0x388] sm:$0xff]  ;;  %1185 = vmatpush.msrb.mxu0 %v656_v28  ;;  %v567_v25 = vld [vmem:[%s2162_s16 + $0x740] sm:$0xff] }
  0xcf   : > { %908 = vmatmul.f32.gmra.mxu1 %v496_v32  ;;  %1524 = vmatpush.msrb.mxu3 %v704_v29  ;;  %v672_v32 = vld [vmem:[%s2774_s1 + $0x288] sm:$0xff] }
  0xd0   : > { %1134 = vmatmul.f32.gmra.mxu3 %v498_v33  ;;  %v974_v36 = vpop.f32.mrf.mxu2  ;;  %1298 = vmatpush.msrb.mxu1 %v672_v32  ;;  %v570_v32 = vld [vmem:[%s2162_s16 + $0x758] sm:$0xff] }
  0xd1   : > { %v975_v39 = vadd.f32 %v974_v36, %v862_v35  ;;  %v537_v35 = vld [vmem:[%s2162_s16 + $0x650] sm:$0xff] }
  0xd2   : > { %v751_v41 = vpop.f32.mrf.mxu0  ;;  %1299 = vmatpush.msrb.mxu1 %v671_v61 }
  0xd3   : > { %v1087_v44 = vpop.f32.mrf.mxu3 }
  0xd4   : > { %v2432_v45 = vadd.f32 %v1087_v44, %v975_v39  ;;  %v864_v46 = vpop.f32.mrf.mxu1  ;;  %v536_v39 = vld [vmem:[%s2162_s16 + $0x648] sm:$0xff] }
  0xd5   : > { %798 = vmatmul.f32.gmra.mxu0 %v503_v42  ;;  %1024 = vmatmul.f32.gmra.mxu2 %v505_v43  ;;  %v865_v49 = vadd.f32 %v864_v46, %v751_v41  ;;  %v543_v46 = vld [vmem:[%s2162_s16 + $0x680] sm:$0xff] }
  0xd7   : > { %911 = vmatmul.f32.gmra.mxu1 %v504_v47  ;;  %v545_v47 = vld [vmem:[%s2162_s16 + $0x690] sm:$0xff] }
  0xd8   : > { %1137 = vmatmul.f32.gmra.mxu3 %v506_v48  ;;  %v977_v50 = vpop.f32.mrf.mxu2 }
  0xd9   : > { %v978_v51 = vadd.f32 %v977_v50, %v865_v49 }
  0xda   : > { %v754_v52 = vpop.f32.mrf.mxu0 }
  0xdb   : > { %v1090_v55 = vpop.f32.mrf.mxu3 }
  0xdc   : > { %v2438_v56 = vadd.f32 %v1090_v55, %v978_v51  ;;  %v867_v58 = vpop.f32.mrf.mxu1  ;;  %v544_v51 = vld [vmem:[%s2162_s16 + $0x688] sm:$0xff] }
  0xdd   : > { %801 = vmatmul.f32.gmra.mxu0 %v511_v53  ;;  %1027 = vmatmul.f32.gmra.mxu2 %v513_v54  ;;  %v868_v62 = vadd.f32 %v867_v58, %v754_v52  ;;  %v546_v52 = vld [vmem:[%s2162_s16 + $0x698] sm:$0xff]  ;;  %v687_v53 = vld [vmem:[%s2774_s1 + $0x300] sm:$0xff] }
  0xde   : > { %1412 = vmatpush.msrb.mxu2 %v687_v53  ;;  %v655_v58 = vld [vmem:[%s2774_s1 + $0x200] sm:$0xff] }
  0xdf   : > { %914 = vmatmul.f32.gmra.mxu1 %v512_v59  ;;  %v703_v59 = vld [vmem:[%s2774_s1 + $0x380] sm:$0xff]  ;;  %1186 = vmatpush.msrb.mxu0 %v655_v58  ;;  %v584_v58 = vld [vmem:[%s2162_s16 + $0x7c8] sm:$0xff] }
  0xe0   : > { %1140 = vmatmul.f32.gmra.mxu3 %v514_v60  ;;  %v980_v63 = vpop.f32.mrf.mxu2 }
  0xe1   : > { %v981_v2 = vadd.f32 %v980_v63, %v868_v62  ;;  %1525 = vmatpush.msrb.mxu3 %v703_v59  ;;  %v551_v63 = vld [vmem:[%s2162_s16 + $0x6c0] sm:$0xff]  ;;  %v586_v59 = vld [vmem:[%s2162_s16 + $0x7d8] sm:$0xff] }
  0xe2   : > { %v757_v5 = vpop.f32.mrf.mxu0 }
  0xe3   : > { %v1093_v8 = vpop.f32.mrf.mxu3 }
  0xe4   : > { %v2456_v9 = vadd.f32 %v1093_v8, %v981_v2  ;;  %v870_v10 = vpop.f32.mrf.mxu1 }
  0xe5   : > { %804 = vmatmul.f32.gmra.mxu0 %v519_v6  ;;  %1030 = vmatmul.f32.gmra.mxu2 %v521_v7  ;;  %v871_v13 = vadd.f32 %v870_v10, %v757_v5  ;;  %v552_v5 = vld [vmem:[%s2162_s16 + $0x6c8] sm:$0xff]  ;;  %v554_v6 = vld [vmem:[%s2162_s16 + $0x6d8] sm:$0xff] }
  0xe7   : > { %917 = vmatmul.f32.gmra.mxu1 %v520_v11 }
  0xe8   : > { %1143 = vmatmul.f32.gmra.mxu3 %v522_v12  ;;  %v983_v14 = vpop.f32.mrf.mxu2  ;;  %v559_v12 = vld [vmem:[%s2162_s16 + $0x700] sm:$0xff] }
  0xe9   : > { %v984_v15 = vadd.f32 %v983_v14, %v871_v13  ;;  %v561_v13 = vld [vmem:[%s2162_s16 + $0x710] sm:$0xff] }
  0xea   : > { %v760_v16 = vpop.f32.mrf.mxu0 }
  0xeb   : > { %v1096_v20 = vpop.f32.mrf.mxu3 }
  0xec   : > { %v2462_v21 = vadd.f32 %v1096_v20, %v984_v15  ;;  %v873_v22 = vpop.f32.mrf.mxu1 }
  0xed   : > { %807 = vmatmul.f32.gmra.mxu0 %v527_v17  ;;  %1033 = vmatmul.f32.gmra.mxu2 %v529_v18  ;;  %v874_v26 = vadd.f32 %v873_v22, %v760_v16  ;;  %v560_v17 = vld [vmem:[%s2162_s16 + $0x708] sm:$0xff]  ;;  %v562_v18 = vld [vmem:[%s2162_s16 + $0x718] sm:$0xff] }
  0xef   : > { %920 = vmatmul.f32.gmra.mxu1 %v528_v23 }
  0xf0   : > { %1146 = vmatmul.f32.gmra.mxu3 %v530_v24  ;;  %v986_v27 = vpop.f32.mrf.mxu2 }
  0xf1   : > { %v987_v31 = vadd.f32 %v986_v27, %v874_v26  ;;  %v569_v26 = vld [vmem:[%s2162_s16 + $0x750] sm:$0xff] }
  0xf2   : > { %v763_v33 = vpop.f32.mrf.mxu0 }
  0xf3   : > { %v1099_v36 = vpop.f32.mrf.mxu3 }
  0xf4   : > { %v2480_v37 = vadd.f32 %v1099_v36, %v987_v31  ;;  %v876_v38 = vpop.f32.mrf.mxu1  ;;  %v568_v31 = vld [vmem:[%s2162_s16 + $0x748] sm:$0xff] }
  0xf5   : > { %810 = vmatmul.f32.gmra.mxu0 %v535_v34  ;;  %1036 = vmatmul.f32.gmra.mxu2 %v537_v35  ;;  %v877_v41 = vadd.f32 %v876_v38, %v763_v33  ;;  %v575_v38 = vld [vmem:[%s2162_s16 + $0x780] sm:$0xff] }
  0xf7   : > { %923 = vmatmul.f32.gmra.mxu1 %v536_v39  ;;  %v577_v39 = vld [vmem:[%s2162_s16 + $0x790] sm:$0xff] }
  0xf8   : > { %1149 = vmatmul.f32.gmra.mxu3 %v538_v40  ;;  %v989_v42 = vpop.f32.mrf.mxu2 }
  0xf9   : > { %v990_v43 = vadd.f32 %v989_v42, %v877_v41 }
  0xfa   : > { %v766_v44 = vpop.f32.mrf.mxu0 }
  0xfb   : > { %v1102_v48 = vpop.f32.mrf.mxu3 }
  0xfc   : > { %v2486_v49 = vadd.f32 %v1102_v48, %v990_v43  ;;  %v879_v50 = vpop.f32.mrf.mxu1  ;;  %v576_v43 = vld [vmem:[%s2162_s16 + $0x788] sm:$0xff] }
  0xfd   : > { %813 = vmatmul.f32.gmra.mxu0 %v543_v46  ;;  %1039 = vmatmul.f32.gmra.mxu2 %v545_v47  ;;  %v880_v54 = vadd.f32 %v879_v50, %v766_v44  ;;  %v578_v44 = vld [vmem:[%s2162_s16 + $0x798] sm:$0xff] }
  0xff   : > { %926 = vmatmul.f32.gmra.mxu1 %v544_v51  ;;  %v583_v51 = vld [vmem:[%s2162_s16 + $0x7c0] sm:$0xff] }
 0x100   : > { %1152 = vmatmul.f32.gmra.mxu3 %v546_v52  ;;  %v992_v55 = vpop.f32.mrf.mxu2  ;;  %v585_v52 = vld [vmem:[%s2162_s16 + $0x7d0] sm:$0xff] }
 0x101   : > { %v993_v60 = vadd.f32 %v992_v55, %v880_v54 }
 0x102   : > { %v769_v62 = vpop.f32.mrf.mxu0 }
 0x103   : > { %v1105_v1 = vpop.f32.mrf.mxu3 }
 0x104   : > { %v2504_v2 = vadd.f32 %v1105_v1, %v993_v60  ;;  %v882_v3 = vpop.f32.mrf.mxu1  ;;  %v341_v1 = vld [vmem:[%s2162_s16 + $0x30] sm:$0xff] }
 0x105   : > { %816 = vmatmul.f32.gmra.mxu0 %v551_v63  ;;  %1042 = vmatmul.f32.gmra.mxu2 %v553_v0  ;;  %v883_v7 = vadd.f32 %v882_v3, %v769_v62  ;;  %v339_v0 = vld [vmem:[%s2162_s16 + $0x20] sm:$0xff] }
 0x107   : > { %929 = vmatmul.f32.gmra.mxu1 %v552_v5 }
 0x108   : > { %1155 = vmatmul.f32.gmra.mxu3 %v554_v6  ;;  %v995_v8 = vpop.f32.mrf.mxu2 }
 0x109   : > { %v996_v10 = vadd.f32 %v995_v8, %v883_v7  ;;  %v340_v7 = vld [vmem:[%s2162_s16 + $0x28] sm:$0xff]  ;;  %v342_v8 = vld [vmem:[%s2162_s16 + $0x38] sm:$0xff] }
 0x10a   : > { %v772_v11 = vpop.f32.mrf.mxu0 }
 0x10b   : > { %v1108_v14 = vpop.f32.mrf.mxu3 }
 0x10c   : > { %v2510_v15 = vadd.f32 %v1108_v14, %v996_v10  ;;  %v885_v16 = vpop.f32.mrf.mxu1  ;;  %v347_v14 = vld [vmem:[%s2162_s16 + $0x60] sm:$0xff] }
 0x10d   : > { %819 = vmatmul.f32.gmra.mxu0 %v559_v12  ;;  %1045 = vmatmul.f32.gmra.mxu2 %v561_v13  ;;  %v886_v20 = vadd.f32 %v885_v16, %v772_v11  ;;  %v349_v16 = vld [vmem:[%s2162_s16 + $0x70] sm:$0xff] }
 0x10f   : > { %932 = vmatmul.f32.gmra.mxu1 %v560_v17 }
 0x110   : > { %1158 = vmatmul.f32.gmra.mxu3 %v562_v18  ;;  %v998_v22 = vpop.f32.mrf.mxu2 }
 0x111   : > { %v999_v23 = vadd.f32 %v998_v22, %v886_v20  ;;  %v348_v22 = vld [vmem:[%s2162_s16 + $0x68] sm:$0xff] }
 0x112   : > { %v775_v24 = vpop.f32.mrf.mxu0 }
 0x113   : > { %v1111_v27 = vpop.f32.mrf.mxu3 }
 0x114   : > { %v2516_v28 = vadd.f32 %v1111_v27, %v999_v23  ;;  %v888_v29 = vpop.f32.mrf.mxu1  ;;  %v350_v23 = vld [vmem:[%s2162_s16 + $0x78] sm:$0xff] }
 0x115   : > { %822 = vmatmul.f32.gmra.mxu0 %v567_v25  ;;  %1048 = vmatmul.f32.gmra.mxu2 %v569_v26  ;;  %v889_v33 = vadd.f32 %v888_v29, %v775_v24  ;;  %v355_v29 = vld [vmem:[%s2162_s16 + $0xa0] sm:$0xff] }
 0x117   : > { %935 = vmatmul.f32.gmra.mxu1 %v568_v31  ;;  %v357_v31 = vld [vmem:[%s2162_s16 + $0xb0] sm:$0xff] }
 0x118   : > { %1161 = vmatmul.f32.gmra.mxu3 %v570_v32  ;;  %v1001_v34 = vpop.f32.mrf.mxu2 }
 0x119   : > { %v1002_v35 = vadd.f32 %v1001_v34, %v889_v33 }
 0x11a   : > { %v778_v36 = vpop.f32.mrf.mxu0 }
 0x11b   : > { %v1114_v40 = vpop.f32.mrf.mxu3 }
 0x11c   : > { %v2522_v41 = vadd.f32 %v1114_v40, %v1002_v35  ;;  %v891_v42 = vpop.f32.mrf.mxu1  ;;  %v356_v35 = vld [vmem:[%s2162_s16 + $0xa8] sm:$0xff] }
 0x11d   : > { %825 = vmatmul.f32.gmra.mxu0 %v575_v38  ;;  %1051 = vmatmul.f32.gmra.mxu2 %v577_v39  ;;  %v892_v46 = vadd.f32 %v891_v42, %v778_v36  ;;  %v358_v36 = vld [vmem:[%s2162_s16 + $0xb8] sm:$0xff] }
 0x11f   : > { %938 = vmatmul.f32.gmra.mxu1 %v576_v43  ;;  %v363_v43 = vld [vmem:[%s2162_s16 + $0xe0] sm:$0xff] }
 0x120   : > { %1164 = vmatmul.f32.gmra.mxu3 %v578_v44  ;;  %v1004_v47 = vpop.f32.mrf.mxu2  ;;  %v365_v44 = vld [vmem:[%s2162_s16 + $0xf0] sm:$0xff] }
 0x121   : > { %v1005_v48 = vadd.f32 %v1004_v47, %v892_v46 }
 0x122   : > { %v781_v50 = vpop.f32.mrf.mxu0 }
 0x123   : > { %v1117_v53 = vpop.f32.mrf.mxu3 }
 0x124   : > { %v2528_v54 = vadd.f32 %v1117_v53, %v1005_v48  ;;  %v894_v55 = vpop.f32.mrf.mxu1 }
 0x125   : > { %828 = vmatmul.f32.gmra.mxu0 %v583_v51  ;;  %1054 = vmatmul.f32.gmra.mxu2 %v585_v52  ;;  %v895_v60 = vadd.f32 %v894_v55, %v781_v50  ;;  %v364_v50 = vld [vmem:[%s2162_s16 + $0xe8] sm:$0xff]  ;;  %v366_v51 = vld [vmem:[%s2162_s16 + $0xf8] sm:$0xff] }
 0x127   : > { %941 = vmatmul.f32.gmra.mxu1 %v584_v58 }
 0x128   : > { %1167 = vmatmul.f32.gmra.mxu3 %v586_v59  ;;  %v1007_v61 = vpop.f32.mrf.mxu2  ;;  %v371_v59 = vld [vmem:[%s2162_s16 + $0x120] sm:$0xff] }
 0x129   : > { %v1008_v62 = vadd.f32 %v1007_v61, %v895_v60  ;;  %v373_v60 = vld [vmem:[%s2162_s16 + $0x130] sm:$0xff] }
 0x12a   : > { %v784_v63 = vpop.f32.mrf.mxu0 }
 0x12b   : > { %v1120_v3 = vpop.f32.mrf.mxu3 }
 0x12c   : > { %v2534_v5 = vadd.f32 %v1120_v3, %v1008_v62  ;;  %v897_v6 = vpop.f32.mrf.mxu1 }
 0x12d   : > { %1187 = vmatmul.f32.vlgmr.msrb.gmra.mxu0 %v339_v0  ;;  %1413 = vmatmul.f32.vlgmr.msrb.gmra.mxu2 %v341_v1  ;;  %v898_v10 = vadd.f32 %v897_v6, %v784_v63  ;;  %v372_v0 = vld [vmem:[%s2162_s16 + $0x128] sm:$0xff]  ;;  %v374_v1 = vld [vmem:[%s2162_s16 + $0x138] sm:$0xff] }
 0x12f   : > { %1300 = vmatmul.f32.vlgmr.msrb.gmra.mxu1 %v340_v7 }
 0x130   : > { %1526 = vmatmul.f32.vlgmr.msrb.gmra.mxu3 %v342_v8  ;;  %v1010_v11 = vpop.f32.mrf.mxu2 }
 0x131   : > { %v1011_v12 = vadd.f32 %v1010_v11, %v898_v10  ;;  %v379_v10 = vld [vmem:[%s2162_s16 + $0x160] sm:$0xff]  ;;  %v381_v11 = vld [vmem:[%s2162_s16 + $0x170] sm:$0xff] }
 0x132   : > { %v787_v13 = vpop.f32.mrf.mxu0 }
 0x133   : > { %v1123_v17 = vpop.f32.mrf.mxu3 }
 0x134   : > { %v2540_v18 = vadd.f32 %v1123_v17, %v1011_v12  ;;  %v900_v20 = vpop.f32.mrf.mxu1  ;;  %v382_v17 = vld [vmem:[%s2162_s16 + $0x178] sm:$0xff] }
 0x135   : > { %1190 = vmatmul.f32.gmra.mxu0 %v347_v14  ;;  %1416 = vmatmul.f32.gmra.mxu2 %v349_v16  ;;  %v901_v24 = vadd.f32 %v900_v20, %v787_v13  ;;  %v380_v16 = vld [vmem:[%s2162_s16 + $0x168] sm:$0xff] }
 0x137   : > { %1303 = vmatmul.f32.gmra.mxu1 %v348_v22 }
 0x138   : > { %1529 = vmatmul.f32.gmra.mxu3 %v350_v23  ;;  %v1013_v25 = vpop.f32.mrf.mxu2 }
 0x139   : > { %v1014_v26 = vadd.f32 %v1013_v25, %v901_v24  ;;  %v387_v25 = vld [vmem:[%s2162_s16 + $0x1a0] sm:$0xff] }
 0x13a   : > { %v790_v27 = vpop.f32.mrf.mxu0 }
 0x13b   : > { %v1126_v32 = vpop.f32.mrf.mxu3 }
 0x13c   : > { %v2546_v33 = vadd.f32 %v1126_v32, %v1014_v26  ;;  %v903_v34 = vpop.f32.mrf.mxu1  ;;  %v389_v26 = vld [vmem:[%s2162_s16 + $0x1b0] sm:$0xff]  ;;  %v388_v32 = vld [vmem:[%s2162_s16 + $0x1a8] sm:$0xff] }
 0x13d   : > { %1193 = vmatmul.f32.gmra.mxu0 %v355_v29  ;;  %1419 = vmatmul.f32.gmra.mxu2 %v357_v31  ;;  %v904_v38 = vadd.f32 %v903_v34, %v790_v27  ;;  %v390_v34 = vld [vmem:[%s2162_s16 + $0x1b8] sm:$0xff] }
 0x13f   : > { %1306 = vmatmul.f32.gmra.mxu1 %v356_v35 }
 0x140   : > { %1532 = vmatmul.f32.gmra.mxu3 %v358_v36  ;;  %v1016_v39 = vpop.f32.mrf.mxu2 }
 0x141   : > { %v1017_v40 = vadd.f32 %v1016_v39, %v904_v38 }
 0x142   : > { %v793_v42 = vpop.f32.mrf.mxu0 }
 0x143   : > { %v1129_v46 = vpop.f32.mrf.mxu3 }
 0x144   : > { %v2552_v47 = vadd.f32 %v1129_v46, %v1017_v40  ;;  %v906_v48 = vpop.f32.mrf.mxu1  ;;  %v395_v40 = vld [vmem:[%s2162_s16 + $0x1e0] sm:$0xff] }
 0x145   : > { %1196 = vmatmul.f32.gmra.mxu0 %v363_v43  ;;  %1422 = vmatmul.f32.gmra.mxu2 %v365_v44  ;;  %v907_v52 = vadd.f32 %v906_v48, %v793_v42  ;;  %v397_v42 = vld [vmem:[%s2162_s16 + $0x1f0] sm:$0xff]  ;;  %v396_v48 = vld [vmem:[%s2162_s16 + $0x1e8] sm:$0xff] }
 0x147   : > { %1309 = vmatmul.f32.gmra.mxu1 %v364_v50  ;;  %v398_v50 = vld [vmem:[%s2162_s16 + $0x1f8] sm:$0xff] }
 0x148   : > { %1535 = vmatmul.f32.gmra.mxu3 %v366_v51  ;;  %v1019_v53 = vpop.f32.mrf.mxu2 }
 0x149   : > { %v1020_v55 = vadd.f32 %v1019_v53, %v907_v52 }
 0x14a   : > { %v796_v58 = vpop.f32.mrf.mxu0 }
 0x14b   : > { %v1132_v61 = vpop.f32.mrf.mxu3 }
 0x14c   : > { %v2558_v62 = vadd.f32 %v1132_v61, %v1020_v55  ;;  %v909_v63 = vpop.f32.mrf.mxu1 }
 0x14d   : > { %1199 = vmatmul.f32.gmra.mxu0 %v371_v59  ;;  %1425 = vmatmul.f32.gmra.mxu2 %v373_v60  ;;  %v910_v3 = vadd.f32 %v909_v63, %v796_v58  ;;  %v403_v58 = vld [vmem:[%s2162_s16 + $0x220] sm:$0xff]  ;;  %v405_v59 = vld [vmem:[%s2162_s16 + $0x230] sm:$0xff] }
 0x14f   : > { %1312 = vmatmul.f32.gmra.mxu1 %v372_v0  ;;  %v404_v0 = vld [vmem:[%s2162_s16 + $0x228] sm:$0xff] }
 0x150   : > { %1538 = vmatmul.f32.gmra.mxu3 %v374_v1  ;;  %v1022_v6 = vpop.f32.mrf.mxu2  ;;  %v406_v1 = vld [vmem:[%s2162_s16 + $0x238] sm:$0xff] }
 0x151   : > { %v1023_v7 = vadd.f32 %v1022_v6, %v910_v3 }
 0x152   : > { %v799_v8 = vpop.f32.mrf.mxu0 }
 0x153   : > { %v1135_v12 = vpop.f32.mrf.mxu3 }
 0x154   : > { %v2564_v13 = vadd.f32 %v1135_v12, %v1023_v7  ;;  %v912_v14 = vpop.f32.mrf.mxu1 }
 0x155   : > { %1202 = vmatmul.f32.gmra.mxu0 %v379_v10  ;;  %1428 = vmatmul.f32.gmra.mxu2 %v381_v11  ;;  %v913_v20 = vadd.f32 %v912_v14, %v799_v8  ;;  %v411_v10 = vld [vmem:[%s2162_s16 + $0x260] sm:$0xff]  ;;  %v413_v11 = vld [vmem:[%s2162_s16 + $0x270] sm:$0xff] }
 0x157   : > { %1315 = vmatmul.f32.gmra.mxu1 %v380_v16 }
 0x158   : > { %1541 = vmatmul.f32.gmra.mxu3 %v382_v17  ;;  %v1025_v22 = vpop.f32.mrf.mxu2  ;;  %v412_v17 = vld [vmem:[%s2162_s16 + $0x268] sm:$0xff] }
 0x159   : > { %v1026_v23 = vadd.f32 %v1025_v22, %v913_v20  ;;  %v414_v20 = vld [vmem:[%s2162_s16 + $0x278] sm:$0xff] }
 0x15a   : > { %v802_v24 = vpop.f32.mrf.mxu0 }
 0x15b   : > { %v1138_v27 = vpop.f32.mrf.mxu3 }
 0x15c   : > { %v2570_v29 = vadd.f32 %v1138_v27, %v1026_v23  ;;  %v915_v31 = vpop.f32.mrf.mxu1  ;;  %v421_v27 = vld [vmem:[%s2162_s16 + $0x2b0] sm:$0xff] }
 0x15d   : > { %1205 = vmatmul.f32.gmra.mxu0 %v387_v25  ;;  %1431 = vmatmul.f32.gmra.mxu2 %v389_v26  ;;  %v916_v35 = vadd.f32 %v915_v31, %v802_v24  ;;  %v419_v26 = vld [vmem:[%s2162_s16 + $0x2a0] sm:$0xff] }
 0x15f   : > { %1318 = vmatmul.f32.gmra.mxu1 %v388_v32 }
 0x160   : > { %1544 = vmatmul.f32.gmra.mxu3 %v390_v34  ;;  %v1028_v36 = vpop.f32.mrf.mxu2 }
 0x161   : > { %v1029_v38 = vadd.f32 %v1028_v36, %v916_v35  ;;  %v420_v35 = vld [vmem:[%s2162_s16 + $0x2a8] sm:$0xff]  ;;  %v422_v36 = vld [vmem:[%s2162_s16 + $0x2b8] sm:$0xff] }
 0x162   : > { %v805_v39 = vpop.f32.mrf.mxu0 }
 0x163   : > { %v1141_v43 = vpop.f32.mrf.mxu3 }
 0x164   : > { %v2576_v44 = vadd.f32 %v1141_v43, %v1029_v38  ;;  %v918_v46 = vpop.f32.mrf.mxu1  ;;  %v427_v43 = vld [vmem:[%s2162_s16 + $0x2e0] sm:$0xff] }
 0x165   : > { %1208 = vmatmul.f32.gmra.mxu0 %v395_v40  ;;  %1434 = vmatmul.f32.gmra.mxu2 %v397_v42  ;;  %v919_v51 = vadd.f32 %v918_v46, %v805_v39  ;;  %v429_v46 = vld [vmem:[%s2162_s16 + $0x2f0] sm:$0xff] }
 0x167   : > { %1321 = vmatmul.f32.gmra.mxu1 %v396_v48 }
 0x168   : > { %1547 = vmatmul.f32.gmra.mxu3 %v398_v50  ;;  %v1031_v52 = vpop.f32.mrf.mxu2 }
 0x169   : > { %v1032_v53 = vadd.f32 %v1031_v52, %v919_v51  ;;  %v428_v52 = vld [vmem:[%s2162_s16 + $0x2e8] sm:$0xff] }
 0x16a   : > { %v808_v55 = vpop.f32.mrf.mxu0 }
 0x16b   : > { %v1144_v60 = vpop.f32.mrf.mxu3 }
 0x16c   : > { %v2582_v61 = vadd.f32 %v1144_v60, %v1032_v53  ;;  %v921_v63 = vpop.f32.mrf.mxu1  ;;  %v430_v53 = vld [vmem:[%s2162_s16 + $0x2f8] sm:$0xff] }
 0x16d   : > { %1211 = vmatmul.f32.gmra.mxu0 %v403_v58  ;;  %1437 = vmatmul.f32.gmra.mxu2 %v405_v59  ;;  %v922_v3 = vadd.f32 %v921_v63, %v808_v55  ;;  %v435_v63 = vld [vmem:[%s2162_s16 + $0x320] sm:$0xff] }
 0x16f   : > { %1324 = vmatmul.f32.gmra.mxu1 %v404_v0  ;;  %v437_v0 = vld [vmem:[%s2162_s16 + $0x330] sm:$0xff] }
 0x170   : > { %1550 = vmatmul.f32.gmra.mxu3 %v406_v1  ;;  %v1034_v6 = vpop.f32.mrf.mxu2 }
 0x171   : > { %v1035_v7 = vadd.f32 %v1034_v6, %v922_v3 }
 0x172   : > { %v811_v8 = vpop.f32.mrf.mxu0 }
 0x173   : > { %v1147_v12 = vpop.f32.mrf.mxu3 }
 0x174   : > { %v2588_v14 = vadd.f32 %v1147_v12, %v1035_v7  ;;  %v924_v16 = vpop.f32.mrf.mxu1  ;;  %v436_v7 = vld [vmem:[%s2162_s16 + $0x328] sm:$0xff] }
 0x175   : > { %1214 = vmatmul.f32.gmra.mxu0 %v411_v10  ;;  %1440 = vmatmul.f32.gmra.mxu2 %v413_v11  ;;  %v925_v22 = vadd.f32 %v924_v16, %v811_v8  ;;  %v438_v8 = vld [vmem:[%s2162_s16 + $0x338] sm:$0xff] }
 0x177   : > { %1327 = vmatmul.f32.gmra.mxu1 %v412_v17  ;;  %v443_v17 = vld [vmem:[%s2162_s16 + $0x360] sm:$0xff] }
 0x178   : > { %1553 = vmatmul.f32.gmra.mxu3 %v414_v20  ;;  %v1037_v23 = vpop.f32.mrf.mxu2  ;;  %v445_v20 = vld [vmem:[%s2162_s16 + $0x370] sm:$0xff] }
 0x179   : > { %v1038_v24 = vadd.f32 %v1037_v23, %v925_v22 }
 0x17a   : > { %v814_v25 = vpop.f32.mrf.mxu0 }
 0x17b   : > { %v1150_v31 = vpop.f32.mrf.mxu3 }
 0x17c   : > { %v2594_v32 = vadd.f32 %v1150_v31, %v1038_v24  ;;  %v927_v34 = vpop.f32.mrf.mxu1 }
 0x17d   : > { %1217 = vmatmul.f32.gmra.mxu0 %v419_v26  ;;  %1443 = vmatmul.f32.gmra.mxu2 %v421_v27  ;;  %v928_v38 = vadd.f32 %v927_v34, %v814_v25  ;;  %v444_v25 = vld [vmem:[%s2162_s16 + $0x368] sm:$0xff]  ;;  %v446_v26 = vld [vmem:[%s2162_s16 + $0x378] sm:$0xff] }
 0x17f   : > { %1330 = vmatmul.f32.gmra.mxu1 %v420_v35 }
 0x180   : > { %1556 = vmatmul.f32.gmra.mxu3 %v422_v36  ;;  %v1040_v39 = vpop.f32.mrf.mxu2  ;;  %v451_v36 = vld [vmem:[%s2162_s16 + $0x3a0] sm:$0xff] }
 0x181   : > { %v1041_v40 = vadd.f32 %v1040_v39, %v928_v38  ;;  %v453_v38 = vld [vmem:[%s2162_s16 + $0x3b0] sm:$0xff] }
 0x182   : > { %v817_v42 = vpop.f32.mrf.mxu0 }
 0x183   : > { %v1153_v48 = vpop.f32.mrf.mxu3 }
 0x184   : > { %v2600_v50 = vadd.f32 %v1153_v48, %v1041_v40  ;;  %v930_v51 = vpop.f32.mrf.mxu1 }
 0x185   : > { %1220 = vmatmul.f32.gmra.mxu0 %v427_v43  ;;  %1446 = vmatmul.f32.gmra.mxu2 %v429_v46  ;;  %v931_v55 = vadd.f32 %v930_v51, %v817_v42  ;;  %v452_v43 = vld [vmem:[%s2162_s16 + $0x3a8] sm:$0xff]  ;;  %v454_v46 = vld [vmem:[%s2162_s16 + $0x3b8] sm:$0xff] }
 0x187   : > { %1333 = vmatmul.f32.gmra.mxu1 %v428_v52 }
 0x188   : > { %1559 = vmatmul.f32.gmra.mxu3 %v430_v53  ;;  %v1043_v58 = vpop.f32.mrf.mxu2 }
 0x189   : > { %v1044_v59 = vadd.f32 %v1043_v58, %v931_v55  ;;  %v459_v55 = vld [vmem:[%s2162_s16 + $0x3e0] sm:$0xff]  ;;  %v461_v58 = vld [vmem:[%s2162_s16 + $0x3f0] sm:$0xff] }
 0x18a   : > { %v820_v60 = vpop.f32.mrf.mxu0 }
 0x18b   : > { %v1156_v1 = vpop.f32.mrf.mxu3 }
 0x18c   : > { %v2606_v3 = vadd.f32 %v1156_v1, %v1044_v59  ;;  %v933_v6 = vpop.f32.mrf.mxu1  ;;  %v462_v1 = vld [vmem:[%s2162_s16 + $0x3f8] sm:$0xff] }
 0x18d   : > { %1223 = vmatmul.f32.gmra.mxu0 %v435_v63  ;;  %1449 = vmatmul.f32.gmra.mxu2 %v437_v0  ;;  %v934_v10 = vadd.f32 %v933_v6, %v820_v60  ;;  %v460_v0 = vld [vmem:[%s2162_s16 + $0x3e8] sm:$0xff] }
 0x18f   : > { %1336 = vmatmul.f32.gmra.mxu1 %v436_v7 }
 0x190   : > { %1562 = vmatmul.f32.gmra.mxu3 %v438_v8  ;;  %v1046_v11 = vpop.f32.mrf.mxu2 }
 0x191   : > { %v1047_v12 = vadd.f32 %v1046_v11, %v934_v10  ;;  %v467_v11 = vld [vmem:[%s2162_s16 + $0x420] sm:$0xff] }
 0x192   : > { %v823_v16 = vpop.f32.mrf.mxu0 }
 0x193   : > { %v1159_v22 = vpop.f32.mrf.mxu3 }
 0x194   : > { %v2612_v23 = vadd.f32 %v1159_v22, %v1047_v12  ;;  %v936_v24 = vpop.f32.mrf.mxu1  ;;  %v469_v12 = vld [vmem:[%s2162_s16 + $0x430] sm:$0xff] }
 0x195   : > { %1226 = vmatmul.f32.gmra.mxu0 %v443_v17  ;;  %1452 = vmatmul.f32.gmra.mxu2 %v445_v20  ;;  %v937_v27 = vadd.f32 %v936_v24, %v823_v16  ;;  %v468_v24 = vld [vmem:[%s2162_s16 + $0x428] sm:$0xff] }
 0x197   : > { %1339 = vmatmul.f32.gmra.mxu1 %v444_v25  ;;  %v470_v25 = vld [vmem:[%s2162_s16 + $0x438] sm:$0xff] }
 0x198   : > { %1565 = vmatmul.f32.gmra.mxu3 %v446_v26  ;;  %v1049_v31 = vpop.f32.mrf.mxu2 }
 0x199   : > { %v1050_v34 = vadd.f32 %v1049_v31, %v937_v27 }
 0x19a   : > { %v826_v35 = vpop.f32.mrf.mxu0 }
 0x19b   : > { %v1162_v39 = vpop.f32.mrf.mxu3 }
 0x19c   : > { %v2618_v40 = vadd.f32 %v1162_v39, %v1050_v34  ;;  %v939_v42 = vpop.f32.mrf.mxu1 }
 0x19d   : > { %1229 = vmatmul.f32.gmra.mxu0 %v451_v36  ;;  %1455 = vmatmul.f32.gmra.mxu2 %v453_v38  ;;  %v940_v48 = vadd.f32 %v939_v42, %v826_v35  ;;  %v475_v35 = vld [vmem:[%s2162_s16 + $0x460] sm:$0xff]  ;;  %v477_v36 = vld [vmem:[%s2162_s16 + $0x470] sm:$0xff] }
 0x19f   : > { %1342 = vmatmul.f32.gmra.mxu1 %v452_v43  ;;  %v476_v43 = vld [vmem:[%s2162_s16 + $0x468] sm:$0xff] }
 0x1a0   : > { %1568 = vmatmul.f32.gmra.mxu3 %v454_v46  ;;  %v1052_v51 = vpop.f32.mrf.mxu2  ;;  %v478_v46 = vld [vmem:[%s2162_s16 + $0x478] sm:$0xff] }
 0x1a1   : > { %v1053_v52 = vadd.f32 %v1052_v51, %v940_v48 }
 0x1a2   : > { %v829_v53 = vpop.f32.mrf.mxu0 }
 0x1a3   : > { %v1165_v59 = vpop.f32.mrf.mxu3 }
 0x1a4   : > { %v2624_v60 = vadd.f32 %v1165_v59, %v1053_v52  ;;  %v942_v63 = vpop.f32.mrf.mxu1 }
 0x1a5   : > { %1232 = vmatmul.f32.gmra.mxu0 %v459_v55  ;;  %1458 = vmatmul.f32.gmra.mxu2 %v461_v58  ;;  %v943_v6 = vadd.f32 %v942_v63, %v829_v53  ;;  %v483_v53 = vld [vmem:[%s2162_s16 + $0x4a0] sm:$0xff]  ;;  %v485_v55 = vld [vmem:[%s2162_s16 + $0x4b0] sm:$0xff] }
 0x1a7   : > { %1345 = vmatmul.f32.gmra.mxu1 %v460_v0 }
 0x1a8   : > { %1571 = vmatmul.f32.gmra.mxu3 %v462_v1  ;;  %v1055_v7 = vpop.f32.mrf.mxu2  ;;  %v484_v1 = vld [vmem:[%s2162_s16 + $0x4a8] sm:$0xff] }
 0x1a9   : > { %v1056_v8 = vadd.f32 %v1055_v7, %v943_v6  ;;  %v486_v6 = vld [vmem:[%s2162_s16 + $0x4b8] sm:$0xff] }
 0x1aa   : > { %v1188_v10 = vpop.f32.mrf.mxu0 }
 0x1ab   : > { %v1168_v16 = vpop.f32.mrf.mxu3  ;;  %v1189_v17 = vadd.f32 %v1188_v10, %v2384_v57 }
 0x1ac   : > { %v2631_v20 = vadd.f32 %v1168_v16, %v1056_v8  ;;  %v1301_v22 = vpop.f32.mrf.mxu1 }
 0x1ad   : > { %1235 = vmatmul.f32.gmra.mxu0 %v467_v11  ;;  %1461 = vmatmul.f32.gmra.mxu2 %v469_v12  ;;  %v1302_v26 = vadd.f32 %v1301_v22, %v1189_v17  ;;  %v491_v12 = vld [vmem:[%s2162_s16 + $0x4e0] sm:$0xff] }
 0x1af   : > { %1348 = vmatmul.f32.gmra.mxu1 %v468_v24 }
 0x1b0   : > { %1574 = vmatmul.f32.gmra.mxu3 %v470_v25  ;;  %v1414_v27 = vpop.f32.mrf.mxu2  ;;  %v492_v25 = vld [vmem:[%s2162_s16 + $0x4e8] sm:$0xff] }
 0x1b1   : > { %v1415_v31 = vadd.f32 %v1414_v27, %v1302_v26  ;;  %v494_v26 = vld [vmem:[%s2162_s16 + $0x4f8] sm:$0xff] }
 0x1b2   : > { %v1191_v34 = vpop.f32.mrf.mxu0 }
 0x1b3   : > { %v1192_v57 = vadd.f32 %v1191_v34, %v2390_v4  ;;  %v1527_v38 = vpop.f32.mrf.mxu3 }
 0x1b4   : > { %v1528_v39 = vadd.f32 %v1527_v38, %v1415_v31  ;;  %v1304_v42 = vpop.f32.mrf.mxu1 }
 0x1b5   : > { %1238 = vmatmul.f32.gmra.mxu0 %v475_v35  ;;  %1464 = vmatmul.f32.gmra.mxu2 %v477_v36  ;;  %v1305_v48 = vadd.f32 %v1304_v42, %v1192_v57  ;;  %v499_v36 = vld [vmem:[%s2162_s16 + $0x520] sm:$0xff] }
 0x1b6   : > { %1722 = vst [vmem:[%s2642_s22] sm:$0xff] %v1528_v39 }
 0x1b7   : > { %1351 = vmatmul.f32.gmra.mxu1 %v476_v43  ;;  %v500_v43 = vld [vmem:[%s2162_s16 + $0x528] sm:$0xff] }
 0x1b8   : > { %1577 = vmatmul.f32.gmra.mxu3 %v478_v46  ;;  %v1417_v4 = vpop.f32.mrf.mxu2  ;;  %v502_v46 = vld [vmem:[%s2162_s16 + $0x538] sm:$0xff] }
 0x1b9   : > { %v1418_v51 = vadd.f32 %v1417_v4, %v1305_v48 }
 0x1ba   : > { %v1194_v52 = vpop.f32.mrf.mxu0 }
 0x1bb   : > { %v1195_v58 = vadd.f32 %v1194_v52, %v2408_v19  ;;  %v1530_v59 = vpop.f32.mrf.mxu3  ;;  %v493_v19 = vld [vmem:[%s2162_s16 + $0x4f0] sm:$0xff] }
 0x1bc   : > { %v1531_v63 = vadd.f32 %v1530_v59, %v1418_v51  ;;  %v1307_v0 = vpop.f32.mrf.mxu1 }
 0x1bd   : > { %1241 = vmatmul.f32.gmra.mxu0 %v483_v53  ;;  %1467 = vmatmul.f32.gmra.mxu2 %v485_v55  ;;  %v1308_v7 = vadd.f32 %v1307_v0, %v1195_v58  ;;  %v507_v53 = vld [vmem:[%s2162_s16 + $0x560] sm:$0xff]  ;;  %v508_v0 = vld [vmem:[%s2162_s16 + $0x568] sm:$0xff] }
 0x1be   : > { %1723 = vst [vmem:[%s2642_s22 + $0x8] sm:$0xff] %v1531_v63 }
 0x1bf   : > { %1354 = vmatmul.f32.gmra.mxu1 %v484_v1  ;;  %v510_v1 = vld [vmem:[%s2162_s16 + $0x578] sm:$0xff] }
 0x1c0   : > { %1580 = vmatmul.f32.gmra.mxu3 %v486_v6  ;;  %v1420_v8 = vpop.f32.mrf.mxu2 }
 0x1c1   : > { %v1421_v10 = vadd.f32 %v1420_v8, %v1308_v7 }
 0x1c2   : > { %v1197_v11 = vpop.f32.mrf.mxu0 }
 0x1c3   : > { %v1198_v16 = vadd.f32 %v1197_v11, %v2414_v30  ;;  %v1533_v17 = vpop.f32.mrf.mxu3  ;;  %v501_v30 = vld [vmem:[%s2162_s16 + $0x530] sm:$0xff]  ;;  %v515_v11 = vld [vmem:[%s2162_s16 + $0x5a0] sm:$0xff] }
 0x1c4   : > { %v1534_v22 = vadd.f32 %v1533_v17, %v1421_v10  ;;  %v1310_v24 = vpop.f32.mrf.mxu1 }
 0x1c5   : > { %1244 = vmatmul.f32.gmra.mxu0 %v491_v12  ;;  %1470 = vmatmul.f32.gmra.mxu2 %v493_v19  ;;  %v1311_v27 = vadd.f32 %v1310_v24, %v1198_v16  ;;  %v518_v24 = vld [vmem:[%s2162_s16 + $0x5b8] sm:$0xff] }
 0x1c6   : > { %1724 = vst [vmem:[%s2642_s22 + $0x10] sm:$0xff] %v1534_v22  ;;  %v516_v22 = vld [vmem:[%s2162_s16 + $0x5a8] sm:$0xff] }
 0x1c7   : > { %1357 = vmatmul.f32.gmra.mxu1 %v492_v25 }
 0x1c8   : > { %1583 = vmatmul.f32.gmra.mxu3 %v494_v26  ;;  %v1423_v31 = vpop.f32.mrf.mxu2 }
 0x1c9   : > { %v1424_v34 = vadd.f32 %v1423_v31, %v1311_v27 }
 0x1ca   : > { %v1200_v35 = vpop.f32.mrf.mxu0 }
 0x1cb   : > { %v1201_v57 = vadd.f32 %v1200_v35, %v2432_v45  ;;  %v1536_v38 = vpop.f32.mrf.mxu3  ;;  %v509_v45 = vld [vmem:[%s2162_s16 + $0x570] sm:$0xff] }
 0x1cc   : > { %v1537_v39 = vadd.f32 %v1536_v38, %v1424_v34  ;;  %v1313_v42 = vpop.f32.mrf.mxu1  ;;  %v523_v34 = vld [vmem:[%s2162_s16 + $0x5e0] sm:$0xff]  ;;  %v524_v38 = vld [vmem:[%s2162_s16 + $0x5e8] sm:$0xff] }
 0x1cd   : > { %1247 = vmatmul.f32.gmra.mxu0 %v499_v36  ;;  %1473 = vmatmul.f32.gmra.mxu2 %v501_v30  ;;  %v1314_v48 = vadd.f32 %v1313_v42, %v1201_v57 }
 0x1ce   : > { %1725 = vst [vmem:[%s2642_s22 + $0x18] sm:$0xff] %v1537_v39  ;;  %v526_v39 = vld [vmem:[%s2162_s16 + $0x5f8] sm:$0xff] }
 0x1cf   : > { %1360 = vmatmul.f32.gmra.mxu1 %v500_v43 }
 0x1d0   : > { %1586 = vmatmul.f32.gmra.mxu3 %v502_v46  ;;  %v1426_v4 = vpop.f32.mrf.mxu2 }
 0x1d1   : > { %v1427_v51 = vadd.f32 %v1426_v4, %v1314_v48  ;;  %v531_v4 = vld [vmem:[%s2162_s16 + $0x620] sm:$0xff] }
 0x1d2   : > { %v1203_v52 = vpop.f32.mrf.mxu0 }
 0x1d3   : > { %v1204_v55 = vadd.f32 %v1203_v52, %v2438_v56  ;;  %v1539_v58 = vpop.f32.mrf.mxu3  ;;  %v517_v56 = vld [vmem:[%s2162_s16 + $0x5b0] sm:$0xff] }
 0x1d4   : > { %v1540_v59 = vadd.f32 %v1539_v58, %v1427_v51  ;;  %v1316_v63 = vpop.f32.mrf.mxu1  ;;  %v534_v58 = vld [vmem:[%s2162_s16 + $0x638] sm:$0xff] }
 0x1d5   : > { %1250 = vmatmul.f32.gmra.mxu0 %v507_v53  ;;  %1476 = vmatmul.f32.gmra.mxu2 %v509_v45  ;;  %v1317_v6 = vadd.f32 %v1316_v63, %v1204_v55  ;;  %v532_v55 = vld [vmem:[%s2162_s16 + $0x628] sm:$0xff] }
 0x1d6   : > { %1726 = vst [vmem:[%s2642_s22 + $0x20] sm:$0xff] %v1540_v59 }
 0x1d7   : > { %1363 = vmatmul.f32.gmra.mxu1 %v508_v0 }
 0x1d8   : > { %1589 = vmatmul.f32.gmra.mxu3 %v510_v1  ;;  %v1429_v7 = vpop.f32.mrf.mxu2 }
 0x1d9   : > { %v1430_v8 = vadd.f32 %v1429_v7, %v1317_v6  ;;  %v539_v6 = vld [vmem:[%s2162_s16 + $0x660] sm:$0xff] }
 0x1da   : > { %v1206_v10 = vpop.f32.mrf.mxu0 }
 0x1db   : > { %v1207_v12 = vadd.f32 %v1206_v10, %v2456_v9  ;;  %v1542_v19 = vpop.f32.mrf.mxu3  ;;  %v525_v9 = vld [vmem:[%s2162_s16 + $0x5f0] sm:$0xff] }
 0x1dc   : > { %v1543_v16 = vadd.f32 %v1542_v19, %v1430_v8  ;;  %v1319_v17 = vpop.f32.mrf.mxu1 }
 0x1dd   : > { %1253 = vmatmul.f32.gmra.mxu0 %v515_v11  ;;  %1479 = vmatmul.f32.gmra.mxu2 %v517_v56  ;;  %v1320_v25 = vadd.f32 %v1319_v17, %v1207_v12  ;;  %v540_v56 = vld [vmem:[%s2162_s16 + $0x668] sm:$0xff]  ;;  %v542_v12 = vld [vmem:[%s2162_s16 + $0x678] sm:$0xff] }
 0x1de   : > { %1727 = vst [vmem:[%s2642_s22 + $0x28] sm:$0xff] %v1543_v16 }
 0x1df   : > { %1366 = vmatmul.f32.gmra.mxu1 %v516_v22 }
 0x1e0   : > { %1592 = vmatmul.f32.gmra.mxu3 %v518_v24  ;;  %v1432_v26 = vpop.f32.mrf.mxu2  ;;  %v547_v24 = vld [vmem:[%s2162_s16 + $0x6a0] sm:$0xff] }
 0x1e1   : > { %v1433_v27 = vadd.f32 %v1432_v26, %v1320_v25 }
 0x1e2   : > { %v1209_v31 = vpop.f32.mrf.mxu0 }
 0x1e3   : > { %v1210_v35 = vadd.f32 %v1209_v31, %v2462_v21  ;;  %v1545_v36 = vpop.f32.mrf.mxu3  ;;  %v533_v21 = vld [vmem:[%s2162_s16 + $0x630] sm:$0xff] }
 0x1e4   : > { %v1546_v30 = vadd.f32 %v1545_v36, %v1433_v27  ;;  %v1322_v57 = vpop.f32.mrf.mxu1 }
 0x1e5   : > { %1256 = vmatmul.f32.gmra.mxu0 %v523_v34  ;;  %1482 = vmatmul.f32.gmra.mxu2 %v525_v9  ;;  %v1323_v42 = vadd.f32 %v1322_v57, %v1210_v35  ;;  %v548_v34 = vld [vmem:[%s2162_s16 + $0x6a8] sm:$0xff]  ;;  %v550_v9 = vld [vmem:[%s2162_s16 + $0x6b8] sm:$0xff] }
 0x1e6   : > { %1728 = vst [vmem:[%s2642_s22 + $0x30] sm:$0xff] %v1546_v30 }
 0x1e7   : > { %1369 = vmatmul.f32.gmra.mxu1 %v524_v38  ;;  %v555_v38 = vld [vmem:[%s2162_s16 + $0x6e0] sm:$0xff] }
 0x1e8   : > { %1595 = vmatmul.f32.gmra.mxu3 %v526_v39  ;;  %v1435_v43 = vpop.f32.mrf.mxu2 }
 0x1e9   : > { %v1436_v46 = vadd.f32 %v1435_v43, %v1323_v42 }
 0x1ea   : > { %v1212_v48 = vpop.f32.mrf.mxu0 }
 0x1eb   : > { %v1213_v51 = vadd.f32 %v1212_v48, %v2480_v37  ;;  %v1548_v52 = vpop.f32.mrf.mxu3  ;;  %v541_v37 = vld [vmem:[%s2162_s16 + $0x670] sm:$0xff]  ;;  %v556_v48 = vld [vmem:[%s2162_s16 + $0x6e8] sm:$0xff] }
 0x1ec   : > { %v1549_v53 = vadd.f32 %v1548_v52, %v1436_v46  ;;  %v1325_v45 = vpop.f32.mrf.mxu1 }
 0x1ed   : > { %1259 = vmatmul.f32.gmra.mxu0 %v531_v4  ;;  %1485 = vmatmul.f32.gmra.mxu2 %v533_v21  ;;  %v1326_v59 = vadd.f32 %v1325_v45, %v1213_v51  ;;  %v558_v4 = vld [vmem:[%s2162_s16 + $0x6f8] sm:$0xff]  ;;  %v563_v45 = vld [vmem:[%s2162_s16 + $0x720] sm:$0xff] }
 0x1ee   : > { %1729 = vst [vmem:[%s2642_s22 + $0x38] sm:$0xff] %v1549_v53 }
 0x1ef   : > { %1372 = vmatmul.f32.gmra.mxu1 %v532_v55 }
 0x1f0   : > { %1598 = vmatmul.f32.gmra.mxu3 %v534_v58  ;;  %v1438_v63 = vpop.f32.mrf.mxu2 }
 0x1f1   : > { %v1439_v0 = vadd.f32 %v1438_v63, %v1326_v59 }
 0x1f2   : > { %v1215_v1 = vpop.f32.mrf.mxu0 }
 0x1f3   : > { %v1216_v7 = vadd.f32 %v1215_v1, %v2486_v49  ;;  %v1551_v8 = vpop.f32.mrf.mxu3  ;;  %v549_v49 = vld [vmem:[%s2162_s16 + $0x6b0] sm:$0xff]  ;;  %v566_v1 = vld [vmem:[%s2162_s16 + $0x738] sm:$0xff] }
 0x1f4   : > { %v1552_v10 = vadd.f32 %v1551_v8, %v1439_v0  ;;  %v1328_v11 = vpop.f32.mrf.mxu1  ;;  %v564_v0 = vld [vmem:[%s2162_s16 + $0x728] sm:$0xff] }
 0x1f5   : > { %1262 = vmatmul.f32.gmra.mxu0 %v539_v6  ;;  %1488 = vmatmul.f32.gmra.mxu2 %v541_v37  ;;  %v1329_v19 = vadd.f32 %v1328_v11, %v1216_v7 }
 0x1f6   : > { %1730 = vst [vmem:[%s2642_s22 + $0x40] sm:$0xff] %v1552_v10  ;;  %v571_v10 = vld [vmem:[%s2162_s16 + $0x760] sm:$0xff] }
 0x1f7   : > { %1375 = vmatmul.f32.gmra.mxu1 %v540_v56 }
 0x1f8   : > { %1601 = vmatmul.f32.gmra.mxu3 %v542_v12  ;;  %v1441_v16 = vpop.f32.mrf.mxu2 }
 0x1f9   : > { %v1442_v17 = vadd.f32 %v1441_v16, %v1329_v19  ;;  %v572_v16 = vld [vmem:[%s2162_s16 + $0x768] sm:$0xff] }
 0x1fa   : > { %v1218_v22 = vpop.f32.mrf.mxu0 }
 0x1fb   : > { %v1219_v25 = vadd.f32 %v1218_v22, %v2504_v2  ;;  %v1554_v26 = vpop.f32.mrf.mxu3  ;;  %v557_v2 = vld [vmem:[%s2162_s16 + $0x6f0] sm:$0xff] }
 0x1fc   : > { %v1555_v27 = vadd.f32 %v1554_v26, %v1442_v17  ;;  %v1331_v31 = vpop.f32.mrf.mxu1  ;;  %v574_v17 = vld [vmem:[%s2162_s16 + $0x778] sm:$0xff]  ;;  %v579_v26 = vld [vmem:[%s2162_s16 + $0x7a0] sm:$0xff] }
 0x1fd   : > { %1265 = vmatmul.f32.gmra.mxu0 %v547_v24  ;;  %1491 = vmatmul.f32.gmra.mxu2 %v549_v49  ;;  %v1332_v35 = vadd.f32 %v1331_v31, %v1219_v25 }
 0x1fe   : > { %1731 = vst [vmem:[%s2642_s22 + $0x48] sm:$0xff] %v1555_v27 }
 0x1ff   : > { %1378 = vmatmul.f32.gmra.mxu1 %v548_v34 }
 0x200   : > { %1604 = vmatmul.f32.gmra.mxu3 %v550_v9  ;;  %v1444_v36 = vpop.f32.mrf.mxu2 }
 0x201   : > { %v1445_v30 = vadd.f32 %v1444_v36, %v1332_v35  ;;  %v580_v35 = vld [vmem:[%s2162_s16 + $0x7a8] sm:$0xff]  ;;  %v582_v36 = vld [vmem:[%s2162_s16 + $0x7b8] sm:$0xff] }
 0x202   : > { %v1221_v57 = vpop.f32.mrf.mxu0 }
 0x203   : > { %v1222_v39 = vadd.f32 %v1221_v57, %v2510_v15  ;;  %v1557_v42 = vpop.f32.mrf.mxu3  ;;  %v565_v15 = vld [vmem:[%s2162_s16 + $0x730] sm:$0xff] }
 0x204   : > { %v1558_v43 = vadd.f32 %v1557_v42, %v1445_v30  ;;  %v1334_v46 = vpop.f32.mrf.mxu1 }
 0x205   : > { %1268 = vmatmul.f32.gmra.mxu0 %v555_v38  ;;  %1494 = vmatmul.f32.gmra.mxu2 %v557_v2  ;;  %v1335_v21 = vadd.f32 %v1334_v46, %v1222_v39  ;;  %v587_v39 = vld [vmem:[%s2162_s16 + $0x7e0] sm:$0xff] }
 0x206   : > { %1732 = vst [vmem:[%s2642_s22 + $0x50] sm:$0xff] %v1558_v43 }
 0x207   : > { %1381 = vmatmul.f32.gmra.mxu1 %v556_v48 }
 0x208   : > { %1607 = vmatmul.f32.gmra.mxu3 %v558_v4  ;;  %v1447_v51 = vpop.f32.mrf.mxu2  ;;  %v588_v4 = vld [vmem:[%s2162_s16 + $0x7e8] sm:$0xff] }
 0x209   : > { %v1448_v52 = vadd.f32 %v1447_v51, %v1335_v21  ;;  %v590_v21 = vld [vmem:[%s2162_s16 + $0x7f8] sm:$0xff] }
 0x20a   : > { %v1224_v53 = vpop.f32.mrf.mxu0 }
 0x20b   : > { %v1225_v55 = vadd.f32 %v1224_v53, %v2516_v28  ;;  %v1560_v58 = vpop.f32.mrf.mxu3  ;;  %v573_v28 = vld [vmem:[%s2162_s16 + $0x770] sm:$0xff] }
 0x20c   : > { %v1561_v59 = vadd.f32 %v1560_v58, %v1448_v52  ;;  %v1337_v63 = vpop.f32.mrf.mxu1 }
 0x20d   : > { %1271 = vmatmul.f32.gmra.mxu0 %v563_v45  ;;  %1497 = vmatmul.f32.gmra.mxu2 %v565_v15  ;;  %v1338_v6 = vadd.f32 %v1337_v63, %v1225_v55 }
 0x20e   : > { %1733 = vst [vmem:[%s2642_s22 + $0x58] sm:$0xff] %v1561_v59 }
 0x20f   : > { %1384 = vmatmul.f32.gmra.mxu1 %v564_v0 }
 0x210   : > { %1610 = vmatmul.f32.gmra.mxu3 %v566_v1  ;;  %v1450_v37 = vpop.f32.mrf.mxu2 }
 0x211   : > { %v1451_v7 = vadd.f32 %v1450_v37, %v1338_v6 }
 0x212   : > { %v1227_v8 = vpop.f32.mrf.mxu0 }
 0x213   : > { %v1228_v11 = vadd.f32 %v1227_v8, %v2522_v41  ;;  %v1563_v56 = vpop.f32.mrf.mxu3  ;;  %v581_v41 = vld [vmem:[%s2162_s16 + $0x7b0] sm:$0xff] }
 0x214   : > { %v1564_v12 = vadd.f32 %v1563_v56, %v1451_v7  ;;  %v1340_v19 = vpop.f32.mrf.mxu1 }
 0x215   : > { %1274 = vmatmul.f32.gmra.mxu0 %v571_v10  ;;  %1500 = vmatmul.f32.gmra.mxu2 %v573_v28  ;;  %v1341_v22 = vadd.f32 %v1340_v19, %v1228_v11 }
 0x216   : > { %1734 = vst [vmem:[%s2642_s22 + $0x60] sm:$0xff] %v1564_v12 }
 0x217   : > { %1387 = vmatmul.f32.gmra.mxu1 %v572_v16 }
 0x218   : > { %1613 = vmatmul.f32.gmra.mxu3 %v574_v17  ;;  %v1453_v24 = vpop.f32.mrf.mxu2 }
 0x219   : > { %v1454_v49 = vadd.f32 %v1453_v24, %v1341_v22 }
 0x21a   : > { %v1230_v25 = vpop.f32.mrf.mxu0 }
 0x21b   : > { %v1231_v27 = vadd.f32 %v1230_v25, %v2528_v54  ;;  %v1566_v31 = vpop.f32.mrf.mxu3  ;;  %v589_v54 = vld [vmem:[%s2162_s16 + $0x7f0] sm:$0xff] }
 0x21c   : > { %v1567_v34 = vadd.f32 %v1566_v31, %v1454_v49  ;;  %v1343_v9 = vpop.f32.mrf.mxu1 }
 0x21d   : > { %1277 = vmatmul.f32.gmra.mxu0 %v579_v26  ;;  %1503 = vmatmul.f32.gmra.mxu2 %v581_v41  ;;  %v1344_v30 = vadd.f32 %v1343_v9, %v1231_v27 }
 0x21e   : > { %1735 = vst [vmem:[%s2642_s22 + $0x68] sm:$0xff] %v1567_v34 }
 0x21f   : > { %1390 = vmatmul.f32.gmra.mxu1 %v580_v35 }
 0x220   : > { %1616 = vmatmul.f32.gmra.mxu3 %v582_v36  ;;  %v1456_v57 = vpop.f32.mrf.mxu2 }
 0x221   : > { %v1457_v38 = vadd.f32 %v1456_v57, %v1344_v30 }
 0x222   : > { %v1233_v2 = vpop.f32.mrf.mxu0 }
 0x223   : > { %v1234_v42 = vadd.f32 %v1233_v2, %v2534_v5  ;;  %v1569_v43 = vpop.f32.mrf.mxu3 }
 0x224   : > { %v1570_v46 = vadd.f32 %v1569_v43, %v1457_v38  ;;  %v1346_v48 = vpop.f32.mrf.mxu1 }
 0x225   : > { %1280 = vmatmul.f32.gmra.mxu0 %v587_v39  ;;  %1506 = vmatmul.f32.gmra.mxu2 %v589_v54  ;;  %v1347_v51 = vadd.f32 %v1346_v48, %v1234_v42 }
 0x226   : > { %1736 = vst [vmem:[%s2642_s22 + $0x70] sm:$0xff] %v1570_v46 }
 0x227   : > { %1393 = vmatmul.f32.gmra.mxu1 %v588_v4 }
 0x228   : > { %1619 = vmatmul.f32.gmra.mxu3 %v590_v21  ;;  %v1459_v52 = vpop.f32.mrf.mxu2 }
 0x229   : > { %v1460_v53 = vadd.f32 %v1459_v52, %v1347_v51 }
 0x22a   : > { %v1236_v45 = vpop.f32.mrf.mxu0 }
 0x22b   : > { %v1237_v15 = vadd.f32 %v1236_v45, %v2540_v18  ;;  %v1572_v55 = vpop.f32.mrf.mxu3 }
 0x22c   : > { %v1573_v5 = vadd.f32 %v1572_v55, %v1460_v53  ;;  %v1349_v58 = vpop.f32.mrf.mxu1 }
 0x22d   : > { %v1350_v59 = vadd.f32 %v1349_v58, %v1237_v15 }
 0x22e   : > { %1737 = vst [vmem:[%s2642_s22 + $0x78] sm:$0xff] %v1573_v5 }
 0x230   : > { %v1462_v63 = vpop.f32.mrf.mxu2 }
 0x231   : > { %v1463_v0 = vadd.f32 %v1462_v63, %v1350_v59 }
 0x232   : > { %v1239_v1 = vpop.f32.mrf.mxu0 }
 0x233   : > { %v1240_v6 = vadd.f32 %v1239_v1, %v2546_v33  ;;  %v1575_v37 = vpop.f32.mrf.mxu3 }
 0x234   : > { %v1576_v7 = vadd.f32 %v1575_v37, %v1463_v0  ;;  %v1352_v8 = vpop.f32.mrf.mxu1 }
 0x235   : > { %v1353_v10 = vadd.f32 %v1352_v8, %v1240_v6 }
 0x236   : > { %1738 = vst [vmem:[%s2642_s22 + $0x80] sm:$0xff] %v1576_v7 }
 0x238   : > { %v1465_v28 = vpop.f32.mrf.mxu2 }
 0x239   : > { %v1466_v11 = vadd.f32 %v1465_v28, %v1353_v10 }
 0x23a   : > { %v1242_v18 = vpop.f32.mrf.mxu0 }
 0x23b   : > { %v1243_v56 = vadd.f32 %v1242_v18, %v2552_v47  ;;  %v1578_v12 = vpop.f32.mrf.mxu3 }
 0x23c   : > { %v1579_v19 = vadd.f32 %v1578_v12, %v1466_v11  ;;  %v1355_v16 = vpop.f32.mrf.mxu1 }
 0x23d   : > { %v1356_v17 = vadd.f32 %v1355_v16, %v1243_v56 }
 0x23e   : > { %1739 = vst [vmem:[%s2642_s22 + $0x88] sm:$0xff] %v1579_v19 }
 0x240   : > { %v1468_v22 = vpop.f32.mrf.mxu2 }
 0x241   : > { %v1469_v24 = vadd.f32 %v1468_v22, %v1356_v17 }
 0x242   : > { %v1245_v33 = vpop.f32.mrf.mxu0 }
 0x243   : > { %v1246_v49 = vadd.f32 %v1245_v33, %v2558_v62  ;;  %v1581_v25 = vpop.f32.mrf.mxu3 }
 0x244   : > { %v1582_v26 = vadd.f32 %v1581_v25, %v1469_v24  ;;  %v1358_v41 = vpop.f32.mrf.mxu1 }
 0x245   : > { %v1359_v27 = vadd.f32 %v1358_v41, %v1246_v49 }
 0x246   : > { %1740 = vst [vmem:[%s2642_s22 + $0x90] sm:$0xff] %v1582_v26 }
 0x248   : > { %v1471_v31 = vpop.f32.mrf.mxu2 }
 0x249   : > { %v1472_v34 = vadd.f32 %v1471_v31, %v1359_v27 }
 0x24a   : > { %v1248_v47 = vpop.f32.mrf.mxu0 }
 0x24b   : > { %v1249_v9 = vadd.f32 %v1248_v47, %v2564_v13  ;;  %v1584_v35 = vpop.f32.mrf.mxu3 }
 0x24c   : > { %v1585_v36 = vadd.f32 %v1584_v35, %v1472_v34  ;;  %v1361_v30 = vpop.f32.mrf.mxu1 }
 0x24d   : > { %v1362_v57 = vadd.f32 %v1361_v30, %v1249_v9 }
 0x24e   : > { %1741 = vst [vmem:[%s2642_s22 + $0x98] sm:$0xff] %v1585_v36 }
 0x250   : > { %v1474_v38 = vpop.f32.mrf.mxu2 }
 0x251   : > { %v1475_v2 = vadd.f32 %v1474_v38, %v1362_v57 }
 0x252   : > { %v1251_v62 = vpop.f32.mrf.mxu0 }
 0x253   : > { %v1252_v39 = vadd.f32 %v1251_v62, %v2570_v29  ;;  %v1587_v54 = vpop.f32.mrf.mxu3 }
 0x254   : > { %v1588_v42 = vadd.f32 %v1587_v54, %v1475_v2  ;;  %v1364_v43 = vpop.f32.mrf.mxu1 }
 0x255   : > { %v1365_v46 = vadd.f32 %v1364_v43, %v1252_v39 }
 0x256   : > { %1742 = vst [vmem:[%s2642_s22 + $0xa0] sm:$0xff] %v1588_v42 }
 0x258   : > { %v1477_v48 = vpop.f32.mrf.mxu2 }
 0x259   : > { %v1478_v4 = vadd.f32 %v1477_v48, %v1365_v46 }
 0x25a   : > { %v1254_v13 = vpop.f32.mrf.mxu0 }
 0x25b   : > { %v1255_v21 = vadd.f32 %v1254_v13, %v2576_v44  ;;  %v1590_v51 = vpop.f32.mrf.mxu3 }
 0x25c   : > { %v1591_v52 = vadd.f32 %v1590_v51, %v1478_v4  ;;  %v1367_v53 = vpop.f32.mrf.mxu1 }
 0x25d   : > { %v1368_v45 = vadd.f32 %v1367_v53, %v1255_v21 }
 0x25e   : > { %1743 = vst [vmem:[%s2642_s22 + $0xa8] sm:$0xff] %v1591_v52 }
 0x260   : > { %v1480_v15 = vpop.f32.mrf.mxu2 }
 0x261   : > { %v1481_v55 = vadd.f32 %v1480_v15, %v1368_v45 }
 0x262   : > { %v1257_v29 = vpop.f32.mrf.mxu0 }
 0x263   : > { %v1258_v5 = vadd.f32 %v1257_v29, %v2582_v61  ;;  %v1593_v58 = vpop.f32.mrf.mxu3 }
 0x264   : > { %v1594_v59 = vadd.f32 %v1593_v58, %v1481_v55  ;;  %v1370_v63 = vpop.f32.mrf.mxu1 }
 0x265   : > { %v1371_v0 = vadd.f32 %v1370_v63, %v1258_v5 }
 0x266   : > { %1744 = vst [vmem:[%s2642_s22 + $0xb0] sm:$0xff] %v1594_v59 }
 0x268   : > { %v1483_v1 = vpop.f32.mrf.mxu2 }
 0x269   : > { %v1484_v6 = vadd.f32 %v1483_v1, %v1371_v0 }
 0x26a   : > { %v1260_v44 = vpop.f32.mrf.mxu0 }
 0x26b   : > { %v1261_v37 = vadd.f32 %v1260_v44, %v2588_v14  ;;  %v1596_v7 = vpop.f32.mrf.mxu3 }
 0x26c   : > { %v1597_v8 = vadd.f32 %v1596_v7, %v1484_v6  ;;  %v1373_v10 = vpop.f32.mrf.mxu1 }
 0x26d   : > { %v1374_v28 = vadd.f32 %v1373_v10, %v1261_v37 }
 0x26e   : > { %1745 = vst [vmem:[%s2642_s22 + $0xb8] sm:$0xff] %v1597_v8 }
 0x270   : > { %v1486_v11 = vpop.f32.mrf.mxu2 }
 0x271   : > { %v1487_v18 = vadd.f32 %v1486_v11, %v1374_v28 }
 0x272   : > { %v1263_v61 = vpop.f32.mrf.mxu0 }
 0x273   : > { %v1264_v56 = vadd.f32 %v1263_v61, %v2594_v32  ;;  %v1599_v12 = vpop.f32.mrf.mxu3 }
 0x274   : > { %v1600_v19 = vadd.f32 %v1599_v12, %v1487_v18  ;;  %v1376_v16 = vpop.f32.mrf.mxu1 }
 0x275   : > { %v1377_v17 = vadd.f32 %v1376_v16, %v1264_v56 }
 0x276   : > { %1746 = vst [vmem:[%s2642_s22 + $0xc0] sm:$0xff] %v1600_v19 }
 0x278   : > { %v1489_v22 = vpop.f32.mrf.mxu2 }
 0x279   : > { %v1490_v24 = vadd.f32 %v1489_v22, %v1377_v17 }
 0x27a   : > { %v1266_v14 = vpop.f32.mrf.mxu0 }
 0x27b   : > { %v1267_v33 = vadd.f32 %v1266_v14, %v2600_v50  ;;  %v1602_v49 = vpop.f32.mrf.mxu3 }
 0x27c   : > { %v1603_v25 = vadd.f32 %v1602_v49, %v1490_v24  ;;  %v1379_v26 = vpop.f32.mrf.mxu1 }
 0x27d   : > { %v1380_v41 = vadd.f32 %v1379_v26, %v1267_v33 }
 0x27e   : > { %1747 = vst [vmem:[%s2642_s22 + $0xc8] sm:$0xff] %v1603_v25 }
 0x280   : > { %v1492_v27 = vpop.f32.mrf.mxu2 }
 0x281   : > { %v1493_v31 = vadd.f32 %v1492_v27, %v1380_v41 }
 0x282   : > { %v1269_v32 = vpop.f32.mrf.mxu0 }
 0x283   : > { %v1270_v34 = vadd.f32 %v1269_v32, %v2606_v3  ;;  %v1605_v47 = vpop.f32.mrf.mxu3 }
 0x284   : > { %v1606_v9 = vadd.f32 %v1605_v47, %v1493_v31  ;;  %v1382_v35 = vpop.f32.mrf.mxu1 }
 0x285   : > { %v1383_v36 = vadd.f32 %v1382_v35, %v1270_v34 }
 0x286   : > { %1748 = vst [vmem:[%s2642_s22 + $0xd0] sm:$0xff] %v1606_v9 }
 0x288   : > { %v1495_v30 = vpop.f32.mrf.mxu2 }
 0x289   : > { %v1496_v57 = vadd.f32 %v1495_v30, %v1383_v36 }
 0x28a   : > { %v1272_v50 = vpop.f32.mrf.mxu0 }
 0x28b   : > { %v1273_v38 = vadd.f32 %v1272_v50, %v2612_v23  ;;  %v1608_v2 = vpop.f32.mrf.mxu3 }
 0x28c   : > { %v1609_v62 = vadd.f32 %v1608_v2, %v1496_v57  ;;  %v1385_v39 = vpop.f32.mrf.mxu1 }
 0x28d   : > { %v1386_v54 = vadd.f32 %v1385_v39, %v1273_v38 }
 0x28e   : > { %1749 = vst [vmem:[%s2642_s22 + $0xd8] sm:$0xff] %v1609_v62 }
 0x290   : > { %v1498_v42 = vpop.f32.mrf.mxu2 }
 0x291   : > { %v1499_v43 = vadd.f32 %v1498_v42, %v1386_v54 }
 0x292   : > { %v1275_v3 = vpop.f32.mrf.mxu0 }
 0x293   : > { %v1276_v46 = vadd.f32 %v1275_v3, %v2618_v40  ;;  %v1611_v48 = vpop.f32.mrf.mxu3 }
 0x294   : > { %v1612_v4 = vadd.f32 %v1611_v48, %v1499_v43  ;;  %v1388_v13 = vpop.f32.mrf.mxu1 }
 0x295   : > { %v1389_v21 = vadd.f32 %v1388_v13, %v1276_v46 }
 0x296   : > { %1750 = vst [vmem:[%s2642_s22 + $0xe0] sm:$0xff] %v1612_v4 }
 0x298   : > { %v1501_v51 = vpop.f32.mrf.mxu2 }
 0x299   : > { %v1502_v52 = vadd.f32 %v1501_v51, %v1389_v21 }
 0x29a   : > { %v1278_v23 = vpop.f32.mrf.mxu0 }
 0x29b   : > { %v1279_v53 = vadd.f32 %v1278_v23, %v2624_v60  ;;  %v1614_v45 = vpop.f32.mrf.mxu3 }
 0x29c   : > { %v1615_v15 = vadd.f32 %v1614_v45, %v1502_v52  ;;  %v1391_v55 = vpop.f32.mrf.mxu1 }
 0x29d   : > { %v1392_v29 = vadd.f32 %v1391_v55, %v1279_v53 }
 0x29e   : > { %1751 = vst [vmem:[%s2642_s22 + $0xe8] sm:$0xff] %v1615_v15 }
 0x2a0   : > { %v1504_v5 = vpop.f32.mrf.mxu2 }
 0x2a1   : > { %v1505_v58 = vadd.f32 %v1504_v5, %v1392_v29 }
 0x2a2   : > { %v1281_v40 = vpop.f32.mrf.mxu0 }
 0x2a3   : > { %v1282_v59 = vadd.f32 %v1281_v40, %v2631_v20  ;;  %v1617_v63 = vpop.f32.mrf.mxu3 }
 0x2a4   : > { %v1618_v0 = vadd.f32 %v1617_v63, %v1505_v58  ;;  %v1394_v1 = vpop.f32.mrf.mxu1 }
 0x2a5   : > { %v1395_v6 = vadd.f32 %v1394_v1, %v1282_v59 }
 0x2a6   : > { %1752 = vst [vmem:[%s2642_s22 + $0xf0] sm:$0xff] %v1618_v0 }
 0x2a8   : > { %v1507_v44 = vpop.f32.mrf.mxu2 }
 0x2a9   : > { %v1508_v37 = vadd.f32 %v1507_v44, %v1395_v6 }
 0x2ab   : > { %v1620_v7 = vpop.f32.mrf.mxu3 }
 0x2ac   : > { %v1621_v60 = vadd.f32 %v1620_v7, %v1508_v37 }
 0x2ae   : > { %1753 = vst [vmem:[%s2642_s22 + $0xf8] sm:$0xff] %v1621_v60 }
 0x2af PF: > { %s13_s14 = sadd.s32 1, %s1929_s14   ;;  %s2778_s12 = smov %s1925_s13 }
 0x2b0   : > { %p10_p5 = scmp.ge.s32.totalorder %s13_s14, 4   ;;  %s2779_s13 = smov %s2781_s2 }
 0x2b2   :  { %12 = sbr.rel (!%p10_p5) target bundleno = 2 (0x2), region = 76 }

// kernel: discriminator_forward.14
= control target key start
LH: loop header
LB: loop body
LE: loop exit
PB: predicated region body
PF: predicated region fallthrough
CT: control target
= control target key end

     0   :  { %s756_s18 = smov 0   ;;  %s758_s19 = smov 0   ;;  %s948_s0 = inlined_call_operand.vmem [shape: f32[512,128], index: 0, kind: input, shape index: {}]   ;;  %s949_s1 = inlined_call_operand.vmem [shape: f32[1,128], index: 1, kind: input, shape index: {}]   ;;  %s950_s2 = inlined_call_operand.vmem [shape: f32[1,128], index: 2, kind: input, shape index: {}]   ;;  %s951_s3 = inlined_call_operand.vmem [shape: f32[1,128], index: 3, kind: input, shape index: {}]   ;;  %s952_s4 = inlined_call_operand.vmem [shape: f32[1,128], index: 4, kind: input, shape index: {}]   ;;  %s953_s5 = inlined_call_operand.vmem [shape: f32[512,128], index: 5, kind: output, shape index: {}]  }
   0x1   :  { %s760_s20 = smov 0  }
   0x2 LB: > { %s27_s21 = sadd.s32 1, %s720_s19  ;;  %p669_p0 = scmp.ge.s32.totalorder %s724_s20, 1  ;;  %s724_s20 = sphi %s760_s20, %s15_s20   ;;  %s720_s19 = sphi %s758_s19, %s955_s19   ;;  %s716_s18 = sphi %s756_s18, %s954_s18  }
   0x3   : > { %p29_p1 = scmp.ge.s32.totalorder %s27_s21, 2  ;;  %p239_p2 = scmp.lt.s32.totalorder %s724_s20, 3 }
   0x5   : > { %s957_s21 = smov (%p29_p1, %s27_s21), 0  ;;  %p240_p3 = pnand %p669_p0, %p239_p2 }
   0x6   : > { %s670_s26 = sshll.u32 (!%p240_p3), %s716_s18, 5 }
   0x7   : > { %243 = sbr.rel (%p240_p3) target bundleno = 85 (0x55), region = 40  ;;  %p286_p4 = scmp.lt.s32.totalorder (!%p240_p3), %s670_s26, 63 }
   0xc   : > { %v315_v0 = vld [vmem:[%s949_s1] sm:$0x1]  ;;  %s959_s26 = smov (!%p286_p4, %s670_s26), 63 }
   0xd   : > { %v317_v1 = vld [vmem:[%s950_s2] sm:$0x1]  ;;  %v316_v2 = vmul.f32 0.001953125, %v315_v0  ;;  %s671_s27 = sshll.u32 %s959_s26, 3 }
   0xe   : > { %v318_v3 = vmul.f32 0.001953125, %v317_v1  ;;  %s788_s30 = scalar_lea.vmem %s948_s0, %s671_s27  ;;  %v321_v12 = vld [vmem:[%s951_s3] sm:$0x1]  ;;  %s842_s12 = scalar_lea.vmem %s953_s5, %s671_s27 }
   0xf   : > { %v319_v4 = vmul.f32 %v316_v2, %v316_v2  ;;  %v334_v16 = vld [vmem:[%s952_s4] sm:$0x1]  ;;  %v338_v18 = vld [vmem:[%s788_s30 + $0x8] sm:$0xff]  ;;  %v339_v19 = vld [vmem:[%s788_s30 + $0x10] sm:$0xff] }
  0x10   : > { %v337_v17 = vld [vmem:[%s788_s30] sm:$0xff]  ;;  %v340_v20 = vld [vmem:[%s788_s30 + $0x18] sm:$0xff]  ;;  %v342_v24 = vld [vmem:[%s788_s30 + $0x28] sm:$0xff] }
  0x11   : > { %v320_v5 = vsub.f32 %v318_v3, %v319_v4  ;;  %v341_v21 = vld [vmem:[%s788_s30 + $0x20] sm:$0xff]  ;;  %v343_v25 = vld [vmem:[%s788_s30 + $0x30] sm:$0xff]  ;;  %v344_v26 = vld [vmem:[%s788_s30 + $0x38] sm:$0xff] }
  0x12   : > { %v345_v27 = vld [vmem:[%s788_s30 + $0x40] sm:$0xff]  ;;  %v346_v28 = vld [vmem:[%s788_s30 + $0x48] sm:$0xff]  ;;  %v347_v29 = vld [vmem:[%s788_s30 + $0x50] sm:$0xff] }
  0x13   : > { %v322_v6 = vadd.f32 1e-05, %v320_v5  ;;  %v348_v34 = vld [vmem:[%s788_s30 + $0x58] sm:$0xff]  ;;  %v349_v35 = vld [vmem:[%s788_s30 + $0x60] sm:$0xff]  ;;  %v350_v36 = vld [vmem:[%s788_s30 + $0x68] sm:$0xff] }
  0x15   : > { %700 = vrsqrt.f32 %v322_v6  ;;  %vm329_vm0 = vweird.f32 %v322_v6 }
  0x1b   : > { %v701_v7 = vpop.eup %700 }
  0x1c   : > { %v324_v8 = vmul.f32 %v701_v7, %v322_v6  ;;  %vm330_vm1 = vweird.f32 %v701_v7 }
  0x1d   : > { %vm331_vm2 = vmor %vm329_vm0, %vm330_vm1 }
  0x1e   : > { %v325_v9 = vmul.f32 %v701_v7, %v324_v8 }
  0x20   : > { %v326_v10 = vmul.f32 0.5, %v325_v9 }
  0x22   : > { %v327_v11 = vsub.f32 1.5, %v326_v10 }
  0x24   : > { %v328_v13 = vmul.f32 %v701_v7, %v327_v11 }
  0x26   : > { %v332_v14 = vsel %vm331_vm2, %v701_v7, %v328_v13  ;;  %v351_v7 = vld [vmem:[%s788_s30 + $0x70] sm:$0xff]  ;;  %v353_v13 = vld [vmem:[%s788_s30 + $0x80] sm:$0xff] }
  0x27   : > { %v333_v15 = vmul.f32 %v332_v14, %v321_v12  ;;  %v352_v12 = vld [vmem:[%s788_s30 + $0x78] sm:$0xff] }
  0x29   : > { %v335_v22 = vmul.f32 %v333_v15, %v316_v2  ;;  %v801_v23 = vperm.slane %v333_v15, 0 }
  0x2b   : > { %v336_v30 = vsub.f32 %v334_v16, %v335_v22  ;;  %v372_v31 = vmul.f32 %v801_v23, %v337_v17  ;;  %v373_v32 = vmul.f32 %v801_v23, %v338_v18  ;;  %v374_v33 = vmul.f32 %v801_v23, %v339_v19  ;;  %v354_v18 = vld [vmem:[%s788_s30 + $0x88] sm:$0xff] }
  0x2c   : > { %v375_v37 = vmul.f32 %v801_v23, %v340_v20  ;;  %v376_v38 = vmul.f32 %v801_v23, %v341_v21  ;;  %v377_v39 = vmul.f32 %v801_v23, %v342_v24  ;;  %v378_v40 = vmul.f32 %v801_v23, %v343_v25 }
  0x2d   : > { %v819_v41 = vperm.slane %v336_v30, 0  ;;  %v379_v42 = vmul.f32 %v801_v23, %v344_v26  ;;  %v380_v43 = vmul.f32 %v801_v23, %v345_v27  ;;  %v381_v44 = vmul.f32 %v801_v23, %v346_v28  ;;  %v355_v27 = vld [vmem:[%s788_s30 + $0x90] sm:$0xff] }
  0x2e   : > { %v382_v45 = vmul.f32 %v801_v23, %v347_v29  ;;  %v383_v46 = vmul.f32 %v801_v23, %v348_v34  ;;  %v384_v47 = vmul.f32 %v801_v23, %v349_v35  ;;  %v385_v48 = vmul.f32 %v801_v23, %v350_v36 }
  0x2f   : > { %v407_v49 = vadd.f32 %v819_v41, %v372_v31  ;;  %v408_v50 = vadd.f32 %v819_v41, %v373_v32  ;;  %v409_v51 = vadd.f32 %v819_v41, %v374_v33  ;;  %v410_v52 = vadd.f32 %v819_v41, %v375_v37  ;;  %v356_v32 = vld [vmem:[%s788_s30 + $0x98] sm:$0xff]  ;;  %v357_v33 = vld [vmem:[%s788_s30 + $0xa0] sm:$0xff] }
  0x30   : > { %v411_v53 = vadd.f32 %v819_v41, %v376_v38  ;;  %v412_v54 = vadd.f32 %v819_v41, %v377_v39  ;;  %v413_v55 = vadd.f32 %v819_v41, %v378_v40  ;;  %v414_v56 = vadd.f32 %v819_v41, %v379_v42  ;;  %v358_v38 = vld [vmem:[%s788_s30 + $0xa8] sm:$0xff] }
  0x31   : > { %v439_v57 = vmul.f32 0.2, %v407_v49  ;;  %v440_v58 = vmul.f32 0.2, %v408_v50  ;;  %v441_v59 = vmul.f32 0.2, %v409_v51  ;;  %v415_v60 = vadd.f32 %v819_v41, %v380_v43 }
  0x32   : > { %v442_v61 = vmul.f32 0.2, %v410_v52  ;;  %v443_v62 = vmul.f32 0.2, %v411_v53  ;;  %v444_v63 = vmul.f32 0.2, %v412_v54  ;;  %v416_v0 = vadd.f32 %v819_v41, %v381_v44 }
  0x33   : > { %v471_v1 = vmax.f32 %v407_v49, %v439_v57  ;;  %v472_v2 = vmax.f32 %v408_v50, %v440_v58  ;;  %v473_v3 = vmax.f32 %v409_v51, %v441_v59  ;;  %v445_v4 = vmul.f32 0.2, %v413_v55  ;;  %v362_v59 = vld [vmem:[%s788_s30 + $0xc8] sm:$0xff] }
  0x34   : > { %v474_v5 = vmax.f32 %v410_v52, %v442_v61  ;;  %v446_v6 = vmul.f32 0.2, %v414_v56  ;;  %v475_v8 = vmax.f32 %v411_v53, %v443_v62  ;;  %v476_v9 = vmax.f32 %v412_v54, %v444_v63  ;;  %v360_v53 = vld [vmem:[%s788_s30 + $0xb8] sm:$0xff]  ;;  %v361_v54 = vld [vmem:[%s788_s30 + $0xc0] sm:$0xff] }
  0x35   : > { %503 = vst [vmem:[%s842_s12] sm:$0xff] %v471_v1  ;;  %v447_v10 = vmul.f32 0.2, %v415_v60  ;;  %v417_v11 = vadd.f32 %v819_v41, %v382_v45  ;;  %v448_v14 = vmul.f32 0.2, %v416_v0  ;;  %v418_v15 = vadd.f32 %v819_v41, %v383_v46 }
  0x36   : > { %504 = vst [vmem:[%s842_s12 + $0x8] sm:$0xff] %v472_v2  ;;  %v419_v16 = vadd.f32 %v819_v41, %v384_v47  ;;  %v854_v17 = vadd.f32 %v819_v41, %v385_v48  ;;  %v477_v19 = vmax.f32 %v413_v55, %v445_v4  ;;  %v386_v21 = vmul.f32 %v801_v23, %v351_v7  ;;  %v359_v48 = vld [vmem:[%s788_s30 + $0xb0] sm:$0xff] }
  0x37   : > { %505 = vst [vmem:[%s842_s12 + $0x10] sm:$0xff] %v473_v3  ;;  %v449_v20 = vmul.f32 0.2, %v417_v11  ;;  %v478_v22 = vmax.f32 %v414_v56, %v446_v6  ;;  %v450_v24 = vmul.f32 0.2, %v418_v15  ;;  %v387_v25 = vmul.f32 %v801_v23, %v352_v12  ;;  %v363_v4 = vld [vmem:[%s788_s30 + $0xd0] sm:$0xff] }
  0x38   : > { %506 = vst [vmem:[%s842_s12 + $0x18] sm:$0xff] %v474_v5  ;;  %v388_v26 = vmul.f32 %v801_v23, %v353_v13  ;;  %v479_v28 = vmax.f32 %v415_v60, %v447_v10  ;;  %v451_v29 = vmul.f32 0.2, %v419_v16  ;;  %v421_v30 = vadd.f32 %v819_v41, %v386_v21  ;;  %v365_v10 = vld [vmem:[%s788_s30 + $0xe0] sm:$0xff] }
  0x39   : > { %507 = vst [vmem:[%s842_s12 + $0x20] sm:$0xff] %v475_v8  ;;  %v389_v31 = vmul.f32 %v801_v23, %v354_v18  ;;  %v480_v34 = vmax.f32 %v416_v0, %v448_v14  ;;  %v452_v35 = vmul.f32 0.2, %v854_v17  ;;  %v422_v36 = vadd.f32 %v819_v41, %v387_v25  ;;  %v367_v25 = vld [vmem:[%s788_s30 + $0xf0] sm:$0xff] }
  0x3a   : > { %508 = vst [vmem:[%s842_s12 + $0x28] sm:$0xff] %v476_v9  ;;  %v423_v37 = vadd.f32 %v819_v41, %v388_v26  ;;  %v481_v39 = vmax.f32 %v417_v11, %v449_v20  ;;  %v453_v40 = vmul.f32 0.2, %v421_v30  ;;  %v390_v43 = vmul.f32 %v801_v23, %v355_v27  ;;  %v364_v9 = vld [vmem:[%s788_s30 + $0xd8] sm:$0xff] }
  0x3b   : > { %509 = vst [vmem:[%s842_s12 + $0x30] sm:$0xff] %v477_v19  ;;  %v424_v42 = vadd.f32 %v819_v41, %v389_v31  ;;  %v482_v44 = vmax.f32 %v418_v15, %v450_v24  ;;  %v454_v45 = vmul.f32 0.2, %v422_v36  ;;  %v391_v46 = vmul.f32 %v801_v23, %v356_v32  ;;  %v366_v15 = vld [vmem:[%s788_s30 + $0xe8] sm:$0xff] }
  0x3c   : > { %510 = vst [vmem:[%s842_s12 + $0x38] sm:$0xff] %v478_v22  ;;  %v392_v47 = vmul.f32 %v801_v23, %v357_v33  ;;  %v483_v49 = vmax.f32 %v419_v16, %v451_v29  ;;  %v455_v50 = vmul.f32 0.2, %v423_v37  ;;  %v425_v51 = vadd.f32 %v819_v41, %v390_v43 }
  0x3d   : > { %511 = vst [vmem:[%s842_s12 + $0x40] sm:$0xff] %v479_v28  ;;  %v393_v52 = vmul.f32 %v801_v23, %v358_v38  ;;  %v484_v55 = vmax.f32 %v854_v17, %v452_v35  ;;  %v456_v56 = vmul.f32 0.2, %v424_v42  ;;  %v426_v57 = vadd.f32 %v819_v41, %v391_v46 }
  0x3e   : > { %512 = vst [vmem:[%s842_s12 + $0x48] sm:$0xff] %v480_v34  ;;  %v427_v58 = vadd.f32 %v819_v41, %v392_v47  ;;  %v485_v60 = vmax.f32 %v421_v30, %v453_v40  ;;  %v457_v61 = vmul.f32 0.2, %v425_v51  ;;  %v394_v63 = vmul.f32 %v801_v23, %v359_v48  ;;  %v368_v30 = vld [vmem:[%s788_s30 + $0xf8] sm:$0xff] }
  0x3f   : > { %513 = vst [vmem:[%s842_s12 + $0x50] sm:$0xff] %v481_v39  ;;  %v428_v62 = vadd.f32 %v819_v41, %v393_v52  ;;  %v486_v0 = vmax.f32 %v422_v36, %v454_v45  ;;  %v458_v1 = vmul.f32 0.2, %v426_v57  ;;  %v395_v2 = vmul.f32 %v801_v23, %v360_v53 }
  0x40   : > { %514 = vst [vmem:[%s842_s12 + $0x58] sm:$0xff] %v482_v44  ;;  %v396_v3 = vmul.f32 %v801_v23, %v361_v54  ;;  %v487_v5 = vmax.f32 %v423_v37, %v455_v50  ;;  %v459_v6 = vmul.f32 0.2, %v427_v58  ;;  %v429_v7 = vadd.f32 %v819_v41, %v394_v63 }
  0x41   : > { %515 = vst [vmem:[%s842_s12 + $0x60] sm:$0xff] %v483_v49  ;;  %v397_v8 = vmul.f32 %v801_v23, %v362_v59  ;;  %v488_v11 = vmax.f32 %v424_v42, %v456_v56  ;;  %v460_v12 = vmul.f32 0.2, %v428_v62  ;;  %v430_v13 = vadd.f32 %v819_v41, %v395_v2 }
  0x42   : > { %516 = vst [vmem:[%s842_s12 + $0x68] sm:$0xff] %v484_v55  ;;  %v431_v14 = vadd.f32 %v819_v41, %v396_v3  ;;  %v489_v16 = vmax.f32 %v425_v51, %v457_v61  ;;  %v461_v17 = vmul.f32 0.2, %v429_v7  ;;  %v398_v19 = vmul.f32 %v801_v23, %v363_v4 }
  0x43   : > { %517 = vst [vmem:[%s842_s12 + $0x70] sm:$0xff] %v485_v60  ;;  %v432_v18 = vadd.f32 %v819_v41, %v397_v8  ;;  %v490_v20 = vmax.f32 %v426_v57, %v458_v1  ;;  %v462_v21 = vmul.f32 0.2, %v430_v13  ;;  %v399_v22 = vmul.f32 %v801_v23, %v364_v9 }
  0x44   : > { %518 = vst [vmem:[%s842_s12 + $0x78] sm:$0xff] %v486_v0  ;;  %v400_v24 = vmul.f32 %v801_v23, %v365_v10  ;;  %v491_v26 = vmax.f32 %v427_v58, %v459_v6  ;;  %v463_v27 = vmul.f32 0.2, %v431_v14  ;;  %v433_v28 = vadd.f32 %v819_v41, %v398_v19 }
  0x45   : > { %519 = vst [vmem:[%s842_s12 + $0x80] sm:$0xff] %v487_v5  ;;  %v401_v29 = vmul.f32 %v801_v23, %v366_v15  ;;  %v492_v31 = vmax.f32 %v428_v62, %v460_v12  ;;  %v464_v32 = vmul.f32 0.2, %v432_v18  ;;  %v434_v33 = vadd.f32 %v819_v41, %v399_v22 }
  0x46   : > { %520 = vst [vmem:[%s842_s12 + $0x88] sm:$0xff] %v488_v11  ;;  %v435_v34 = vadd.f32 %v819_v41, %v400_v24  ;;  %v493_v35 = vmax.f32 %v429_v7, %v461_v17  ;;  %v465_v36 = vmul.f32 0.2, %v433_v28  ;;  %v402_v38 = vmul.f32 %v801_v23, %v367_v25 }
  0x47   : > { %521 = vst [vmem:[%s842_s12 + $0x90] sm:$0xff] %v489_v16  ;;  %v436_v37 = vadd.f32 %v819_v41, %v401_v29  ;;  %v494_v39 = vmax.f32 %v430_v13, %v462_v21  ;;  %v466_v40 = vmul.f32 0.2, %v434_v33  ;;  %v403_v42 = vmul.f32 %v801_v23, %v368_v30 }
  0x48   : > { %522 = vst [vmem:[%s842_s12 + $0x98] sm:$0xff] %v490_v20  ;;  %v495_v43 = vmax.f32 %v431_v14, %v463_v27  ;;  %v467_v44 = vmul.f32 0.2, %v435_v34  ;;  %v437_v45 = vadd.f32 %v819_v41, %v402_v38  ;;  %v496_v46 = vmax.f32 %v432_v18, %v464_v32 }
  0x49   : > { %523 = vst [vmem:[%s842_s12 + $0xa0] sm:$0xff] %v491_v26  ;;  %v468_v47 = vmul.f32 0.2, %v436_v37  ;;  %v438_v48 = vadd.f32 %v819_v41, %v403_v42  ;;  %v497_v49 = vmax.f32 %v433_v28, %v465_v36  ;;  %v498_v50 = vmax.f32 %v434_v33, %v466_v40 }
  0x4a   : > { %524 = vst [vmem:[%s842_s12 + $0xa8] sm:$0xff] %v492_v31  ;;  %v469_v23 = vmul.f32 0.2, %v437_v45  ;;  %v499_v52 = vmax.f32 %v435_v34, %v467_v44 }
  0x4b   : > { %525 = vst [vmem:[%s842_s12 + $0xb0] sm:$0xff] %v493_v35  ;;  %v470_v51 = vmul.f32 0.2, %v438_v48  ;;  %v500_v53 = vmax.f32 %v436_v37, %v468_v47 }
  0x4c   : > { %526 = vst [vmem:[%s842_s12 + $0xb8] sm:$0xff] %v494_v39  ;;  %v501_v54 = vmax.f32 %v437_v45, %v469_v23 }
  0x4d   : > { %527 = vst [vmem:[%s842_s12 + $0xc0] sm:$0xff] %v495_v43  ;;  %v502_v55 = vmax.f32 %v438_v48, %v470_v51 }
  0x4e   : > { %528 = vst [vmem:[%s842_s12 + $0xc8] sm:$0xff] %v496_v46 }
  0x4f   : > { %529 = vst [vmem:[%s842_s12 + $0xd0] sm:$0xff] %v497_v49 }
  0x50   : > { %530 = vst [vmem:[%s842_s12 + $0xd8] sm:$0xff] %v498_v50 }
  0x51   : > { %531 = vst [vmem:[%s842_s12 + $0xe0] sm:$0xff] %v499_v52 }
  0x52   : > { %532 = vst [vmem:[%s842_s12 + $0xe8] sm:$0xff] %v500_v53 }
  0x53   : > { %533 = vst [vmem:[%s842_s12 + $0xf0] sm:$0xff] %v501_v54 }
  0x54   : > { %534 = vst [vmem:[%s842_s12 + $0xf8] sm:$0xff] %v502_v55 }
  0x55 PF: > { %s15_s20 = sadd.s32 1, %s724_s20   ;;  %s954_s18 = smov %s720_s19 }
  0x56   : > { %p12_p5 = scmp.ge.s32.totalorder %s15_s20, 4   ;;  %s955_s19 = smov %s957_s21 }
  0x58   :  { %14 = sbr.rel (!%p12_p5) target bundleno = 2 (0x2), region = 82 }

// kernel: discriminator_forward.16
= control target key start
LH: loop header
LB: loop body
LE: loop exit
PB: predicated region body
PF: predicated region fallthrough
CT: control target
= control target key end

     0   :  { %v14_v0 = vlaneseq  ;;  %v198_v7 = vmov 0.0   ;;  %vm98_vm1 = vcmask 1040384   ;;  %s342_s0 = inlined_call_operand.vmem [shape: f32[128,256], index: 0, kind: input, shape index: {}]   ;;  %s343_s1 = inlined_call_operand.vmem [shape: f32[1,256], index: 1, kind: output, shape index: {0}]   ;;  %s344_s2 = inlined_call_operand.vmem [shape: f32[1,256], index: 2, kind: output, shape index: {1}]  }
   0x1   :  { %v20_v1 = vld [vmem:[%s342_s0] sm:$0xff]  ;;  %v22_v2 = vld [vmem:[%s342_s0 + $0x10] sm:$0xff]  ;;  %v21_v4 = vld [vmem:[%s342_s0 + $0x8] sm:$0xff] }
   0x2   :  { %vm220_vm0 = vcmp.lt.s32.totalorder %v14_v0, 256  ;;  %v23_v5 = vld [vmem:[%s342_s0 + $0x18] sm:$0xff]  ;;  %v53_v6 = vadd.f32 %v22_v2, %v20_v1  ;;  %v24_v8 = vld [vmem:[%s342_s0 + $0x20] sm:$0xff]  ;;  %v25_v10 = vld [vmem:[%s342_s0 + $0x28] sm:$0xff]  ;;  %v108_v20 = vmul.f32 %v20_v1, %v20_v1  ;;  %v109_v23 = vmul.f32 %v21_v4, %v21_v4 }
   0x3   :  { %18 = vst.msk [vmem:[%s343_s1] sm:$0x3] %vm220_vm0, %v198_v7  ;;  %v74_v9 = vadd.f32 %v23_v5, %v21_v4  ;;  %v26_v12 = vld [vmem:[%s342_s0 + $0x30] sm:$0xff]  ;;  %v27_v14 = vld [vmem:[%s342_s0 + $0x38] sm:$0xff]  ;;  %v28_v16 = vld [vmem:[%s342_s0 + $0x40] sm:$0xff]  ;;  %v110_v24 = vmul.f32 %v22_v2, %v22_v2  ;;  %v111_v25 = vmul.f32 %v23_v5, %v23_v5  ;;  %v112_v30 = vmul.f32 %v24_v8, %v24_v8 }
   0x4   :  { %v54_v11 = vadd.f32 %v53_v6, %v24_v8  ;;  %19 = vst.msk [vmem:[%s344_s2] sm:$0x3] %vm220_vm0, %v198_v7  ;;  %v29_v18 = vld [vmem:[%s342_s0 + $0x48] sm:$0xff]  ;;  %v30_v21 = vld [vmem:[%s342_s0 + $0x50] sm:$0xff]  ;;  %v31_v26 = vld [vmem:[%s342_s0 + $0x58] sm:$0xff]  ;;  %v113_v31 = vmul.f32 %v25_v10, %v25_v10  ;;  %v114_v34 = vmul.f32 %v26_v12, %v26_v12  ;;  %v115_v37 = vmul.f32 %v27_v14, %v27_v14 }
   0x5   :  { %v75_v13 = vadd.f32 %v74_v9, %v25_v10  ;;  %v32_v28 = vld [vmem:[%s342_s0 + $0x60] sm:$0xff]  ;;  %v33_v32 = vld [vmem:[%s342_s0 + $0x68] sm:$0xff]  ;;  %v34_v35 = vld [vmem:[%s342_s0 + $0x70] sm:$0xff]  ;;  %v140_v38 = vadd.f32 %v110_v24, %v108_v20  ;;  %v161_v39 = vadd.f32 %v111_v25, %v109_v23  ;;  %v116_v42 = vmul.f32 %v28_v16, %v28_v16 }
   0x6   :  { %v55_v15 = vadd.f32 %v54_v11, %v26_v12  ;;  %v35_v40 = vld [vmem:[%s342_s0 + $0x78] sm:$0xff]  ;;  %v36_v43 = vld [vmem:[%s342_s0 + $0x80] sm:$0xff]  ;;  %v117_v45 = vmul.f32 %v29_v18, %v29_v18  ;;  %v37_v48 = vld [vmem:[%s342_s0 + $0x88] sm:$0xff]  ;;  %v118_v50 = vmul.f32 %v30_v21, %v30_v21  ;;  %v119_v53 = vmul.f32 %v31_v26, %v31_v26 }
   0x7   :  { %v76_v17 = vadd.f32 %v75_v13, %v27_v14  ;;  %v141_v46 = vadd.f32 %v140_v38, %v112_v30  ;;  %v162_v47 = vadd.f32 %v161_v39, %v113_v31  ;;  %v38_v51 = vld [vmem:[%s342_s0 + $0x90] sm:$0xff]  ;;  %v39_v56 = vld [vmem:[%s342_s0 + $0x98] sm:$0xff]  ;;  %v120_v58 = vmul.f32 %v32_v28, %v32_v28  ;;  %v40_v59 = vld [vmem:[%s342_s0 + $0xa0] sm:$0xff] }
   0x8   :  { %v56_v19 = vadd.f32 %v55_v15, %v28_v16  ;;  %v121_v61 = vmul.f32 %v33_v32, %v33_v32  ;;  %v41_v0 = vld [vmem:[%s342_s0 + $0xa8] sm:$0xff]  ;;  %v122_v2 = vmul.f32 %v34_v35, %v34_v35  ;;  %v42_v4 = vld [vmem:[%s342_s0 + $0xb0] sm:$0xff]  ;;  %v123_v6 = vmul.f32 %v35_v40, %v35_v40  ;;  %v43_v9 = vld [vmem:[%s342_s0 + $0xb8] sm:$0xff] }
   0x9   :  { %v77_v22 = vadd.f32 %v76_v17, %v29_v18  ;;  %v142_v54 = vadd.f32 %v141_v46, %v114_v34  ;;  %v163_v55 = vadd.f32 %v162_v47, %v115_v37  ;;  %v124_v11 = vmul.f32 %v36_v43, %v36_v43  ;;  %v44_v12 = vld [vmem:[%s342_s0 + $0xc0] sm:$0xff]  ;;  %v45_v17 = vld [vmem:[%s342_s0 + $0xc8] sm:$0xff]  ;;  %v46_v20 = vld [vmem:[%s342_s0 + $0xd0] sm:$0xff] }
   0xa   :  { %v57_v27 = vadd.f32 %v56_v19, %v30_v21  ;;  %v125_v14 = vmul.f32 %v37_v48, %v37_v48  ;;  %v126_v19 = vmul.f32 %v38_v51, %v38_v51  ;;  %v47_v25 = vld [vmem:[%s342_s0 + $0xd8] sm:$0xff]  ;;  %v129_v30 = vmul.f32 %v41_v0, %v41_v0 }
   0xb   :  { %v78_v29 = vadd.f32 %v77_v22, %v31_v26  ;;  %v143_v62 = vadd.f32 %v142_v54, %v116_v42  ;;  %v164_v63 = vadd.f32 %v163_v55, %v117_v45  ;;  %v127_v22 = vmul.f32 %v39_v56, %v39_v56 }
   0xc   :  { %v58_v33 = vadd.f32 %v57_v27, %v32_v28  ;;  %v128_v27 = vmul.f32 %v40_v59, %v40_v59  ;;  %v48_v28 = vld [vmem:[%s342_s0 + $0xe0] sm:$0xff]  ;;  %v131_v38 = vmul.f32 %v43_v9, %v43_v9  ;;  %v133_v45 = vmul.f32 %v45_v17, %v45_v17 }
   0xd   :  { %v79_v36 = vadd.f32 %v78_v29, %v33_v32  ;;  %v144_v7 = vadd.f32 %v143_v62, %v118_v50  ;;  %v165_v8 = vadd.f32 %v164_v63, %v119_v53  ;;  %v136_v55 = vmul.f32 %v48_v28, %v48_v28 }
   0xe   :  { %v59_v41 = vadd.f32 %v58_v33, %v34_v35  ;;  %v49_v33 = vld [vmem:[%s342_s0 + $0xe8] sm:$0xff]  ;;  %v130_v35 = vmul.f32 %v42_v4, %v42_v4 }
   0xf   :  { %v80_v44 = vadd.f32 %v79_v36, %v35_v40  ;;  %v145_v15 = vadd.f32 %v144_v7, %v120_v58  ;;  %v166_v16 = vadd.f32 %v165_v8, %v121_v61  ;;  %v50_v36 = vld [vmem:[%s342_s0 + $0xf0] sm:$0xff] }
  0x10   :  { %v60_v49 = vadd.f32 %v59_v41, %v36_v43  ;;  %v51_v41 = vld [vmem:[%s342_s0 + $0xf8] sm:$0xff]  ;;  %v132_v43 = vmul.f32 %v44_v12, %v44_v12  ;;  %v138_v61 = vmul.f32 %v50_v36, %v50_v36 }
  0x11   :  { %v81_v52 = vadd.f32 %v80_v44, %v37_v48  ;;  %v146_v23 = vadd.f32 %v145_v15, %v122_v2  ;;  %v167_v24 = vadd.f32 %v166_v16, %v123_v6  ;;  %v139_v63 = vmul.f32 %v51_v41, %v51_v41  ;;  %v52_v15 = vld [vmem:[%s343_s1] sm:$0x3] }
  0x12   :  { %v61_v57 = vadd.f32 %v60_v49, %v38_v51  ;;  %v134_v49 = vmul.f32 %v46_v20, %v46_v20  ;;  %v135_v51 = vmul.f32 %v47_v25, %v47_v25 }
  0x13   :  { %v82_v60 = vadd.f32 %v81_v52, %v39_v56  ;;  %v147_v31 = vadd.f32 %v146_v23, %v124_v11  ;;  %v168_v32 = vadd.f32 %v167_v24, %v125_v14 }
  0x14   :  { %v62_v1 = vadd.f32 %v61_v57, %v40_v59  ;;  %v137_v57 = vmul.f32 %v49_v33, %v49_v33 }
  0x15   :  { %v83_v5 = vadd.f32 %v82_v60, %v41_v0  ;;  %v148_v39 = vadd.f32 %v147_v31, %v126_v19  ;;  %v169_v40 = vadd.f32 %v168_v32, %v127_v22 }
  0x16   :  { %v63_v10 = vadd.f32 %v62_v1, %v42_v4 }
  0x17   :  { %v84_v13 = vadd.f32 %v83_v5, %v43_v9  ;;  %v149_v46 = vadd.f32 %v148_v39, %v128_v27  ;;  %v170_v47 = vadd.f32 %v169_v40, %v129_v30 }
  0x18   :  { %v64_v18 = vadd.f32 %v63_v10, %v44_v12 }
  0x19   :  { %v85_v21 = vadd.f32 %v84_v13, %v45_v17  ;;  %v150_v52 = vadd.f32 %v149_v46, %v130_v35  ;;  %v171_v53 = vadd.f32 %v170_v47, %v131_v38 }
  0x1a   :  { %v65_v26 = vadd.f32 %v64_v18, %v46_v20 }
  0x1b   :  { %v86_v29 = vadd.f32 %v85_v21, %v47_v25  ;;  %v151_v58 = vadd.f32 %v150_v52, %v132_v43  ;;  %v172_v59 = vadd.f32 %v171_v53, %v133_v45 }
  0x1c   :  { %v66_v34 = vadd.f32 %v65_v26, %v48_v28 }
  0x1d   :  { %v87_v37 = vadd.f32 %v86_v29, %v49_v33  ;;  %v152_v0 = vadd.f32 %v151_v58, %v134_v49  ;;  %v173_v1 = vadd.f32 %v172_v59, %v135_v51  ;;  %v107_v29 = vld [vmem:[%s344_s2] sm:$0x3] }
  0x1e   :  { %v67_v42 = vadd.f32 %v66_v34, %v50_v36 }
  0x1f   :  { %v88_v44 = vadd.f32 %v87_v37, %v51_v41  ;;  %v153_v5 = vadd.f32 %v152_v0, %v136_v55  ;;  %v174_v6 = vadd.f32 %v173_v1, %v137_v57 }
  0x20   :  { %v68_v48 = vrot.slane %v67_v42, 4 }
  0x21   :  { %v89_v50 = vrot.slane %v88_v44, 4  ;;  %v154_v9 = vadd.f32 %v153_v5, %v138_v61  ;;  %v175_v10 = vadd.f32 %v174_v6, %v139_v63 }
  0x22   :  { %v69_v54 = vadd.f32 %v68_v48, %v67_v42 }
  0x23   :  { %v90_v56 = vadd.f32 %v89_v50, %v88_v44  ;;  %v155_v13 = vrot.slane %v154_v9, 4  ;;  %v176_v14 = vrot.slane %v175_v10, 4 }
  0x24   :  { %v70_v60 = vrot.slane %v69_v54, 2 }
  0x25   :  { %v91_v62 = vrot.slane %v90_v56, 2  ;;  %v156_v17 = vadd.f32 %v155_v13, %v154_v9  ;;  %v177_v18 = vadd.f32 %v176_v14, %v175_v10 }
  0x26   :  { %v71_v2 = vadd.f32 %v70_v60, %v69_v54 }
  0x27   :  { %v92_v4 = vadd.f32 %v91_v62, %v90_v56  ;;  %v157_v20 = vrot.slane %v156_v17, 2  ;;  %v178_v21 = vrot.slane %v177_v18, 2 }
  0x28   :  { %v72_v7 = vrot.slane %v71_v2, 1 }
  0x29   :  { %v93_v8 = vrot.slane %v92_v4, 1  ;;  %v158_v23 = vadd.f32 %v157_v20, %v156_v17  ;;  %v179_v24 = vadd.f32 %v178_v21, %v177_v18 }
  0x2a   :  { %v73_v11 = vadd.f32 %v72_v7, %v71_v2 }
  0x2b   :  { %v94_v12 = vadd.f32 %v93_v8, %v92_v4  ;;  %v159_v25 = vrot.slane %v158_v23, 1  ;;  %v180_v26 = vrot.slane %v179_v24, 1 }
  0x2d   :  { %v97_v16 = vrot.slane %v94_v12, 7  ;;  %v160_v27 = vadd.f32 %v159_v25, %v158_v23  ;;  %v181_v28 = vadd.f32 %v180_v26, %v179_v24 }
  0x2f   :  { %v99_v19 = vsel %vm98_vm1, %v73_v11, %v97_v16  ;;  %v184_v30 = vrot.slane %v181_v28, 7 }
  0x30   :  { %v101_v22 = vadd.f32 %v99_v19, %v52_v15 }
  0x31   :  { %v185_v31 = vsel %vm98_vm1, %v160_v27, %v184_v30 }
  0x32   :  { %106 = vst.msk [vmem:[%s343_s1] sm:$0x3] %vm220_vm0, %v101_v22  ;;  %v187_v32 = vadd.f32 %v185_v31, %v107_v29 }
  0x34   :  { %188 = vst.msk [vmem:[%s344_s2] sm:$0x3] %vm220_vm0, %v187_v32 }

// kernel: discriminator_forward.17
= control target key start
LH: loop header
LB: loop body
LE: loop exit
PB: predicated region body
PF: predicated region fallthrough
CT: control target
= control target key end

     0   :  { %s568_s1 = inlined_call_operand.vmem [shape: f32[1,256], index: 1, kind: input, shape index: {}]   ;;  %s569_s2 = inlined_call_operand.vmem [shape: f32[1,256], index: 2, kind: input, shape index: {}]   ;;  %s570_s3 = inlined_call_operand.vmem [shape: f32[1,256], index: 3, kind: input, shape index: {}]   ;;  %s571_s0 = inlined_call_operand.vmem [shape: f32[128,256], index: 0, kind: input, shape index: {}]   ;;  %s572_s4 = inlined_call_operand.vmem [shape: f32[1,256], index: 4, kind: input, shape index: {}]   ;;  %s573_s5 = inlined_call_operand.vmem [shape: f32[128,256], index: 5, kind: output, shape index: {}]  }
   0x1   :  { %v20_v0 = vld [vmem:[%s568_s1] sm:$0x3]  ;;  %v43_v18 = vld [vmem:[%s571_s0 + $0x8] sm:$0xff]  ;;  %v44_v19 = vld [vmem:[%s571_s0 + $0x10] sm:$0xff] }
   0x2   :  { %v22_v1 = vld [vmem:[%s569_s2] sm:$0x3]  ;;  %v21_v2 = vmul.f32 0.0078125, %v20_v0  ;;  %v45_v20 = vld [vmem:[%s571_s0 + $0x18] sm:$0xff]  ;;  %v47_v25 = vld [vmem:[%s571_s0 + $0x28] sm:$0xff] }
   0x3   :  { %v23_v3 = vmul.f32 0.0078125, %v22_v1  ;;  %v26_v12 = vld [vmem:[%s570_s3] sm:$0x3]  ;;  %v48_v26 = vld [vmem:[%s571_s0 + $0x30] sm:$0xff]  ;;  %v49_v27 = vld [vmem:[%s571_s0 + $0x38] sm:$0xff] }
   0x4   :  { %v24_v4 = vmul.f32 %v21_v2, %v21_v2  ;;  %v39_v16 = vld [vmem:[%s572_s4] sm:$0x3]  ;;  %v51_v29 = vld [vmem:[%s571_s0 + $0x48] sm:$0xff]  ;;  %v52_v34 = vld [vmem:[%s571_s0 + $0x50] sm:$0xff] }
   0x5   :  { %v42_v17 = vld [vmem:[%s571_s0] sm:$0xff]  ;;  %v53_v35 = vld [vmem:[%s571_s0 + $0x58] sm:$0xff] }
   0x6   :  { %v25_v5 = vsub.f32 %v23_v3, %v24_v4  ;;  %v46_v24 = vld [vmem:[%s571_s0 + $0x20] sm:$0xff] }
   0x7   :  { %v50_v28 = vld [vmem:[%s571_s0 + $0x40] sm:$0xff] }
   0x8   :  { %v27_v6 = vadd.f32 1e-05, %v25_v5  ;;  %v54_v36 = vld [vmem:[%s571_s0 + $0x60] sm:$0xff]  ;;  %v55_v5 = vld [vmem:[%s571_s0 + $0x68] sm:$0xff] }
   0xa   :  { %248 = vrsqrt.f32 %v27_v6  ;;  %vm34_vm0 = vweird.f32 %v27_v6 }
  0x10   :  { %v249_v7 = vpop.eup %248 }
  0x11   :  { %v29_v8 = vmul.f32 %v249_v7, %v27_v6  ;;  %vm35_vm1 = vweird.f32 %v249_v7 }
  0x12   :  { %vm36_vm2 = vmor %vm34_vm0, %vm35_vm1 }
  0x13   :  { %v30_v9 = vmul.f32 %v249_v7, %v29_v8  ;;  %v56_v8 = vld [vmem:[%s571_s0 + $0x70] sm:$0xff] }
  0x15   :  { %v31_v10 = vmul.f32 0.5, %v30_v9 }
  0x17   :  { %v32_v11 = vsub.f32 1.5, %v31_v10 }
  0x19   :  { %v33_v13 = vmul.f32 %v249_v7, %v32_v11 }
  0x1b   :  { %v37_v14 = vsel %vm36_vm2, %v249_v7, %v33_v13  ;;  %v57_v13 = vld [vmem:[%s571_s0 + $0x78] sm:$0xff] }
  0x1c   :  { %v38_v15 = vmul.f32 %v37_v14, %v26_v12 }
  0x1e   :  { %v40_v21 = vmul.f32 %v38_v15, %v21_v2  ;;  %v304_v22 = vperm.slane %v38_v15, 0  ;;  %v306_v23 = vperm.slane %v38_v15, 1 }
  0x20   :  { %v41_v30 = vsub.f32 %v39_v16, %v40_v21  ;;  %v79_v31 = vmul.f32 %v304_v22, %v42_v17  ;;  %v80_v32 = vmul.f32 %v306_v23, %v43_v18  ;;  %v81_v33 = vmul.f32 %v304_v22, %v44_v19  ;;  %v58_v18 = vld [vmem:[%s571_s0 + $0x80] sm:$0xff]  ;;  %v59_v19 = vld [vmem:[%s571_s0 + $0x88] sm:$0xff] }
  0x21   :  { %v82_v37 = vmul.f32 %v306_v23, %v45_v20  ;;  %v83_v38 = vmul.f32 %v304_v22, %v46_v24  ;;  %v84_v39 = vmul.f32 %v306_v23, %v47_v25  ;;  %v85_v40 = vmul.f32 %v304_v22, %v48_v26 }
  0x22   :  { %v342_v41 = vperm.slane %v41_v30, 0  ;;  %v344_v42 = vperm.slane %v41_v30, 1  ;;  %v86_v43 = vmul.f32 %v306_v23, %v49_v27  ;;  %v87_v44 = vmul.f32 %v304_v22, %v50_v28  ;;  %v60_v30 = vld [vmem:[%s571_s0 + $0x90] sm:$0xff] }
  0x23   :  { %v88_v45 = vmul.f32 %v306_v23, %v51_v29  ;;  %v89_v46 = vmul.f32 %v304_v22, %v52_v34  ;;  %v90_v47 = vmul.f32 %v306_v23, %v53_v35  ;;  %v91_v48 = vmul.f32 %v304_v22, %v54_v36  ;;  %v61_v35 = vld [vmem:[%s571_s0 + $0x98] sm:$0xff]  ;;  %v62_v36 = vld [vmem:[%s571_s0 + $0xa0] sm:$0xff] }
  0x24   :  { %v116_v49 = vadd.f32 %v342_v41, %v79_v31  ;;  %v117_v50 = vadd.f32 %v344_v42, %v80_v32  ;;  %v118_v51 = vadd.f32 %v342_v41, %v81_v33  ;;  %v119_v52 = vadd.f32 %v344_v42, %v82_v37 }
  0x25   :  { %v120_v53 = vadd.f32 %v342_v41, %v83_v38  ;;  %v121_v54 = vadd.f32 %v344_v42, %v84_v39  ;;  %v122_v55 = vadd.f32 %v342_v41, %v85_v40  ;;  %v123_v56 = vadd.f32 %v344_v42, %v86_v43 }
  0x26   :  { %v148_v57 = vmul.f32 0.2, %v116_v49  ;;  %v149_v58 = vmul.f32 0.2, %v117_v50  ;;  %v150_v59 = vmul.f32 0.2, %v118_v51  ;;  %v124_v60 = vadd.f32 %v342_v41, %v87_v44 }
  0x27   :  { %v151_v61 = vmul.f32 0.2, %v119_v52  ;;  %v152_v62 = vmul.f32 0.2, %v120_v53  ;;  %v153_v63 = vmul.f32 0.2, %v121_v54  ;;  %v362_v0 = vadd.f32 %v344_v42, %v88_v45 }
  0x28   :  { %v180_v1 = vmax.f32 %v116_v49, %v148_v57  ;;  %v181_v2 = vmax.f32 %v117_v50, %v149_v58  ;;  %v182_v3 = vmax.f32 %v118_v51, %v150_v59  ;;  %v154_v4 = vmul.f32 0.2, %v122_v55  ;;  %v65_v57 = vld [vmem:[%s571_s0 + $0xb8] sm:$0xff] }
  0x29   :  { %v183_v6 = vmax.f32 %v119_v52, %v151_v61  ;;  %v155_v7 = vmul.f32 0.2, %v123_v56  ;;  %v184_v9 = vmax.f32 %v120_v53, %v152_v62  ;;  %v185_v10 = vmax.f32 %v121_v54, %v153_v63  ;;  %v64_v52 = vld [vmem:[%s571_s0 + $0xb0] sm:$0xff]  ;;  %v66_v62 = vld [vmem:[%s571_s0 + $0xc0] sm:$0xff]  ;;  %v67_v63 = vld [vmem:[%s571_s0 + $0xc8] sm:$0xff] }
  0x2a   :  { %212 = vst [vmem:[%s573_s5] sm:$0xff] %v180_v1  ;;  %v156_v11 = vmul.f32 0.2, %v124_v60  ;;  %v126_v12 = vadd.f32 %v342_v41, %v89_v46  ;;  %v157_v14 = vmul.f32 0.2, %v362_v0  ;;  %v127_v15 = vadd.f32 %v344_v42, %v90_v47  ;;  %v63_v47 = vld [vmem:[%s571_s0 + $0xa8] sm:$0xff] }
  0x2b   :  { %213 = vst [vmem:[%s573_s5 + $0x8] sm:$0xff] %v181_v2  ;;  %v383_v16 = vadd.f32 %v342_v41, %v91_v48  ;;  %v92_v17 = vmul.f32 %v306_v23, %v55_v5  ;;  %v186_v20 = vmax.f32 %v122_v55, %v154_v4  ;;  %v187_v21 = vmax.f32 %v123_v56, %v155_v7 }
  0x2c   :  { %214 = vst [vmem:[%s573_s5 + $0x10] sm:$0xff] %v182_v3  ;;  %v158_v24 = vmul.f32 0.2, %v126_v12  ;;  %v93_v25 = vmul.f32 %v304_v22, %v56_v8  ;;  %v188_v26 = vmax.f32 %v124_v60, %v156_v11  ;;  %v159_v27 = vmul.f32 0.2, %v127_v15  ;;  %v68_v8 = vld [vmem:[%s571_s0 + $0xd0] sm:$0xff] }
  0x2d   :  { %215 = vst [vmem:[%s573_s5 + $0x18] sm:$0xff] %v183_v6  ;;  %v129_v28 = vadd.f32 %v344_v42, %v92_v17  ;;  %v94_v29 = vmul.f32 %v306_v23, %v57_v13  ;;  %v160_v31 = vmul.f32 0.2, %v383_v16  ;;  %v95_v33 = vmul.f32 %v304_v22, %v58_v18  ;;  %v69_v13 = vld [vmem:[%s571_s0 + $0xd8] sm:$0xff] }
  0x2e   :  { %216 = vst [vmem:[%s573_s5 + $0x20] sm:$0xff] %v184_v9  ;;  %v130_v32 = vadd.f32 %v342_v41, %v93_v25  ;;  %v96_v34 = vmul.f32 %v306_v23, %v59_v19  ;;  %v189_v37 = vmax.f32 %v362_v0, %v157_v14  ;;  %v190_v38 = vmax.f32 %v126_v12, %v158_v24  ;;  %v70_v14 = vld [vmem:[%s571_s0 + $0xe0] sm:$0xff]  ;;  %v71_v25 = vld [vmem:[%s571_s0 + $0xe8] sm:$0xff] }
  0x2f   :  { %217 = vst [vmem:[%s573_s5 + $0x28] sm:$0xff] %v185_v10  ;;  %v161_v39 = vmul.f32 0.2, %v129_v28  ;;  %v131_v40 = vadd.f32 %v344_v42, %v94_v29  ;;  %v132_v44 = vadd.f32 %v342_v41, %v95_v33  ;;  %v97_v46 = vmul.f32 %v304_v22, %v60_v30  ;;  %v72_v30 = vld [vmem:[%s571_s0 + $0xf0] sm:$0xff] }
  0x30   :  { %218 = vst [vmem:[%s573_s5 + $0x30] sm:$0xff] %v186_v20  ;;  %v162_v43 = vmul.f32 0.2, %v130_v32  ;;  %v427_v45 = vadd.f32 %v344_v42, %v96_v34  ;;  %v191_v48 = vmax.f32 %v127_v15, %v159_v27  ;;  %v98_v50 = vmul.f32 %v306_v23, %v61_v35  ;;  %v73_v35 = vld [vmem:[%s571_s0 + $0xf8] sm:$0xff] }
  0x31   :  { %219 = vst [vmem:[%s573_s5 + $0x38] sm:$0xff] %v187_v21  ;;  %v163_v49 = vmul.f32 0.2, %v131_v40  ;;  %v99_v51 = vmul.f32 %v304_v22, %v62_v36  ;;  %v192_v53 = vmax.f32 %v383_v16, %v160_v31  ;;  %v193_v54 = vmax.f32 %v129_v28, %v161_v39 }
  0x32   :  { %220 = vst [vmem:[%s573_s5 + $0x40] sm:$0xff] %v188_v26  ;;  %v164_v55 = vmul.f32 0.2, %v132_v44  ;;  %v134_v56 = vadd.f32 %v342_v41, %v97_v46  ;;  %v165_v58 = vmul.f32 0.2, %v427_v45  ;;  %v135_v59 = vadd.f32 %v344_v42, %v98_v50 }
  0x33   :  { %221 = vst [vmem:[%s573_s5 + $0x48] sm:$0xff] %v189_v37  ;;  %v136_v60 = vadd.f32 %v342_v41, %v99_v51  ;;  %v100_v61 = vmul.f32 %v306_v23, %v63_v47  ;;  %v194_v0 = vmax.f32 %v130_v32, %v162_v43  ;;  %v195_v1 = vmax.f32 %v131_v40, %v163_v49 }
  0x34   :  { %222 = vst [vmem:[%s573_s5 + $0x50] sm:$0xff] %v190_v38  ;;  %v166_v2 = vmul.f32 0.2, %v134_v56  ;;  %v101_v3 = vmul.f32 %v304_v22, %v64_v52  ;;  %v196_v4 = vmax.f32 %v132_v44, %v164_v55  ;;  %v167_v5 = vmul.f32 0.2, %v135_v59 }
  0x35   :  { %223 = vst [vmem:[%s573_s5 + $0x58] sm:$0xff] %v191_v48  ;;  %v137_v6 = vadd.f32 %v344_v42, %v100_v61  ;;  %v102_v7 = vmul.f32 %v306_v23, %v65_v57  ;;  %v168_v9 = vmul.f32 0.2, %v136_v60  ;;  %v103_v11 = vmul.f32 %v304_v22, %v66_v62 }
  0x36   :  { %224 = vst [vmem:[%s573_s5 + $0x60] sm:$0xff] %v192_v53  ;;  %v138_v10 = vadd.f32 %v342_v41, %v101_v3  ;;  %v104_v12 = vmul.f32 %v306_v23, %v67_v63  ;;  %v197_v15 = vmax.f32 %v427_v45, %v165_v58  ;;  %v198_v16 = vmax.f32 %v134_v56, %v166_v2 }
  0x37   :  { %225 = vst [vmem:[%s573_s5 + $0x68] sm:$0xff] %v193_v54  ;;  %v169_v17 = vmul.f32 0.2, %v137_v6  ;;  %v139_v18 = vadd.f32 %v344_v42, %v102_v7  ;;  %v140_v20 = vadd.f32 %v342_v41, %v103_v11  ;;  %v105_v24 = vmul.f32 %v304_v22, %v68_v8 }
  0x38   :  { %226 = vst [vmem:[%s573_s5 + $0x70] sm:$0xff] %v194_v0  ;;  %v170_v19 = vmul.f32 0.2, %v138_v10  ;;  %v141_v21 = vadd.f32 %v344_v42, %v104_v12  ;;  %v199_v26 = vmax.f32 %v135_v59, %v167_v5  ;;  %v106_v28 = vmul.f32 %v306_v23, %v69_v13 }
  0x39   :  { %227 = vst [vmem:[%s573_s5 + $0x78] sm:$0xff] %v195_v1  ;;  %v171_v27 = vmul.f32 0.2, %v139_v18  ;;  %v107_v29 = vmul.f32 %v304_v22, %v70_v14  ;;  %v200_v31 = vmax.f32 %v136_v60, %v168_v9  ;;  %v201_v32 = vmax.f32 %v137_v6, %v169_v17 }
  0x3a   :  { %228 = vst [vmem:[%s573_s5 + $0x80] sm:$0xff] %v196_v4  ;;  %v172_v33 = vmul.f32 0.2, %v140_v20  ;;  %v142_v34 = vadd.f32 %v342_v41, %v105_v24  ;;  %v173_v36 = vmul.f32 0.2, %v141_v21  ;;  %v143_v37 = vadd.f32 %v344_v42, %v106_v28 }
  0x3b   :  { %229 = vst [vmem:[%s573_s5 + $0x88] sm:$0xff] %v197_v15  ;;  %v144_v38 = vadd.f32 %v342_v41, %v107_v29  ;;  %v108_v39 = vmul.f32 %v306_v23, %v71_v25  ;;  %v202_v40 = vmax.f32 %v138_v10, %v170_v19  ;;  %v109_v44 = vmul.f32 %v304_v22, %v72_v30 }
  0x3c   :  { %230 = vst [vmem:[%s573_s5 + $0x90] sm:$0xff] %v198_v16  ;;  %v174_v43 = vmul.f32 0.2, %v142_v34  ;;  %v203_v45 = vmax.f32 %v139_v18, %v171_v27  ;;  %v175_v46 = vmul.f32 0.2, %v143_v37  ;;  %v110_v48 = vmul.f32 %v306_v23, %v73_v35 }
  0x3d   :  { %231 = vst [vmem:[%s573_s5 + $0x98] sm:$0xff] %v199_v26  ;;  %v145_v47 = vadd.f32 %v344_v42, %v108_v39  ;;  %v204_v49 = vmax.f32 %v140_v20, %v172_v33  ;;  %v176_v50 = vmul.f32 0.2, %v144_v38  ;;  %v146_v51 = vadd.f32 %v342_v41, %v109_v44 }
  0x3e   :  { %232 = vst [vmem:[%s573_s5 + $0xa0] sm:$0xff] %v200_v31  ;;  %v205_v22 = vmax.f32 %v141_v21, %v173_v36  ;;  %v147_v53 = vadd.f32 %v344_v42, %v110_v48  ;;  %v206_v23 = vmax.f32 %v142_v34, %v174_v43  ;;  %v207_v55 = vmax.f32 %v143_v37, %v175_v46 }
  0x3f   :  { %233 = vst [vmem:[%s573_s5 + $0xa8] sm:$0xff] %v201_v32  ;;  %v177_v52 = vmul.f32 0.2, %v145_v47  ;;  %v178_v54 = vmul.f32 0.2, %v146_v51  ;;  %v208_v56 = vmax.f32 %v144_v38, %v176_v50 }
  0x40   :  { %234 = vst [vmem:[%s573_s5 + $0xb0] sm:$0xff] %v202_v40  ;;  %v179_v41 = vmul.f32 0.2, %v147_v53 }
  0x41   :  { %235 = vst [vmem:[%s573_s5 + $0xb8] sm:$0xff] %v203_v45  ;;  %v209_v42 = vmax.f32 %v145_v47, %v177_v52  ;;  %v210_v57 = vmax.f32 %v146_v51, %v178_v54 }
  0x42   :  { %236 = vst [vmem:[%s573_s5 + $0xc0] sm:$0xff] %v204_v49  ;;  %v211_v58 = vmax.f32 %v147_v53, %v179_v41 }
  0x43   :  { %237 = vst [vmem:[%s573_s5 + $0xc8] sm:$0xff] %v205_v22 }
  0x44   :  { %238 = vst [vmem:[%s573_s5 + $0xd0] sm:$0xff] %v206_v23 }
  0x45   :  { %239 = vst [vmem:[%s573_s5 + $0xd8] sm:$0xff] %v207_v55 }
  0x46   :  { %240 = vst [vmem:[%s573_s5 + $0xe0] sm:$0xff] %v208_v56 }
  0x47   :  { %241 = vst [vmem:[%s573_s5 + $0xe8] sm:$0xff] %v209_v42 }
  0x48   :  { %242 = vst [vmem:[%s573_s5 + $0xf0] sm:$0xff] %v210_v57 }
  0x49   :  { %243 = vst [vmem:[%s573_s5 + $0xf8] sm:$0xff] %v211_v58 }

// kernel: discriminator_forward.15
= control target key start
LH: loop header
LB: loop body
LE: loop exit
PB: predicated region body
PF: predicated region fallthrough
CT: control target
= control target key end

     0   :  { %s2542_s12 = smov 0   ;;  %s2544_s13 = smov 0   ;;  %s3577_s0 = inlined_call_operand.vmem [shape: f32[128,2048], index: 0, kind: input, shape index: {}]   ;;  %s3578_s1 = inlined_call_operand.vmem [shape: f32[2048,256], index: 1, kind: input, shape index: {}]   ;;  %s3579_s2 = inlined_call_operand.vmem [shape: f32[1,256], index: 2, kind: input, shape index: {}]   ;;  %s3580_s3 = inlined_call_operand.vmem [shape: f32[128,256], index: 3, kind: output, shape index: {}]  }
   0x1   :  { %s2546_s14 = smov 0   ;;  %s2548_s15 = smov 0  }
   0x2   :  { %s2550_s16 = smov 0  }
   0x3 LB: > { %s25_s2 = sadd.s32 1, %s2515_s15  ;;  %p48_p1 = scmp.ne.s32.totalorder %s2507_s13, %s2503_s12  ;;  %s2519_s16 = sphi %s2550_s16, %s13_s16   ;;  %s2515_s15 = sphi %s2548_s15, %s3584_s15   ;;  %s2511_s14 = sphi %s2546_s14, %s3583_s14   ;;  %s2507_s13 = sphi %s2544_s13, %s3582_s13   ;;  %s2503_s12 = sphi %s2542_s12, %s3581_s12  }
   0x4   : > { %p26_p0 = scmp.ge.s32.totalorder %s25_s2, 2  ;;  %p49_p2 = scmp.eq.s32.totalorder %s2519_s16, 0 }
   0x5   : > { %s41_s18 = sadd.s32 1, %s2507_s13  ;;  %p2295_p5 = scmp.ge.s32.totalorder %s2519_s16, 2 }
   0x6   : > { %s3586_s2 = smov (%p26_p0, %s25_s2), 0  ;;  %p50_p3 = por %p49_p2, %p48_p1 }
   0x7   : > { %s37_s17 = ssub.s32 %s2515_s15, %s3586_s2  ;;  %164 = sbr.rel (%p2295_p5) target bundleno = 144 (0x90), region = 20 }
   0x8   : > { %p39_p4 = scmp.eq.s32.totalorder %s37_s17, 0 }
   0xa   : > { %s2577_s19 = scalar_select %p39_p4, %s2507_s13, %s41_s18  }
   0xc   : > { %167 = sbr.rel (!%p50_p3) target bundleno = 144 (0x90), region = 24  ;;  %s169_s20 = sand.u32 (%p50_p3), 1, %s2507_s13  }
   0xd   : > { %s2310_s21 = sshll.u32 (%p50_p3), %s2515_s15, 6  ;;  %s2296_s22 = sshll.u32 (%p50_p3), %s169_s20, 10 }
   0xe   : > { %s2585_s25 = scalar_lea.vmem (%p50_p3), %s3577_s0, %s2310_s21  ;;  %s2590_s26 = scalar_lea.vmem (%p50_p3), [#allocation3], %s2296_s22 }
   0xf   : > { %v190_v0 = vld [vmem:[%s2585_s25] sm:$0xff] (%p50_p3)  ;;  %v192_v1 = vld [vmem:[%s2585_s25 + $0x8] sm:$0xff] (%p50_p3)  ;;  %v194_v2 = vld [vmem:[%s2585_s25 + $0x10] sm:$0xff] (%p50_p3) }
  0x10   : > { %191 = vst [vmem:[%s2590_s26] sm:$0xff] (%p50_p3), %v190_v0  ;;  %v196_v3 = vld [vmem:[%s2585_s25 + $0x18] sm:$0xff] (%p50_p3)  ;;  %v198_v4 = vld [vmem:[%s2585_s25 + $0x20] sm:$0xff] (%p50_p3)  ;;  %v200_v5 = vld [vmem:[%s2585_s25 + $0x28] sm:$0xff] (%p50_p3) }
  0x11   : > { %193 = vst [vmem:[%s2590_s26 + $0x8] sm:$0xff] %v192_v1  ;;  %v202_v6 = vld [vmem:[%s2585_s25 + $0x30] sm:$0xff]  ;;  %v204_v7 = vld [vmem:[%s2585_s25 + $0x38] sm:$0xff]  ;;  %v206_v8 = vld [vmem:[%s2585_s25 + $0x80] sm:$0xff] }
  0x12   : > { %195 = vst [vmem:[%s2590_s26 + $0x10] sm:$0xff] %v194_v2  ;;  %v208_v9 = vld [vmem:[%s2585_s25 + $0x88] sm:$0xff]  ;;  %v210_v10 = vld [vmem:[%s2585_s25 + $0x90] sm:$0xff]  ;;  %v212_v11 = vld [vmem:[%s2585_s25 + $0x98] sm:$0xff] }
  0x13   : > { %197 = vst [vmem:[%s2590_s26 + $0x18] sm:$0xff] %v196_v3  ;;  %v214_v12 = vld [vmem:[%s2585_s25 + $0xa0] sm:$0xff]  ;;  %v216_v13 = vld [vmem:[%s2585_s25 + $0xa8] sm:$0xff]  ;;  %v218_v14 = vld [vmem:[%s2585_s25 + $0xb0] sm:$0xff] }
  0x14   : > { %199 = vst [vmem:[%s2590_s26 + $0x20] sm:$0xff] %v198_v4  ;;  %v220_v15 = vld [vmem:[%s2585_s25 + $0xb8] sm:$0xff]  ;;  %v222_v16 = vld [vmem:[%s2585_s25 + $0x100] sm:$0xff]  ;;  %v224_v17 = vld [vmem:[%s2585_s25 + $0x108] sm:$0xff] }
  0x15   : > { %201 = vst [vmem:[%s2590_s26 + $0x28] sm:$0xff] %v200_v5  ;;  %v226_v18 = vld [vmem:[%s2585_s25 + $0x110] sm:$0xff]  ;;  %v228_v19 = vld [vmem:[%s2585_s25 + $0x118] sm:$0xff]  ;;  %v230_v20 = vld [vmem:[%s2585_s25 + $0x120] sm:$0xff] }
  0x16   : > { %203 = vst [vmem:[%s2590_s26 + $0x30] sm:$0xff] %v202_v6  ;;  %v232_v21 = vld [vmem:[%s2585_s25 + $0x128] sm:$0xff]  ;;  %v234_v22 = vld [vmem:[%s2585_s25 + $0x130] sm:$0xff]  ;;  %v236_v23 = vld [vmem:[%s2585_s25 + $0x138] sm:$0xff] }
  0x17   : > { %205 = vst [vmem:[%s2590_s26 + $0x38] sm:$0xff] %v204_v7  ;;  %v238_v24 = vld [vmem:[%s2585_s25 + $0x180] sm:$0xff]  ;;  %v240_v25 = vld [vmem:[%s2585_s25 + $0x188] sm:$0xff]  ;;  %v242_v26 = vld [vmem:[%s2585_s25 + $0x190] sm:$0xff] }
  0x18   : > { %207 = vst [vmem:[%s2590_s26 + $0x40] sm:$0xff] %v206_v8  ;;  %v244_v27 = vld [vmem:[%s2585_s25 + $0x198] sm:$0xff]  ;;  %v246_v28 = vld [vmem:[%s2585_s25 + $0x1a0] sm:$0xff]  ;;  %v248_v29 = vld [vmem:[%s2585_s25 + $0x1a8] sm:$0xff] }
  0x19   : > { %209 = vst [vmem:[%s2590_s26 + $0x48] sm:$0xff] %v208_v9  ;;  %v250_v30 = vld [vmem:[%s2585_s25 + $0x1b0] sm:$0xff]  ;;  %v252_v31 = vld [vmem:[%s2585_s25 + $0x1b8] sm:$0xff]  ;;  %v254_v32 = vld [vmem:[%s2585_s25 + $0x200] sm:$0xff] }
  0x1a   : > { %211 = vst [vmem:[%s2590_s26 + $0x50] sm:$0xff] %v210_v10  ;;  %v256_v33 = vld [vmem:[%s2585_s25 + $0x208] sm:$0xff]  ;;  %v258_v34 = vld [vmem:[%s2585_s25 + $0x210] sm:$0xff]  ;;  %v260_v35 = vld [vmem:[%s2585_s25 + $0x218] sm:$0xff] }
  0x1b   : > { %213 = vst [vmem:[%s2590_s26 + $0x58] sm:$0xff] %v212_v11  ;;  %v262_v36 = vld [vmem:[%s2585_s25 + $0x220] sm:$0xff]  ;;  %v264_v37 = vld [vmem:[%s2585_s25 + $0x228] sm:$0xff]  ;;  %v266_v38 = vld [vmem:[%s2585_s25 + $0x230] sm:$0xff] }
  0x1c   : > { %215 = vst [vmem:[%s2590_s26 + $0x60] sm:$0xff] %v214_v12  ;;  %v268_v39 = vld [vmem:[%s2585_s25 + $0x238] sm:$0xff]  ;;  %v270_v40 = vld [vmem:[%s2585_s25 + $0x280] sm:$0xff]  ;;  %v272_v41 = vld [vmem:[%s2585_s25 + $0x288] sm:$0xff] }
  0x1d   : > { %217 = vst [vmem:[%s2590_s26 + $0x68] sm:$0xff] %v216_v13  ;;  %v274_v42 = vld [vmem:[%s2585_s25 + $0x290] sm:$0xff]  ;;  %v276_v43 = vld [vmem:[%s2585_s25 + $0x298] sm:$0xff]  ;;  %v278_v44 = vld [vmem:[%s2585_s25 + $0x2a0] sm:$0xff] }
  0x1e   : > { %219 = vst [vmem:[%s2590_s26 + $0x70] sm:$0xff] %v218_v14  ;;  %v280_v45 = vld [vmem:[%s2585_s25 + $0x2a8] sm:$0xff]  ;;  %v282_v46 = vld [vmem:[%s2585_s25 + $0x2b0] sm:$0xff]  ;;  %v284_v47 = vld [vmem:[%s2585_s25 + $0x2b8] sm:$0xff] }
  0x1f   : > { %221 = vst [vmem:[%s2590_s26 + $0x78] sm:$0xff] %v220_v15  ;;  %v286_v48 = vld [vmem:[%s2585_s25 + $0x300] sm:$0xff]  ;;  %v288_v49 = vld [vmem:[%s2585_s25 + $0x308] sm:$0xff]  ;;  %v290_v50 = vld [vmem:[%s2585_s25 + $0x310] sm:$0xff] }
  0x20   : > { %223 = vst [vmem:[%s2590_s26 + $0x80] sm:$0xff] %v222_v16  ;;  %v292_v51 = vld [vmem:[%s2585_s25 + $0x318] sm:$0xff]  ;;  %v294_v52 = vld [vmem:[%s2585_s25 + $0x320] sm:$0xff]  ;;  %v296_v53 = vld [vmem:[%s2585_s25 + $0x328] sm:$0xff] }
  0x21   : > { %225 = vst [vmem:[%s2590_s26 + $0x88] sm:$0xff] %v224_v17  ;;  %v298_v54 = vld [vmem:[%s2585_s25 + $0x330] sm:$0xff]  ;;  %v300_v55 = vld [vmem:[%s2585_s25 + $0x338] sm:$0xff]  ;;  %v302_v56 = vld [vmem:[%s2585_s25 + $0x380] sm:$0xff] }
  0x22   : > { %227 = vst [vmem:[%s2590_s26 + $0x90] sm:$0xff] %v226_v18  ;;  %v304_v57 = vld [vmem:[%s2585_s25 + $0x388] sm:$0xff]  ;;  %v306_v58 = vld [vmem:[%s2585_s25 + $0x390] sm:$0xff]  ;;  %v308_v59 = vld [vmem:[%s2585_s25 + $0x398] sm:$0xff] }
  0x23   : > { %229 = vst [vmem:[%s2590_s26 + $0x98] sm:$0xff] %v228_v19  ;;  %v310_v60 = vld [vmem:[%s2585_s25 + $0x3a0] sm:$0xff]  ;;  %v312_v61 = vld [vmem:[%s2585_s25 + $0x3a8] sm:$0xff]  ;;  %v314_v62 = vld [vmem:[%s2585_s25 + $0x3b0] sm:$0xff] }
  0x24   : > { %231 = vst [vmem:[%s2590_s26 + $0xa0] sm:$0xff] %v230_v20  ;;  %v316_v63 = vld [vmem:[%s2585_s25 + $0x3b8] sm:$0xff]  ;;  %v318_v0 = vld [vmem:[%s2585_s25 + $0x400] sm:$0xff]  ;;  %v320_v1 = vld [vmem:[%s2585_s25 + $0x408] sm:$0xff] }
  0x25   : > { %233 = vst [vmem:[%s2590_s26 + $0xa8] sm:$0xff] %v232_v21  ;;  %v322_v2 = vld [vmem:[%s2585_s25 + $0x410] sm:$0xff]  ;;  %v324_v3 = vld [vmem:[%s2585_s25 + $0x418] sm:$0xff]  ;;  %v326_v4 = vld [vmem:[%s2585_s25 + $0x420] sm:$0xff] }
  0x26   : > { %235 = vst [vmem:[%s2590_s26 + $0xb0] sm:$0xff] %v234_v22  ;;  %v328_v5 = vld [vmem:[%s2585_s25 + $0x428] sm:$0xff]  ;;  %v330_v6 = vld [vmem:[%s2585_s25 + $0x430] sm:$0xff]  ;;  %v332_v7 = vld [vmem:[%s2585_s25 + $0x438] sm:$0xff] }
  0x27   : > { %237 = vst [vmem:[%s2590_s26 + $0xb8] sm:$0xff] %v236_v23  ;;  %v334_v8 = vld [vmem:[%s2585_s25 + $0x480] sm:$0xff]  ;;  %v336_v9 = vld [vmem:[%s2585_s25 + $0x488] sm:$0xff]  ;;  %v338_v10 = vld [vmem:[%s2585_s25 + $0x490] sm:$0xff] }
  0x28   : > { %239 = vst [vmem:[%s2590_s26 + $0xc0] sm:$0xff] %v238_v24  ;;  %v340_v11 = vld [vmem:[%s2585_s25 + $0x498] sm:$0xff]  ;;  %v342_v12 = vld [vmem:[%s2585_s25 + $0x4a0] sm:$0xff]  ;;  %v344_v13 = vld [vmem:[%s2585_s25 + $0x4a8] sm:$0xff] }
  0x29   : > { %241 = vst [vmem:[%s2590_s26 + $0xc8] sm:$0xff] %v240_v25  ;;  %v346_v14 = vld [vmem:[%s2585_s25 + $0x4b0] sm:$0xff]  ;;  %v348_v15 = vld [vmem:[%s2585_s25 + $0x4b8] sm:$0xff]  ;;  %v350_v16 = vld [vmem:[%s2585_s25 + $0x500] sm:$0xff] }
  0x2a   : > { %243 = vst [vmem:[%s2590_s26 + $0xd0] sm:$0xff] %v242_v26  ;;  %v352_v17 = vld [vmem:[%s2585_s25 + $0x508] sm:$0xff]  ;;  %v354_v18 = vld [vmem:[%s2585_s25 + $0x510] sm:$0xff]  ;;  %v356_v19 = vld [vmem:[%s2585_s25 + $0x518] sm:$0xff] }
  0x2b   : > { %245 = vst [vmem:[%s2590_s26 + $0xd8] sm:$0xff] %v244_v27  ;;  %v358_v20 = vld [vmem:[%s2585_s25 + $0x520] sm:$0xff]  ;;  %v360_v21 = vld [vmem:[%s2585_s25 + $0x528] sm:$0xff]  ;;  %v362_v22 = vld [vmem:[%s2585_s25 + $0x530] sm:$0xff] }
  0x2c   : > { %247 = vst [vmem:[%s2590_s26 + $0xe0] sm:$0xff] %v246_v28  ;;  %v364_v23 = vld [vmem:[%s2585_s25 + $0x538] sm:$0xff]  ;;  %v366_v24 = vld [vmem:[%s2585_s25 + $0x580] sm:$0xff]  ;;  %v368_v25 = vld [vmem:[%s2585_s25 + $0x588] sm:$0xff] }
  0x2d   : > { %249 = vst [vmem:[%s2590_s26 + $0xe8] sm:$0xff] %v248_v29  ;;  %v370_v26 = vld [vmem:[%s2585_s25 + $0x590] sm:$0xff]  ;;  %v372_v27 = vld [vmem:[%s2585_s25 + $0x598] sm:$0xff]  ;;  %v374_v28 = vld [vmem:[%s2585_s25 + $0x5a0] sm:$0xff] }
  0x2e   : > { %251 = vst [vmem:[%s2590_s26 + $0xf0] sm:$0xff] %v250_v30  ;;  %v376_v29 = vld [vmem:[%s2585_s25 + $0x5a8] sm:$0xff]  ;;  %v378_v30 = vld [vmem:[%s2585_s25 + $0x5b0] sm:$0xff] }
  0x2f   : > { %253 = vst [vmem:[%s2590_s26 + $0xf8] sm:$0xff] %v252_v31  ;;  %v380_v31 = vld [vmem:[%s2585_s25 + $0x5b8] sm:$0xff] }
  0x30   : > { %255 = vst [vmem:[%s2590_s26 + $0x100] sm:$0xff] %v254_v32  ;;  %v382_v32 = vld [vmem:[%s2585_s25 + $0x600] sm:$0xff] }
  0x31   : > { %257 = vst [vmem:[%s2590_s26 + $0x108] sm:$0xff] %v256_v33  ;;  %v384_v33 = vld [vmem:[%s2585_s25 + $0x608] sm:$0xff] }
  0x32   : > { %259 = vst [vmem:[%s2590_s26 + $0x110] sm:$0xff] %v258_v34  ;;  %v386_v34 = vld [vmem:[%s2585_s25 + $0x610] sm:$0xff] }
  0x33   : > { %261 = vst [vmem:[%s2590_s26 + $0x118] sm:$0xff] %v260_v35  ;;  %v388_v35 = vld [vmem:[%s2585_s25 + $0x618] sm:$0xff] }
  0x34   : > { %263 = vst [vmem:[%s2590_s26 + $0x120] sm:$0xff] %v262_v36  ;;  %v390_v36 = vld [vmem:[%s2585_s25 + $0x620] sm:$0xff] }
  0x35   : > { %265 = vst [vmem:[%s2590_s26 + $0x128] sm:$0xff] %v264_v37  ;;  %v392_v37 = vld [vmem:[%s2585_s25 + $0x628] sm:$0xff] }
  0x36   : > { %267 = vst [vmem:[%s2590_s26 + $0x130] sm:$0xff] %v266_v38  ;;  %v394_v38 = vld [vmem:[%s2585_s25 + $0x630] sm:$0xff] }
  0x37   : > { %269 = vst [vmem:[%s2590_s26 + $0x138] sm:$0xff] %v268_v39  ;;  %v396_v39 = vld [vmem:[%s2585_s25 + $0x638] sm:$0xff] }
  0x38   : > { %271 = vst [vmem:[%s2590_s26 + $0x140] sm:$0xff] %v270_v40  ;;  %v398_v40 = vld [vmem:[%s2585_s25 + $0x680] sm:$0xff] }
  0x39   : > { %273 = vst [vmem:[%s2590_s26 + $0x148] sm:$0xff] %v272_v41  ;;  %v400_v41 = vld [vmem:[%s2585_s25 + $0x688] sm:$0xff] }
  0x3a   : > { %275 = vst [vmem:[%s2590_s26 + $0x150] sm:$0xff] %v274_v42  ;;  %v402_v42 = vld [vmem:[%s2585_s25 + $0x690] sm:$0xff] }
  0x3b   : > { %277 = vst [vmem:[%s2590_s26 + $0x158] sm:$0xff] %v276_v43  ;;  %v404_v43 = vld [vmem:[%s2585_s25 + $0x698] sm:$0xff] }
  0x3c   : > { %279 = vst [vmem:[%s2590_s26 + $0x160] sm:$0xff] %v278_v44  ;;  %v406_v44 = vld [vmem:[%s2585_s25 + $0x6a0] sm:$0xff] }
  0x3d   : > { %281 = vst [vmem:[%s2590_s26 + $0x168] sm:$0xff] %v280_v45  ;;  %v408_v45 = vld [vmem:[%s2585_s25 + $0x6a8] sm:$0xff] }
  0x3e   : > { %283 = vst [vmem:[%s2590_s26 + $0x170] sm:$0xff] %v282_v46  ;;  %v410_v46 = vld [vmem:[%s2585_s25 + $0x6b0] sm:$0xff] }
  0x3f   : > { %285 = vst [vmem:[%s2590_s26 + $0x178] sm:$0xff] %v284_v47  ;;  %v412_v47 = vld [vmem:[%s2585_s25 + $0x6b8] sm:$0xff] }
  0x40   : > { %287 = vst [vmem:[%s2590_s26 + $0x180] sm:$0xff] %v286_v48  ;;  %v414_v48 = vld [vmem:[%s2585_s25 + $0x700] sm:$0xff] }
  0x41   : > { %289 = vst [vmem:[%s2590_s26 + $0x188] sm:$0xff] %v288_v49  ;;  %v416_v49 = vld [vmem:[%s2585_s25 + $0x708] sm:$0xff] }
  0x42   : > { %291 = vst [vmem:[%s2590_s26 + $0x190] sm:$0xff] %v290_v50  ;;  %v418_v50 = vld [vmem:[%s2585_s25 + $0x710] sm:$0xff] }
  0x43   : > { %293 = vst [vmem:[%s2590_s26 + $0x198] sm:$0xff] %v292_v51  ;;  %v420_v51 = vld [vmem:[%s2585_s25 + $0x718] sm:$0xff] }
  0x44   : > { %295 = vst [vmem:[%s2590_s26 + $0x1a0] sm:$0xff] %v294_v52  ;;  %v422_v52 = vld [vmem:[%s2585_s25 + $0x720] sm:$0xff] }
  0x45   : > { %297 = vst [vmem:[%s2590_s26 + $0x1a8] sm:$0xff] %v296_v53  ;;  %v424_v53 = vld [vmem:[%s2585_s25 + $0x728] sm:$0xff] }
  0x46   : > { %299 = vst [vmem:[%s2590_s26 + $0x1b0] sm:$0xff] %v298_v54  ;;  %v426_v54 = vld [vmem:[%s2585_s25 + $0x730] sm:$0xff] }
  0x47   : > { %301 = vst [vmem:[%s2590_s26 + $0x1b8] sm:$0xff] %v300_v55  ;;  %v428_v55 = vld [vmem:[%s2585_s25 + $0x738] sm:$0xff] }
  0x48   : > { %303 = vst [vmem:[%s2590_s26 + $0x1c0] sm:$0xff] %v302_v56  ;;  %v430_v56 = vld [vmem:[%s2585_s25 + $0x780] sm:$0xff] }
  0x49   : > { %305 = vst [vmem:[%s2590_s26 + $0x1c8] sm:$0xff] %v304_v57  ;;  %v432_v57 = vld [vmem:[%s2585_s25 + $0x788] sm:$0xff] }
  0x4a   : > { %307 = vst [vmem:[%s2590_s26 + $0x1d0] sm:$0xff] %v306_v58  ;;  %v434_v58 = vld [vmem:[%s2585_s25 + $0x790] sm:$0xff] }
  0x4b   : > { %309 = vst [vmem:[%s2590_s26 + $0x1d8] sm:$0xff] %v308_v59  ;;  %v436_v59 = vld [vmem:[%s2585_s25 + $0x798] sm:$0xff] }
  0x4c   : > { %311 = vst [vmem:[%s2590_s26 + $0x1e0] sm:$0xff] %v310_v60  ;;  %v438_v60 = vld [vmem:[%s2585_s25 + $0x7a0] sm:$0xff] }
  0x4d   : > { %313 = vst [vmem:[%s2590_s26 + $0x1e8] sm:$0xff] %v312_v61  ;;  %v440_v61 = vld [vmem:[%s2585_s25 + $0x7a8] sm:$0xff] }
  0x4e   : > { %315 = vst [vmem:[%s2590_s26 + $0x1f0] sm:$0xff] %v314_v62  ;;  %v442_v62 = vld [vmem:[%s2585_s25 + $0x7b0] sm:$0xff] }
  0x4f   : > { %317 = vst [vmem:[%s2590_s26 + $0x1f8] sm:$0xff] %v316_v63  ;;  %v444_v63 = vld [vmem:[%s2585_s25 + $0x7b8] sm:$0xff] }
  0x50   : > { %319 = vst [vmem:[%s2590_s26 + $0x200] sm:$0xff] %v318_v0 }
  0x51   : > { %321 = vst [vmem:[%s2590_s26 + $0x208] sm:$0xff] %v320_v1 }
  0x52   : > { %323 = vst [vmem:[%s2590_s26 + $0x210] sm:$0xff] %v322_v2 }
  0x53   : > { %325 = vst [vmem:[%s2590_s26 + $0x218] sm:$0xff] %v324_v3 }
  0x54   : > { %327 = vst [vmem:[%s2590_s26 + $0x220] sm:$0xff] %v326_v4 }
  0x55   : > { %329 = vst [vmem:[%s2590_s26 + $0x228] sm:$0xff] %v328_v5 }
  0x56   : > { %331 = vst [vmem:[%s2590_s26 + $0x230] sm:$0xff] %v330_v6 }
  0x57   : > { %333 = vst [vmem:[%s2590_s26 + $0x238] sm:$0xff] %v332_v7 }
  0x58   : > { %335 = vst [vmem:[%s2590_s26 + $0x240] sm:$0xff] %v334_v8 }
  0x59   : > { %337 = vst [vmem:[%s2590_s26 + $0x248] sm:$0xff] %v336_v9 }
  0x5a   : > { %339 = vst [vmem:[%s2590_s26 + $0x250] sm:$0xff] %v338_v10 }
  0x5b   : > { %341 = vst [vmem:[%s2590_s26 + $0x258] sm:$0xff] %v340_v11 }
  0x5c   : > { %343 = vst [vmem:[%s2590_s26 + $0x260] sm:$0xff] %v342_v12 }
  0x5d   : > { %345 = vst [vmem:[%s2590_s26 + $0x268] sm:$0xff] %v344_v13 }
  0x5e   : > { %347 = vst [vmem:[%s2590_s26 + $0x270] sm:$0xff] %v346_v14 }
  0x5f   : > { %349 = vst [vmem:[%s2590_s26 + $0x278] sm:$0xff] %v348_v15 }
  0x60   : > { %351 = vst [vmem:[%s2590_s26 + $0x280] sm:$0xff] %v350_v16 }
  0x61   : > { %353 = vst [vmem:[%s2590_s26 + $0x288] sm:$0xff] %v352_v17 }
  0x62   : > { %355 = vst [vmem:[%s2590_s26 + $0x290] sm:$0xff] %v354_v18 }
  0x63   : > { %357 = vst [vmem:[%s2590_s26 + $0x298] sm:$0xff] %v356_v19 }
  0x64   : > { %359 = vst [vmem:[%s2590_s26 + $0x2a0] sm:$0xff] %v358_v20 }
  0x65   : > { %361 = vst [vmem:[%s2590_s26 + $0x2a8] sm:$0xff] %v360_v21 }
  0x66   : > { %363 = vst [vmem:[%s2590_s26 + $0x2b0] sm:$0xff] %v362_v22 }
  0x67   : > { %365 = vst [vmem:[%s2590_s26 + $0x2b8] sm:$0xff] %v364_v23 }
  0x68   : > { %367 = vst [vmem:[%s2590_s26 + $0x2c0] sm:$0xff] %v366_v24 }
  0x69   : > { %369 = vst [vmem:[%s2590_s26 + $0x2c8] sm:$0xff] %v368_v25 }
  0x6a   : > { %371 = vst [vmem:[%s2590_s26 + $0x2d0] sm:$0xff] %v370_v26 }
  0x6b   : > { %373 = vst [vmem:[%s2590_s26 + $0x2d8] sm:$0xff] %v372_v27 }
  0x6c   : > { %375 = vst [vmem:[%s2590_s26 + $0x2e0] sm:$0xff] %v374_v28 }
  0x6d   : > { %377 = vst [vmem:[%s2590_s26 + $0x2e8] sm:$0xff] %v376_v29 }
  0x6e   : > { %379 = vst [vmem:[%s2590_s26 + $0x2f0] sm:$0xff] %v378_v30 }
  0x6f   : > { %381 = vst [vmem:[%s2590_s26 + $0x2f8] sm:$0xff] %v380_v31 }
  0x70   : > { %383 = vst [vmem:[%s2590_s26 + $0x300] sm:$0xff] %v382_v32 }
  0x71   : > { %385 = vst [vmem:[%s2590_s26 + $0x308] sm:$0xff] %v384_v33 }
  0x72   : > { %387 = vst [vmem:[%s2590_s26 + $0x310] sm:$0xff] %v386_v34 }
  0x73   : > { %389 = vst [vmem:[%s2590_s26 + $0x318] sm:$0xff] %v388_v35 }
  0x74   : > { %391 = vst [vmem:[%s2590_s26 + $0x320] sm:$0xff] %v390_v36 }
  0x75   : > { %393 = vst [vmem:[%s2590_s26 + $0x328] sm:$0xff] %v392_v37 }
  0x76   : > { %395 = vst [vmem:[%s2590_s26 + $0x330] sm:$0xff] %v394_v38 }
  0x77   : > { %397 = vst [vmem:[%s2590_s26 + $0x338] sm:$0xff] %v396_v39 }
  0x78   : > { %399 = vst [vmem:[%s2590_s26 + $0x340] sm:$0xff] %v398_v40 }
  0x79   : > { %401 = vst [vmem:[%s2590_s26 + $0x348] sm:$0xff] %v400_v41 }
  0x7a   : > { %403 = vst [vmem:[%s2590_s26 + $0x350] sm:$0xff] %v402_v42 }
  0x7b   : > { %405 = vst [vmem:[%s2590_s26 + $0x358] sm:$0xff] %v404_v43 }
  0x7c   : > { %407 = vst [vmem:[%s2590_s26 + $0x360] sm:$0xff] %v406_v44 }
  0x7d   : > { %409 = vst [vmem:[%s2590_s26 + $0x368] sm:$0xff] %v408_v45 }
  0x7e   : > { %411 = vst [vmem:[%s2590_s26 + $0x370] sm:$0xff] %v410_v46 }
  0x7f   : > { %413 = vst [vmem:[%s2590_s26 + $0x378] sm:$0xff] %v412_v47 }
  0x80   : > { %415 = vst [vmem:[%s2590_s26 + $0x380] sm:$0xff] %v414_v48 }
  0x81   : > { %417 = vst [vmem:[%s2590_s26 + $0x388] sm:$0xff] %v416_v49 }
  0x82   : > { %419 = vst [vmem:[%s2590_s26 + $0x390] sm:$0xff] %v418_v50 }
  0x83   : > { %421 = vst [vmem:[%s2590_s26 + $0x398] sm:$0xff] %v420_v51 }
  0x84   : > { %423 = vst [vmem:[%s2590_s26 + $0x3a0] sm:$0xff] %v422_v52 }
  0x85   : > { %425 = vst [vmem:[%s2590_s26 + $0x3a8] sm:$0xff] %v424_v53 }
  0x86   : > { %427 = vst [vmem:[%s2590_s26 + $0x3b0] sm:$0xff] %v426_v54 }
  0x87   : > { %429 = vst [vmem:[%s2590_s26 + $0x3b8] sm:$0xff] %v428_v55 }
  0x88   : > { %431 = vst [vmem:[%s2590_s26 + $0x3c0] sm:$0xff] %v430_v56 }
  0x89   : > { %433 = vst [vmem:[%s2590_s26 + $0x3c8] sm:$0xff] %v432_v57 }
  0x8a   : > { %435 = vst [vmem:[%s2590_s26 + $0x3d0] sm:$0xff] %v434_v58 }
  0x8b   : > { %437 = vst [vmem:[%s2590_s26 + $0x3d8] sm:$0xff] %v436_v59 }
  0x8c   : > { %439 = vst [vmem:[%s2590_s26 + $0x3e0] sm:$0xff] %v438_v60 }
  0x8d   : > { %441 = vst [vmem:[%s2590_s26 + $0x3e8] sm:$0xff] %v440_v61 }
  0x8e   : > { %443 = vst [vmem:[%s2590_s26 + $0x3f0] sm:$0xff] %v442_v62 }
  0x8f   : > { %445 = vst [vmem:[%s2590_s26 + $0x3f8] sm:$0xff] %v444_v63 }
  0x90 PF: > { %p2299_p6 = scmp.ge.s32.totalorder %s2519_s16, 1  ;;  %p465_p7 = scmp.lt.s32.totalorder %s2519_s16, 3 }
  0x92   : > { %p466_p8 = pnand %p2299_p6, %p465_p7 }
  0x93   : > { %s472_s27 = sand.u32 (!%p466_p8), 1, %s2503_s12   ;;  %s2301_s28 = sshll.u32 (!%p466_p8), %s2511_s14, 7 }
  0x94   : > { %469 = sbr.rel (%p466_p8) target bundleno = 901 (0x385), region = 51  ;;  %s2300_s29 = sshll.u32 (!%p466_p8), %s472_s27, 10 }
  0x95   : > { %p518_p9 = scmp.lt.s32.totalorder (!%p466_p8), %s2301_s28, 255  ;;  %s2854_s7 = scalar_lea.vmem (!%p466_p8), [#allocation3], %s2300_s29 }
  0x96   : > { %p2304_p10 = scmp.ne.s32.totalorder (!%p466_p8), %s2511_s14, 0 }
  0x99   : > { %s3588_s28 = smov (!%p518_p9, %s2301_s28), 255  ;;  %548 = sbr.rel (%p2304_p10) target bundleno = 191 (0xbf), region = 59 }
  0x9a   : > { %s2311_s30 = sshll.u32 %s3588_s28, 4 }
  0x9b   : > { %s2852_s6 = scalar_lea.vmem %s3578_s1, %s2311_s30 }
  0x9e   : > { %v2521_v0 = vmov 0.0  }
  0x9f   : > { %549 = vst [vmem:[#allocation2 + $0xb0] sm:$0xff] %v2521_v0 }
  0xa0   : > { %550 = vst [vmem:[#allocation2] sm:$0xff] %v2521_v0 }
  0xa1   : > { %551 = vst [vmem:[#allocation2 + $0xd8] sm:$0xff] %v2521_v0 }
  0xa2   : > { %552 = vst [vmem:[#allocation2 + $0x18] sm:$0xff] %v2521_v0 }
  0xa3   : > { %553 = vst [vmem:[#allocation2 + $0x50] sm:$0xff] %v2521_v0 }
  0xa4   : > { %554 = vst [vmem:[#allocation2 + $0x68] sm:$0xff] %v2521_v0 }
  0xa5   : > { %555 = vst [vmem:[#allocation2 + $0x30] sm:$0xff] %v2521_v0 }
  0xa6   : > { %556 = vst [vmem:[#allocation2 + $0x48] sm:$0xff] %v2521_v0 }
  0xa7   : > { %557 = vst [vmem:[#allocation2 + $0x80] sm:$0xff] %v2521_v0 }
  0xa8   : > { %558 = vst [vmem:[#allocation2 + $0x88] sm:$0xff] %v2521_v0 }
  0xa9   : > { %559 = vst [vmem:[#allocation2 + $0xe8] sm:$0xff] %v2521_v0 }
  0xaa   : > { %560 = vst [vmem:[#allocation2 + $0xb8] sm:$0xff] %v2521_v0 }
  0xab   : > { %561 = vst [vmem:[#allocation2 + $0x60] sm:$0xff] %v2521_v0 }
  0xac   : > { %562 = vst [vmem:[#allocation2 + $0xf0] sm:$0xff] %v2521_v0 }
  0xad   : > { %563 = vst [vmem:[#allocation2 + $0x8] sm:$0xff] %v2521_v0 }
  0xae   : > { %564 = vst [vmem:[#allocation2 + $0x78] sm:$0xff] %v2521_v0 }
  0xaf   : > { %565 = vst [vmem:[#allocation2 + $0x38] sm:$0xff] %v2521_v0 }
  0xb0   : > { %566 = vst [vmem:[#allocation2 + $0x58] sm:$0xff] %v2521_v0 }
  0xb1   : > { %567 = vst [vmem:[#allocation2 + $0x40] sm:$0xff] %v2521_v0 }
  0xb2   : > { %568 = vst [vmem:[#allocation2 + $0xc8] sm:$0xff] %v2521_v0 }
  0xb3   : > { %569 = vst [vmem:[#allocation2 + $0xe0] sm:$0xff] %v2521_v0 }
  0xb4   : > { %570 = vst [vmem:[#allocation2 + $0x90] sm:$0xff] %v2521_v0 }
  0xb5   : > { %571 = vst [vmem:[#allocation2 + $0x70] sm:$0xff] %v2521_v0 }
  0xb6   : > { %572 = vst [vmem:[#allocation2 + $0xc0] sm:$0xff] %v2521_v0 }
  0xb7   : > { %573 = vst [vmem:[#allocation2 + $0xa8] sm:$0xff] %v2521_v0 }
  0xb8   : > { %574 = vst [vmem:[#allocation2 + $0xd0] sm:$0xff] %v2521_v0 }
  0xb9   : > { %575 = vst [vmem:[#allocation2 + $0x10] sm:$0xff] %v2521_v0 }
  0xba   : > { %576 = vst [vmem:[#allocation2 + $0x28] sm:$0xff] %v2521_v0 }
  0xbb   : > { %577 = vst [vmem:[#allocation2 + $0xa0] sm:$0xff] %v2521_v0 }
  0xbc   : > { %578 = vst [vmem:[#allocation2 + $0xf8] sm:$0xff] %v2521_v0 }
  0xbd   : > { %579 = vst [vmem:[#allocation2 + $0x20] sm:$0xff] %v2521_v0 }
  0xbe   : > { %580 = vst [vmem:[#allocation2 + $0x98] sm:$0xff] %v2521_v0 }
  0xbf PF: > { %v771_v1 = vld [vmem:[%s2852_s6 + $0xf0] sm:$0xff]  ;;  %v769_v3 = vld [vmem:[%s2852_s6 + $0xe0] sm:$0xff]  ;;  %p2305_p11 = scmp.ne.s32.totalorder %s2511_s14, 1 }
  0xc0   : > { %v835_v2 = vld [vmem:[%s2852_s6 + $0x2f0] sm:$0xff]  ;;  %997 = vmatpush.msra.mxu0 %v771_v1  ;;  %v833_v5 = vld [vmem:[%s2852_s6 + $0x2e0] sm:$0xff] }
  0xc1   : > { %1127 = vmatpush.msra.mxu2 %v835_v2  ;;  %v803_v4 = vld [vmem:[%s2852_s6 + $0x1f0] sm:$0xff]  ;;  %v801_v8 = vld [vmem:[%s2852_s6 + $0x1e0] sm:$0xff] }
  0xc2   : > { %v867_v6 = vld [vmem:[%s2852_s6 + $0x3f0] sm:$0xff]  ;;  %1062 = vmatpush.msra.mxu1 %v803_v4  ;;  %998 = vmatpush.msra.mxu0 %v769_v3  ;;  %v865_v10 = vld [vmem:[%s2852_s6 + $0x3e0] sm:$0xff]  ;;  %v614_v4 = vld [vmem:[%s2854_s7 + $0x8] sm:$0xff] }
  0xc3   : > { %1192 = vmatpush.msra.mxu3 %v867_v6  ;;  %v767_v7 = vld [vmem:[%s2852_s6 + $0xd0] sm:$0xff]  ;;  %1128 = vmatpush.msra.mxu2 %v833_v5  ;;  %v765_v12 = vld [vmem:[%s2852_s6 + $0xc0] sm:$0xff]  ;;  %v616_v5 = vld [vmem:[%s2854_s7 + $0x18] sm:$0xff] }
  0xc4   : > { %v831_v9 = vld [vmem:[%s2852_s6 + $0x2d0] sm:$0xff]  ;;  %1063 = vmatpush.msra.mxu1 %v801_v8  ;;  %v829_v13 = vld [vmem:[%s2852_s6 + $0x2c0] sm:$0xff]  ;;  %999 = vmatpush.msra.mxu0 %v767_v7 }
  0xc5   : > { %v799_v11 = vld [vmem:[%s2852_s6 + $0x1d0] sm:$0xff]  ;;  %1193 = vmatpush.msra.mxu3 %v865_v10  ;;  %1129 = vmatpush.msra.mxu2 %v831_v9  ;;  %v797_v15 = vld [vmem:[%s2852_s6 + $0x1c0] sm:$0xff] }
  0xc6   : > { %v863_v14 = vld [vmem:[%s2852_s6 + $0x3d0] sm:$0xff]  ;;  %v861_v16 = vld [vmem:[%s2852_s6 + $0x3c0] sm:$0xff]  ;;  %1064 = vmatpush.msra.mxu1 %v799_v11  ;;  %1000 = vmatpush.msra.mxu0 %v765_v12 }
  0xc7   : > { %1194 = vmatpush.msra.mxu3 %v863_v14  ;;  %v763_v17 = vld [vmem:[%s2852_s6 + $0xb0] sm:$0xff]  ;;  %1130 = vmatpush.msra.mxu2 %v829_v13  ;;  %v761_v21 = vld [vmem:[%s2852_s6 + $0xa0] sm:$0xff] }
  0xc8   : > { %v827_v18 = vld [vmem:[%s2852_s6 + $0x2b0] sm:$0xff]  ;;  %1065 = vmatpush.msra.mxu1 %v797_v15  ;;  %v825_v22 = vld [vmem:[%s2852_s6 + $0x2a0] sm:$0xff]  ;;  %1001 = vmatpush.msra.mxu0 %v763_v17 }
  0xc9   : > { %v795_v19 = vld [vmem:[%s2852_s6 + $0x1b0] sm:$0xff]  ;;  %1195 = vmatpush.msra.mxu3 %v861_v16  ;;  %1131 = vmatpush.msra.mxu2 %v827_v18  ;;  %v793_v23 = vld [vmem:[%s2852_s6 + $0x1a0] sm:$0xff] }
  0xca   : > { %v859_v20 = vld [vmem:[%s2852_s6 + $0x3b0] sm:$0xff]  ;;  %v857_v24 = vld [vmem:[%s2852_s6 + $0x3a0] sm:$0xff]  ;;  %1066 = vmatpush.msra.mxu1 %v795_v19  ;;  %1002 = vmatpush.msra.mxu0 %v761_v21  ;;  %v622_v19 = vld [vmem:[%s2854_s7 + $0x48] sm:$0xff] }
  0xcb   : > { %1196 = vmatpush.msra.mxu3 %v859_v20  ;;  %v759_v25 = vld [vmem:[%s2852_s6 + $0x90] sm:$0xff]  ;;  %1132 = vmatpush.msra.mxu2 %v825_v22  ;;  %v757_v29 = vld [vmem:[%s2852_s6 + $0x80] sm:$0xff]  ;;  %v624_v21 = vld [vmem:[%s2854_s7 + $0x58] sm:$0xff] }
  0xcc   : > { %v823_v26 = vld [vmem:[%s2852_s6 + $0x290] sm:$0xff]  ;;  %1067 = vmatpush.msra.mxu1 %v793_v23  ;;  %v821_v30 = vld [vmem:[%s2852_s6 + $0x280] sm:$0xff]  ;;  %1003 = vmatpush.msra.mxu0 %v759_v25 }
  0xcd   : > { %v791_v27 = vld [vmem:[%s2852_s6 + $0x190] sm:$0xff]  ;;  %1197 = vmatpush.msra.mxu3 %v857_v24  ;;  %1133 = vmatpush.msra.mxu2 %v823_v26  ;;  %v789_v31 = vld [vmem:[%s2852_s6 + $0x180] sm:$0xff] }
  0xce   : > { %v855_v28 = vld [vmem:[%s2852_s6 + $0x390] sm:$0xff]  ;;  %v853_v32 = vld [vmem:[%s2852_s6 + $0x380] sm:$0xff]  ;;  %1068 = vmatpush.msra.mxu1 %v791_v27  ;;  %1004 = vmatpush.msra.mxu0 %v757_v29 }
  0xcf   : > { %1198 = vmatpush.msra.mxu3 %v855_v28  ;;  %v755_v33 = vld [vmem:[%s2852_s6 + $0x70] sm:$0xff]  ;;  %1134 = vmatpush.msra.mxu2 %v821_v30  ;;  %v753_v37 = vld [vmem:[%s2852_s6 + $0x60] sm:$0xff] }
  0xd0   : > { %v819_v34 = vld [vmem:[%s2852_s6 + $0x270] sm:$0xff]  ;;  %1069 = vmatpush.msra.mxu1 %v789_v31  ;;  %v817_v38 = vld [vmem:[%s2852_s6 + $0x260] sm:$0xff]  ;;  %1005 = vmatpush.msra.mxu0 %v755_v33 }
  0xd1   : > { %v787_v35 = vld [vmem:[%s2852_s6 + $0x170] sm:$0xff]  ;;  %1199 = vmatpush.msra.mxu3 %v853_v32  ;;  %1135 = vmatpush.msra.mxu2 %v819_v34  ;;  %v785_v39 = vld [vmem:[%s2852_s6 + $0x160] sm:$0xff] }
  0xd2   : > { %v851_v36 = vld [vmem:[%s2852_s6 + $0x370] sm:$0xff]  ;;  %v849_v40 = vld [vmem:[%s2852_s6 + $0x360] sm:$0xff]  ;;  %1070 = vmatpush.msra.mxu1 %v787_v35  ;;  %1006 = vmatpush.msra.mxu0 %v753_v37  ;;  %v630_v35 = vld [vmem:[%s2854_s7 + $0x88] sm:$0xff] }
  0xd3   : > { %1200 = vmatpush.msra.mxu3 %v851_v36  ;;  %v751_v41 = vld [vmem:[%s2852_s6 + $0x50] sm:$0xff]  ;;  %1136 = vmatpush.msra.mxu2 %v817_v38  ;;  %v749_v45 = vld [vmem:[%s2852_s6 + $0x40] sm:$0xff]  ;;  %v632_v36 = vld [vmem:[%s2854_s7 + $0x98] sm:$0xff] }
  0xd4   : > { %v815_v42 = vld [vmem:[%s2852_s6 + $0x250] sm:$0xff]  ;;  %1071 = vmatpush.msra.mxu1 %v785_v39  ;;  %v813_v46 = vld [vmem:[%s2852_s6 + $0x240] sm:$0xff]  ;;  %1007 = vmatpush.msra.mxu0 %v751_v41 }
  0xd5   : > { %v783_v43 = vld [vmem:[%s2852_s6 + $0x150] sm:$0xff]  ;;  %1201 = vmatpush.msra.mxu3 %v849_v40  ;;  %1137 = vmatpush.msra.mxu2 %v815_v42  ;;  %v781_v47 = vld [vmem:[%s2852_s6 + $0x140] sm:$0xff] }
  0xd6   : > { %v847_v44 = vld [vmem:[%s2852_s6 + $0x350] sm:$0xff]  ;;  %v845_v48 = vld [vmem:[%s2852_s6 + $0x340] sm:$0xff]  ;;  %1072 = vmatpush.msra.mxu1 %v783_v43  ;;  %1008 = vmatpush.msra.mxu0 %v749_v45  ;;  %v638_v43 = vld [vmem:[%s2854_s7 + $0xc8] sm:$0xff] }
  0xd7   : > { %1202 = vmatpush.msra.mxu3 %v847_v44  ;;  %v747_v49 = vld [vmem:[%s2852_s6 + $0x30] sm:$0xff]  ;;  %1138 = vmatpush.msra.mxu2 %v813_v46  ;;  %v745_v53 = vld [vmem:[%s2852_s6 + $0x20] sm:$0xff]  ;;  %v640_v44 = vld [vmem:[%s2854_s7 + $0xd8] sm:$0xff] }
  0xd8   : > { %v811_v50 = vld [vmem:[%s2852_s6 + $0x230] sm:$0xff]  ;;  %1073 = vmatpush.msra.mxu1 %v781_v47  ;;  %v809_v54 = vld [vmem:[%s2852_s6 + $0x220] sm:$0xff]  ;;  %1009 = vmatpush.msra.mxu0 %v747_v49 }
  0xd9   : > { %v779_v51 = vld [vmem:[%s2852_s6 + $0x130] sm:$0xff]  ;;  %1203 = vmatpush.msra.mxu3 %v845_v48  ;;  %1139 = vmatpush.msra.mxu2 %v811_v50  ;;  %v777_v55 = vld [vmem:[%s2852_s6 + $0x120] sm:$0xff] }
  0xda   : > { %v843_v52 = vld [vmem:[%s2852_s6 + $0x330] sm:$0xff]  ;;  %v841_v56 = vld [vmem:[%s2852_s6 + $0x320] sm:$0xff]  ;;  %1074 = vmatpush.msra.mxu1 %v779_v51  ;;  %1010 = vmatpush.msra.mxu0 %v745_v53  ;;  %v646_v51 = vld [vmem:[%s2854_s7 + $0x108] sm:$0xff] }
  0xdb   : > { %1204 = vmatpush.msra.mxu3 %v843_v52  ;;  %v743_v57 = vld [vmem:[%s2852_s6 + $0x10] sm:$0xff]  ;;  %1140 = vmatpush.msra.mxu2 %v809_v54  ;;  %v741_v61 = vld [vmem:[%s2852_s6] sm:$0xff]  ;;  %v648_v52 = vld [vmem:[%s2854_s7 + $0x118] sm:$0xff] }
  0xdc   : > { %v807_v58 = vld [vmem:[%s2852_s6 + $0x210] sm:$0xff]  ;;  %1075 = vmatpush.msra.mxu1 %v777_v55  ;;  %v805_v62 = vld [vmem:[%s2852_s6 + $0x200] sm:$0xff]  ;;  %1011 = vmatpush.msra.mxu0 %v743_v57 }
  0xdd   : > { %v775_v59 = vld [vmem:[%s2852_s6 + $0x110] sm:$0xff]  ;;  %1205 = vmatpush.msra.mxu3 %v841_v56  ;;  %1141 = vmatpush.msra.mxu2 %v807_v58  ;;  %v613_v63 = vld [vmem:[%s2854_s7] sm:$0xff] }
  0xde   : > { %v839_v60 = vld [vmem:[%s2852_s6 + $0x310] sm:$0xff]  ;;  %1076 = vmatpush.msra.mxu1 %v775_v59  ;;  %v773_v2 = vld [vmem:[%s2852_s6 + $0x100] sm:$0xff]  ;;  %1012 = vmatpush.msra.mxu0 %v741_v61  ;;  %v654_v59 = vld [vmem:[%s2854_s7 + $0x148] sm:$0xff] }
  0xdf   : > { %v615_v0 = vld [vmem:[%s2854_s7 + $0x10] sm:$0xff]  ;;  %1206 = vmatpush.msra.mxu3 %v839_v60  ;;  %1142 = vmatpush.msra.mxu2 %v805_v62  ;;  %v837_v3 = vld [vmem:[%s2852_s6 + $0x300] sm:$0xff]  ;;  %v656_v60 = vld [vmem:[%s2854_s7 + $0x158] sm:$0xff] }
  0xe0   : > { %v963_v1 = vld [vmem:[%s2852_s6 + $0x6f0] sm:$0xff]  ;;  %1013 = vmatmul.f32.vlgmr.msra.gmra.mxu0 %v613_v63  ;;  %1143 = vmatmul.f32.vlgmr.msra.gmra.mxu2 %v615_v0  ;;  %v961_v9 = vld [vmem:[%s2852_s6 + $0x6e0] sm:$0xff] }
  0xe1   : > { %v899_v6 = vld [vmem:[%s2852_s6 + $0x4f0] sm:$0xff]  ;;  %1387 = vmatpush.msrb.mxu2 %v963_v1  ;;  %1077 = vmatpush.msra.mxu1 %v773_v2  ;;  %v897_v10 = vld [vmem:[%s2852_s6 + $0x4e0] sm:$0xff] }
  0xe2   : > { %v995_v7 = vld [vmem:[%s2852_s6 + $0x7f0] sm:$0xff]  ;;  %1207 = vmatpush.msra.mxu3 %v837_v3  ;;  %1078 = vmatmul.f32.vlgmr.msra.gmra.mxu1 %v614_v4  ;;  %v993_v11 = vld [vmem:[%s2852_s6 + $0x7e0] sm:$0xff]  ;;  %v662_v3 = vld [vmem:[%s2854_s7 + $0x188] sm:$0xff] }
  0xe3   : > { %v931_v8 = vld [vmem:[%s2852_s6 + $0x5f0] sm:$0xff]  ;;  %1208 = vmatmul.f32.vlgmr.msra.gmra.mxu3 %v616_v5  ;;  %1257 = vmatpush.msrb.mxu0 %v899_v6  ;;  %v929_v12 = vld [vmem:[%s2852_s6 + $0x5e0] sm:$0xff]  ;;  %v664_v4 = vld [vmem:[%s2854_s7 + $0x198] sm:$0xff] }
  0xe4   : > { %1452 = vmatpush.msrb.mxu3 %v995_v7  ;;  %1322 = vmatpush.msrb.mxu1 %v931_v8  ;;  %v959_v13 = vld [vmem:[%s2852_s6 + $0x6d0] sm:$0xff]  ;;  %v621_v15 = vld [vmem:[%s2854_s7 + $0x40] sm:$0xff] }
  0xe5   : > { %v895_v14 = vld [vmem:[%s2852_s6 + $0x4d0] sm:$0xff]  ;;  %1388 = vmatpush.msrb.mxu2 %v961_v9  ;;  %1258 = vmatpush.msrb.mxu0 %v897_v10  ;;  %v957_v20 = vld [vmem:[%s2852_s6 + $0x6c0] sm:$0xff] }
  0xe6   : > { %v623_v16 = vld [vmem:[%s2854_s7 + $0x50] sm:$0xff]  ;;  %1453 = vmatpush.msrb.mxu3 %v993_v11  ;;  %1323 = vmatpush.msrb.mxu1 %v929_v12  ;;  %v893_v22 = vld [vmem:[%s2852_s6 + $0x4c0] sm:$0xff]  ;;  %v670_v11 = vld [vmem:[%s2854_s7 + $0x1c8] sm:$0xff] }
  0xe7   : > { %v991_v17 = vld [vmem:[%s2852_s6 + $0x7d0] sm:$0xff]  ;;  %1389 = vmatpush.msrb.mxu2 %v959_v13  ;;  %1259 = vmatpush.msrb.mxu0 %v895_v14  ;;  %v989_v23 = vld [vmem:[%s2852_s6 + $0x7c0] sm:$0xff]  ;;  %v672_v12 = vld [vmem:[%s2854_s7 + $0x1d8] sm:$0xff] }
  0xe8   : > { %v927_v18 = vld [vmem:[%s2852_s6 + $0x5d0] sm:$0xff]  ;;  %1016 = vmatmul.f32.gmra.mxu0 %v621_v15  ;;  %1146 = vmatmul.f32.gmra.mxu2 %v623_v16  ;;  %v925_v24 = vld [vmem:[%s2852_s6 + $0x5c0] sm:$0xff] }
  0xe9   : > { %1454 = vmatpush.msrb.mxu3 %v991_v17  ;;  %1324 = vmatpush.msrb.mxu1 %v927_v18  ;;  %v955_v25 = vld [vmem:[%s2852_s6 + $0x6b0] sm:$0xff]  ;;  %v953_v29 = vld [vmem:[%s2852_s6 + $0x6a0] sm:$0xff] }
  0xea   : > { %1081 = vmatmul.f32.gmra.mxu1 %v622_v19  ;;  %1390 = vmatpush.msrb.mxu2 %v957_v20  ;;  %v891_v26 = vld [vmem:[%s2852_s6 + $0x4b0] sm:$0xff]  ;;  %v889_v30 = vld [vmem:[%s2852_s6 + $0x4a0] sm:$0xff]  ;;  %v678_v19 = vld [vmem:[%s2854_s7 + $0x208] sm:$0xff] }
  0xeb   : > { %1211 = vmatmul.f32.gmra.mxu3 %v624_v21  ;;  %1260 = vmatpush.msrb.mxu0 %v893_v22  ;;  %v987_v27 = vld [vmem:[%s2852_s6 + $0x7b0] sm:$0xff]  ;;  %v629_v31 = vld [vmem:[%s2854_s7 + $0x80] sm:$0xff]  ;;  %v680_v20 = vld [vmem:[%s2854_s7 + $0x218] sm:$0xff] }
  0xec   : > { %v923_v28 = vld [vmem:[%s2852_s6 + $0x5b0] sm:$0xff]  ;;  %1455 = vmatpush.msrb.mxu3 %v989_v23  ;;  %1325 = vmatpush.msrb.mxu1 %v925_v24  ;;  %v985_v33 = vld [vmem:[%s2852_s6 + $0x7a0] sm:$0xff] }
  0xed   : > { %v631_v32 = vld [vmem:[%s2854_s7 + $0x90] sm:$0xff]  ;;  %1391 = vmatpush.msrb.mxu2 %v955_v25  ;;  %1261 = vmatpush.msrb.mxu0 %v891_v26  ;;  %v921_v34 = vld [vmem:[%s2852_s6 + $0x5a0] sm:$0xff] }
  0xee   : > { %1456 = vmatpush.msrb.mxu3 %v987_v27  ;;  %1326 = vmatpush.msrb.mxu1 %v923_v28  ;;  %v951_v37 = vld [vmem:[%s2852_s6 + $0x690] sm:$0xff]  ;;  %v637_v41 = vld [vmem:[%s2854_s7 + $0xc0] sm:$0xff]  ;;  %v686_v27 = vld [vmem:[%s2854_s7 + $0x248] sm:$0xff] }
  0xef   : > { %1392 = vmatpush.msrb.mxu2 %v953_v29  ;;  %1262 = vmatpush.msrb.mxu0 %v889_v30  ;;  %v887_v38 = vld [vmem:[%s2852_s6 + $0x490] sm:$0xff]  ;;  %v949_v45 = vld [vmem:[%s2852_s6 + $0x680] sm:$0xff]  ;;  %v688_v28 = vld [vmem:[%s2854_s7 + $0x258] sm:$0xff] }
  0xf0   : > { %1019 = vmatmul.f32.gmra.mxu0 %v629_v31  ;;  %1149 = vmatmul.f32.gmra.mxu2 %v631_v32  ;;  %v983_v39 = vld [vmem:[%s2852_s6 + $0x790] sm:$0xff]  ;;  %v885_v46 = vld [vmem:[%s2852_s6 + $0x480] sm:$0xff] }
  0xf1   : > { %1457 = vmatpush.msrb.mxu3 %v985_v33  ;;  %1327 = vmatpush.msrb.mxu1 %v921_v34  ;;  %v919_v40 = vld [vmem:[%s2852_s6 + $0x590] sm:$0xff]  ;;  %v981_v47 = vld [vmem:[%s2852_s6 + $0x780] sm:$0xff] }
  0xf2   : > { %1084 = vmatmul.f32.gmra.mxu1 %v630_v35  ;;  %1393 = vmatpush.msrb.mxu2 %v951_v37  ;;  %v639_v42 = vld [vmem:[%s2854_s7 + $0xd0] sm:$0xff]  ;;  %v917_v48 = vld [vmem:[%s2852_s6 + $0x580] sm:$0xff]  ;;  %v694_v35 = vld [vmem:[%s2854_s7 + $0x288] sm:$0xff] }
  0xf3   : > { %1214 = vmatmul.f32.gmra.mxu3 %v632_v36  ;;  %1263 = vmatpush.msrb.mxu0 %v887_v38  ;;  %v645_v49 = vld [vmem:[%s2854_s7 + $0x100] sm:$0xff]  ;;  %v647_v50 = vld [vmem:[%s2854_s7 + $0x110] sm:$0xff]  ;;  %v696_v36 = vld [vmem:[%s2854_s7 + $0x298] sm:$0xff] }
  0xf4   : > { %1458 = vmatpush.msrb.mxu3 %v983_v39  ;;  %1328 = vmatpush.msrb.mxu1 %v919_v40  ;;  %v947_v53 = vld [vmem:[%s2852_s6 + $0x670] sm:$0xff]  ;;  %v653_v57 = vld [vmem:[%s2854_s7 + $0x140] sm:$0xff] }
  0xf5   : > { %1394 = vmatpush.msrb.mxu2 %v949_v45  ;;  %1264 = vmatpush.msrb.mxu0 %v885_v46  ;;  %v883_v54 = vld [vmem:[%s2852_s6 + $0x470] sm:$0xff]  ;;  %v945_v61 = vld [vmem:[%s2852_s6 + $0x660] sm:$0xff] }
  0xf6   : > { %1459 = vmatpush.msrb.mxu3 %v981_v47  ;;  %1329 = vmatpush.msrb.mxu1 %v917_v48  ;;  %v979_v55 = vld [vmem:[%s2852_s6 + $0x770] sm:$0xff]  ;;  %v881_v62 = vld [vmem:[%s2852_s6 + $0x460] sm:$0xff] }
  0xf7   : > { %1395 = vmatpush.msrb.mxu2 %v947_v53  ;;  %v915_v56 = vld [vmem:[%s2852_s6 + $0x570] sm:$0xff]  ;;  %1265 = vmatpush.msrb.mxu0 %v883_v54  ;;  %v977_v63 = vld [vmem:[%s2852_s6 + $0x760] sm:$0xff]  ;;  %v836_v53 = vld [vmem:[%s2852_s6 + $0x2f8] sm:$0xff] }
  0xf8   : > { %1022 = vmatmul.f32.gmra.mxu0 %v637_v41  ;;  %1152 = vmatmul.f32.gmra.mxu2 %v639_v42  ;;  %v655_v58 = vld [vmem:[%s2854_s7 + $0x150] sm:$0xff]  ;;  %v913_v0 = vld [vmem:[%s2852_s6 + $0x560] sm:$0xff]  ;;  %v772_v54 = vld [vmem:[%s2852_s6 + $0xf8] sm:$0xff] }
  0xf9   : > { %1460 = vmatpush.msrb.mxu3 %v979_v55  ;;  %1330 = vmatpush.msrb.mxu1 %v915_v56  ;;  %v661_v1 = vld [vmem:[%s2854_s7 + $0x180] sm:$0xff]  ;;  %v663_v2 = vld [vmem:[%s2854_s7 + $0x190] sm:$0xff]  ;;  %v868_v55 = vld [vmem:[%s2852_s6 + $0x3f8] sm:$0xff] }
  0xfa   : > { %1087 = vmatmul.f32.gmra.mxu1 %v638_v43  ;;  %1396 = vmatpush.msrb.mxu2 %v945_v61  ;;  %v943_v5 = vld [vmem:[%s2852_s6 + $0x650] sm:$0xff]  ;;  %v669_v9 = vld [vmem:[%s2854_s7 + $0x1c0] sm:$0xff]  ;;  %v702_v43 = vld [vmem:[%s2854_s7 + $0x2c8] sm:$0xff] }
  0xfb   : > { %1217 = vmatmul.f32.gmra.mxu3 %v640_v44  ;;  %1266 = vmatpush.msrb.mxu0 %v881_v62  ;;  %v879_v6 = vld [vmem:[%s2852_s6 + $0x450] sm:$0xff]  ;;  %v941_v13 = vld [vmem:[%s2852_s6 + $0x640] sm:$0xff]  ;;  %v704_v44 = vld [vmem:[%s2854_s7 + $0x2d8] sm:$0xff] }
  0xfc   : > { %1461 = vmatpush.msrb.mxu3 %v977_v63  ;;  %1331 = vmatpush.msrb.mxu1 %v913_v0  ;;  %v975_v7 = vld [vmem:[%s2852_s6 + $0x750] sm:$0xff]  ;;  %v877_v14 = vld [vmem:[%s2852_s6 + $0x440] sm:$0xff]  ;;  %v804_v56 = vld [vmem:[%s2852_s6 + $0x1f8] sm:$0xff] }
  0xfd   : > { %1397 = vmatpush.msrb.mxu2 %v943_v5  ;;  %v911_v8 = vld [vmem:[%s2852_s6 + $0x550] sm:$0xff]  ;;  %1267 = vmatpush.msrb.mxu0 %v879_v6  ;;  %v973_v15 = vld [vmem:[%s2852_s6 + $0x740] sm:$0xff]  ;;  %v834_v61 = vld [vmem:[%s2852_s6 + $0x2e8] sm:$0xff] }
  0xfe   : > { %1462 = vmatpush.msrb.mxu3 %v975_v7  ;;  %v671_v10 = vld [vmem:[%s2854_s7 + $0x1d0] sm:$0xff]  ;;  %1332 = vmatpush.msrb.mxu1 %v911_v8  ;;  %v909_v16 = vld [vmem:[%s2852_s6 + $0x540] sm:$0xff]  ;;  %v770_v62 = vld [vmem:[%s2852_s6 + $0xe8] sm:$0xff] }
  0xff   : > { %1398 = vmatpush.msrb.mxu2 %v941_v13  ;;  %1268 = vmatpush.msrb.mxu0 %v877_v14  ;;  %v677_v17 = vld [vmem:[%s2854_s7 + $0x200] sm:$0xff]  ;;  %v679_v18 = vld [vmem:[%s2854_s7 + $0x210] sm:$0xff]  ;;  %v866_v63 = vld [vmem:[%s2852_s6 + $0x3e8] sm:$0xff] }
 0x100   : > { %1025 = vmatmul.f32.gmra.mxu0 %v645_v49  ;;  %1155 = vmatmul.f32.gmra.mxu2 %v647_v50  ;;  %v939_v21 = vld [vmem:[%s2852_s6 + $0x630] sm:$0xff]  ;;  %v685_v25 = vld [vmem:[%s2854_s7 + $0x240] sm:$0xff]  ;;  %v802_v0 = vld [vmem:[%s2852_s6 + $0x1e8] sm:$0xff] }
 0x101   : > { %1463 = vmatpush.msrb.mxu3 %v973_v15  ;;  %1333 = vmatpush.msrb.mxu1 %v909_v16  ;;  %v875_v22 = vld [vmem:[%s2852_s6 + $0x430] sm:$0xff]  ;;  %v937_v29 = vld [vmem:[%s2852_s6 + $0x620] sm:$0xff]  ;;  %v832_v5 = vld [vmem:[%s2852_s6 + $0x2d8] sm:$0xff] }
 0x102   : > { %1090 = vmatmul.f32.gmra.mxu1 %v646_v51  ;;  %1399 = vmatpush.msrb.mxu2 %v939_v21  ;;  %v971_v23 = vld [vmem:[%s2852_s6 + $0x730] sm:$0xff]  ;;  %v873_v30 = vld [vmem:[%s2852_s6 + $0x420] sm:$0xff]  ;;  %v710_v51 = vld [vmem:[%s2854_s7 + $0x308] sm:$0xff] }
 0x103   : > { %1220 = vmatmul.f32.gmra.mxu3 %v648_v52  ;;  %v907_v24 = vld [vmem:[%s2852_s6 + $0x530] sm:$0xff]  ;;  %1269 = vmatpush.msrb.mxu0 %v875_v22  ;;  %v969_v31 = vld [vmem:[%s2852_s6 + $0x720] sm:$0xff]  ;;  %v712_v52 = vld [vmem:[%s2854_s7 + $0x318] sm:$0xff] }
 0x104   : > { %1464 = vmatpush.msrb.mxu3 %v971_v23  ;;  %v687_v26 = vld [vmem:[%s2854_s7 + $0x250] sm:$0xff]  ;;  %1334 = vmatpush.msrb.mxu1 %v907_v24  ;;  %v905_v32 = vld [vmem:[%s2852_s6 + $0x520] sm:$0xff]  ;;  %v768_v6 = vld [vmem:[%s2852_s6 + $0xd8] sm:$0xff] }
 0x105   : > { %1400 = vmatpush.msrb.mxu2 %v937_v29  ;;  %1270 = vmatpush.msrb.mxu0 %v873_v30  ;;  %v693_v33 = vld [vmem:[%s2854_s7 + $0x280] sm:$0xff]  ;;  %v695_v34 = vld [vmem:[%s2854_s7 + $0x290] sm:$0xff]  ;;  %v864_v7 = vld [vmem:[%s2852_s6 + $0x3d8] sm:$0xff] }
 0x106   : > { %1465 = vmatpush.msrb.mxu3 %v969_v31  ;;  %1335 = vmatpush.msrb.mxu1 %v905_v32  ;;  %v935_v37 = vld [vmem:[%s2852_s6 + $0x610] sm:$0xff]  ;;  %v701_v41 = vld [vmem:[%s2854_s7 + $0x2c0] sm:$0xff]  ;;  %v800_v8 = vld [vmem:[%s2852_s6 + $0x1d8] sm:$0xff] }
 0x107   : > { %1401 = vmatpush.msrb.mxu2 %v935_v37  ;;  %v871_v38 = vld [vmem:[%s2852_s6 + $0x410] sm:$0xff]  ;;  %v933_v45 = vld [vmem:[%s2852_s6 + $0x600] sm:$0xff]  ;;  %v830_v13 = vld [vmem:[%s2852_s6 + $0x2c8] sm:$0xff] }
 0x108   : > { %1028 = vmatmul.f32.gmra.mxu0 %v653_v57  ;;  %1158 = vmatmul.f32.gmra.mxu2 %v655_v58  ;;  %v967_v39 = vld [vmem:[%s2852_s6 + $0x710] sm:$0xff]  ;;  %v869_v46 = vld [vmem:[%s2852_s6 + $0x400] sm:$0xff]  ;;  %v766_v14 = vld [vmem:[%s2852_s6 + $0xc8] sm:$0xff] }
 0x109   : > { %v903_v40 = vld [vmem:[%s2852_s6 + $0x510] sm:$0xff]  ;;  %1271 = vmatpush.msrb.mxu0 %v871_v38  ;;  %1466 = vmatpush.msrb.mxu3 %v967_v39  ;;  %v965_v47 = vld [vmem:[%s2852_s6 + $0x700] sm:$0xff]  ;;  %v862_v15 = vld [vmem:[%s2852_s6 + $0x3c8] sm:$0xff] }
 0x10a   : > { %1093 = vmatmul.f32.gmra.mxu1 %v654_v59  ;;  %v703_v42 = vld [vmem:[%s2854_s7 + $0x2d0] sm:$0xff]  ;;  %1402 = vmatpush.msrb.mxu2 %v933_v45  ;;  %v901_v48 = vld [vmem:[%s2852_s6 + $0x500] sm:$0xff]  ;;  %v718_v59 = vld [vmem:[%s2854_s7 + $0x348] sm:$0xff] }
 0x10b   : > { %1223 = vmatmul.f32.gmra.mxu3 %v656_v60  ;;  %1336 = vmatpush.msrb.mxu1 %v903_v40  ;;  %v709_v49 = vld [vmem:[%s2854_s7 + $0x300] sm:$0xff]  ;;  %v711_v50 = vld [vmem:[%s2854_s7 + $0x310] sm:$0xff]  ;;  %v720_v60 = vld [vmem:[%s2854_s7 + $0x358] sm:$0xff] }
 0x10c   : > { %1272 = vmatpush.msrb.mxu0 %v869_v46  ;;  %1467 = vmatpush.msrb.mxu3 %v965_v47  ;;  %v717_v57 = vld [vmem:[%s2854_s7 + $0x340] sm:$0xff]  ;;  %v719_v58 = vld [vmem:[%s2854_s7 + $0x350] sm:$0xff]  ;;  %v798_v16 = vld [vmem:[%s2852_s6 + $0x1c8] sm:$0xff] }
 0x10d   : > { %1337 = vmatpush.msrb.mxu1 %v901_v48  ;;  %1647 = vmatpush.msra.mxu2 %v836_v53  ;;  %v618_v21 = vld [vmem:[%s2854_s7 + $0x28] sm:$0xff]  ;;  %v620_v22 = vld [vmem:[%s2854_s7 + $0x38] sm:$0xff]  ;;  %v625_v31 = vld [vmem:[%s2854_s7 + $0x60] sm:$0xff] }
 0x10e   : > { %1517 = vmatpush.msra.mxu0 %v772_v54  ;;  %1712 = vmatpush.msra.mxu3 %v868_v55  ;;  %v828_v23 = vld [vmem:[%s2852_s6 + $0x2b8] sm:$0xff]  ;;  %v627_v32 = vld [vmem:[%s2854_s7 + $0x70] sm:$0xff]  ;;  %v826_v38 = vld [vmem:[%s2852_s6 + $0x2a8] sm:$0xff] }
 0x10f   : > { %1582 = vmatpush.msra.mxu1 %v804_v56  ;;  %1648 = vmatpush.msra.mxu2 %v834_v61  ;;  %v796_v29 = vld [vmem:[%s2852_s6 + $0x1b8] sm:$0xff]  ;;  %v633_v46 = vld [vmem:[%s2854_s7 + $0xa0] sm:$0xff]  ;;  %v635_v47 = vld [vmem:[%s2854_s7 + $0xb0] sm:$0xff] }
 0x110   : > { %1031 = vmatmul.f32.gmra.mxu0 %v661_v1  ;;  %1161 = vmatmul.f32.gmra.mxu2 %v663_v2  ;;  %v725_v1 = vld [vmem:[%s2854_s7 + $0x380] sm:$0xff]  ;;  %v727_v2 = vld [vmem:[%s2854_s7 + $0x390] sm:$0xff]  ;;  %v628_v37 = vld [vmem:[%s2854_s7 + $0x78] sm:$0xff] }
 0x111   : > { %1518 = vmatpush.msra.mxu0 %v770_v62  ;;  %1713 = vmatpush.msra.mxu3 %v866_v63  ;;  %v824_v53 = vld [vmem:[%s2852_s6 + $0x298] sm:$0xff]  ;;  %v641_v61 = vld [vmem:[%s2854_s7 + $0xe0] sm:$0xff]  ;;  %v643_v62 = vld [vmem:[%s2854_s7 + $0xf0] sm:$0xff] }
 0x112   : > { %1096 = vmatmul.f32.gmra.mxu1 %v662_v3  ;;  %v726_v3 = vld [vmem:[%s2854_s7 + $0x388] sm:$0xff]  ;;  %1649 = vmatpush.msra.mxu2 %v832_v5  ;;  %v760_v56 = vld [vmem:[%s2852_s6 + $0x98] sm:$0xff] }
 0x113   : > { %1226 = vmatmul.f32.gmra.mxu3 %v664_v4  ;;  %1583 = vmatpush.msra.mxu1 %v802_v0  ;;  %v728_v4 = vld [vmem:[%s2854_s7 + $0x398] sm:$0xff] }
 0x114   : > { %1519 = vmatpush.msra.mxu0 %v768_v6  ;;  %1714 = vmatpush.msra.mxu3 %v864_v7  ;;  %v758_v7 = vld [vmem:[%s2852_s6 + $0x88] sm:$0xff] }
 0x115   : > { %1584 = vmatpush.msra.mxu1 %v800_v8  ;;  %1650 = vmatpush.msra.mxu2 %v830_v13  ;;  %v854_v8 = vld [vmem:[%s2852_s6 + $0x388] sm:$0xff]  ;;  %v651_v13 = vld [vmem:[%s2854_s7 + $0x130] sm:$0xff] }
 0x116   : > { %1520 = vmatpush.msra.mxu0 %v766_v14  ;;  %1715 = vmatpush.msra.mxu3 %v862_v15 }
 0x117   : > { %1585 = vmatpush.msra.mxu1 %v798_v16  ;;  %1651 = vmatpush.msra.mxu2 %v828_v23  ;;  %v852_v23 = vld [vmem:[%s2852_s6 + $0x378] sm:$0xff] }
 0x118   : > { %1034 = vmatmul.f32.gmra.mxu0 %v669_v9  ;;  %1164 = vmatmul.f32.gmra.mxu2 %v671_v10  ;;  %v733_v9 = vld [vmem:[%s2854_s7 + $0x3c0] sm:$0xff]  ;;  %v735_v10 = vld [vmem:[%s2854_s7 + $0x3d0] sm:$0xff] }
 0x119   : > { %1586 = vmatpush.msra.mxu1 %v796_v29  ;;  %1652 = vmatpush.msra.mxu2 %v826_v38  ;;  %v754_v38 = vld [vmem:[%s2852_s6 + $0x68] sm:$0xff] }
 0x11a   : > { %1099 = vmatmul.f32.gmra.mxu1 %v670_v11  ;;  %v734_v11 = vld [vmem:[%s2854_s7 + $0x3c8] sm:$0xff] }
 0x11b   : > { %1229 = vmatmul.f32.gmra.mxu3 %v672_v12  ;;  %v736_v12 = vld [vmem:[%s2854_s7 + $0x3d8] sm:$0xff]  ;;  %1653 = vmatpush.msra.mxu2 %v824_v53 }
 0x120   : > { %1037 = vmatmul.f32.gmra.mxu0 %v677_v17  ;;  %1167 = vmatmul.f32.gmra.mxu2 %v679_v18  ;;  %v617_v18 = vld [vmem:[%s2854_s7 + $0x20] sm:$0xff] }
 0x122   : > { %1102 = vmatmul.f32.gmra.mxu1 %v678_v19  ;;  %v619_v19 = vld [vmem:[%s2854_s7 + $0x30] sm:$0xff] }
 0x123   : > { %1232 = vmatmul.f32.gmra.mxu3 %v680_v20 }
 0x128   : > { %1040 = vmatmul.f32.gmra.mxu0 %v685_v25  ;;  %1170 = vmatmul.f32.gmra.mxu2 %v687_v26  ;;  %v764_v26 = vld [vmem:[%s2852_s6 + $0xb8] sm:$0xff] }
 0x129   : > { %1521 = vmatpush.msra.mxu0 %v764_v26 }
 0x12a   : > { %1105 = vmatmul.f32.gmra.mxu1 %v686_v27  ;;  %v860_v27 = vld [vmem:[%s2852_s6 + $0x3b8] sm:$0xff] }
 0x12b   : > { %1235 = vmatmul.f32.gmra.mxu3 %v688_v28 }
 0x12c   : > { %1716 = vmatpush.msra.mxu3 %v860_v27  ;;  %v657_v27 = vld [vmem:[%s2854_s7 + $0x160] sm:$0xff] }
 0x130   : > { %1043 = vmatmul.f32.gmra.mxu0 %v693_v33  ;;  %1173 = vmatmul.f32.gmra.mxu2 %v695_v34 }
 0x132   : > { %1108 = vmatmul.f32.gmra.mxu1 %v694_v35 }
 0x133   : > { %1238 = vmatmul.f32.gmra.mxu3 %v696_v36  ;;  %v626_v36 = vld [vmem:[%s2854_s7 + $0x68] sm:$0xff] }
 0x138   : > { %1046 = vmatmul.f32.gmra.mxu0 %v701_v41  ;;  %1176 = vmatmul.f32.gmra.mxu2 %v703_v42  ;;  %v762_v41 = vld [vmem:[%s2852_s6 + $0xa8] sm:$0xff] }
 0x139   : > { %v858_v42 = vld [vmem:[%s2852_s6 + $0x3a8] sm:$0xff]  ;;  %1522 = vmatpush.msra.mxu0 %v762_v41 }
 0x13a   : > { %1111 = vmatmul.f32.gmra.mxu1 %v702_v43  ;;  %1717 = vmatpush.msra.mxu3 %v858_v42  ;;  %v786_v41 = vld [vmem:[%s2852_s6 + $0x168] sm:$0xff] }
 0x13b   : > { %1241 = vmatmul.f32.gmra.mxu3 %v704_v44  ;;  %v794_v44 = vld [vmem:[%s2852_s6 + $0x1a8] sm:$0xff]  ;;  %1523 = vmatpush.msra.mxu0 %v760_v56 }
 0x13c   : > { %1587 = vmatpush.msra.mxu1 %v794_v44  ;;  %v667_v44 = vld [vmem:[%s2854_s7 + $0x1b0] sm:$0xff] }
 0x13d   : > { %1524 = vmatpush.msra.mxu0 %v758_v7  ;;  %v846_v7 = vld [vmem:[%s2852_s6 + $0x348] sm:$0xff] }
 0x140   : > { %1049 = vmatmul.f32.gmra.mxu0 %v709_v49  ;;  %1179 = vmatmul.f32.gmra.mxu2 %v711_v50 }
 0x142   : > { %1114 = vmatmul.f32.gmra.mxu1 %v710_v51  ;;  %v634_v51 = vld [vmem:[%s2854_s7 + $0xa8] sm:$0xff] }
 0x143   : > { %1244 = vmatmul.f32.gmra.mxu3 %v712_v52  ;;  %v636_v52 = vld [vmem:[%s2854_s7 + $0xb8] sm:$0xff] }
 0x148   : > { %1052 = vmatmul.f32.gmra.mxu0 %v717_v57  ;;  %1182 = vmatmul.f32.gmra.mxu2 %v719_v58  ;;  %v856_v57 = vld [vmem:[%s2852_s6 + $0x398] sm:$0xff] }
 0x149   : > { %1718 = vmatpush.msra.mxu3 %v856_v57  ;;  %v784_v57 = vld [vmem:[%s2852_s6 + $0x158] sm:$0xff] }
 0x14a   : > { %1117 = vmatmul.f32.gmra.mxu1 %v718_v59  ;;  %v792_v59 = vld [vmem:[%s2852_s6 + $0x198] sm:$0xff] }
 0x14b   : > { %1247 = vmatmul.f32.gmra.mxu3 %v720_v60  ;;  %1588 = vmatpush.msra.mxu1 %v792_v59  ;;  %v673_v59 = vld [vmem:[%s2854_s7 + $0x1e0] sm:$0xff] }
 0x14c   : > { %1719 = vmatpush.msra.mxu3 %v854_v8 }
 0x14e   : > { %1720 = vmatpush.msra.mxu3 %v852_v23  ;;  %v844_v23 = vld [vmem:[%s2852_s6 + $0x338] sm:$0xff] }
 0x150   : > { %1055 = vmatmul.f32.gmra.mxu0 %v725_v1  ;;  %1185 = vmatmul.f32.gmra.mxu2 %v727_v2  ;;  %v642_v2 = vld [vmem:[%s2854_s7 + $0xe8] sm:$0xff] }
 0x152   : > { %1120 = vmatmul.f32.gmra.mxu1 %v726_v3  ;;  %v644_v3 = vld [vmem:[%s2854_s7 + $0xf8] sm:$0xff] }
 0x153   : > { %1250 = vmatmul.f32.gmra.mxu3 %v728_v4  ;;  %v822_v4 = vld [vmem:[%s2852_s6 + $0x288] sm:$0xff] }
 0x154   : > { %1654 = vmatpush.msra.mxu2 %v822_v4 }
 0x158   : > { %1058 = vmatmul.f32.gmra.mxu0 %v733_v9  ;;  %1188 = vmatmul.f32.gmra.mxu2 %v735_v10  ;;  %v790_v10 = vld [vmem:[%s2852_s6 + $0x188] sm:$0xff] }
 0x159   : > { %1589 = vmatpush.msra.mxu1 %v790_v10 }
 0x15a   : > { %1123 = vmatmul.f32.gmra.mxu1 %v734_v11 }
 0x15b   : > { %1253 = vmatmul.f32.gmra.mxu3 %v736_v12  ;;  %v649_v12 = vld [vmem:[%s2854_s7 + $0x120] sm:$0xff] }
 0x15d   : > { %v1014_v17 = vpop.f32.mrf.mxu0 }
 0x15f   : > { %v1079_v20 = vpop.f32.mrf.mxu1 }
 0x160   : > { %1273 = vmatmul.f32.vlgmr.msrb.gmra.mxu0 %v617_v18  ;;  %1403 = vmatmul.f32.vlgmr.msrb.gmra.mxu2 %v619_v19  ;;  %v1080_v24 = vadd.f32 %v1079_v20, %v1014_v17  ;;  %v650_v17 = vld [vmem:[%s2854_s7 + $0x128] sm:$0xff]  ;;  %v652_v18 = vld [vmem:[%s2854_s7 + $0x138] sm:$0xff] }
 0x161   : > { %v820_v19 = vld [vmem:[%s2852_s6 + $0x278] sm:$0xff] }
 0x162   : > { %1338 = vmatmul.f32.vlgmr.msrb.gmra.mxu1 %v618_v21  ;;  %1655 = vmatpush.msra.mxu2 %v820_v19  ;;  %v812_v19 = vld [vmem:[%s2852_s6 + $0x238] sm:$0xff] }
 0x163   : > { %1468 = vmatmul.f32.vlgmr.msrb.gmra.mxu3 %v620_v22  ;;  %v1144_v25 = vpop.f32.mrf.mxu2  ;;  %v756_v22 = vld [vmem:[%s2852_s6 + $0x78] sm:$0xff] }
 0x164   : > { %v1145_v28 = vadd.f32 %v1144_v25, %v1080_v24  ;;  %1525 = vmatpush.msra.mxu0 %v756_v22  ;;  %v788_v25 = vld [vmem:[%s2852_s6 + $0x178] sm:$0xff] }
 0x165   : > { %v1017_v30 = vpop.f32.mrf.mxu0  ;;  %1590 = vmatpush.msra.mxu1 %v788_v25  ;;  %v748_v22 = vld [vmem:[%s2852_s6 + $0x38] sm:$0xff] }
 0x166   : > { %v1209_v33 = vpop.f32.mrf.mxu3  ;;  %1526 = vmatpush.msra.mxu0 %v754_v38  ;;  %v780_v25 = vld [vmem:[%s2852_s6 + $0x138] sm:$0xff] }
 0x167   : > { %v3075_v34 = vadd.f32 %v1209_v33, %v1145_v28  ;;  %v1082_v35 = vpop.f32.mrf.mxu1  ;;  %v659_v28 = vld [vmem:[%s2854_s7 + $0x170] sm:$0xff]  ;;  %v660_v33 = vld [vmem:[%s2854_s7 + $0x178] sm:$0xff]  ;;  %1591 = vmatpush.msra.mxu1 %v786_v41 }
 0x168   : > { %1276 = vmatmul.f32.gmra.mxu0 %v625_v31  ;;  %1406 = vmatmul.f32.gmra.mxu2 %v627_v32  ;;  %v1083_v39 = vadd.f32 %v1082_v35, %v1017_v30  ;;  %v658_v32 = vld [vmem:[%s2854_s7 + $0x168] sm:$0xff] }
 0x169   : > { %v818_v35 = vld [vmem:[%s2852_s6 + $0x268] sm:$0xff]  ;;  %1592 = vmatpush.msra.mxu1 %v784_v57  ;;  %v840_v57 = vld [vmem:[%s2852_s6 + $0x318] sm:$0xff] }
 0x16a   : > { %1341 = vmatmul.f32.gmra.mxu1 %v626_v36  ;;  %1656 = vmatpush.msra.mxu2 %v818_v35  ;;  %v692_v35 = vld [vmem:[%s2854_s7 + $0x278] sm:$0xff] }
 0x16b   : > { %1471 = vmatmul.f32.gmra.mxu3 %v628_v37  ;;  %v1147_v40 = vpop.f32.mrf.mxu2 }
 0x16c   : > { %v1148_v43 = vadd.f32 %v1147_v40, %v1083_v39  ;;  %v850_v39 = vld [vmem:[%s2852_s6 + $0x368] sm:$0xff] }
 0x16d   : > { %v1020_v45 = vpop.f32.mrf.mxu0  ;;  %1721 = vmatpush.msra.mxu3 %v850_v39  ;;  %v746_v39 = vld [vmem:[%s2852_s6 + $0x28] sm:$0xff] }
 0x16e   : > { %v1212_v48 = vpop.f32.mrf.mxu3 }
 0x16f   : > { %v3085_v49 = vadd.f32 %v1212_v48, %v1148_v43  ;;  %v1085_v50 = vpop.f32.mrf.mxu1  ;;  %v665_v43 = vld [vmem:[%s2854_s7 + $0x1a0] sm:$0xff]  ;;  %v666_v48 = vld [vmem:[%s2854_s7 + $0x1a8] sm:$0xff] }
 0x170   : > { %1279 = vmatmul.f32.gmra.mxu0 %v633_v46  ;;  %1409 = vmatmul.f32.gmra.mxu2 %v635_v47  ;;  %v1086_v54 = vadd.f32 %v1085_v50, %v1020_v45  ;;  %v668_v50 = vld [vmem:[%s2854_s7 + $0x1b8] sm:$0xff] }
 0x172   : > { %1344 = vmatmul.f32.gmra.mxu1 %v634_v51  ;;  %v816_v51 = vld [vmem:[%s2852_s6 + $0x258] sm:$0xff] }
 0x173   : > { %1474 = vmatmul.f32.gmra.mxu3 %v636_v52  ;;  %v1150_v55 = vpop.f32.mrf.mxu2  ;;  %1657 = vmatpush.msra.mxu2 %v816_v51  ;;  %v698_v51 = vld [vmem:[%s2854_s7 + $0x2a8] sm:$0xff] }
 0x174   : > { %v1151_v58 = vadd.f32 %v1150_v55, %v1086_v54  ;;  %v752_v54 = vld [vmem:[%s2852_s6 + $0x58] sm:$0xff] }
 0x175   : > { %v1023_v60 = vpop.f32.mrf.mxu0  ;;  %v848_v55 = vld [vmem:[%s2852_s6 + $0x358] sm:$0xff]  ;;  %1527 = vmatpush.msra.mxu0 %v752_v54 }
 0x176   : > { %v1215_v63 = vpop.f32.mrf.mxu3  ;;  %1722 = vmatpush.msra.mxu3 %v848_v55 }
 0x177   : > { %v3095_v0 = vadd.f32 %v1215_v63, %v1151_v58  ;;  %v1088_v1 = vpop.f32.mrf.mxu1 }
 0x178   : > { %1282 = vmatmul.f32.gmra.mxu0 %v641_v61  ;;  %1412 = vmatmul.f32.gmra.mxu2 %v643_v62  ;;  %v1089_v5 = vadd.f32 %v1088_v1, %v1023_v60  ;;  %v675_v60 = vld [vmem:[%s2854_s7 + $0x1f0] sm:$0xff]  ;;  %v674_v1 = vld [vmem:[%s2854_s7 + $0x1e8] sm:$0xff] }
 0x179   : > { %1723 = vmatpush.msra.mxu3 %v846_v7 }
 0x17a   : > { %1347 = vmatmul.f32.gmra.mxu1 %v642_v2  ;;  %v676_v2 = vld [vmem:[%s2854_s7 + $0x1f8] sm:$0xff] }
 0x17b   : > { %1477 = vmatmul.f32.gmra.mxu3 %v644_v3  ;;  %v1153_v6 = vpop.f32.mrf.mxu2  ;;  %v814_v3 = vld [vmem:[%s2852_s6 + $0x248] sm:$0xff] }
 0x17c   : > { %v1154_v9 = vadd.f32 %v1153_v6, %v1089_v5  ;;  %1658 = vmatpush.msra.mxu2 %v814_v3  ;;  %v750_v6 = vld [vmem:[%s2852_s6 + $0x48] sm:$0xff]  ;;  %1724 = vmatpush.msra.mxu3 %v844_v23  ;;  %v964_v23 = vld [vmem:[%s2852_s6 + $0x6f8] sm:$0xff] }
 0x17d   : > { %v1026_v11 = vpop.f32.mrf.mxu0  ;;  %1528 = vmatpush.msra.mxu0 %v750_v6  ;;  %v806_v6 = vld [vmem:[%s2852_s6 + $0x208] sm:$0xff] }
 0x17e   : > { %v1218_v14 = vpop.f32.mrf.mxu3  ;;  %1659 = vmatpush.msra.mxu2 %v812_v19 }
 0x17f   : > { %v3105_v15 = vadd.f32 %v1218_v14, %v1154_v9  ;;  %v1091_v16 = vpop.f32.mrf.mxu1  ;;  %v782_v9 = vld [vmem:[%s2852_s6 + $0x148] sm:$0xff]  ;;  %1529 = vmatpush.msra.mxu0 %v748_v22  ;;  %v716_v22 = vld [vmem:[%s2854_s7 + $0x338] sm:$0xff] }
 0x180   : > { %1285 = vmatmul.f32.gmra.mxu0 %v649_v12  ;;  %1415 = vmatmul.f32.gmra.mxu2 %v651_v13  ;;  %v1092_v20 = vadd.f32 %v1091_v16, %v1026_v11  ;;  %v681_v11 = vld [vmem:[%s2854_s7 + $0x220] sm:$0xff]  ;;  %v683_v12 = vld [vmem:[%s2854_s7 + $0x230] sm:$0xff] }
 0x181   : > { %1593 = vmatpush.msra.mxu1 %v782_v9  ;;  %1530 = vmatpush.msra.mxu0 %v746_v39  ;;  %v742_v9 = vld [vmem:[%s2852_s6 + $0x8] sm:$0xff] }
 0x182   : > { %1350 = vmatmul.f32.gmra.mxu1 %v650_v17  ;;  %v682_v17 = vld [vmem:[%s2854_s7 + $0x228] sm:$0xff] }
 0x183   : > { %1480 = vmatmul.f32.gmra.mxu3 %v652_v18  ;;  %v1156_v21 = vpop.f32.mrf.mxu2  ;;  %v684_v18 = vld [vmem:[%s2854_s7 + $0x238] sm:$0xff]  ;;  %1594 = vmatpush.msra.mxu1 %v780_v25  ;;  %v722_v39 = vld [vmem:[%s2854_s7 + $0x368] sm:$0xff] }
 0x184   : > { %v1157_v24 = vadd.f32 %v1156_v21, %v1092_v20 }
 0x185   : > { %v1029_v26 = vpop.f32.mrf.mxu0 }
 0x186   : > { %v1221_v29 = vpop.f32.mrf.mxu3 }
 0x187   : > { %v3115_v30 = vadd.f32 %v1221_v29, %v1157_v24  ;;  %v1094_v31 = vpop.f32.mrf.mxu1 }
 0x188   : > { %1288 = vmatmul.f32.gmra.mxu0 %v657_v27  ;;  %1418 = vmatmul.f32.gmra.mxu2 %v659_v28  ;;  %v1095_v36 = vadd.f32 %v1094_v31, %v1029_v26  ;;  %v689_v27 = vld [vmem:[%s2854_s7 + $0x260] sm:$0xff]  ;;  %v691_v28 = vld [vmem:[%s2854_s7 + $0x270] sm:$0xff] }
 0x18a   : > { %1353 = vmatmul.f32.gmra.mxu1 %v658_v32 }
 0x18b   : > { %1483 = vmatmul.f32.gmra.mxu3 %v660_v33  ;;  %v1159_v37 = vpop.f32.mrf.mxu2  ;;  %v690_v33 = vld [vmem:[%s2854_s7 + $0x268] sm:$0xff] }
 0x18c   : > { %v1160_v40 = vadd.f32 %v1159_v37, %v1095_v36  ;;  %v810_v36 = vld [vmem:[%s2852_s6 + $0x228] sm:$0xff] }
 0x18d   : > { %v1032_v42 = vpop.f32.mrf.mxu0  ;;  %1660 = vmatpush.msra.mxu2 %v810_v36 }
 0x18e   : > { %v1224_v45 = vpop.f32.mrf.mxu3 }
 0x18f   : > { %v3125_v46 = vadd.f32 %v1224_v45, %v1160_v40  ;;  %v1097_v47 = vpop.f32.mrf.mxu1  ;;  %v842_v40 = vld [vmem:[%s2852_s6 + $0x328] sm:$0xff]  ;;  %v699_v45 = vld [vmem:[%s2854_s7 + $0x2b0] sm:$0xff] }
 0x190   : > { %1291 = vmatmul.f32.gmra.mxu0 %v665_v43  ;;  %1421 = vmatmul.f32.gmra.mxu2 %v667_v44  ;;  %v1098_v52 = vadd.f32 %v1097_v47, %v1032_v42  ;;  %v778_v42 = vld [vmem:[%s2852_s6 + $0x128] sm:$0xff]  ;;  %v697_v44 = vld [vmem:[%s2854_s7 + $0x2a0] sm:$0xff] }
 0x191   : > { %1725 = vmatpush.msra.mxu3 %v842_v40  ;;  %1595 = vmatpush.msra.mxu1 %v778_v42  ;;  %v724_v40 = vld [vmem:[%s2854_s7 + $0x378] sm:$0xff] }
 0x192   : > { %1356 = vmatmul.f32.gmra.mxu1 %v666_v48 }
 0x193   : > { %1486 = vmatmul.f32.gmra.mxu3 %v668_v50  ;;  %v1162_v53 = vpop.f32.mrf.mxu2 }
 0x194   : > { %v1163_v56 = vadd.f32 %v1162_v53, %v1098_v52  ;;  %v700_v52 = vld [vmem:[%s2854_s7 + $0x2b8] sm:$0xff]  ;;  %1726 = vmatpush.msra.mxu3 %v840_v57  ;;  %v730_v57 = vld [vmem:[%s2854_s7 + $0x3a8] sm:$0xff] }
 0x195   : > { %v1035_v58 = vpop.f32.mrf.mxu0  ;;  %v808_v53 = vld [vmem:[%s2852_s6 + $0x218] sm:$0xff] }
 0x196   : > { %v1227_v61 = vpop.f32.mrf.mxu3  ;;  %1661 = vmatpush.msra.mxu2 %v808_v53  ;;  %v731_v53 = vld [vmem:[%s2854_s7 + $0x3b0] sm:$0xff] }
 0x197   : > { %v3135_v62 = vadd.f32 %v1227_v61, %v1163_v56  ;;  %v1100_v63 = vpop.f32.mrf.mxu1  ;;  %v744_v56 = vld [vmem:[%s2852_s6 + $0x18] sm:$0xff]  ;;  %v705_v61 = vld [vmem:[%s2854_s7 + $0x2e0] sm:$0xff] }
 0x198   : > { %1294 = vmatmul.f32.gmra.mxu0 %v673_v59  ;;  %1424 = vmatmul.f32.gmra.mxu2 %v675_v60  ;;  %v1101_v4 = vadd.f32 %v1100_v63, %v1035_v58  ;;  %v776_v59 = vld [vmem:[%s2852_s6 + $0x118] sm:$0xff]  ;;  %v707_v63 = vld [vmem:[%s2854_s7 + $0x2f0] sm:$0xff] }
 0x199   : > { %1531 = vmatpush.msra.mxu0 %v744_v56  ;;  %1596 = vmatpush.msra.mxu1 %v776_v59 }
 0x19a   : > { %1359 = vmatmul.f32.gmra.mxu1 %v674_v1  ;;  %1662 = vmatpush.msra.mxu2 %v806_v6  ;;  %v737_v6 = vld [vmem:[%s2854_s7 + $0x3e0] sm:$0xff] }
 0x19b   : > { %1489 = vmatmul.f32.gmra.mxu3 %v676_v2  ;;  %v1165_v5 = vpop.f32.mrf.mxu2  ;;  %1532 = vmatpush.msra.mxu0 %v742_v9 }
 0x19c   : > { %v1166_v8 = vadd.f32 %v1165_v5, %v1101_v4  ;;  %v706_v4 = vld [vmem:[%s2854_s7 + $0x2e8] sm:$0xff]  ;;  %v708_v5 = vld [vmem:[%s2854_s7 + $0x2f8] sm:$0xff]  ;;  %1907 = vmatpush.msrb.mxu2 %v964_v23 }
 0x19d   : > { %v1038_v10 = vpop.f32.mrf.mxu0 }
 0x19e   : > { %v1230_v13 = vpop.f32.mrf.mxu3 }
 0x19f   : > { %v3145_v14 = vadd.f32 %v1230_v13, %v1166_v8  ;;  %v1103_v16 = vpop.f32.mrf.mxu1 }
 0x1a0   : > { %1297 = vmatmul.f32.gmra.mxu0 %v681_v11  ;;  %1427 = vmatmul.f32.gmra.mxu2 %v683_v12  ;;  %v1104_v20 = vadd.f32 %v1103_v16, %v1038_v10  ;;  %v838_v10 = vld [vmem:[%s2852_s6 + $0x308] sm:$0xff]  ;;  %v713_v16 = vld [vmem:[%s2854_s7 + $0x320] sm:$0xff] }
 0x1a1   : > { %1727 = vmatpush.msra.mxu3 %v838_v10  ;;  %v774_v12 = vld [vmem:[%s2852_s6 + $0x108] sm:$0xff] }
 0x1a2   : > { %1362 = vmatmul.f32.gmra.mxu1 %v682_v17  ;;  %v715_v17 = vld [vmem:[%s2854_s7 + $0x330] sm:$0xff] }
 0x1a3   : > { %1492 = vmatmul.f32.gmra.mxu3 %v684_v18  ;;  %v1168_v21 = vpop.f32.mrf.mxu2  ;;  %1597 = vmatpush.msra.mxu1 %v774_v12  ;;  %v740_v12 = vld [vmem:[%s2854_s7 + $0x3f8] sm:$0xff] }
 0x1a4   : > { %v1169_v24 = vadd.f32 %v1168_v21, %v1104_v20  ;;  %v714_v21 = vld [vmem:[%s2854_s7 + $0x328] sm:$0xff] }
 0x1a5   : > { %v1041_v26 = vpop.f32.mrf.mxu0 }
 0x1a6   : > { %v1233_v29 = vpop.f32.mrf.mxu3 }
 0x1a7   : > { %v3155_v31 = vadd.f32 %v1233_v29, %v1169_v24  ;;  %v1106_v32 = vpop.f32.mrf.mxu1  ;;  %v932_v29 = vld [vmem:[%s2852_s6 + $0x5f8] sm:$0xff] }
 0x1a8   : > { %1300 = vmatmul.f32.gmra.mxu0 %v689_v27  ;;  %1430 = vmatmul.f32.gmra.mxu2 %v691_v28  ;;  %v1107_v37 = vadd.f32 %v1106_v32, %v1041_v26  ;;  %v900_v26 = vld [vmem:[%s2852_s6 + $0x4f8] sm:$0xff] }
 0x1a9   : > { %v996_v27 = vld [vmem:[%s2852_s6 + $0x7f8] sm:$0xff]  ;;  %1777 = vmatpush.msrb.mxu0 %v900_v26  ;;  %1842 = vmatpush.msrb.mxu1 %v932_v29  ;;  %v2354_v29 = vld [vmem:[%s2854_s7 + $0x10] sm:$0xff] }
 0x1aa   : > { %1365 = vmatmul.f32.gmra.mxu1 %v690_v33  ;;  %1972 = vmatpush.msrb.mxu3 %v996_v27  ;;  %v721_v33 = vld [vmem:[%s2854_s7 + $0x360] sm:$0xff] }
 0x1ab   : > { %1495 = vmatmul.f32.gmra.mxu3 %v692_v35  ;;  %v1171_v38 = vpop.f32.mrf.mxu2  ;;  %v723_v35 = vld [vmem:[%s2854_s7 + $0x370] sm:$0xff] }
 0x1ac   : > { %v1172_v41 = vadd.f32 %v1171_v38, %v1107_v37 }
 0x1ad   : > { %v1044_v43 = vpop.f32.mrf.mxu0 }
 0x1ae   : > { %v1236_v47 = vpop.f32.mrf.mxu3 }
 0x1af   : > { %v3165_v48 = vadd.f32 %v1236_v47, %v1172_v41  ;;  %v1109_v50 = vpop.f32.mrf.mxu1 }
 0x1b0   : > { %1303 = vmatmul.f32.gmra.mxu0 %v697_v44  ;;  %1433 = vmatmul.f32.gmra.mxu2 %v699_v45  ;;  %v1110_v54 = vadd.f32 %v1109_v50, %v1044_v43  ;;  %v962_v43 = vld [vmem:[%s2852_s6 + $0x6e8] sm:$0xff] }
 0x1b1   : > { %v898_v44 = vld [vmem:[%s2852_s6 + $0x4e8] sm:$0xff]  ;;  %1908 = vmatpush.msrb.mxu2 %v962_v43 }
 0x1b2   : > { %1368 = vmatmul.f32.gmra.mxu1 %v698_v51  ;;  %v994_v45 = vld [vmem:[%s2852_s6 + $0x7e8] sm:$0xff]  ;;  %1778 = vmatpush.msrb.mxu0 %v898_v44  ;;  %v581_v44 = vld [vmem:[#allocation2 + $0xb0] sm:$0xff] }
 0x1b3   : > { %1498 = vmatmul.f32.gmra.mxu3 %v700_v52  ;;  %v1174_v55 = vpop.f32.mrf.mxu2  ;;  %v930_v50 = vld [vmem:[%s2852_s6 + $0x5e8] sm:$0xff]  ;;  %v729_v52 = vld [vmem:[%s2854_s7 + $0x3a0] sm:$0xff] }
 0x1b4   : > { %v1175_v58 = vadd.f32 %v1174_v55, %v1110_v54  ;;  %1973 = vmatpush.msrb.mxu3 %v994_v45  ;;  %1843 = vmatpush.msrb.mxu1 %v930_v50 }
 0x1b5   : > { %v1047_v60 = vpop.f32.mrf.mxu0 }
 0x1b6   : > { %v1239_v1 = vpop.f32.mrf.mxu3 }
 0x1b7   : > { %v3175_v2 = vadd.f32 %v1239_v1, %v1175_v58  ;;  %v1112_v3 = vpop.f32.mrf.mxu1  ;;  %v732_v58 = vld [vmem:[%s2854_s7 + $0x3b8] sm:$0xff] }
 0x1b8   : > { %1306 = vmatmul.f32.gmra.mxu0 %v705_v61  ;;  %1436 = vmatmul.f32.gmra.mxu2 %v707_v63  ;;  %v1113_v7 = vadd.f32 %v1112_v3, %v1047_v60  ;;  %v960_v61 = vld [vmem:[%s2852_s6 + $0x6d8] sm:$0xff] }
 0x1b9   : > { %v896_v63 = vld [vmem:[%s2852_s6 + $0x4d8] sm:$0xff]  ;;  %1909 = vmatpush.msrb.mxu2 %v960_v61 }
 0x1ba   : > { %1371 = vmatmul.f32.gmra.mxu1 %v706_v4  ;;  %v992_v1 = vld [vmem:[%s2852_s6 + $0x7d8] sm:$0xff]  ;;  %1779 = vmatpush.msrb.mxu0 %v896_v63  ;;  %v922_v63 = vld [vmem:[%s2852_s6 + $0x5a8] sm:$0xff] }
 0x1bb   : > { %1501 = vmatmul.f32.gmra.mxu3 %v708_v5  ;;  %v1177_v8 = vpop.f32.mrf.mxu2  ;;  %v928_v4 = vld [vmem:[%s2852_s6 + $0x5d8] sm:$0xff] }
 0x1bc   : > { %v1178_v11 = vadd.f32 %v1177_v8, %v1113_v7  ;;  %v739_v7 = vld [vmem:[%s2854_s7 + $0x3f0] sm:$0xff]  ;;  %1974 = vmatpush.msrb.mxu3 %v992_v1  ;;  %1844 = vmatpush.msrb.mxu1 %v928_v4  ;;  %v583_v4 = vld [vmem:[#allocation2 + $0xd8] sm:$0xff] }
 0x1bd   : > { %v1050_v13 = vpop.f32.mrf.mxu0 }
 0x1be   : > { %v1242_v18 = vpop.f32.mrf.mxu3 }
 0x1bf   : > { %v3185_v19 = vadd.f32 %v1242_v18, %v1178_v11  ;;  %v1115_v20 = vpop.f32.mrf.mxu1  ;;  %v738_v11 = vld [vmem:[%s2854_s7 + $0x3e8] sm:$0xff] }
 0x1c0   : > { %1309 = vmatmul.f32.gmra.mxu0 %v713_v16  ;;  %1439 = vmatmul.f32.gmra.mxu2 %v715_v17  ;;  %v1116_v24 = vadd.f32 %v1115_v20, %v1050_v13  ;;  %v958_v17 = vld [vmem:[%s2852_s6 + $0x6c8] sm:$0xff] }
 0x1c1   : > { %v894_v18 = vld [vmem:[%s2852_s6 + $0x4c8] sm:$0xff]  ;;  %1910 = vmatpush.msrb.mxu2 %v958_v17  ;;  %v952_v17 = vld [vmem:[%s2852_s6 + $0x698] sm:$0xff] }
 0x1c2   : > { %1374 = vmatmul.f32.gmra.mxu1 %v714_v21  ;;  %v990_v20 = vld [vmem:[%s2852_s6 + $0x7c8] sm:$0xff]  ;;  %1780 = vmatpush.msrb.mxu0 %v894_v18  ;;  %v888_v18 = vld [vmem:[%s2852_s6 + $0x498] sm:$0xff] }
 0x1c3   : > { %1504 = vmatmul.f32.gmra.mxu3 %v716_v22  ;;  %v1180_v25 = vpop.f32.mrf.mxu2  ;;  %v926_v22 = vld [vmem:[%s2852_s6 + $0x5c8] sm:$0xff] }
 0x1c4   : > { %v1181_v28 = vadd.f32 %v1180_v25, %v1116_v24  ;;  %1975 = vmatpush.msrb.mxu3 %v990_v20  ;;  %1845 = vmatpush.msrb.mxu1 %v926_v22  ;;  %v984_v20 = vld [vmem:[%s2852_s6 + $0x798] sm:$0xff] }
 0x1c5   : > { %v1053_v32 = vpop.f32.mrf.mxu0  ;;  %v920_v22 = vld [vmem:[%s2852_s6 + $0x598] sm:$0xff] }
 0x1c6   : > { %v1245_v36 = vpop.f32.mrf.mxu3 }
 0x1c7   : > { %v3195_v37 = vadd.f32 %v1245_v36, %v1181_v28  ;;  %v1118_v38 = vpop.f32.mrf.mxu1  ;;  %v2353_v28 = vld [vmem:[%s2854_s7] sm:$0xff] }
 0x1c8   : > { %1312 = vmatmul.f32.gmra.mxu0 %v721_v33  ;;  %1442 = vmatmul.f32.gmra.mxu2 %v723_v35  ;;  %v1119_v41 = vadd.f32 %v1118_v38, %v1053_v32  ;;  %v2355_v33 = vld [vmem:[%s2854_s7 + $0x8] sm:$0xff]  ;;  %v2356_v35 = vld [vmem:[%s2854_s7 + $0x18] sm:$0xff] }
 0x1c9   : > { %v956_v38 = vld [vmem:[%s2852_s6 + $0x6b8] sm:$0xff] }
 0x1ca   : > { %1377 = vmatmul.f32.gmra.mxu1 %v722_v39  ;;  %v892_v39 = vld [vmem:[%s2852_s6 + $0x4b8] sm:$0xff]  ;;  %1911 = vmatpush.msrb.mxu2 %v956_v38  ;;  %v2367_v38 = vld [vmem:[%s2854_s7 + $0xc8] sm:$0xff] }
 0x1cb   : > { %1507 = vmatmul.f32.gmra.mxu3 %v724_v40  ;;  %v1183_v42 = vpop.f32.mrf.mxu2  ;;  %v988_v40 = vld [vmem:[%s2852_s6 + $0x7b8] sm:$0xff]  ;;  %1781 = vmatpush.msrb.mxu0 %v892_v39 }
 0x1cc   : > { %v1184_v47 = vadd.f32 %v1183_v42, %v1119_v41  ;;  %v924_v41 = vld [vmem:[%s2852_s6 + $0x5b8] sm:$0xff]  ;;  %1976 = vmatpush.msrb.mxu3 %v988_v40  ;;  %v950_v40 = vld [vmem:[%s2852_s6 + $0x688] sm:$0xff] }
 0x1cd   : > { %v1056_v51 = vpop.f32.mrf.mxu0  ;;  %1846 = vmatpush.msrb.mxu1 %v924_v41  ;;  %v2368_v39 = vld [vmem:[%s2854_s7 + $0xd8] sm:$0xff]  ;;  %v982_v41 = vld [vmem:[%s2852_s6 + $0x788] sm:$0xff] }
 0x1ce   : > { %v1248_v54 = vpop.f32.mrf.mxu3 }
 0x1cf   : > { %v3205_v55 = vadd.f32 %v1248_v54, %v1184_v47  ;;  %v1121_v56 = vpop.f32.mrf.mxu1  ;;  %1847 = vmatpush.msrb.mxu1 %v922_v63 }
 0x1d0   : > { %1315 = vmatmul.f32.gmra.mxu0 %v729_v52  ;;  %1445 = vmatmul.f32.gmra.mxu2 %v731_v53  ;;  %v1122_v59 = vadd.f32 %v1121_v56, %v1056_v51  ;;  %v2357_v51 = vld [vmem:[%s2854_s7 + $0x40] sm:$0xff]  ;;  %v2358_v52 = vld [vmem:[%s2854_s7 + $0x50] sm:$0xff]  ;;  %v2359_v56 = vld [vmem:[%s2854_s7 + $0x48] sm:$0xff] }
 0x1d1   : > { %1848 = vmatpush.msrb.mxu1 %v920_v22  ;;  %v914_v22 = vld [vmem:[%s2852_s6 + $0x568] sm:$0xff] }
 0x1d2   : > { %1380 = vmatmul.f32.gmra.mxu1 %v730_v57  ;;  %v2360_v57 = vld [vmem:[%s2854_s7 + $0x58] sm:$0xff] }
 0x1d3   : > { %1510 = vmatmul.f32.gmra.mxu3 %v732_v58  ;;  %v1186_v60 = vpop.f32.mrf.mxu2  ;;  %v954_v58 = vld [vmem:[%s2852_s6 + $0x6a8] sm:$0xff] }
 0x1d4   : > { %v1187_v3 = vadd.f32 %v1186_v60, %v1122_v59  ;;  %v890_v59 = vld [vmem:[%s2852_s6 + $0x4a8] sm:$0xff]  ;;  %1912 = vmatpush.msrb.mxu2 %v954_v58  ;;  %v2372_v58 = vld [vmem:[%s2854_s7 + $0x118] sm:$0xff] }
 0x1d5   : > { %v1059_v5 = vpop.f32.mrf.mxu0  ;;  %v986_v60 = vld [vmem:[%s2852_s6 + $0x7a8] sm:$0xff]  ;;  %1782 = vmatpush.msrb.mxu0 %v890_v59  ;;  %v948_v59 = vld [vmem:[%s2852_s6 + $0x678] sm:$0xff] }
 0x1d6   : > { %v1251_v8 = vpop.f32.mrf.mxu3  ;;  %1977 = vmatpush.msrb.mxu3 %v986_v60  ;;  %1913 = vmatpush.msrb.mxu2 %v952_v17  ;;  %v884_v60 = vld [vmem:[%s2852_s6 + $0x478] sm:$0xff]  ;;  %v946_v17 = vld [vmem:[%s2852_s6 + $0x668] sm:$0xff] }
 0x1d7   : > { %v3215_v9 = vadd.f32 %v1251_v8, %v1187_v3  ;;  %v1124_v10 = vpop.f32.mrf.mxu1  ;;  %v2361_v8 = vld [vmem:[%s2854_s7 + $0x80] sm:$0xff]  ;;  %1783 = vmatpush.msrb.mxu0 %v888_v18  ;;  %v882_v18 = vld [vmem:[%s2852_s6 + $0x468] sm:$0xff] }
 0x1d8   : > { %1318 = vmatmul.f32.gmra.mxu0 %v737_v6  ;;  %1448 = vmatmul.f32.gmra.mxu2 %v739_v7  ;;  %v1125_v13 = vadd.f32 %v1124_v10, %v1059_v5  ;;  %v2362_v10 = vld [vmem:[%s2854_s7 + $0x90] sm:$0xff] }
 0x1d9   : > { %1978 = vmatpush.msrb.mxu3 %v984_v20  ;;  %1914 = vmatpush.msrb.mxu2 %v950_v40  ;;  %v978_v20 = vld [vmem:[%s2852_s6 + $0x768] sm:$0xff]  ;;  %v880_v40 = vld [vmem:[%s2852_s6 + $0x458] sm:$0xff] }
 0x1da   : > { %1383 = vmatmul.f32.gmra.mxu1 %v738_v11 }
 0x1db   : > { %1513 = vmatmul.f32.gmra.mxu3 %v740_v12  ;;  %v1189_v16 = vpop.f32.mrf.mxu2  ;;  %1915 = vmatpush.msrb.mxu2 %v948_v59  ;;  %v974_v59 = vld [vmem:[%s2852_s6 + $0x748] sm:$0xff] }
 0x1dc   : > { %v1190_v21 = vadd.f32 %v1189_v16, %v1125_v13  ;;  %v2363_v13 = vld [vmem:[%s2854_s7 + $0x88] sm:$0xff]  ;;  %v2364_v16 = vld [vmem:[%s2854_s7 + $0x98] sm:$0xff]  ;;  %1979 = vmatpush.msrb.mxu3 %v982_v41 }
 0x1dd   : > { %v1274_v23 = vpop.f32.mrf.mxu0  ;;  %1916 = vmatpush.msrb.mxu2 %v946_v17 }
 0x1de   : > { %v1254_v24 = vpop.f32.mrf.mxu3  ;;  %v1275_v25 = vadd.f32 %v1274_v23, %v3075_v34 }
 0x1df   : > { %v3224_v26 = vadd.f32 %v1254_v24, %v1190_v21  ;;  %v1339_v27 = vpop.f32.mrf.mxu1 }
 0x1e0   : > { %1533 = vmatmul.f32.vlgmr.msra.gmra.mxu0 %v2353_v28  ;;  %1663 = vmatmul.f32.vlgmr.msra.gmra.mxu2 %v2354_v29  ;;  %v1340_v32 = vadd.f32 %v1339_v27, %v1275_v25  ;;  %v585_v25 = vld [vmem:[#allocation2 + $0x50] sm:$0xff] }
 0x1e2   : > { %1598 = vmatmul.f32.vlgmr.msra.gmra.mxu1 %v2355_v33  ;;  %v2366_v33 = vld [vmem:[%s2854_s7 + $0xd0] sm:$0xff] }
 0x1e3   : > { %1728 = vmatmul.f32.vlgmr.msra.gmra.mxu3 %v2356_v35  ;;  %v1404_v36 = vpop.f32.mrf.mxu2 }
 0x1e4   : > { %v1405_v34 = vadd.f32 %v1404_v36, %v1340_v32  ;;  %v2365_v32 = vld [vmem:[%s2854_s7 + $0xc0] sm:$0xff] }
 0x1e5   : > { %v1277_v42 = vpop.f32.mrf.mxu0 }
 0x1e6   : > { %v1278_v43 = vadd.f32 %v1277_v42, %v3085_v49  ;;  %v1469_v45 = vpop.f32.mrf.mxu3 }
 0x1e7   : > { %v1470_v47 = vadd.f32 %v1469_v45, %v1405_v34  ;;  %v1342_v50 = vpop.f32.mrf.mxu1  ;;  %v886_v34 = vld [vmem:[%s2852_s6 + $0x488] sm:$0xff] }
 0x1e8   : > { %1536 = vmatmul.f32.gmra.mxu0 %v2357_v51  ;;  %1666 = vmatmul.f32.gmra.mxu2 %v2358_v52  ;;  %v1343_v54 = vadd.f32 %v1342_v50, %v1278_v43  ;;  %v918_v43 = vld [vmem:[%s2852_s6 + $0x588] sm:$0xff] }
 0x1e9   : > { %v2037_v53 = vadd.f32 %v1470_v47, %v581_v44  ;;  %1784 = vmatpush.msrb.mxu0 %v886_v34  ;;  %1849 = vmatpush.msrb.mxu1 %v918_v43  ;;  %v587_v47 = vld [vmem:[#allocation2 + $0x30] sm:$0xff]  ;;  %v976_v34 = vld [vmem:[%s2852_s6 + $0x758] sm:$0xff] }
 0x1ea   : > { %1601 = vmatmul.f32.gmra.mxu1 %v2359_v56 }
 0x1eb   : > { %2069 = vst [vmem:[#allocation2 + $0xb0] sm:$0xff] %v2037_v53  ;;  %1731 = vmatmul.f32.gmra.mxu3 %v2360_v57  ;;  %v1407_v49 = vpop.f32.mrf.mxu2  ;;  %v2369_v53 = vld [vmem:[%s2854_s7 + $0x100] sm:$0xff]  ;;  %1785 = vmatpush.msrb.mxu0 %v884_v60 }
 0x1ec   : > { %v1408_v61 = vadd.f32 %v1407_v49, %v1343_v54  ;;  %v2370_v54 = vld [vmem:[%s2854_s7 + $0x110] sm:$0xff]  ;;  %v2371_v49 = vld [vmem:[%s2854_s7 + $0x108] sm:$0xff] }
 0x1ed   : > { %v1280_v1 = vpop.f32.mrf.mxu0  ;;  %1786 = vmatpush.msrb.mxu0 %v882_v18  ;;  %v908_v18 = vld [vmem:[%s2852_s6 + $0x538] sm:$0xff] }
 0x1ee   : > { %v1281_v3 = vadd.f32 %v1280_v1, %v3095_v0  ;;  %v1472_v5 = vpop.f32.mrf.mxu3  ;;  %v916_v1 = vld [vmem:[%s2852_s6 + $0x578] sm:$0xff] }
 0x1ef   : > { %v1473_v6 = vadd.f32 %v1472_v5, %v1408_v61  ;;  %v1345_v7 = vpop.f32.mrf.mxu1  ;;  %v980_v61 = vld [vmem:[%s2852_s6 + $0x778] sm:$0xff]  ;;  %1850 = vmatpush.msrb.mxu1 %v916_v1  ;;  %v589_v5 = vld [vmem:[#allocation2 + $0x80] sm:$0xff]  ;;  %1787 = vmatpush.msrb.mxu0 %v880_v40 }
 0x1f0   : > { %1539 = vmatmul.f32.gmra.mxu0 %v2361_v8  ;;  %1669 = vmatmul.f32.gmra.mxu2 %v2362_v10  ;;  %v1346_v12 = vadd.f32 %v1345_v7, %v1281_v3  ;;  %v2373_v10 = vld [vmem:[%s2854_s7 + $0x140] sm:$0xff] }
 0x1f1   : > { %v2039_v11 = vadd.f32 %v1473_v6, %v583_v4  ;;  %1980 = vmatpush.msrb.mxu3 %v980_v61  ;;  %1851 = vmatpush.msrb.mxu1 %v914_v22  ;;  %v910_v61 = vld [vmem:[%s2852_s6 + $0x548] sm:$0xff]  ;;  %v597_v22 = vld [vmem:[#allocation2 + $0x38] sm:$0xff] }
 0x1f2   : > { %1604 = vmatmul.f32.gmra.mxu1 %v2363_v13 }
 0x1f3   : > { %2071 = vst [vmem:[#allocation2 + $0xd8] sm:$0xff] %v2039_v11  ;;  %1734 = vmatmul.f32.gmra.mxu3 %v2364_v16  ;;  %v1410_v0 = vpop.f32.mrf.mxu2  ;;  %v2374_v11 = vld [vmem:[%s2854_s7 + $0x150] sm:$0xff]  ;;  %v2375_v16 = vld [vmem:[%s2854_s7 + $0x148] sm:$0xff] }
 0x1f4   : > { %v1411_v21 = vadd.f32 %v1410_v0, %v1346_v12  ;;  %v2376_v0 = vld [vmem:[%s2854_s7 + $0x158] sm:$0xff]  ;;  %1981 = vmatpush.msrb.mxu3 %v978_v20 }
 0x1f5   : > { %v1283_v23 = vpop.f32.mrf.mxu0 }
 0x1f6   : > { %v1284_v24 = vadd.f32 %v1283_v23, %v3105_v15  ;;  %v1475_v27 = vpop.f32.mrf.mxu3  ;;  %1982 = vmatpush.msrb.mxu3 %v976_v34 }
 0x1f7   : > { %v1476_v28 = vadd.f32 %v1475_v27, %v1411_v21  ;;  %v1348_v29 = vpop.f32.mrf.mxu1 }
 0x1f8   : > { %1542 = vmatmul.f32.gmra.mxu0 %v2365_v32  ;;  %1672 = vmatmul.f32.gmra.mxu2 %v2366_v33  ;;  %v1349_v36 = vadd.f32 %v1348_v29, %v1284_v24  ;;  %v2377_v32 = vld [vmem:[%s2854_s7 + $0x180] sm:$0xff]  ;;  %v2378_v33 = vld [vmem:[%s2854_s7 + $0x190] sm:$0xff] }
 0x1f9   : > { %v2041_v35 = vadd.f32 %v1476_v28, %v585_v25  ;;  %v591_v25 = vld [vmem:[#allocation2 + $0xe8] sm:$0xff]  ;;  %1983 = vmatpush.msrb.mxu3 %v974_v59  ;;  %v601_v59 = vld [vmem:[#allocation2 + $0xe0] sm:$0xff] }
 0x1fa   : > { %1607 = vmatmul.f32.gmra.mxu1 %v2367_v38  ;;  %v2379_v38 = vld [vmem:[%s2854_s7 + $0x188] sm:$0xff] }
 0x1fb   : > { %2073 = vst [vmem:[#allocation2 + $0x50] sm:$0xff] %v2041_v35  ;;  %1737 = vmatmul.f32.gmra.mxu3 %v2368_v39  ;;  %v1413_v15 = vpop.f32.mrf.mxu2  ;;  %v2380_v39 = vld [vmem:[%s2854_s7 + $0x198] sm:$0xff] }
 0x1fc   : > { %v1414_v42 = vadd.f32 %v1413_v15, %v1349_v36  ;;  %v944_v15 = vld [vmem:[%s2852_s6 + $0x658] sm:$0xff] }
 0x1fd   : > { %v1286_v44 = vpop.f32.mrf.mxu0  ;;  %1917 = vmatpush.msrb.mxu2 %v944_v15  ;;  %v906_v15 = vld [vmem:[%s2852_s6 + $0x528] sm:$0xff] }
 0x1fe   : > { %v1287_v45 = vadd.f32 %v1286_v44, %v3115_v30  ;;  %v1478_v50 = vpop.f32.mrf.mxu3 }
 0x1ff   : > { %v1479_v51 = vadd.f32 %v1478_v50, %v1414_v42  ;;  %v1351_v52 = vpop.f32.mrf.mxu1  ;;  %v912_v42 = vld [vmem:[%s2852_s6 + $0x558] sm:$0xff] }
 0x200   : > { %1545 = vmatmul.f32.gmra.mxu0 %v2369_v53  ;;  %1675 = vmatmul.f32.gmra.mxu2 %v2370_v54  ;;  %v1352_v57 = vadd.f32 %v1351_v52, %v1287_v45  ;;  %v593_v45 = vld [vmem:[#allocation2 + $0x60] sm:$0xff]  ;;  %v2382_v53 = vld [vmem:[%s2854_s7 + $0x1d0] sm:$0xff] }
 0x201   : > { %v2043_v56 = vadd.f32 %v1479_v51, %v587_v47  ;;  %1852 = vmatpush.msrb.mxu1 %v912_v42  ;;  %v2381_v52 = vld [vmem:[%s2854_s7 + $0x1c0] sm:$0xff] }
 0x202   : > { %1610 = vmatmul.f32.gmra.mxu1 %v2371_v49  ;;  %v2384_v49 = vld [vmem:[%s2854_s7 + $0x1d8] sm:$0xff] }
 0x203   : > { %2075 = vst [vmem:[#allocation2 + $0x30] sm:$0xff] %v2043_v56  ;;  %1740 = vmatmul.f32.gmra.mxu3 %v2372_v58  ;;  %v1416_v30 = vpop.f32.mrf.mxu2  ;;  %v942_v58 = vld [vmem:[%s2852_s6 + $0x648] sm:$0xff]  ;;  %1853 = vmatpush.msrb.mxu1 %v910_v61 }
 0x204   : > { %v1417_v63 = vadd.f32 %v1416_v30, %v1352_v57  ;;  %v2383_v57 = vld [vmem:[%s2854_s7 + $0x1c8] sm:$0xff]  ;;  %1918 = vmatpush.msrb.mxu2 %v942_v58 }
 0x205   : > { %v1289_v3 = vpop.f32.mrf.mxu0  ;;  %v878_v30 = vld [vmem:[%s2852_s6 + $0x448] sm:$0xff]  ;;  %1854 = vmatpush.msrb.mxu1 %v908_v18 }
 0x206   : > { %v1290_v4 = vadd.f32 %v1289_v3, %v3125_v46  ;;  %v1481_v6 = vpop.f32.mrf.mxu3  ;;  %1788 = vmatpush.msrb.mxu0 %v878_v30  ;;  %v595_v3 = vld [vmem:[#allocation2 + $0x8] sm:$0xff] }
 0x207   : > { %v1482_v7 = vadd.f32 %v1481_v6, %v1417_v63  ;;  %v1354_v8 = vpop.f32.mrf.mxu1  ;;  %1855 = vmatpush.msrb.mxu1 %v906_v15  ;;  %v2407_v15 = vld [vmem:[%s2854_s7 + $0x348] sm:$0xff] }
 0x208   : > { %1548 = vmatmul.f32.gmra.mxu0 %v2373_v10  ;;  %1678 = vmatmul.f32.gmra.mxu2 %v2374_v11  ;;  %v1355_v13 = vadd.f32 %v1354_v8, %v1290_v4  ;;  %v2386_v8 = vld [vmem:[%s2854_s7 + $0x210] sm:$0xff] }
 0x209   : > { %v2045_v12 = vadd.f32 %v1482_v7, %v589_v5  ;;  %v2385_v7 = vld [vmem:[%s2854_s7 + $0x200] sm:$0xff] }
 0x20a   : > { %1613 = vmatmul.f32.gmra.mxu1 %v2375_v16  ;;  %v940_v16 = vld [vmem:[%s2852_s6 + $0x638] sm:$0xff] }
 0x20b   : > { %2077 = vst [vmem:[#allocation2 + $0x80] sm:$0xff] %v2045_v12  ;;  %1743 = vmatmul.f32.gmra.mxu3 %v2376_v0  ;;  %v1419_v46 = vpop.f32.mrf.mxu2  ;;  %v2387_v12 = vld [vmem:[%s2854_s7 + $0x208] sm:$0xff]  ;;  %v876_v0 = vld [vmem:[%s2852_s6 + $0x438] sm:$0xff]  ;;  %1919 = vmatpush.msrb.mxu2 %v940_v16 }
 0x20c   : > { %v1420_v21 = vadd.f32 %v1419_v46, %v1355_v13  ;;  %v2388_v13 = vld [vmem:[%s2854_s7 + $0x218] sm:$0xff]  ;;  %1789 = vmatpush.msrb.mxu0 %v876_v0  ;;  %v603_v0 = vld [vmem:[#allocation2 + $0x70] sm:$0xff] }
 0x20d   : > { %v1292_v23 = vpop.f32.mrf.mxu0  ;;  %v972_v46 = vld [vmem:[%s2852_s6 + $0x738] sm:$0xff] }
 0x20e   : > { %v1293_v24 = vadd.f32 %v1292_v23, %v3135_v62  ;;  %v1484_v27 = vpop.f32.mrf.mxu3  ;;  %1984 = vmatpush.msrb.mxu3 %v972_v46 }
 0x20f   : > { %v1485_v28 = vadd.f32 %v1484_v27, %v1420_v21  ;;  %v1357_v29 = vpop.f32.mrf.mxu1  ;;  %v2389_v27 = vld [vmem:[%s2854_s7 + $0x240] sm:$0xff] }
 0x210   : > { %1551 = vmatmul.f32.gmra.mxu0 %v2377_v32  ;;  %1681 = vmatmul.f32.gmra.mxu2 %v2378_v33  ;;  %v1358_v36 = vadd.f32 %v1357_v29, %v1293_v24  ;;  %v2391_v33 = vld [vmem:[%s2854_s7 + $0x248] sm:$0xff] }
 0x211   : > { %v2047_v35 = vadd.f32 %v1485_v28, %v591_v25  ;;  %v2390_v28 = vld [vmem:[%s2854_s7 + $0x250] sm:$0xff] }
 0x212   : > { %1616 = vmatmul.f32.gmra.mxu1 %v2379_v38  ;;  %v874_v38 = vld [vmem:[%s2852_s6 + $0x428] sm:$0xff] }
 0x213   : > { %2079 = vst [vmem:[#allocation2 + $0xe8] sm:$0xff] %v2047_v35  ;;  %1746 = vmatmul.f32.gmra.mxu3 %v2380_v39  ;;  %v1422_v62 = vpop.f32.mrf.mxu2  ;;  %v2392_v35 = vld [vmem:[%s2854_s7 + $0x258] sm:$0xff]  ;;  %v970_v39 = vld [vmem:[%s2852_s6 + $0x728] sm:$0xff]  ;;  %1790 = vmatpush.msrb.mxu0 %v874_v38  ;;  %v2406_v38 = vld [vmem:[%s2854_s7 + $0x350] sm:$0xff] }
 0x214   : > { %v1423_v41 = vadd.f32 %v1422_v62, %v1358_v36  ;;  %v938_v36 = vld [vmem:[%s2852_s6 + $0x628] sm:$0xff]  ;;  %1985 = vmatpush.msrb.mxu3 %v970_v39 }
 0x215   : > { %v1295_v43 = vpop.f32.mrf.mxu0  ;;  %1920 = vmatpush.msrb.mxu2 %v938_v36  ;;  %v2405_v36 = vld [vmem:[%s2854_s7 + $0x340] sm:$0xff] }
 0x216   : > { %v1296_v44 = vadd.f32 %v1295_v43, %v3145_v14  ;;  %v1487_v47 = vpop.f32.mrf.mxu3 }
 0x217   : > { %v1488_v50 = vadd.f32 %v1487_v47, %v1423_v41  ;;  %v1360_v51 = vpop.f32.mrf.mxu1  ;;  %v599_v41 = vld [vmem:[#allocation2 + $0x40] sm:$0xff]  ;;  %v2394_v47 = vld [vmem:[%s2854_s7 + $0x290] sm:$0xff] }
 0x218   : > { %1554 = vmatmul.f32.gmra.mxu0 %v2381_v52  ;;  %1684 = vmatmul.f32.gmra.mxu2 %v2382_v53  ;;  %v1361_v56 = vadd.f32 %v1360_v51, %v1296_v44  ;;  %v2395_v52 = vld [vmem:[%s2854_s7 + $0x288] sm:$0xff]  ;;  %v2396_v53 = vld [vmem:[%s2854_s7 + $0x298] sm:$0xff] }
 0x219   : > { %v2049_v54 = vadd.f32 %v1488_v50, %v593_v45  ;;  %v2393_v45 = vld [vmem:[%s2854_s7 + $0x280] sm:$0xff] }
 0x21a   : > { %1619 = vmatmul.f32.gmra.mxu1 %v2383_v57  ;;  %v968_v57 = vld [vmem:[%s2852_s6 + $0x718] sm:$0xff] }
 0x21b   : > { %2081 = vst [vmem:[#allocation2 + $0x60] sm:$0xff] %v2049_v54  ;;  %1749 = vmatmul.f32.gmra.mxu3 %v2384_v49  ;;  %v1425_v14 = vpop.f32.mrf.mxu2  ;;  %v936_v54 = vld [vmem:[%s2852_s6 + $0x618] sm:$0xff] }
 0x21c   : > { %v1426_v60 = vadd.f32 %v1425_v14, %v1361_v56  ;;  %v872_v56 = vld [vmem:[%s2852_s6 + $0x418] sm:$0xff]  ;;  %1921 = vmatpush.msrb.mxu2 %v936_v54  ;;  %1986 = vmatpush.msrb.mxu3 %v968_v57 }
 0x21d   : > { %v1298_v63 = vpop.f32.mrf.mxu0  ;;  %1791 = vmatpush.msrb.mxu0 %v872_v56  ;;  %v904_v14 = vld [vmem:[%s2852_s6 + $0x518] sm:$0xff] }
 0x21e   : > { %v1299_v1 = vadd.f32 %v1298_v63, %v3155_v31  ;;  %v1490_v4 = vpop.f32.mrf.mxu3  ;;  %1856 = vmatpush.msrb.mxu1 %v904_v14  ;;  %v2412_v54 = vld [vmem:[%s2854_s7 + $0x398] sm:$0xff]  ;;  %v609_v14 = vld [vmem:[#allocation2 + $0xa0] sm:$0xff] }
 0x21f   : > { %v1491_v5 = vadd.f32 %v1490_v4, %v1426_v60  ;;  %v1363_v6 = vpop.f32.mrf.mxu1 }
 0x220   : > { %1557 = vmatmul.f32.gmra.mxu0 %v2385_v7  ;;  %1687 = vmatmul.f32.gmra.mxu2 %v2386_v8  ;;  %v1364_v11 = vadd.f32 %v1363_v6, %v1299_v1  ;;  %v2397_v1 = vld [vmem:[%s2854_s7 + $0x2c0] sm:$0xff]  ;;  %v2399_v6 = vld [vmem:[%s2854_s7 + $0x2c8] sm:$0xff]  ;;  %v2400_v7 = vld [vmem:[%s2854_s7 + $0x2d8] sm:$0xff] }
 0x221   : > { %v2051_v10 = vadd.f32 %v1491_v5, %v595_v3  ;;  %v2398_v3 = vld [vmem:[%s2854_s7 + $0x2d0] sm:$0xff]  ;;  %v934_v8 = vld [vmem:[%s2852_s6 + $0x608] sm:$0xff] }
 0x222   : > { %1622 = vmatmul.f32.gmra.mxu1 %v2387_v12  ;;  %1922 = vmatpush.msrb.mxu2 %v934_v8 }
 0x223   : > { %2083 = vst [vmem:[#allocation2 + $0x8] sm:$0xff] %v2051_v10  ;;  %1752 = vmatmul.f32.gmra.mxu3 %v2388_v13  ;;  %v1428_v31 = vpop.f32.mrf.mxu2  ;;  %v870_v10 = vld [vmem:[%s2852_s6 + $0x408] sm:$0xff] }
 0x224   : > { %v1429_v17 = vadd.f32 %v1428_v31, %v1364_v11  ;;  %v966_v11 = vld [vmem:[%s2852_s6 + $0x708] sm:$0xff]  ;;  %1792 = vmatpush.msrb.mxu0 %v870_v10 }
 0x225   : > { %v1301_v20 = vpop.f32.mrf.mxu0  ;;  %v902_v13 = vld [vmem:[%s2852_s6 + $0x508] sm:$0xff]  ;;  %1987 = vmatpush.msrb.mxu3 %v966_v11  ;;  %v2417_v11 = vld [vmem:[%s2854_s7 + $0x20] sm:$0xff] }
 0x226   : > { %v1302_v21 = vadd.f32 %v1301_v20, %v3165_v48  ;;  %v1493_v23 = vpop.f32.mrf.mxu3  ;;  %1857 = vmatpush.msrb.mxu1 %v902_v13  ;;  %v2401_v20 = vld [vmem:[%s2854_s7 + $0x300] sm:$0xff] }
 0x227   : > { %v1494_v24 = vadd.f32 %v1493_v23, %v1429_v17  ;;  %v1366_v25 = vpop.f32.mrf.mxu1 }
 0x228   : > { %1560 = vmatmul.f32.gmra.mxu0 %v2389_v27  ;;  %1690 = vmatmul.f32.gmra.mxu2 %v2390_v28  ;;  %v1367_v32 = vadd.f32 %v1366_v25, %v1302_v21  ;;  %v2402_v21 = vld [vmem:[%s2854_s7 + $0x310] sm:$0xff]  ;;  %v2404_v25 = vld [vmem:[%s2854_s7 + $0x318] sm:$0xff] }
 0x229   : > { %v2053_v29 = vadd.f32 %v1494_v24, %v597_v22  ;;  %v2403_v24 = vld [vmem:[%s2854_s7 + $0x308] sm:$0xff] }
 0x22a   : > { %1625 = vmatmul.f32.gmra.mxu1 %v2391_v33 }
 0x22b   : > { %2085 = vst [vmem:[#allocation2 + $0x38] sm:$0xff] %v2053_v29  ;;  %1755 = vmatmul.f32.gmra.mxu3 %v2392_v35  ;;  %v1431_v48 = vpop.f32.mrf.mxu2 }
 0x22c   : > { %v1432_v62 = vadd.f32 %v1431_v48, %v1367_v32  ;;  %v605_v32 = vld [vmem:[#allocation2 + $0xa8] sm:$0xff] }
 0x22d   : > { %v1304_v40 = vpop.f32.mrf.mxu0 }
 0x22e   : > { %v1305_v34 = vadd.f32 %v1304_v40, %v3175_v2  ;;  %v1496_v42 = vpop.f32.mrf.mxu3  ;;  %v2408_v40 = vld [vmem:[%s2854_s7 + $0x358] sm:$0xff] }
 0x22f   : > { %v1497_v43 = vadd.f32 %v1496_v42, %v1432_v62  ;;  %v1369_v44 = vpop.f32.mrf.mxu1 }
 0x230   : > { %1563 = vmatmul.f32.gmra.mxu0 %v2393_v45  ;;  %1693 = vmatmul.f32.gmra.mxu2 %v2394_v47  ;;  %v1370_v51 = vadd.f32 %v1369_v44, %v1305_v34 }
 0x231   : > { %v2055_v50 = vadd.f32 %v1497_v43, %v599_v41  ;;  %v607_v43 = vld [vmem:[#allocation2 + $0x10] sm:$0xff] }
 0x232   : > { %1628 = vmatmul.f32.gmra.mxu1 %v2395_v52 }
 0x233   : > { %2087 = vst [vmem:[#allocation2 + $0x40] sm:$0xff] %v2055_v50  ;;  %1758 = vmatmul.f32.gmra.mxu3 %v2396_v53  ;;  %v1434_v2 = vpop.f32.mrf.mxu2  ;;  %v2409_v50 = vld [vmem:[%s2854_s7 + $0x380] sm:$0xff] }
 0x234   : > { %v1435_v49 = vadd.f32 %v1434_v2, %v1370_v51  ;;  %v2410_v51 = vld [vmem:[%s2854_s7 + $0x390] sm:$0xff]  ;;  %v2411_v2 = vld [vmem:[%s2854_s7 + $0x388] sm:$0xff] }
 0x235   : > { %v1307_v58 = vpop.f32.mrf.mxu0 }
 0x236   : > { %v1308_v30 = vadd.f32 %v1307_v58, %v3185_v19  ;;  %v1499_v60 = vpop.f32.mrf.mxu3 }
 0x237   : > { %v1500_v61 = vadd.f32 %v1499_v60, %v1435_v49  ;;  %v1372_v63 = vpop.f32.mrf.mxu1  ;;  %v2413_v60 = vld [vmem:[%s2854_s7 + $0x3c0] sm:$0xff] }
 0x238   : > { %1566 = vmatmul.f32.gmra.mxu0 %v2397_v1  ;;  %1696 = vmatmul.f32.gmra.mxu2 %v2398_v3  ;;  %v1373_v5 = vadd.f32 %v1372_v63, %v1308_v30  ;;  %v2415_v3 = vld [vmem:[%s2854_s7 + $0x3c8] sm:$0xff] }
 0x239   : > { %v2057_v4 = vadd.f32 %v1500_v61, %v601_v59  ;;  %v2414_v61 = vld [vmem:[%s2854_s7 + $0x3d0] sm:$0xff] }
 0x23a   : > { %1631 = vmatmul.f32.gmra.mxu1 %v2399_v6 }
 0x23b   : > { %2089 = vst [vmem:[#allocation2 + $0xe0] sm:$0xff] %v2057_v4  ;;  %1761 = vmatmul.f32.gmra.mxu3 %v2400_v7  ;;  %v1437_v19 = vpop.f32.mrf.mxu2  ;;  %v2416_v4 = vld [vmem:[%s2854_s7 + $0x3d8] sm:$0xff]  ;;  %v611_v7 = vld [vmem:[#allocation2 + $0x20] sm:$0xff] }
 0x23c   : > { %v1438_v12 = vadd.f32 %v1437_v19, %v1373_v5 }
 0x23d   : > { %v1310_v31 = vpop.f32.mrf.mxu0 }
 0x23e   : > { %v1311_v16 = vadd.f32 %v1310_v31, %v3195_v37  ;;  %v1502_v46 = vpop.f32.mrf.mxu3 }
 0x23f   : > { %v1503_v17 = vadd.f32 %v1502_v46, %v1438_v12  ;;  %v1375_v18 = vpop.f32.mrf.mxu1  ;;  %v2418_v12 = vld [vmem:[%s2854_s7 + $0x30] sm:$0xff] }
 0x240   : > { %1569 = vmatmul.f32.gmra.mxu0 %v2401_v20  ;;  %1699 = vmatmul.f32.gmra.mxu2 %v2402_v21  ;;  %v1376_v23 = vadd.f32 %v1375_v18, %v1311_v16  ;;  %v2419_v16 = vld [vmem:[%s2854_s7 + $0x28] sm:$0xff] }
 0x241   : > { %v2059_v22 = vadd.f32 %v1503_v17, %v603_v0  ;;  %v2420_v0 = vld [vmem:[%s2854_s7 + $0x38] sm:$0xff] }
 0x242   : > { %1634 = vmatmul.f32.gmra.mxu1 %v2403_v24  ;;  %v2422_v24 = vld [vmem:[%s2854_s7 + $0x70] sm:$0xff] }
 0x243   : > { %2091 = vst [vmem:[#allocation2 + $0x70] sm:$0xff] %v2059_v22  ;;  %1764 = vmatmul.f32.gmra.mxu3 %v2404_v25  ;;  %v1440_v27 = vpop.f32.mrf.mxu2 }
 0x244   : > { %v1441_v37 = vadd.f32 %v1440_v27, %v1376_v23  ;;  %v2421_v23 = vld [vmem:[%s2854_s7 + $0x60] sm:$0xff]  ;;  %v2423_v27 = vld [vmem:[%s2854_s7 + $0x68] sm:$0xff] }
 0x245   : > { %v1313_v28 = vpop.f32.mrf.mxu0 }
 0x246   : > { %v1314_v29 = vadd.f32 %v1313_v28, %v3205_v55  ;;  %v1505_v33 = vpop.f32.mrf.mxu3 }
 0x247   : > { %v1506_v35 = vadd.f32 %v1505_v33, %v1441_v37  ;;  %v1378_v48 = vpop.f32.mrf.mxu1  ;;  %v2424_v37 = vld [vmem:[%s2854_s7 + $0x78] sm:$0xff] }
 0x248   : > { %1572 = vmatmul.f32.gmra.mxu0 %v2405_v36  ;;  %1702 = vmatmul.f32.gmra.mxu2 %v2406_v38  ;;  %v1379_v62 = vadd.f32 %v1378_v48, %v1314_v29  ;;  %v2425_v36 = vld [vmem:[%s2854_s7 + $0xa0] sm:$0xff]  ;;  %v2426_v38 = vld [vmem:[%s2854_s7 + $0xb0] sm:$0xff] }
 0x249   : > { %v2061_v39 = vadd.f32 %v1506_v35, %v605_v32 }
 0x24a   : > { %1637 = vmatmul.f32.gmra.mxu1 %v2407_v15  ;;  %v2428_v15 = vld [vmem:[%s2854_s7 + $0xb8] sm:$0xff] }
 0x24b   : > { %2093 = vst [vmem:[#allocation2 + $0xa8] sm:$0xff] %v2061_v39  ;;  %1767 = vmatmul.f32.gmra.mxu3 %v2408_v40  ;;  %v1443_v34 = vpop.f32.mrf.mxu2 }
 0x24c   : > { %v1444_v55 = vadd.f32 %v1443_v34, %v1379_v62  ;;  %v2427_v62 = vld [vmem:[%s2854_s7 + $0xa8] sm:$0xff] }
 0x24d   : > { %v1316_v41 = vpop.f32.mrf.mxu0 }
 0x24e   : > { %v1317_v42 = vadd.f32 %v1316_v41, %v3215_v9  ;;  %v1508_v44 = vpop.f32.mrf.mxu3 }
 0x24f   : > { %v1509_v45 = vadd.f32 %v1508_v44, %v1444_v55  ;;  %v1381_v47 = vpop.f32.mrf.mxu1  ;;  %v2429_v44 = vld [vmem:[%s2854_s7 + $0xe0] sm:$0xff] }
 0x250   : > { %1575 = vmatmul.f32.gmra.mxu0 %v2409_v50  ;;  %1705 = vmatmul.f32.gmra.mxu2 %v2410_v51  ;;  %v1382_v53 = vadd.f32 %v1381_v47, %v1317_v42  ;;  %v2431_v50 = vld [vmem:[%s2854_s7 + $0xe8] sm:$0xff]  ;;  %v2432_v51 = vld [vmem:[%s2854_s7 + $0xf8] sm:$0xff] }
 0x251   : > { %v2063_v52 = vadd.f32 %v1509_v45, %v607_v43  ;;  %v2430_v45 = vld [vmem:[%s2854_s7 + $0xf0] sm:$0xff] }
 0x252   : > { %1640 = vmatmul.f32.gmra.mxu1 %v2411_v2 }
 0x253   : > { %2095 = vst [vmem:[#allocation2 + $0x10] sm:$0xff] %v2063_v52  ;;  %1770 = vmatmul.f32.gmra.mxu3 %v2412_v54  ;;  %v1446_v56 = vpop.f32.mrf.mxu2 }
 0x254   : > { %v1447_v9 = vadd.f32 %v1446_v56, %v1382_v53 }
 0x255   : > { %v1319_v57 = vpop.f32.mrf.mxu0 }
 0x256   : > { %v1320_v49 = vadd.f32 %v1319_v57, %v3224_v26  ;;  %v1511_v58 = vpop.f32.mrf.mxu3  ;;  %v2433_v57 = vld [vmem:[%s2854_s7 + $0x120] sm:$0xff] }
 0x257   : > { %v1512_v30 = vadd.f32 %v1511_v58, %v1447_v9  ;;  %v1384_v59 = vpop.f32.mrf.mxu1  ;;  %v2435_v58 = vld [vmem:[%s2854_s7 + $0x128] sm:$0xff] }
 0x258   : > { %1578 = vmatmul.f32.gmra.mxu0 %v2413_v60  ;;  %1708 = vmatmul.f32.gmra.mxu2 %v2414_v61  ;;  %v1385_v1 = vadd.f32 %v1384_v59, %v1320_v49  ;;  %v2434_v49 = vld [vmem:[%s2854_s7 + $0x130] sm:$0xff] }
 0x259   : > { %v2065_v63 = vadd.f32 %v1512_v30, %v609_v14  ;;  %v2436_v30 = vld [vmem:[%s2854_s7 + $0x138] sm:$0xff] }
 0x25a   : > { %1643 = vmatmul.f32.gmra.mxu1 %v2415_v3 }
 0x25b   : > { %2097 = vst [vmem:[#allocation2 + $0xa0] sm:$0xff] %v2065_v63  ;;  %1773 = vmatmul.f32.gmra.mxu3 %v2416_v4  ;;  %v1449_v5 = vpop.f32.mrf.mxu2  ;;  %v2437_v4 = vld [vmem:[%s2854_s7 + $0x160] sm:$0xff] }
 0x25c   : > { %v1450_v26 = vadd.f32 %v1449_v5, %v1385_v1  ;;  %v2438_v5 = vld [vmem:[%s2854_s7 + $0x170] sm:$0xff] }
 0x25d   : > { %v1534_v6 = vpop.f32.mrf.mxu0 }
 0x25e   : > { %v1514_v19 = vpop.f32.mrf.mxu3 }
 0x25f   : > { %v1515_v8 = vadd.f32 %v1514_v19, %v1450_v26  ;;  %v1599_v10 = vpop.f32.mrf.mxu1 }
 0x260   : > { %1793 = vmatmul.f32.vlgmr.msrb.gmra.mxu0 %v2417_v11  ;;  %1923 = vmatmul.f32.vlgmr.msrb.gmra.mxu2 %v2418_v12  ;;  %v1600_v31 = vadd.f32 %v1599_v10, %v1534_v6  ;;  %v2439_v6 = vld [vmem:[%s2854_s7 + $0x168] sm:$0xff] }
 0x261   : > { %v2067_v13 = vadd.f32 %v1515_v8, %v611_v7  ;;  %v2440_v7 = vld [vmem:[%s2854_s7 + $0x178] sm:$0xff] }
 0x262   : > { %1858 = vmatmul.f32.vlgmr.msrb.gmra.mxu1 %v2419_v16  ;;  %v2442_v16 = vld [vmem:[%s2854_s7 + $0x1b0] sm:$0xff] }
 0x263   : > { %2099 = vst [vmem:[#allocation2 + $0x20] sm:$0xff] %v2067_v13  ;;  %1988 = vmatmul.f32.vlgmr.msrb.gmra.mxu3 %v2420_v0  ;;  %v1664_v46 = vpop.f32.mrf.mxu2 }
 0x264   : > { %v1665_v17 = vadd.f32 %v1664_v46, %v1600_v31  ;;  %v2441_v31 = vld [vmem:[%s2854_s7 + $0x1a0] sm:$0xff]  ;;  %v2443_v46 = vld [vmem:[%s2854_s7 + $0x1a8] sm:$0xff] }
 0x265   : > { %v1537_v18 = vpop.f32.mrf.mxu0 }
 0x266   : > { %v1729_v20 = vpop.f32.mrf.mxu3 }
 0x267   : > { %v3357_v21 = vadd.f32 %v1729_v20, %v1665_v17  ;;  %v1602_v22 = vpop.f32.mrf.mxu1  ;;  %v2444_v17 = vld [vmem:[%s2854_s7 + $0x1b8] sm:$0xff] }
 0x268   : > { %1796 = vmatmul.f32.gmra.mxu0 %v2421_v23  ;;  %1926 = vmatmul.f32.gmra.mxu2 %v2422_v24  ;;  %v1603_v25 = vadd.f32 %v1602_v22, %v1537_v18 }
 0x26a   : > { %1861 = vmatmul.f32.gmra.mxu1 %v2423_v27  ;;  %v2445_v27 = vld [vmem:[%s2854_s7 + $0x1e0] sm:$0xff] }
 0x26b   : > { %1991 = vmatmul.f32.gmra.mxu3 %v2424_v37  ;;  %v1667_v28 = vpop.f32.mrf.mxu2  ;;  %v2446_v37 = vld [vmem:[%s2854_s7 + $0x1f0] sm:$0xff] }
 0x26c   : > { %v1668_v29 = vadd.f32 %v1667_v28, %v1603_v25 }
 0x26d   : > { %v1540_v32 = vpop.f32.mrf.mxu0 }
 0x26e   : > { %v1732_v33 = vpop.f32.mrf.mxu3 }
 0x26f   : > { %v3363_v35 = vadd.f32 %v1732_v33, %v1668_v29  ;;  %v1605_v48 = vpop.f32.mrf.mxu1  ;;  %v2447_v29 = vld [vmem:[%s2854_s7 + $0x1e8] sm:$0xff] }
 0x270   : > { %1799 = vmatmul.f32.gmra.mxu0 %v2425_v36  ;;  %1929 = vmatmul.f32.gmra.mxu2 %v2426_v38  ;;  %v1606_v39 = vadd.f32 %v1605_v48, %v1540_v32  ;;  %v2448_v32 = vld [vmem:[%s2854_s7 + $0x1f8] sm:$0xff] }
 0x272   : > { %1864 = vmatmul.f32.gmra.mxu1 %v2427_v62 }
 0x273   : > { %1994 = vmatmul.f32.gmra.mxu3 %v2428_v15  ;;  %v1670_v40 = vpop.f32.mrf.mxu2 }
 0x274   : > { %v1671_v34 = vadd.f32 %v1670_v40, %v1606_v39  ;;  %v2449_v40 = vld [vmem:[%s2854_s7 + $0x220] sm:$0xff] }
 0x275   : > { %v1543_v55 = vpop.f32.mrf.mxu0 }
 0x276   : > { %v1735_v41 = vpop.f32.mrf.mxu3 }
 0x277   : > { %v3369_v42 = vadd.f32 %v1735_v41, %v1671_v34  ;;  %v1608_v43 = vpop.f32.mrf.mxu1  ;;  %v2450_v34 = vld [vmem:[%s2854_s7 + $0x230] sm:$0xff]  ;;  %v2452_v41 = vld [vmem:[%s2854_s7 + $0x238] sm:$0xff] }
 0x278   : > { %1802 = vmatmul.f32.gmra.mxu0 %v2429_v44  ;;  %1932 = vmatmul.f32.gmra.mxu2 %v2430_v45  ;;  %v1609_v47 = vadd.f32 %v1608_v43, %v1543_v55  ;;  %v2451_v55 = vld [vmem:[%s2854_s7 + $0x228] sm:$0xff] }
 0x27a   : > { %1867 = vmatmul.f32.gmra.mxu1 %v2431_v50 }
 0x27b   : > { %1997 = vmatmul.f32.gmra.mxu3 %v2432_v51  ;;  %v1673_v52 = vpop.f32.mrf.mxu2 }
 0x27c   : > { %v1674_v53 = vadd.f32 %v1673_v52, %v1609_v47 }
 0x27d   : > { %v1546_v2 = vpop.f32.mrf.mxu0 }
 0x27e   : > { %v1738_v54 = vpop.f32.mrf.mxu3 }
 0x27f   : > { %v3375_v56 = vadd.f32 %v1738_v54, %v1674_v53  ;;  %v1611_v9 = vpop.f32.mrf.mxu1  ;;  %v2453_v53 = vld [vmem:[%s2854_s7 + $0x260] sm:$0xff]  ;;  %v2455_v54 = vld [vmem:[%s2854_s7 + $0x268] sm:$0xff] }
 0x280   : > { %1805 = vmatmul.f32.gmra.mxu0 %v2433_v57  ;;  %1935 = vmatmul.f32.gmra.mxu2 %v2434_v49  ;;  %v1612_v14 = vadd.f32 %v1611_v9, %v1546_v2  ;;  %v2454_v2 = vld [vmem:[%s2854_s7 + $0x270] sm:$0xff]  ;;  %v2456_v9 = vld [vmem:[%s2854_s7 + $0x278] sm:$0xff] }
 0x282   : > { %1870 = vmatmul.f32.gmra.mxu1 %v2435_v58 }
 0x283   : > { %2000 = vmatmul.f32.gmra.mxu3 %v2436_v30  ;;  %v1676_v59 = vpop.f32.mrf.mxu2 }
 0x284   : > { %v1677_v60 = vadd.f32 %v1676_v59, %v1612_v14 }
 0x285   : > { %v1549_v61 = vpop.f32.mrf.mxu0 }
 0x286   : > { %v1741_v63 = vpop.f32.mrf.mxu3 }
 0x287   : > { %v3381_v1 = vadd.f32 %v1741_v63, %v1677_v60  ;;  %v1614_v3 = vpop.f32.mrf.mxu1  ;;  %v2458_v63 = vld [vmem:[%s2854_s7 + $0x2b0] sm:$0xff] }
 0x288   : > { %1808 = vmatmul.f32.gmra.mxu0 %v2437_v4  ;;  %1938 = vmatmul.f32.gmra.mxu2 %v2438_v5  ;;  %v1615_v26 = vadd.f32 %v1614_v3, %v1549_v61  ;;  %v2457_v61 = vld [vmem:[%s2854_s7 + $0x2a0] sm:$0xff]  ;;  %v2459_v3 = vld [vmem:[%s2854_s7 + $0x2a8] sm:$0xff]  ;;  %v2460_v4 = vld [vmem:[%s2854_s7 + $0x2b8] sm:$0xff] }
 0x28a   : > { %1873 = vmatmul.f32.gmra.mxu1 %v2439_v6 }
 0x28b   : > { %2003 = vmatmul.f32.gmra.mxu3 %v2440_v7  ;;  %v1679_v19 = vpop.f32.mrf.mxu2 }
 0x28c   : > { %v1680_v8 = vadd.f32 %v1679_v19, %v1615_v26 }
 0x28d   : > { %v1552_v10 = vpop.f32.mrf.mxu0 }
 0x28e   : > { %v1744_v11 = vpop.f32.mrf.mxu3 }
 0x28f   : > { %v3387_v12 = vadd.f32 %v1744_v11, %v1680_v8  ;;  %v1617_v13 = vpop.f32.mrf.mxu1  ;;  %v2461_v11 = vld [vmem:[%s2854_s7 + $0x2e0] sm:$0xff] }
 0x290   : > { %1811 = vmatmul.f32.gmra.mxu0 %v2441_v31  ;;  %1941 = vmatmul.f32.gmra.mxu2 %v2442_v16  ;;  %v1618_v0 = vadd.f32 %v1617_v13, %v1552_v10  ;;  %v2462_v13 = vld [vmem:[%s2854_s7 + $0x2f0] sm:$0xff]  ;;  %v2463_v31 = vld [vmem:[%s2854_s7 + $0x2e8] sm:$0xff]  ;;  %v2464_v16 = vld [vmem:[%s2854_s7 + $0x2f8] sm:$0xff] }
 0x292   : > { %1876 = vmatmul.f32.gmra.mxu1 %v2443_v46 }
 0x293   : > { %2006 = vmatmul.f32.gmra.mxu3 %v2444_v17  ;;  %v1682_v18 = vpop.f32.mrf.mxu2 }
 0x294   : > { %v1683_v20 = vadd.f32 %v1682_v18, %v1618_v0 }
 0x295   : > { %v1555_v22 = vpop.f32.mrf.mxu0 }
 0x296   : > { %v1747_v23 = vpop.f32.mrf.mxu3 }
 0x297   : > { %v3393_v24 = vadd.f32 %v1747_v23, %v1683_v20  ;;  %v1620_v25 = vpop.f32.mrf.mxu1 }
 0x298   : > { %1814 = vmatmul.f32.gmra.mxu0 %v2445_v27  ;;  %1944 = vmatmul.f32.gmra.mxu2 %v2446_v37  ;;  %v1621_v28 = vadd.f32 %v1620_v25, %v1555_v22  ;;  %v2465_v25 = vld [vmem:[%s2854_s7 + $0x320] sm:$0xff]  ;;  %v2466_v27 = vld [vmem:[%s2854_s7 + $0x330] sm:$0xff]  ;;  %v2467_v37 = vld [vmem:[%s2854_s7 + $0x328] sm:$0xff] }
 0x29a   : > { %1879 = vmatmul.f32.gmra.mxu1 %v2447_v29 }
 0x29b   : > { %2009 = vmatmul.f32.gmra.mxu3 %v2448_v32  ;;  %v1685_v33 = vpop.f32.mrf.mxu2 }
 0x29c   : > { %v1686_v48 = vadd.f32 %v1685_v33, %v1621_v28  ;;  %v2468_v28 = vld [vmem:[%s2854_s7 + $0x338] sm:$0xff] }
 0x29d   : > { %v1558_v36 = vpop.f32.mrf.mxu0 }
 0x29e   : > { %v1750_v38 = vpop.f32.mrf.mxu3 }
 0x29f   : > { %v3399_v39 = vadd.f32 %v1750_v38, %v1686_v48  ;;  %v1623_v62 = vpop.f32.mrf.mxu1 }
 0x2a0   : > { %v1624_v15 = vadd.f32 %v1623_v62, %v1558_v36  ;;  %1817 = vmatmul.f32.gmra.mxu0 %v2449_v40  ;;  %1947 = vmatmul.f32.gmra.mxu2 %v2450_v34  ;;  %v2470_v40 = vld [vmem:[%s2854_s7 + $0x370] sm:$0xff]  ;;  %v2471_v34 = vld [vmem:[%s2854_s7 + $0x368] sm:$0xff] }
 0x2a2   : > { %1882 = vmatmul.f32.gmra.mxu1 %v2451_v55  ;;  %v2472_v55 = vld [vmem:[%s2854_s7 + $0x378] sm:$0xff] }
 0x2a3   : > { %2012 = vmatmul.f32.gmra.mxu3 %v2452_v41  ;;  %v1688_v43 = vpop.f32.mrf.mxu2 }
 0x2a4   : > { %v1689_v44 = vadd.f32 %v1688_v43, %v1624_v15  ;;  %v2469_v15 = vld [vmem:[%s2854_s7 + $0x360] sm:$0xff] }
 0x2a5   : > { %v1561_v45 = vpop.f32.mrf.mxu0 }
 0x2a6   : > { %v1753_v47 = vpop.f32.mrf.mxu3 }
 0x2a7   : > { %v3405_v50 = vadd.f32 %v1753_v47, %v1689_v44  ;;  %v1626_v51 = vpop.f32.mrf.mxu1 }
 0x2a8   : > { %v1627_v52 = vadd.f32 %v1626_v51, %v1561_v45  ;;  %1820 = vmatmul.f32.gmra.mxu0 %v2453_v53  ;;  %1950 = vmatmul.f32.gmra.mxu2 %v2454_v2  ;;  %v2473_v53 = vld [vmem:[%s2854_s7 + $0x3a0] sm:$0xff]  ;;  %v2474_v2 = vld [vmem:[%s2854_s7 + $0x3b0] sm:$0xff] }
 0x2aa   : > { %1885 = vmatmul.f32.gmra.mxu1 %v2455_v54  ;;  %v2475_v54 = vld [vmem:[%s2854_s7 + $0x3a8] sm:$0xff] }
 0x2ab   : > { %2015 = vmatmul.f32.gmra.mxu3 %v2456_v9  ;;  %v1691_v57 = vpop.f32.mrf.mxu2  ;;  %v2476_v9 = vld [vmem:[%s2854_s7 + $0x3b8] sm:$0xff] }
 0x2ac   : > { %v1692_v49 = vadd.f32 %v1691_v57, %v1627_v52 }
 0x2ad   : > { %v1564_v14 = vpop.f32.mrf.mxu0 }
 0x2ae   : > { %v1756_v58 = vpop.f32.mrf.mxu3 }
 0x2af   : > { %v3411_v30 = vadd.f32 %v1756_v58, %v1692_v49  ;;  %v1629_v59 = vpop.f32.mrf.mxu1 }
 0x2b0   : > { %v1630_v60 = vadd.f32 %v1629_v59, %v1564_v14  ;;  %1823 = vmatmul.f32.gmra.mxu0 %v2457_v61  ;;  %1953 = vmatmul.f32.gmra.mxu2 %v2458_v63  ;;  %v2477_v63 = vld [vmem:[%s2854_s7 + $0x3e0] sm:$0xff] }
 0x2b2   : > { %1888 = vmatmul.f32.gmra.mxu1 %v2459_v3  ;;  %v2478_v3 = vld [vmem:[%s2854_s7 + $0x3f0] sm:$0xff] }
 0x2b3   : > { %2018 = vmatmul.f32.gmra.mxu3 %v2460_v4  ;;  %v1694_v5 = vpop.f32.mrf.mxu2  ;;  %v2479_v4 = vld [vmem:[%s2854_s7 + $0x3e8] sm:$0xff] }
 0x2b4   : > { %v1695_v26 = vadd.f32 %v1694_v5, %v1630_v60  ;;  %v2480_v5 = vld [vmem:[%s2854_s7 + $0x3f8] sm:$0xff] }
 0x2b5   : > { %v1567_v6 = vpop.f32.mrf.mxu0 }
 0x2b6   : > { %v1759_v7 = vpop.f32.mrf.mxu3 }
 0x2b7   : > { %v3417_v19 = vadd.f32 %v1759_v7, %v1695_v26  ;;  %v1632_v8 = vpop.f32.mrf.mxu1 }
 0x2b8   : > { %v1633_v10 = vadd.f32 %v1632_v8, %v1567_v6  ;;  %1826 = vmatmul.f32.gmra.mxu0 %v2461_v11  ;;  %1956 = vmatmul.f32.gmra.mxu2 %v2462_v13 }
 0x2ba   : > { %1891 = vmatmul.f32.gmra.mxu1 %v2463_v31 }
 0x2bb   : > { %2021 = vmatmul.f32.gmra.mxu3 %v2464_v16  ;;  %v1697_v0 = vpop.f32.mrf.mxu2 }
 0x2bc   : > { %v1698_v46 = vadd.f32 %v1697_v0, %v1633_v10 }
 0x2bd   : > { %v1570_v17 = vpop.f32.mrf.mxu0 }
 0x2be   : > { %v1762_v18 = vpop.f32.mrf.mxu3 }
 0x2bf   : > { %v3423_v20 = vadd.f32 %v1762_v18, %v1698_v46  ;;  %v1635_v22 = vpop.f32.mrf.mxu1  ;;  %v582_v18 = vld [vmem:[#allocation2] sm:$0xff] }
 0x2c0   : > { %v1636_v23 = vadd.f32 %v1635_v22, %v1570_v17  ;;  %1829 = vmatmul.f32.gmra.mxu0 %v2465_v25  ;;  %1959 = vmatmul.f32.gmra.mxu2 %v2466_v27 }
 0x2c2   : > { %1894 = vmatmul.f32.gmra.mxu1 %v2467_v37 }
 0x2c3   : > { %2024 = vmatmul.f32.gmra.mxu3 %v2468_v28  ;;  %v1700_v29 = vpop.f32.mrf.mxu2 }
 0x2c4   : > { %v1701_v32 = vadd.f32 %v1700_v29, %v1636_v23 }
 0x2c5   : > { %v1573_v33 = vpop.f32.mrf.mxu0 }
 0x2c6   : > { %v1765_v48 = vpop.f32.mrf.mxu3 }
 0x2c7   : > { %v3429_v36 = vadd.f32 %v1765_v48, %v1701_v32  ;;  %v1638_v38 = vpop.f32.mrf.mxu1 }
 0x2c8   : > { %v1639_v62 = vadd.f32 %v1638_v38, %v1573_v33  ;;  %1832 = vmatmul.f32.gmra.mxu0 %v2469_v15  ;;  %1962 = vmatmul.f32.gmra.mxu2 %v2470_v40  ;;  %v584_v33 = vld [vmem:[#allocation2 + $0x18] sm:$0xff] }
 0x2ca   : > { %1897 = vmatmul.f32.gmra.mxu1 %v2471_v34 }
 0x2cb   : > { %2027 = vmatmul.f32.gmra.mxu3 %v2472_v55  ;;  %v1703_v41 = vpop.f32.mrf.mxu2 }
 0x2cc   : > { %v1704_v43 = vadd.f32 %v1703_v41, %v1639_v62 }
 0x2cd   : > { %v1576_v44 = vpop.f32.mrf.mxu0 }
 0x2ce   : > { %v1768_v45 = vpop.f32.mrf.mxu3 }
 0x2cf   : > { %v3435_v47 = vadd.f32 %v1768_v45, %v1704_v43  ;;  %v1641_v51 = vpop.f32.mrf.mxu1  ;;  %v586_v43 = vld [vmem:[#allocation2 + $0x68] sm:$0xff] }
 0x2d0   : > { %v1642_v52 = vadd.f32 %v1641_v51, %v1576_v44  ;;  %1835 = vmatmul.f32.gmra.mxu0 %v2473_v53  ;;  %1965 = vmatmul.f32.gmra.mxu2 %v2474_v2 }
 0x2d2   : > { %1900 = vmatmul.f32.gmra.mxu1 %v2475_v54 }
 0x2d3   : > { %2030 = vmatmul.f32.gmra.mxu3 %v2476_v9  ;;  %v1706_v57 = vpop.f32.mrf.mxu2 }
 0x2d4   : > { %v1707_v49 = vadd.f32 %v1706_v57, %v1642_v52  ;;  %v588_v57 = vld [vmem:[#allocation2 + $0x48] sm:$0xff] }
 0x2d5   : > { %v1579_v14 = vpop.f32.mrf.mxu0 }
 0x2d6   : > { %v1771_v58 = vpop.f32.mrf.mxu3 }
 0x2d7   : > { %v3441_v59 = vadd.f32 %v1771_v58, %v1707_v49  ;;  %v1644_v60 = vpop.f32.mrf.mxu1 }
 0x2d8   : > { %v1645_v61 = vadd.f32 %v1644_v60, %v1579_v14  ;;  %1838 = vmatmul.f32.gmra.mxu0 %v2477_v63  ;;  %1968 = vmatmul.f32.gmra.mxu2 %v2478_v3 }
 0x2da   : > { %1903 = vmatmul.f32.gmra.mxu1 %v2479_v4 }
 0x2db   : > { %2033 = vmatmul.f32.gmra.mxu3 %v2480_v5  ;;  %v1709_v26 = vpop.f32.mrf.mxu2  ;;  %v590_v5 = vld [vmem:[#allocation2 + $0x88] sm:$0xff] }
 0x2dc   : > { %v1710_v6 = vadd.f32 %v1709_v26, %v1645_v61 }
 0x2dd   : > { %v1794_v7 = vpop.f32.mrf.mxu0 }
 0x2de   : > { %v1774_v8 = vpop.f32.mrf.mxu3  ;;  %v1795_v10 = vadd.f32 %v1794_v7, %v3357_v21 }
 0x2df   : > { %v3448_v11 = vadd.f32 %v1774_v8, %v1710_v6  ;;  %v1859_v13 = vpop.f32.mrf.mxu1 }
 0x2e0   : > { %v1860_v31 = vadd.f32 %v1859_v13, %v1795_v10 }
 0x2e3   : > { %v1924_v16 = vpop.f32.mrf.mxu2 }
 0x2e4   : > { %v1925_v0 = vadd.f32 %v1924_v16, %v1860_v31 }
 0x2e5   : > { %v1797_v46 = vpop.f32.mrf.mxu0 }
 0x2e6   : > { %v1798_v17 = vadd.f32 %v1797_v46, %v3363_v35  ;;  %v1989_v22 = vpop.f32.mrf.mxu3 }
 0x2e7   : > { %v1990_v23 = vadd.f32 %v1989_v22, %v1925_v0  ;;  %v1862_v25 = vpop.f32.mrf.mxu1  ;;  %v592_v0 = vld [vmem:[#allocation2 + $0xb8] sm:$0xff] }
 0x2e8   : > { %v1863_v37 = vadd.f32 %v1862_v25, %v1798_v17 }
 0x2e9   : > { %v2038_v27 = vadd.f32 %v1990_v23, %v582_v18 }
 0x2eb   : > { %2070 = vst [vmem:[#allocation2] sm:$0xff] %v2038_v27  ;;  %v1927_v28 = vpop.f32.mrf.mxu2 }
 0x2ec   : > { %v1928_v29 = vadd.f32 %v1927_v28, %v1863_v37  ;;  %v594_v28 = vld [vmem:[#allocation2 + $0xf0] sm:$0xff] }
 0x2ed   : > { %v1800_v32 = vpop.f32.mrf.mxu0 }
 0x2ee   : > { %v1801_v21 = vadd.f32 %v1800_v32, %v3369_v42  ;;  %v1992_v48 = vpop.f32.mrf.mxu3 }
 0x2ef   : > { %v1993_v38 = vadd.f32 %v1992_v48, %v1928_v29  ;;  %v1865_v62 = vpop.f32.mrf.mxu1 }
 0x2f0   : > { %v1866_v40 = vadd.f32 %v1865_v62, %v1801_v21 }
 0x2f1   : > { %v2040_v15 = vadd.f32 %v1993_v38, %v584_v33 }
 0x2f3   : > { %2072 = vst [vmem:[#allocation2 + $0x18] sm:$0xff] %v2040_v15  ;;  %v1930_v35 = vpop.f32.mrf.mxu2 }
 0x2f4   : > { %v1931_v34 = vadd.f32 %v1930_v35, %v1866_v40  ;;  %v596_v40 = vld [vmem:[#allocation2 + $0x78] sm:$0xff] }
 0x2f5   : > { %v1803_v55 = vpop.f32.mrf.mxu0 }
 0x2f6   : > { %v1804_v41 = vadd.f32 %v1803_v55, %v3375_v56  ;;  %v1995_v44 = vpop.f32.mrf.mxu3 }
 0x2f7   : > { %v1996_v45 = vadd.f32 %v1995_v44, %v1931_v34  ;;  %v1868_v51 = vpop.f32.mrf.mxu1 }
 0x2f8   : > { %v1869_v53 = vadd.f32 %v1868_v51, %v1804_v41 }
 0x2f9   : > { %v2042_v52 = vadd.f32 %v1996_v45, %v586_v43 }
 0x2fb   : > { %2074 = vst [vmem:[#allocation2 + $0x68] sm:$0xff] %v2042_v52  ;;  %v1933_v42 = vpop.f32.mrf.mxu2  ;;  %v598_v52 = vld [vmem:[#allocation2 + $0x58] sm:$0xff] }
 0x2fc   : > { %v1934_v2 = vadd.f32 %v1933_v42, %v1869_v53 }
 0x2fd   : > { %v1806_v54 = vpop.f32.mrf.mxu0 }
 0x2fe   : > { %v1807_v9 = vadd.f32 %v1806_v54, %v3381_v1  ;;  %v1998_v49 = vpop.f32.mrf.mxu3 }
 0x2ff   : > { %v1999_v14 = vadd.f32 %v1998_v49, %v1934_v2  ;;  %v1871_v58 = vpop.f32.mrf.mxu1 }
 0x300   : > { %v1872_v61 = vadd.f32 %v1871_v58, %v1807_v9  ;;  %v600_v58 = vld [vmem:[#allocation2 + $0xc8] sm:$0xff] }
 0x301   : > { %v2044_v60 = vadd.f32 %v1999_v14, %v588_v57 }
 0x303   : > { %2076 = vst [vmem:[#allocation2 + $0x48] sm:$0xff] %v2044_v60  ;;  %v1936_v56 = vpop.f32.mrf.mxu2 }
 0x304   : > { %v1937_v63 = vadd.f32 %v1936_v56, %v1872_v61 }
 0x305   : > { %v1809_v3 = vpop.f32.mrf.mxu0 }
 0x306   : > { %v1810_v4 = vadd.f32 %v1809_v3, %v3387_v12  ;;  %v2001_v26 = vpop.f32.mrf.mxu3 }
 0x307   : > { %v2002_v6 = vadd.f32 %v2001_v26, %v1937_v63  ;;  %v1874_v7 = vpop.f32.mrf.mxu1 }
 0x308   : > { %v1875_v10 = vadd.f32 %v1874_v7, %v1810_v4 }
 0x309   : > { %v2046_v8 = vadd.f32 %v2002_v6, %v590_v5  ;;  %v602_v6 = vld [vmem:[#allocation2 + $0x90] sm:$0xff] }
 0x30b   : > { %2078 = vst [vmem:[#allocation2 + $0x88] sm:$0xff] %v2046_v8  ;;  %v1939_v1 = vpop.f32.mrf.mxu2 }
 0x30c   : > { %v1940_v13 = vadd.f32 %v1939_v1, %v1875_v10 }
 0x30d   : > { %v1812_v31 = vpop.f32.mrf.mxu0 }
 0x30e   : > { %v1813_v16 = vadd.f32 %v1812_v31, %v3393_v24  ;;  %v2004_v46 = vpop.f32.mrf.mxu3 }
 0x30f   : > { %v2005_v17 = vadd.f32 %v2004_v46, %v1940_v13  ;;  %v1877_v18 = vpop.f32.mrf.mxu1  ;;  %v604_v46 = vld [vmem:[#allocation2 + $0xc0] sm:$0xff] }
 0x310   : > { %v1878_v23 = vadd.f32 %v1877_v18, %v1813_v16 }
 0x311   : > { %v2048_v22 = vadd.f32 %v2005_v17, %v592_v0 }
 0x313   : > { %2080 = vst [vmem:[#allocation2 + $0xb8] sm:$0xff] %v2048_v22  ;;  %v1942_v12 = vpop.f32.mrf.mxu2 }
 0x314   : > { %v1943_v25 = vadd.f32 %v1942_v12, %v1878_v23 }
 0x315   : > { %v1815_v27 = vpop.f32.mrf.mxu0 }
 0x316   : > { %v1816_v37 = vadd.f32 %v1815_v27, %v3399_v39  ;;  %v2007_v29 = vpop.f32.mrf.mxu3 }
 0x317   : > { %v2008_v32 = vadd.f32 %v2007_v29, %v1943_v25  ;;  %v1880_v21 = vpop.f32.mrf.mxu1 }
 0x318   : > { %v1881_v48 = vadd.f32 %v1880_v21, %v1816_v37 }
 0x319   : > { %v2050_v33 = vadd.f32 %v2008_v32, %v594_v28  ;;  %v606_v28 = vld [vmem:[#allocation2 + $0xd0] sm:$0xff] }
 0x31b   : > { %2082 = vst [vmem:[#allocation2 + $0xf0] sm:$0xff] %v2050_v33  ;;  %v1945_v24 = vpop.f32.mrf.mxu2 }
 0x31c   : > { %v1946_v38 = vadd.f32 %v1945_v24, %v1881_v48 }
 0x31d   : > { %v1818_v62 = vpop.f32.mrf.mxu0 }
 0x31e   : > { %v1819_v15 = vadd.f32 %v1818_v62, %v3405_v50  ;;  %v2010_v35 = vpop.f32.mrf.mxu3 }
 0x31f   : > { %v2011_v34 = vadd.f32 %v2010_v35, %v1946_v38  ;;  %v1883_v55 = vpop.f32.mrf.mxu1 }
 0x320   : > { %v1884_v43 = vadd.f32 %v1883_v55, %v1819_v15  ;;  %v608_v15 = vld [vmem:[#allocation2 + $0x28] sm:$0xff] }
 0x321   : > { %v2052_v41 = vadd.f32 %v2011_v34, %v596_v40 }
 0x323   : > { %2084 = vst [vmem:[#allocation2 + $0x78] sm:$0xff] %v2052_v41  ;;  %v1948_v39 = vpop.f32.mrf.mxu2 }
 0x324   : > { %v1949_v44 = vadd.f32 %v1948_v39, %v1884_v43 }
 0x325   : > { %v1821_v45 = vpop.f32.mrf.mxu0 }
 0x326   : > { %v1822_v51 = vadd.f32 %v1821_v45, %v3411_v30  ;;  %v2013_v53 = vpop.f32.mrf.mxu3  ;;  %v610_v45 = vld [vmem:[#allocation2 + $0xf8] sm:$0xff] }
 0x327   : > { %v2014_v42 = vadd.f32 %v2013_v53, %v1949_v44  ;;  %v1886_v2 = vpop.f32.mrf.mxu1 }
 0x328   : > { %v1887_v9 = vadd.f32 %v1886_v2, %v1822_v51 }
 0x329   : > { %v2054_v54 = vadd.f32 %v2014_v42, %v598_v52 }
 0x32b   : > { %2086 = vst [vmem:[#allocation2 + $0x58] sm:$0xff] %v2054_v54  ;;  %v1951_v50 = vpop.f32.mrf.mxu2 }
 0x32c   : > { %v1952_v57 = vadd.f32 %v1951_v50, %v1887_v9  ;;  %v612_v9 = vld [vmem:[#allocation2 + $0x98] sm:$0xff] }
 0x32d   : > { %v1824_v49 = vpop.f32.mrf.mxu0 }
 0x32e   : > { %v1825_v14 = vadd.f32 %v1824_v49, %v3417_v19  ;;  %v2016_v60 = vpop.f32.mrf.mxu3 }
 0x32f   : > { %v2017_v61 = vadd.f32 %v2016_v60, %v1952_v57  ;;  %v1889_v56 = vpop.f32.mrf.mxu1 }
 0x330   : > { %v1890_v3 = vadd.f32 %v1889_v56, %v1825_v14 }
 0x331   : > { %v2056_v63 = vadd.f32 %v2017_v61, %v600_v58 }
 0x333   : > { %2088 = vst [vmem:[#allocation2 + $0xc8] sm:$0xff] %v2056_v63  ;;  %v1954_v30 = vpop.f32.mrf.mxu2 }
 0x334   : > { %v1955_v4 = vadd.f32 %v1954_v30, %v1890_v3 }
 0x335   : > { %v1827_v5 = vpop.f32.mrf.mxu0 }
 0x336   : > { %v1828_v26 = vadd.f32 %v1827_v5, %v3423_v20  ;;  %v2019_v7 = vpop.f32.mrf.mxu3 }
 0x337   : > { %v2020_v8 = vadd.f32 %v2019_v7, %v1955_v4  ;;  %v1892_v10 = vpop.f32.mrf.mxu1 }
 0x338   : > { %v1893_v13 = vadd.f32 %v1892_v10, %v1828_v26 }
 0x339   : > { %v2058_v1 = vadd.f32 %v2020_v8, %v602_v6 }
 0x33b   : > { %2090 = vst [vmem:[#allocation2 + $0x90] sm:$0xff] %v2058_v1  ;;  %v1957_v19 = vpop.f32.mrf.mxu2 }
 0x33c   : > { %v1958_v31 = vadd.f32 %v1957_v19, %v1893_v13 }
 0x33d   : > { %v1830_v16 = vpop.f32.mrf.mxu0 }
 0x33e   : > { %v1831_v0 = vadd.f32 %v1830_v16, %v3429_v36  ;;  %v2022_v17 = vpop.f32.mrf.mxu3 }
 0x33f   : > { %v2023_v18 = vadd.f32 %v2022_v17, %v1958_v31  ;;  %v1895_v22 = vpop.f32.mrf.mxu1 }
 0x340   : > { %v1896_v12 = vadd.f32 %v1895_v22, %v1831_v0 }
 0x341   : > { %v2060_v23 = vadd.f32 %v2023_v18, %v604_v46 }
 0x343   : > { %2092 = vst [vmem:[#allocation2 + $0xc0] sm:$0xff] %v2060_v23  ;;  %v1960_v20 = vpop.f32.mrf.mxu2 }
 0x344   : > { %v1961_v25 = vadd.f32 %v1960_v20, %v1896_v12 }
 0x345   : > { %v1833_v27 = vpop.f32.mrf.mxu0 }
 0x346   : > { %v1834_v37 = vadd.f32 %v1833_v27, %v3435_v47  ;;  %v2025_v29 = vpop.f32.mrf.mxu3 }
 0x347   : > { %v2026_v32 = vadd.f32 %v2025_v29, %v1961_v25  ;;  %v1898_v21 = vpop.f32.mrf.mxu1 }
 0x348   : > { %v1899_v48 = vadd.f32 %v1898_v21, %v1834_v37 }
 0x349   : > { %v2062_v33 = vadd.f32 %v2026_v32, %v606_v28 }
 0x34b   : > { %2094 = vst [vmem:[#allocation2 + $0xd0] sm:$0xff] %v2062_v33  ;;  %v1963_v36 = vpop.f32.mrf.mxu2 }
 0x34c   : > { %v1964_v24 = vadd.f32 %v1963_v36, %v1899_v48 }
 0x34d   : > { %v1836_v38 = vpop.f32.mrf.mxu0 }
 0x34e   : > { %v1837_v62 = vadd.f32 %v1836_v38, %v3441_v59  ;;  %v2028_v40 = vpop.f32.mrf.mxu3 }
 0x34f   : > { %v2029_v35 = vadd.f32 %v2028_v40, %v1964_v24  ;;  %v1901_v34 = vpop.f32.mrf.mxu1 }
 0x350   : > { %v1902_v41 = vadd.f32 %v1901_v34, %v1837_v62 }
 0x351   : > { %v2064_v55 = vadd.f32 %v2029_v35, %v608_v15 }
 0x353   : > { %2096 = vst [vmem:[#allocation2 + $0x28] sm:$0xff] %v2064_v55  ;;  %v1966_v47 = vpop.f32.mrf.mxu2 }
 0x354   : > { %v1967_v43 = vadd.f32 %v1966_v47, %v1902_v41 }
 0x355   : > { %v1839_v39 = vpop.f32.mrf.mxu0 }
 0x356   : > { %v1840_v44 = vadd.f32 %v1839_v39, %v3448_v11  ;;  %v2031_v51 = vpop.f32.mrf.mxu3 }
 0x357   : > { %v2032_v52 = vadd.f32 %v2031_v51, %v1967_v43  ;;  %v1904_v53 = vpop.f32.mrf.mxu1 }
 0x358   : > { %v1905_v2 = vadd.f32 %v1904_v53, %v1840_v44 }
 0x359   : > { %v2066_v42 = vadd.f32 %v2032_v52, %v610_v45 }
 0x35b   : > { %2098 = vst [vmem:[#allocation2 + $0xf8] sm:$0xff] %v2066_v42  ;;  %v1969_v59 = vpop.f32.mrf.mxu2 }
 0x35c   : > { %v1970_v54 = vadd.f32 %v1969_v59, %v1905_v2 }
 0x35e   : > { %v2034_v50 = vpop.f32.mrf.mxu3 }
 0x35f   : > { %v2035_v57 = vadd.f32 %v2034_v50, %v1970_v54  ;;  %2104 = sbr.rel (%p2305_p11) target bundleno = 901 (0x385), region = 63 }
 0x361   : > { %v2068_v49 = vadd.f32 %v2035_v57, %v612_v9 }
 0x363   : > { %2100 = vst [vmem:[#allocation2 + $0x98] sm:$0xff] %v2068_v49 }
 0x364   : > { %v2105_v14 = vld [vmem:[#allocation2 + $0xb0] sm:$0xff]  ;;  %v2106_v58 = vld [vmem:[#allocation2] sm:$0xff]  ;;  %v2107_v11 = vld [vmem:[#allocation2 + $0xd8] sm:$0xff] }
 0x365   : > { %2137 = vst [vmem:[%s3580_s3] sm:$0xff] %v2105_v14  ;;  %v2108_v60 = vld [vmem:[#allocation2 + $0x18] sm:$0xff]  ;;  %v2109_v61 = vld [vmem:[#allocation2 + $0x50] sm:$0xff]  ;;  %v2110_v56 = vld [vmem:[#allocation2 + $0x68] sm:$0xff] }
 0x366   : > { %2138 = vst [vmem:[%s3580_s3 + $0x8] sm:$0xff] %v2106_v58  ;;  %v2111_v63 = vld [vmem:[#allocation2 + $0x30] sm:$0xff]  ;;  %v2112_v3 = vld [vmem:[#allocation2 + $0x48] sm:$0xff]  ;;  %v2113_v30 = vld [vmem:[#allocation2 + $0x80] sm:$0xff] }
 0x367   : > { %2139 = vst [vmem:[%s3580_s3 + $0x10] sm:$0xff] %v2107_v11  ;;  %v2114_v4 = vld [vmem:[#allocation2 + $0x88] sm:$0xff]  ;;  %v2116_v26 = vld [vmem:[#allocation2 + $0xb8] sm:$0xff]  ;;  %v2117_v6 = vld [vmem:[#allocation2 + $0x60] sm:$0xff] }
 0x368   : > { %2140 = vst [vmem:[%s3580_s3 + $0x18] sm:$0xff] %v2108_v60  ;;  %v2115_v5 = vld [vmem:[#allocation2 + $0xe8] sm:$0xff]  ;;  %v2118_v7 = vld [vmem:[#allocation2 + $0xf0] sm:$0xff]  ;;  %v2120_v10 = vld [vmem:[#allocation2 + $0x78] sm:$0xff] }
 0x369   : > { %2141 = vst [vmem:[%s3580_s3 + $0x20] sm:$0xff] %v2109_v61  ;;  %v2119_v8 = vld [vmem:[#allocation2 + $0x8] sm:$0xff]  ;;  %v2121_v1 = vld [vmem:[#allocation2 + $0x38] sm:$0xff]  ;;  %v2123_v19 = vld [vmem:[#allocation2 + $0x40] sm:$0xff] }
 0x36a   : > { %2142 = vst [vmem:[%s3580_s3 + $0x28] sm:$0xff] %v2110_v56  ;;  %v2122_v13 = vld [vmem:[#allocation2 + $0x58] sm:$0xff]  ;;  %v2124_v31 = vld [vmem:[#allocation2 + $0xc8] sm:$0xff]  ;;  %v2125_v16 = vld [vmem:[#allocation2 + $0xe0] sm:$0xff] }
 0x36b   : > { %2143 = vst [vmem:[%s3580_s3 + $0x30] sm:$0xff] %v2111_v63  ;;  %v2126_v0 = vld [vmem:[#allocation2 + $0x90] sm:$0xff]  ;;  %v2128_v17 = vld [vmem:[#allocation2 + $0xc0] sm:$0xff]  ;;  %v2129_v18 = vld [vmem:[#allocation2 + $0xa8] sm:$0xff] }
 0x36c   : > { %2144 = vst [vmem:[%s3580_s3 + $0x38] sm:$0xff] %v2112_v3  ;;  %v2127_v46 = vld [vmem:[#allocation2 + $0x70] sm:$0xff]  ;;  %v2132_v12 = vld [vmem:[#allocation2 + $0x28] sm:$0xff]  ;;  %v2133_v20 = vld [vmem:[#allocation2 + $0xa0] sm:$0xff] }
 0x36d   : > { %2145 = vst [vmem:[%s3580_s3 + $0x40] sm:$0xff] %v2113_v30  ;;  %v2130_v22 = vld [vmem:[#allocation2 + $0xd0] sm:$0xff]  ;;  %v2134_v25 = vld [vmem:[#allocation2 + $0xf8] sm:$0xff]  ;;  %v2135_v27 = vld [vmem:[#allocation2 + $0x20] sm:$0xff] }
 0x36e   : > { %2146 = vst [vmem:[%s3580_s3 + $0x48] sm:$0xff] %v2114_v4  ;;  %v2131_v23 = vld [vmem:[#allocation2 + $0x10] sm:$0xff]  ;;  %v2136_v37 = vld [vmem:[#allocation2 + $0x98] sm:$0xff] }
 0x36f   : > { %2147 = vst [vmem:[%s3580_s3 + $0x50] sm:$0xff] %v2115_v5 }
 0x370   : > { %2148 = vst [vmem:[%s3580_s3 + $0x58] sm:$0xff] %v2116_v26 }
 0x371   : > { %2149 = vst [vmem:[%s3580_s3 + $0x60] sm:$0xff] %v2117_v6 }
 0x372   : > { %2150 = vst [vmem:[%s3580_s3 + $0x68] sm:$0xff] %v2118_v7 }
 0x373   : > { %2151 = vst [vmem:[%s3580_s3 + $0x70] sm:$0xff] %v2119_v8 }
 0x374   : > { %2152 = vst [vmem:[%s3580_s3 + $0x78] sm:$0xff] %v2120_v10 }
 0x375   : > { %2153 = vst [vmem:[%s3580_s3 + $0x80] sm:$0xff] %v2121_v1 }
 0x376   : > { %2154 = vst [vmem:[%s3580_s3 + $0x88] sm:$0xff] %v2122_v13 }
 0x377   : > { %2155 = vst [vmem:[%s3580_s3 + $0x90] sm:$0xff] %v2123_v19 }
 0x378   : > { %2156 = vst [vmem:[%s3580_s3 + $0x98] sm:$0xff] %v2124_v31 }
 0x379   : > { %2157 = vst [vmem:[%s3580_s3 + $0xa0] sm:$0xff] %v2125_v16 }
 0x37a   : > { %2158 = vst [vmem:[%s3580_s3 + $0xa8] sm:$0xff] %v2126_v0 }
 0x37b   : > { %2159 = vst [vmem:[%s3580_s3 + $0xb0] sm:$0xff] %v2127_v46 }
 0x37c   : > { %2160 = vst [vmem:[%s3580_s3 + $0xb8] sm:$0xff] %v2128_v17 }
 0x37d   : > { %2161 = vst [vmem:[%s3580_s3 + $0xc0] sm:$0xff] %v2129_v18 }
 0x37e   : > { %2162 = vst [vmem:[%s3580_s3 + $0xc8] sm:$0xff] %v2130_v22 }
 0x37f   : > { %2163 = vst [vmem:[%s3580_s3 + $0xd0] sm:$0xff] %v2131_v23 }
 0x380   : > { %2164 = vst [vmem:[%s3580_s3 + $0xd8] sm:$0xff] %v2132_v12 }
 0x381   : > { %2165 = vst [vmem:[%s3580_s3 + $0xe0] sm:$0xff] %v2133_v20 }
 0x382   : > { %2166 = vst [vmem:[%s3580_s3 + $0xe8] sm:$0xff] %v2134_v25 }
 0x383   : > { %2167 = vst [vmem:[%s3580_s3 + $0xf0] sm:$0xff] %v2135_v27 }
 0x384   : > { %2168 = vst [vmem:[%s3580_s3 + $0xf8] sm:$0xff] %v2136_v37 }
 0x385 PF: > { %s13_s16 = sadd.s32 1, %s2519_s16   ;;  %s3581_s12 = smov %s2507_s13 }
 0x386   : > { %p10_p12 = scmp.ge.s32.totalorder %s13_s16, 4   ;;  %s3582_s13 = smov %s2577_s19 }
 0x387   : > { %s3583_s14 = smov %s2515_s15  ;;  %s3584_s15 = smov %s3586_s2 }
 0x388   :  { %12 = sbr.rel (!%p10_p12) target bundleno = 3 (0x3), region = 104 }

// kernel: discriminator_forward.19
= control target key start
LH: loop header
LB: loop body
LE: loop exit
PB: predicated region body
PF: predicated region fallthrough
CT: control target
= control target key end

     0   :  { %v14_v0 = vlaneseq  ;;  %v168_v11 = vmov 0.0   ;;  %vm80_vm1 = vcmask 1040384   ;;  %vm82_vm2 = vcmask 1042434   ;;  %s268_s0 = inlined_call_operand.vmem [shape: f32[32,512], index: 0, kind: input, shape index: {}]   ;;  %s269_s1 = inlined_call_operand.vmem [shape: f32[1,512], index: 1, kind: output, shape index: {0}]   ;;  %s270_s2 = inlined_call_operand.vmem [shape: f32[1,512], index: 2, kind: output, shape index: {1}]  }
   0x1   :  { %v20_v1 = vld [vmem:[%s268_s0] sm:$0xff]  ;;  %v21_v2 = vld [vmem:[%s268_s0 + $0x8] sm:$0xff]  ;;  %v22_v3 = vld [vmem:[%s268_s0 + $0x10] sm:$0xff]  ;;  %vm84_vm3 = vcmask 1041408  }
   0x2   :  { %vm193_vm0 = vcmp.lt.s32.totalorder %v14_v0, 512  ;;  %v23_v5 = vld [vmem:[%s268_s0 + $0x18] sm:$0xff]  ;;  %v24_v6 = vld [vmem:[%s268_s0 + $0x20] sm:$0xff]  ;;  %v25_v7 = vld [vmem:[%s268_s0 + $0x28] sm:$0xff]  ;;  %v94_v8 = vmul.f32 %v20_v1, %v20_v1  ;;  %v95_v9 = vmul.f32 %v21_v2, %v21_v2  ;;  %v96_v10 = vmul.f32 %v22_v3, %v22_v3 }
   0x3   :  { %18 = vst.msk [vmem:[%s269_s1] sm:$0xf] %vm193_vm0, %v168_v11  ;;  %v26_v12 = vld [vmem:[%s268_s0 + $0x30] sm:$0xff]  ;;  %v27_v13 = vld [vmem:[%s268_s0 + $0x38] sm:$0xff]  ;;  %v28_v14 = vld [vmem:[%s268_s0 + $0x40] sm:$0xff]  ;;  %v37_v15 = vadd.f32 %v24_v6, %v20_v1  ;;  %v46_v16 = vadd.f32 %v25_v7, %v21_v2  ;;  %v97_v17 = vmul.f32 %v23_v5, %v23_v5  ;;  %v98_v18 = vmul.f32 %v24_v6, %v24_v6 }
   0x4   :  { %v29_v19 = vld [vmem:[%s268_s0 + $0x48] sm:$0xff]  ;;  %v30_v20 = vld [vmem:[%s268_s0 + $0x50] sm:$0xff]  ;;  %v31_v21 = vld [vmem:[%s268_s0 + $0x58] sm:$0xff]  ;;  %v55_v22 = vadd.f32 %v26_v12, %v22_v3  ;;  %v64_v23 = vadd.f32 %v27_v13, %v23_v5  ;;  %19 = vst.msk [vmem:[%s270_s2] sm:$0xf] %vm193_vm0, %v168_v11  ;;  %v99_v24 = vmul.f32 %v25_v7, %v25_v7  ;;  %v100_v25 = vmul.f32 %v26_v12, %v26_v12 }
   0x5   :  { %v32_v26 = vld [vmem:[%s268_s0 + $0x60] sm:$0xff]  ;;  %v33_v27 = vld [vmem:[%s268_s0 + $0x68] sm:$0xff]  ;;  %v34_v28 = vld [vmem:[%s268_s0 + $0x70] sm:$0xff]  ;;  %v38_v29 = vadd.f32 %v37_v15, %v28_v14  ;;  %v47_v30 = vadd.f32 %v46_v16, %v29_v19  ;;  %v101_v31 = vmul.f32 %v27_v13, %v27_v13  ;;  %v102_v32 = vmul.f32 %v28_v14, %v28_v14 }
   0x6   :  { %v35_v33 = vld [vmem:[%s268_s0 + $0x78] sm:$0xff]  ;;  %v56_v34 = vadd.f32 %v55_v22, %v30_v20  ;;  %v65_v35 = vadd.f32 %v64_v23, %v31_v21  ;;  %v103_v36 = vmul.f32 %v29_v19, %v29_v19  ;;  %v104_v37 = vmul.f32 %v30_v20, %v30_v20 }
   0x7   :  { %v39_v38 = vadd.f32 %v38_v29, %v32_v26  ;;  %v48_v39 = vadd.f32 %v47_v30, %v33_v27  ;;  %v105_v40 = vmul.f32 %v31_v21, %v31_v21  ;;  %v106_v41 = vmul.f32 %v32_v26, %v32_v26 }
   0x8   :  { %v57_v42 = vadd.f32 %v56_v34, %v34_v28  ;;  %v66_v43 = vadd.f32 %v65_v35, %v35_v33  ;;  %v107_v44 = vmul.f32 %v33_v27, %v33_v27  ;;  %v108_v45 = vmul.f32 %v34_v28, %v34_v28 }
   0x9   :  { %v40_v46 = vrot.slane %v39_v38, 4  ;;  %v49_v47 = vrot.slane %v48_v39, 4  ;;  %v109_v48 = vmul.f32 %v35_v33, %v35_v33  ;;  %v110_v49 = vadd.f32 %v98_v18, %v94_v8 }
   0xa   :  { %v58_v50 = vrot.slane %v57_v42, 4  ;;  %v67_v51 = vrot.slane %v66_v43, 4  ;;  %v119_v52 = vadd.f32 %v99_v24, %v95_v9  ;;  %v128_v53 = vadd.f32 %v100_v25, %v96_v10 }
   0xb   :  { %v41_v54 = vadd.f32 %v40_v46, %v39_v38  ;;  %v50_v55 = vadd.f32 %v49_v47, %v48_v39  ;;  %v111_v56 = vadd.f32 %v110_v49, %v102_v32  ;;  %v137_v57 = vadd.f32 %v101_v31, %v97_v17  ;;  %v36_v38 = vld [vmem:[%s269_s1] sm:$0xf] }
   0xc   :  { %v59_v58 = vadd.f32 %v58_v50, %v57_v42  ;;  %v68_v59 = vadd.f32 %v67_v51, %v66_v43  ;;  %v120_v60 = vadd.f32 %v119_v52, %v103_v36  ;;  %v129_v61 = vadd.f32 %v128_v53, %v104_v37 }
   0xd   :  { %v42_v62 = vrot.slane %v41_v54, 2  ;;  %v51_v63 = vrot.slane %v50_v55, 2  ;;  %v112_v0 = vadd.f32 %v111_v56, %v106_v41  ;;  %v138_v1 = vadd.f32 %v137_v57, %v105_v40 }
   0xe   :  { %v60_v2 = vrot.slane %v59_v58, 2  ;;  %v69_v3 = vrot.slane %v68_v59, 2  ;;  %v121_v5 = vadd.f32 %v120_v60, %v107_v44  ;;  %v130_v6 = vadd.f32 %v129_v61, %v108_v45 }
   0xf   :  { %v43_v7 = vadd.f32 %v42_v62, %v41_v54  ;;  %v52_v8 = vadd.f32 %v51_v63, %v50_v55  ;;  %v113_v9 = vrot.slane %v112_v0, 4  ;;  %v139_v10 = vadd.f32 %v138_v1, %v109_v48  ;;  %v93_v55 = vld [vmem:[%s270_s2] sm:$0xf] }
  0x10   :  { %v61_v11 = vadd.f32 %v60_v2, %v59_v58  ;;  %v70_v12 = vadd.f32 %v69_v3, %v68_v59  ;;  %v122_v13 = vrot.slane %v121_v5, 4  ;;  %v131_v14 = vrot.slane %v130_v6, 4 }
  0x11   :  { %v44_v15 = vrot.slane %v43_v7, 1  ;;  %v53_v16 = vrot.slane %v52_v8, 1  ;;  %v114_v17 = vadd.f32 %v113_v9, %v112_v0  ;;  %v140_v18 = vrot.slane %v139_v10, 4 }
  0x12   :  { %v62_v19 = vrot.slane %v61_v11, 1  ;;  %v71_v20 = vrot.slane %v70_v12, 1  ;;  %v123_v21 = vadd.f32 %v122_v13, %v121_v5  ;;  %v132_v22 = vadd.f32 %v131_v14, %v130_v6 }
  0x13   :  { %v45_v23 = vadd.f32 %v44_v15, %v43_v7  ;;  %v54_v24 = vadd.f32 %v53_v16, %v52_v8  ;;  %v115_v25 = vrot.slane %v114_v17, 2  ;;  %v141_v26 = vadd.f32 %v140_v18, %v139_v10 }
  0x14   :  { %v63_v27 = vadd.f32 %v62_v19, %v61_v11  ;;  %v72_v28 = vadd.f32 %v71_v20, %v70_v12  ;;  %v124_v29 = vrot.slane %v123_v21, 2  ;;  %v133_v30 = vrot.slane %v132_v22, 2 }
  0x15   :  { %v77_v31 = vrot.slane %v54_v24, 7  ;;  %v116_v32 = vadd.f32 %v115_v25, %v114_v17  ;;  %v142_v33 = vrot.slane %v141_v26, 2 }
  0x16   :  { %v78_v34 = vrot.slane %v63_v27, 6  ;;  %v79_v35 = vrot.slane %v72_v28, 5  ;;  %v125_v36 = vadd.f32 %v124_v29, %v123_v21  ;;  %v134_v37 = vadd.f32 %v133_v30, %v132_v22 }
  0x17   :  { %v81_v39 = vsel %vm80_vm1, %v45_v23, %v77_v31  ;;  %v117_v40 = vrot.slane %v116_v32, 1  ;;  %v143_v41 = vadd.f32 %v142_v33, %v141_v26 }
  0x18   :  { %v83_v42 = vsel %vm82_vm2, %v78_v34, %v79_v35  ;;  %v126_v43 = vrot.slane %v125_v36, 1  ;;  %v135_v44 = vrot.slane %v134_v37, 1 }
  0x19   :  { %v85_v45 = vsel %vm84_vm3, %v81_v39, %v83_v42  ;;  %v144_v46 = vrot.slane %v143_v41, 1  ;;  %v118_v48 = vadd.f32 %v117_v40, %v116_v32 }
  0x1a   :  { %v87_v47 = vadd.f32 %v85_v45, %v36_v38  ;;  %v127_v49 = vadd.f32 %v126_v43, %v125_v36  ;;  %v136_v50 = vadd.f32 %v135_v44, %v134_v37 }
  0x1b   :  { %v145_v51 = vadd.f32 %v144_v46, %v143_v41 }
  0x1c   :  { %92 = vst.msk [vmem:[%s269_s1] sm:$0xf] %vm193_vm0, %v87_v47  ;;  %v150_v52 = vrot.slane %v127_v49, 7  ;;  %v151_v53 = vrot.slane %v136_v50, 6 }
  0x1d   :  { %v152_v54 = vrot.slane %v145_v51, 5 }
  0x1e   :  { %v153_v56 = vsel %vm80_vm1, %v118_v48, %v150_v52 }
  0x1f   :  { %v154_v57 = vsel %vm82_vm2, %v151_v53, %v152_v54 }
  0x20   :  { %v155_v58 = vsel %vm84_vm3, %v153_v56, %v154_v57 }
  0x21   :  { %v157_v59 = vadd.f32 %v155_v58, %v93_v55 }
  0x23   :  { %158 = vst.msk [vmem:[%s270_s2] sm:$0xf] %vm193_vm0, %v157_v59 }

// kernel: discriminator_forward.20
= control target key start
LH: loop header
LB: loop body
LE: loop exit
PB: predicated region body
PF: predicated region fallthrough
CT: control target
= control target key end

     0   :  { %s716_s18 = smov 0   ;;  %s718_s19 = smov 0   ;;  %s811_s0 = inlined_call_operand.vmem [shape: f32[32,512], index: 0, kind: input, shape index: {}]   ;;  %s812_s1 = inlined_call_operand.vmem [shape: f32[1,512], index: 1, kind: input, shape index: {}]   ;;  %s813_s2 = inlined_call_operand.vmem [shape: f32[1,512], index: 2, kind: input, shape index: {}]   ;;  %s814_s3 = inlined_call_operand.vmem [shape: f32[1,512], index: 3, kind: input, shape index: {}]   ;;  %s815_s4 = inlined_call_operand.vmem [shape: f32[1,512], index: 4, kind: input, shape index: {}]   ;;  %s816_s5 = inlined_call_operand.vmem [shape: f32[32,512], index: 5, kind: output, shape index: {}]  }
   0x1   :  { %s720_s20 = smov 0   ;;  %s722_s21 = smov 0  }
   0x2   :  { %s724_s22 = smov 0  }
   0x3 LB: > { %s24_s23 = sadd.s32 1, %s680_s21  ;;  %s583_s24 = sadd.s32 4294967295, %s684_s22   ;;  %s684_s22 = sphi %s724_s22, %s15_s22   ;;  %s680_s21 = sphi %s722_s21, %s821_s21   ;;  %s676_s20 = sphi %s720_s20, %s820_s20   ;;  %s672_s19 = sphi %s718_s19, %s819_s19   ;;  %s668_s18 = sphi %s716_s18, %s818_s18  }
   0x4   : > { %p25_p0 = scmp.ge.s32.totalorder %s24_s23, 2  ;;  %p43_p1 = scmp.ne.s32.totalorder %s672_s19, %s668_s18 }
   0x5   : > { %p44_p2 = scmp.eq.s32.totalorder %s684_s22, 0  ;;  %p179_p4 = scmp.eq.s32.totalorder %s583_s24, 1 }
   0x6   : > { %s823_s23 = smov (%p25_p0, %s24_s23), 0  ;;  %s36_s26 = sadd.s32 1, %s672_s19 }
   0x7   : > { %p45_p3 = por %p44_p2, %p43_p1  ;;  %s32_s25 = ssub.s32 %s680_s21, %s823_s23 }
   0x8   : > { %p34_p5 = scmp.eq.s32.totalorder %s32_s25, 0  ;;  %p751_p6 = por %p179_p4, %p43_p1 }
   0x9   : > { %p586_p7 = scmp.ge.s32.totalorder %s684_s22, 2 }
   0xa   : > { %s756_s28 = scalar_select %p34_p5, %s672_s19, %s36_s26  }
   0xb   : > { %201 = sbr.rel (%p586_p7) target bundleno = 28 (0x1c), region = 16 }
  0x10   : > { %204 = sbr.rel (!%p45_p3) target bundleno = 28 (0x1c), region = 20  ;;  %s206_s29 = sand.u32 (%p45_p3), 1, %s672_s19  }
  0x11   : > { %s602_s30 = sshll.u32 (%p45_p3), %s680_s21, 4  ;;  %s587_s6 = sshll.u32 (%p45_p3), %s206_s29, 6 }
  0x12   : > { %s214_s9 = scalar_lea.vmem (%p45_p3), %s811_s0, %s602_s30  ;;  %s208_s10 = scalar_lea.vmem (%p45_p3), [#allocation2], %s587_s6 }
  0x13   : > { %v227_v0 = vld [vmem:[%s214_s9] sm:$0xff] (%p45_p3)  ;;  %v229_v1 = vld [vmem:[%s214_s9 + $0x8] sm:$0xff] (%p45_p3) }
  0x14   : > { %v231_v2 = vld [vmem:[%s214_s9 + $0x20] sm:$0xff] (%p45_p3)  ;;  %228 = vst [vmem:[%s208_s10] sm:$0xff] (%p45_p3), %v227_v0  ;;  %v233_v3 = vld [vmem:[%s214_s9 + $0x28] sm:$0xff] (%p45_p3) }
  0x15   : > { %230 = vst [vmem:[%s208_s10 + $0x8] sm:$0xff] %v229_v1  ;;  %v235_v4 = vld [vmem:[%s214_s9 + $0x40] sm:$0xff]  ;;  %v237_v5 = vld [vmem:[%s214_s9 + $0x48] sm:$0xff] }
  0x16   : > { %232 = vst [vmem:[%s208_s10 + $0x10] sm:$0xff] %v231_v2  ;;  %v239_v6 = vld [vmem:[%s214_s9 + $0x60] sm:$0xff]  ;;  %v241_v7 = vld [vmem:[%s214_s9 + $0x68] sm:$0xff] }
  0x17   : > { %234 = vst [vmem:[%s208_s10 + $0x18] sm:$0xff] %v233_v3 }
  0x18   : > { %236 = vst [vmem:[%s208_s10 + $0x20] sm:$0xff] %v235_v4 }
  0x19   : > { %238 = vst [vmem:[%s208_s10 + $0x28] sm:$0xff] %v237_v5 }
  0x1a   : > { %240 = vst [vmem:[%s208_s10 + $0x30] sm:$0xff] %v239_v6 }
  0x1b   : > { %242 = vst [vmem:[%s208_s10 + $0x38] sm:$0xff] %v241_v7 }
  0x1c PF: > { %p590_p8 = scmp.ge.s32.totalorder %s684_s22, 1  ;;  %p279_p9 = scmp.lt.s32.totalorder %s684_s22, 3 }
  0x1e   : > { %p280_p10 = pnand %p590_p8, %p279_p9 }
  0x1f   : > { %s593_s11 = sshll.u32 (!%p280_p10), %s676_s20, 1  ;;  %s286_s24 = sand.u32 (!%p280_p10), 1, %s668_s18  }
  0x20   : > { %283 = sbr.rel (%p280_p10) target bundleno = 96 (0x60), region = 59  ;;  %p331_p11 = scmp.lt.s32.totalorder (!%p280_p10), %s593_s11, 3 }
  0x21   : > { %s778_s25 = sshll.u32 (!%p280_p10), %s286_s24, 6 }
  0x22   : > { %s288_s18 = scalar_lea.vmem (!%p280_p10), [#allocation2], %s778_s25  ;;  %s327_s9 = scalar_lea.vmem (!%p280_p10), [#allocation3], %s778_s25 }
  0x25   : > { %s825_s11 = smov (!%p331_p11, %s593_s11), 3  ;;  %v374_v24 = vld [vmem:[%s288_s18] sm:$0xff]  ;;  %v375_v25 = vld [vmem:[%s288_s18 + $0x8] sm:$0xff]  ;;  %v376_v27 = vld [vmem:[%s288_s18 + $0x10] sm:$0xff]  ;;  %s603_s10 = sshll.u32 (%p751_p6), %s676_s20, 4 }
  0x26   : > { %s333_s14 = scalar_lea.vmem %s812_s1, %s825_s11  ;;  %s338_s17 = scalar_lea.vmem %s813_s2, %s825_s11  ;;  %v377_v28 = vld [vmem:[%s288_s18 + $0x18] sm:$0xff]  ;;  %v378_v32 = vld [vmem:[%s288_s18 + $0x20] sm:$0xff]  ;;  %v379_v33 = vld [vmem:[%s288_s18 + $0x28] sm:$0xff] }
  0x27   : > { %v352_v8 = vld [vmem:[%s333_s14] sm:$0x3]  ;;  %s343_s30 = scalar_lea.vmem %s814_s3, %s825_s11  ;;  %s348_s8 = scalar_lea.vmem %s815_s4, %s825_s11  ;;  %v380_v34 = vld [vmem:[%s288_s18 + $0x30] sm:$0xff]  ;;  %v381_v35 = vld [vmem:[%s288_s18 + $0x38] sm:$0xff] }
  0x28   : > { %v354_v9 = vld [vmem:[%s338_s17] sm:$0x3]  ;;  %v353_v10 = vmul.f32 0.03125, %v352_v8  ;;  %s444_s13 = scalar_lea.vmem (%p751_p6), %s816_s5, %s603_s10 }
  0x29   : > { %v355_v11 = vmul.f32 0.03125, %v354_v9  ;;  %v358_v20 = vld [vmem:[%s343_s30] sm:$0x3] }
  0x2a   : > { %v356_v12 = vmul.f32 %v353_v10, %v353_v10  ;;  %v371_v26 = vld [vmem:[%s348_s8] sm:$0x3] }
  0x2c   : > { %v357_v13 = vsub.f32 %v355_v11, %v356_v12 }
  0x2e   : > { %v359_v14 = vadd.f32 1e-05, %v357_v13 }
  0x30   : > { %644 = vrsqrt.f32 %v359_v14  ;;  %vm366_vm0 = vweird.f32 %v359_v14 }
  0x36   : > { %v645_v15 = vpop.eup %644 }
  0x37   : > { %v361_v16 = vmul.f32 %v645_v15, %v359_v14  ;;  %vm367_vm1 = vweird.f32 %v645_v15 }
  0x38   : > { %vm368_vm2 = vmor %vm366_vm0, %vm367_vm1 }
  0x39   : > { %v362_v17 = vmul.f32 %v645_v15, %v361_v16 }
  0x3b   : > { %v363_v18 = vmul.f32 0.5, %v362_v17 }
  0x3d   : > { %v364_v19 = vsub.f32 1.5, %v363_v18 }
  0x3f   : > { %v365_v21 = vmul.f32 %v645_v15, %v364_v19 }
  0x41   : > { %v369_v22 = vsel %vm368_vm2, %v645_v15, %v365_v21 }
  0x42   : > { %v370_v23 = vmul.f32 %v369_v22, %v358_v20 }
  0x44   : > { %v372_v29 = vmul.f32 %v370_v23, %v353_v10  ;;  %v383_v30 = vperm.slane %v370_v23, 0  ;;  %v384_v31 = vperm.slane %v370_v23, 1 }
  0x46   : > { %v373_v36 = vsub.f32 %v371_v26, %v372_v29  ;;  %v387_v37 = vmul.f32 %v383_v30, %v374_v24  ;;  %v388_v38 = vmul.f32 %v384_v31, %v375_v25  ;;  %v389_v39 = vmul.f32 %v383_v30, %v376_v27 }
  0x47   : > { %v390_v40 = vmul.f32 %v384_v31, %v377_v28  ;;  %v391_v41 = vmul.f32 %v383_v30, %v378_v32  ;;  %v392_v42 = vmul.f32 %v384_v31, %v379_v33  ;;  %v393_v43 = vmul.f32 %v383_v30, %v380_v34 }
  0x48   : > { %v396_v44 = vperm.slane %v373_v36, 0  ;;  %v397_v45 = vperm.slane %v373_v36, 1  ;;  %v394_v46 = vmul.f32 %v384_v31, %v381_v35 }
  0x4a   : > { %v400_v47 = vadd.f32 %v396_v44, %v387_v37  ;;  %v401_v48 = vadd.f32 %v397_v45, %v388_v38  ;;  %v402_v49 = vadd.f32 %v396_v44, %v389_v39  ;;  %v403_v50 = vadd.f32 %v397_v45, %v390_v40 }
  0x4b   : > { %v404_v51 = vadd.f32 %v396_v44, %v391_v41  ;;  %v405_v52 = vadd.f32 %v397_v45, %v392_v42  ;;  %v406_v53 = vadd.f32 %v396_v44, %v393_v43  ;;  %v407_v54 = vadd.f32 %v397_v45, %v394_v46 }
  0x4c   : > { %v408_v55 = vmul.f32 0.2, %v400_v47  ;;  %v409_v56 = vmul.f32 0.2, %v401_v48  ;;  %v410_v57 = vmul.f32 0.2, %v402_v49 }
  0x4d   : > { %v411_v58 = vmul.f32 0.2, %v403_v50  ;;  %v412_v59 = vmul.f32 0.2, %v404_v51  ;;  %v413_v60 = vmul.f32 0.2, %v405_v52 }
  0x4e   : > { %v416_v61 = vmax.f32 %v400_v47, %v408_v55  ;;  %v417_v62 = vmax.f32 %v401_v48, %v409_v56  ;;  %v418_v63 = vmax.f32 %v402_v49, %v410_v57  ;;  %v414_v0 = vmul.f32 0.2, %v406_v53 }
  0x4f   : > { %v419_v1 = vmax.f32 %v403_v50, %v411_v58  ;;  %v415_v2 = vmul.f32 0.2, %v407_v54  ;;  %v420_v3 = vmax.f32 %v404_v51, %v412_v59  ;;  %v421_v4 = vmax.f32 %v405_v52, %v413_v60 }
  0x50   : > { %424 = vst [vmem:[%s327_s9] sm:$0xff] %v416_v61  ;;  %v422_v5 = vmax.f32 %v406_v53, %v414_v0 }
  0x51   : > { %425 = vst [vmem:[%s327_s9 + $0x8] sm:$0xff] %v417_v62  ;;  %v423_v6 = vmax.f32 %v407_v54, %v415_v2 }
  0x52   : > { %426 = vst [vmem:[%s327_s9 + $0x10] sm:$0xff] %v418_v63 }
  0x53   : > { %427 = vst [vmem:[%s327_s9 + $0x18] sm:$0xff] %v419_v1  ;;  %438 = sbr.rel (!%p751_p6) target bundleno = 96 (0x60), region = 67 }
  0x54   : > { %428 = vst [vmem:[%s327_s9 + $0x20] sm:$0xff] %v420_v3 }
  0x55   : > { %429 = vst [vmem:[%s327_s9 + $0x28] sm:$0xff] %v421_v4 }
  0x56   : > { %430 = vst [vmem:[%s327_s9 + $0x30] sm:$0xff] %v422_v5 }
  0x57   : > { %431 = vst [vmem:[%s327_s9 + $0x38] sm:$0xff] %v423_v6  ;;  %v457_v7 = vld [vmem:[%s327_s9] sm:$0xff] (%p751_p6) }
  0x58   : > { %v459_v8 = vld [vmem:[%s327_s9 + $0x8] sm:$0xff]  ;;  %458 = vst [vmem:[%s444_s13] sm:$0xff] %v457_v7 }
  0x59   : > { %v461_v9 = vld [vmem:[%s327_s9 + $0x10] sm:$0xff]  ;;  %460 = vst [vmem:[%s444_s13 + $0x8] sm:$0xff] %v459_v8 }
  0x5a   : > { %v463_v10 = vld [vmem:[%s327_s9 + $0x18] sm:$0xff]  ;;  %462 = vst [vmem:[%s444_s13 + $0x20] sm:$0xff] %v461_v9 }
  0x5b   : > { %v465_v11 = vld [vmem:[%s327_s9 + $0x20] sm:$0xff]  ;;  %464 = vst [vmem:[%s444_s13 + $0x28] sm:$0xff] %v463_v10 }
  0x5c   : > { %v467_v12 = vld [vmem:[%s327_s9 + $0x28] sm:$0xff]  ;;  %466 = vst [vmem:[%s444_s13 + $0x40] sm:$0xff] %v465_v11 }
  0x5d   : > { %v469_v13 = vld [vmem:[%s327_s9 + $0x30] sm:$0xff]  ;;  %468 = vst [vmem:[%s444_s13 + $0x48] sm:$0xff] %v467_v12 }
  0x5e   : > { %v471_v14 = vld [vmem:[%s327_s9 + $0x38] sm:$0xff]  ;;  %470 = vst [vmem:[%s444_s13 + $0x60] sm:$0xff] %v469_v13 }
  0x5f   : > { %472 = vst [vmem:[%s444_s13 + $0x68] sm:$0xff] %v471_v14 }
  0x60 PF: > { %s15_s22 = sadd.s32 1, %s684_s22   ;;  %s818_s18 = smov %s672_s19 }
  0x61   : > { %p12_p12 = scmp.ge.s32.totalorder %s15_s22, 4   ;;  %s819_s19 = smov %s756_s28 }
  0x62   : > { %s820_s20 = smov %s680_s21  ;;  %s821_s21 = smov %s823_s23 }
  0x63   :  { %14 = sbr.rel (!%p12_p12) target bundleno = 3 (0x3), region = 133 }

// kernel: discriminator_forward.18
= control target key start
LH: loop header
LB: loop body
LE: loop exit
PB: predicated region body
PF: predicated region fallthrough
CT: control target
= control target key end

     0   :  { %s2036_s12 = smov 0   ;;  %s2038_s13 = smov 0   ;;  %s3218_s0 = inlined_call_operand.vmem [shape: f32[32,4096], index: 0, kind: input, shape index: {}]   ;;  %s3219_s1 = inlined_call_operand.vmem [shape: f32[4096,512], index: 1, kind: input, shape index: {}]   ;;  %s3220_s2 = inlined_call_operand.vmem [shape: f32[1,512], index: 2, kind: input, shape index: {}]   ;;  %s3221_s3 = inlined_call_operand.vmem [shape: f32[32,512], index: 3, kind: output, shape index: {}]  }
   0x1   :  { %s2040_s14 = smov 0   ;;  %s2042_s15 = smov 0  }
   0x2   :  { %s2044_s16 = smov 0   ;;  %s2046_s17 = smov 0  }
   0x3   :  { %s2048_s18 = smov 0   ;;  %s2050_s19 = smov 0  }
   0x4   :  { %s2052_s2 = smov 0   ;;  %s2054_s20 = smov 0  }
   0x5   :  { %s2056_s21 = smov 0  }
   0x6 LB: > { %s1812_s22 = sadd.s32 4294967295, %s2013_s21   ;;  %s25_s23 = sadd.s32 1, %s2005_s2  ;;  %s2013_s21 = sphi %s2056_s21, %s13_s21   ;;  %s2009_s20 = sphi %s2054_s20, %s3234_s20   ;;  %s2005_s2 = sphi %s2052_s2, %s3233_s2   ;;  %s2001_s19 = sphi %s2050_s19, %s3232_s19   ;;  %s1997_s18 = sphi %s2048_s18, %s3231_s18   ;;  %s1993_s17 = sphi %s2046_s17, %s3230_s17   ;;  %s1989_s16 = sphi %s2044_s16, %s3229_s16   ;;  %s1985_s15 = sphi %s2042_s15, %s3228_s15   ;;  %s1981_s14 = sphi %s2040_s14, %s3227_s14   ;;  %s1977_s13 = sphi %s2038_s13, %s3226_s13   ;;  %s1973_s12 = sphi %s2036_s12, %s3225_s12  }
   0x7   : > { %p26_p0 = scmp.ge.s32.totalorder %s25_s23, 4  ;;  %s28_s24 = sadd.s32 1, %s2009_s20 }
   0x8   : > { %s41_s25 = sadd.s32 1, %s1993_s17  ;;  %p48_p1 = scmp.ne.s32.totalorder %s1993_s17, %s1989_s16 }
   0x9   : > { %s3236_s23 = smov (%p26_p0, %s25_s23), 0  ;;  %s3238_s24 = smov (!%p26_p0, %s28_s24), %s2009_s20 }
   0xa   : > { %s37_s26 = ssub.s32 %s2005_s2, %s3236_s23  ;;  %p49_p2 = scmp.eq.s32.totalorder %s2013_s21, 0 }
   0xb   : > { %p30_p3 = scmp.ge.s32.totalorder %s3238_s24, 2  ;;  %p39_p4 = scmp.eq.s32.totalorder %s37_s26, 0 }
   0xc   : > { %p2103_p5 = por %p49_p2, %p48_p1  ;;  %s69_s28 = sadd.s32 1, %s1985_s15 }
   0xd   : > { %s3240_s24 = smov (%p30_p3, %s3238_s24), 0  ;;  %p76_p6 = scmp.ne.s32.totalorder %s1985_s15, %s1981_s14 }
   0xe   : > { %s2111_s29 = scalar_select %p39_p4, %s1993_s17, %s41_s25  }
   0xf   : > { %s65_s30 = ssub.s32 %s2009_s20, %s3240_s24  ;;  %p2117_p9 = por %p76_p6, %p49_p2 }
  0x10   : > { %s66_s4 = sor.u32 %s65_s30, %s37_s26  ;;  %p121_p7 = scmp.eq.s32.totalorder %s65_s30, 0 }
  0x11   : > { %p67_p8 = scmp.eq.s32.totalorder %s66_s4, 0  ;;  %s123_s6 = sadd.s32 1, %s1977_s13 }
  0x12   : > { %p133_p10 = scmp.ne.s32.totalorder %s1977_s13, %s1973_s12  ;;  %p134_p11 = scmp.eq.s32.totalorder %s1812_s22, 7 }
  0x13   : > { %s2125_s7 = scalar_select %p67_p8, %s1985_s15, %s69_s28  }
  0x14   : > { %s2128_s8 = scalar_select %p121_p7, %s1977_s13, %s123_s6  }
  0x15   : > { %p2130_p12 = por %p134_p11, %p133_p10  ;;  %p1815_p13 = scmp.ge.s32.totalorder %s2013_s21, 8 }
  0x17   : > { %156 = sbr.rel (%p1815_p13) target bundleno = 327 (0x147), region = 16 }
  0x1c   : > { %159 = sbr.rel (!%p2103_p5) target bundleno = 64 (0x40), region = 20  ;;  %s161_s10 = sand.u32 (%p2103_p5), 1, %s1993_s17  }
  0x1d   : > { %s1835_s11 = sshll.u32 (%p2103_p5), %s2005_s2, 6  ;;  %s1816_s25 = sshll.u32 (%p2103_p5), %s161_s10, 8 }
  0x1e   : > { %s2142_s30 = scalar_lea.vmem (%p2103_p5), %s3218_s0, %s1835_s11  ;;  %s2147_s22 = scalar_lea.vmem (%p2103_p5), [#allocation3], %s1816_s25 }
  0x1f   : > { %v182_v0 = vld [vmem:[%s2142_s30] sm:$0xff] (%p2103_p5)  ;;  %v184_v1 = vld [vmem:[%s2142_s30 + $0x8] sm:$0xff] (%p2103_p5)  ;;  %v186_v2 = vld [vmem:[%s2142_s30 + $0x10] sm:$0xff] (%p2103_p5) }
  0x20   : > { %183 = vst [vmem:[%s2147_s22] sm:$0xff] (%p2103_p5), %v182_v0  ;;  %v188_v3 = vld [vmem:[%s2142_s30 + $0x18] sm:$0xff] (%p2103_p5)  ;;  %v190_v4 = vld [vmem:[%s2142_s30 + $0x20] sm:$0xff] (%p2103_p5)  ;;  %v192_v5 = vld [vmem:[%s2142_s30 + $0x28] sm:$0xff] (%p2103_p5) }
  0x21   : > { %185 = vst [vmem:[%s2147_s22 + $0x8] sm:$0xff] %v184_v1  ;;  %v194_v6 = vld [vmem:[%s2142_s30 + $0x30] sm:$0xff]  ;;  %v196_v7 = vld [vmem:[%s2142_s30 + $0x38] sm:$0xff]  ;;  %v198_v8 = vld [vmem:[%s2142_s30 + $0x100] sm:$0xff] }
  0x22   : > { %187 = vst [vmem:[%s2147_s22 + $0x10] sm:$0xff] %v186_v2  ;;  %v200_v9 = vld [vmem:[%s2142_s30 + $0x108] sm:$0xff]  ;;  %v202_v10 = vld [vmem:[%s2142_s30 + $0x110] sm:$0xff]  ;;  %v204_v11 = vld [vmem:[%s2142_s30 + $0x118] sm:$0xff] }
  0x23   : > { %189 = vst [vmem:[%s2147_s22 + $0x18] sm:$0xff] %v188_v3  ;;  %v206_v12 = vld [vmem:[%s2142_s30 + $0x120] sm:$0xff]  ;;  %v208_v13 = vld [vmem:[%s2142_s30 + $0x128] sm:$0xff]  ;;  %v210_v14 = vld [vmem:[%s2142_s30 + $0x130] sm:$0xff] }
  0x24   : > { %191 = vst [vmem:[%s2147_s22 + $0x20] sm:$0xff] %v190_v4  ;;  %v212_v15 = vld [vmem:[%s2142_s30 + $0x138] sm:$0xff]  ;;  %v214_v16 = vld [vmem:[%s2142_s30 + $0x200] sm:$0xff]  ;;  %v216_v17 = vld [vmem:[%s2142_s30 + $0x208] sm:$0xff] }
  0x25   : > { %193 = vst [vmem:[%s2147_s22 + $0x28] sm:$0xff] %v192_v5  ;;  %v218_v18 = vld [vmem:[%s2142_s30 + $0x210] sm:$0xff]  ;;  %v220_v19 = vld [vmem:[%s2142_s30 + $0x218] sm:$0xff]  ;;  %v222_v20 = vld [vmem:[%s2142_s30 + $0x220] sm:$0xff] }
  0x26   : > { %195 = vst [vmem:[%s2147_s22 + $0x30] sm:$0xff] %v194_v6  ;;  %v224_v21 = vld [vmem:[%s2142_s30 + $0x228] sm:$0xff]  ;;  %v226_v22 = vld [vmem:[%s2142_s30 + $0x230] sm:$0xff]  ;;  %v228_v23 = vld [vmem:[%s2142_s30 + $0x238] sm:$0xff] }
  0x27   : > { %197 = vst [vmem:[%s2147_s22 + $0x38] sm:$0xff] %v196_v7  ;;  %v230_v24 = vld [vmem:[%s2142_s30 + $0x300] sm:$0xff]  ;;  %v232_v25 = vld [vmem:[%s2142_s30 + $0x308] sm:$0xff]  ;;  %v234_v26 = vld [vmem:[%s2142_s30 + $0x310] sm:$0xff] }
  0x28   : > { %199 = vst [vmem:[%s2147_s22 + $0x40] sm:$0xff] %v198_v8  ;;  %v236_v27 = vld [vmem:[%s2142_s30 + $0x318] sm:$0xff]  ;;  %v238_v28 = vld [vmem:[%s2142_s30 + $0x320] sm:$0xff]  ;;  %v240_v29 = vld [vmem:[%s2142_s30 + $0x328] sm:$0xff] }
  0x29   : > { %201 = vst [vmem:[%s2147_s22 + $0x48] sm:$0xff] %v200_v9  ;;  %v242_v30 = vld [vmem:[%s2142_s30 + $0x330] sm:$0xff]  ;;  %v244_v31 = vld [vmem:[%s2142_s30 + $0x338] sm:$0xff] }
  0x2a   : > { %203 = vst [vmem:[%s2147_s22 + $0x50] sm:$0xff] %v202_v10 }
  0x2b   : > { %205 = vst [vmem:[%s2147_s22 + $0x58] sm:$0xff] %v204_v11 }
  0x2c   : > { %207 = vst [vmem:[%s2147_s22 + $0x60] sm:$0xff] %v206_v12 }
  0x2d   : > { %209 = vst [vmem:[%s2147_s22 + $0x68] sm:$0xff] %v208_v13 }
  0x2e   : > { %211 = vst [vmem:[%s2147_s22 + $0x70] sm:$0xff] %v210_v14 }
  0x2f   : > { %213 = vst [vmem:[%s2147_s22 + $0x78] sm:$0xff] %v212_v15 }
  0x30   : > { %215 = vst [vmem:[%s2147_s22 + $0x80] sm:$0xff] %v214_v16 }
  0x31   : > { %217 = vst [vmem:[%s2147_s22 + $0x88] sm:$0xff] %v216_v17 }
  0x32   : > { %219 = vst [vmem:[%s2147_s22 + $0x90] sm:$0xff] %v218_v18 }
  0x33   : > { %221 = vst [vmem:[%s2147_s22 + $0x98] sm:$0xff] %v220_v19 }
  0x34   : > { %223 = vst [vmem:[%s2147_s22 + $0xa0] sm:$0xff] %v222_v20 }
  0x35   : > { %225 = vst [vmem:[%s2147_s22 + $0xa8] sm:$0xff] %v224_v21 }
  0x36   : > { %227 = vst [vmem:[%s2147_s22 + $0xb0] sm:$0xff] %v226_v22 }
  0x37   : > { %229 = vst [vmem:[%s2147_s22 + $0xb8] sm:$0xff] %v228_v23 }
  0x38   : > { %231 = vst [vmem:[%s2147_s22 + $0xc0] sm:$0xff] %v230_v24 }
  0x39   : > { %233 = vst [vmem:[%s2147_s22 + $0xc8] sm:$0xff] %v232_v25 }
  0x3a   : > { %235 = vst [vmem:[%s2147_s22 + $0xd0] sm:$0xff] %v234_v26 }
  0x3b   : > { %237 = vst [vmem:[%s2147_s22 + $0xd8] sm:$0xff] %v236_v27 }
  0x3c   : > { %239 = vst [vmem:[%s2147_s22 + $0xe0] sm:$0xff] %v238_v28 }
  0x3d   : > { %241 = vst [vmem:[%s2147_s22 + $0xe8] sm:$0xff] %v240_v29 }
  0x3e   : > { %243 = vst [vmem:[%s2147_s22 + $0xf0] sm:$0xff] %v242_v30 }
  0x3f   : > { %245 = vst [vmem:[%s2147_s22 + $0xf8] sm:$0xff] %v244_v31 }
  0x40 PF: > { %251 = sbr.rel (!%p2117_p9) target bundleno = 327 (0x147), region = 43  ;;  %s253_s27 = sand.u32 (%p2117_p9), 1, %s1985_s15  }
  0x41   : > { %s1821_s4 = sshll.u32 (%p2117_p9), %s2009_s20, 1  ;;  %s1819_s6 = sshll.u32 (%p2117_p9), %s253_s27, 11 }
  0x42   : > { %s1836_s10 = sshll.u32 (%p2117_p9), %s2005_s2, 9  ;;  %s2223_s5 = scalar_lea.vmem (%p2117_p9), [#allocation4], %s1819_s6 }
  0x43   : > { %s259_s11 = sadd.s32 (%p2117_p9), %s1836_s10, %s1821_s4 }
  0x44   : > { %s1823_s25 = sshll.u32 (%p2117_p9), %s259_s11, 3 }
  0x45   : > { %s2218_s30 = scalar_lea.vmem %s3219_s1, %s1823_s25 }
  0x46   : > { %v274_v32 = vld [vmem:[%s2218_s30] sm:$0xff]  ;;  %v276_v33 = vld [vmem:[%s2218_s30 + $0x8] sm:$0xff] }
  0x47   : > { %v278_v34 = vld [vmem:[%s2218_s30 + $0x20] sm:$0xff]  ;;  %275 = vst [vmem:[%s2223_s5] sm:$0xff] %v274_v32  ;;  %v280_v35 = vld [vmem:[%s2218_s30 + $0x28] sm:$0xff] }
  0x48   : > { %277 = vst [vmem:[%s2223_s5 + $0x8] sm:$0xff] %v276_v33  ;;  %v282_v36 = vld [vmem:[%s2218_s30 + $0x40] sm:$0xff]  ;;  %v284_v37 = vld [vmem:[%s2218_s30 + $0x48] sm:$0xff] }
  0x49   : > { %279 = vst [vmem:[%s2223_s5 + $0x10] sm:$0xff] %v278_v34  ;;  %v286_v38 = vld [vmem:[%s2218_s30 + $0x60] sm:$0xff]  ;;  %v288_v39 = vld [vmem:[%s2218_s30 + $0x68] sm:$0xff] }
  0x4a   : > { %281 = vst [vmem:[%s2223_s5 + $0x18] sm:$0xff] %v280_v35  ;;  %v290_v40 = vld [vmem:[%s2218_s30 + $0x80] sm:$0xff]  ;;  %v292_v41 = vld [vmem:[%s2218_s30 + $0x88] sm:$0xff] }
  0x4b   : > { %283 = vst [vmem:[%s2223_s5 + $0x20] sm:$0xff] %v282_v36  ;;  %v294_v42 = vld [vmem:[%s2218_s30 + $0xa0] sm:$0xff]  ;;  %v296_v43 = vld [vmem:[%s2218_s30 + $0xa8] sm:$0xff] }
  0x4c   : > { %285 = vst [vmem:[%s2223_s5 + $0x28] sm:$0xff] %v284_v37  ;;  %v298_v44 = vld [vmem:[%s2218_s30 + $0xc0] sm:$0xff]  ;;  %v300_v45 = vld [vmem:[%s2218_s30 + $0xc8] sm:$0xff] }
  0x4d   : > { %287 = vst [vmem:[%s2223_s5 + $0x30] sm:$0xff] %v286_v38  ;;  %v302_v46 = vld [vmem:[%s2218_s30 + $0xe0] sm:$0xff]  ;;  %v304_v47 = vld [vmem:[%s2218_s30 + $0xe8] sm:$0xff] }
  0x4e   : > { %289 = vst [vmem:[%s2223_s5 + $0x38] sm:$0xff] %v288_v39  ;;  %v306_v48 = vld [vmem:[%s2218_s30 + $0x100] sm:$0xff]  ;;  %v308_v49 = vld [vmem:[%s2218_s30 + $0x108] sm:$0xff] }
  0x4f   : > { %291 = vst [vmem:[%s2223_s5 + $0x40] sm:$0xff] %v290_v40  ;;  %v310_v50 = vld [vmem:[%s2218_s30 + $0x120] sm:$0xff]  ;;  %v312_v51 = vld [vmem:[%s2218_s30 + $0x128] sm:$0xff] }
  0x50   : > { %293 = vst [vmem:[%s2223_s5 + $0x48] sm:$0xff] %v292_v41  ;;  %v314_v52 = vld [vmem:[%s2218_s30 + $0x140] sm:$0xff]  ;;  %v316_v53 = vld [vmem:[%s2218_s30 + $0x148] sm:$0xff] }
  0x51   : > { %295 = vst [vmem:[%s2223_s5 + $0x50] sm:$0xff] %v294_v42  ;;  %v318_v54 = vld [vmem:[%s2218_s30 + $0x160] sm:$0xff]  ;;  %v320_v55 = vld [vmem:[%s2218_s30 + $0x168] sm:$0xff] }
  0x52   : > { %297 = vst [vmem:[%s2223_s5 + $0x58] sm:$0xff] %v296_v43  ;;  %v322_v56 = vld [vmem:[%s2218_s30 + $0x180] sm:$0xff]  ;;  %v324_v57 = vld [vmem:[%s2218_s30 + $0x188] sm:$0xff] }
  0x53   : > { %299 = vst [vmem:[%s2223_s5 + $0x60] sm:$0xff] %v298_v44  ;;  %v326_v58 = vld [vmem:[%s2218_s30 + $0x1a0] sm:$0xff]  ;;  %v328_v59 = vld [vmem:[%s2218_s30 + $0x1a8] sm:$0xff] }
  0x54   : > { %301 = vst [vmem:[%s2223_s5 + $0x68] sm:$0xff] %v300_v45  ;;  %v330_v60 = vld [vmem:[%s2218_s30 + $0x1c0] sm:$0xff]  ;;  %v332_v61 = vld [vmem:[%s2218_s30 + $0x1c8] sm:$0xff] }
  0x55   : > { %303 = vst [vmem:[%s2223_s5 + $0x70] sm:$0xff] %v302_v46  ;;  %v334_v62 = vld [vmem:[%s2218_s30 + $0x1e0] sm:$0xff]  ;;  %v336_v63 = vld [vmem:[%s2218_s30 + $0x1e8] sm:$0xff] }
  0x56   : > { %305 = vst [vmem:[%s2223_s5 + $0x78] sm:$0xff] %v304_v47  ;;  %v338_v0 = vld [vmem:[%s2218_s30 + $0x200] sm:$0xff]  ;;  %v340_v1 = vld [vmem:[%s2218_s30 + $0x208] sm:$0xff] }
  0x57   : > { %307 = vst [vmem:[%s2223_s5 + $0x80] sm:$0xff] %v306_v48  ;;  %v342_v2 = vld [vmem:[%s2218_s30 + $0x220] sm:$0xff]  ;;  %v344_v3 = vld [vmem:[%s2218_s30 + $0x228] sm:$0xff] }
  0x58   : > { %309 = vst [vmem:[%s2223_s5 + $0x88] sm:$0xff] %v308_v49  ;;  %v346_v4 = vld [vmem:[%s2218_s30 + $0x240] sm:$0xff]  ;;  %v348_v5 = vld [vmem:[%s2218_s30 + $0x248] sm:$0xff] }
  0x59   : > { %311 = vst [vmem:[%s2223_s5 + $0x90] sm:$0xff] %v310_v50  ;;  %v350_v6 = vld [vmem:[%s2218_s30 + $0x260] sm:$0xff]  ;;  %v352_v7 = vld [vmem:[%s2218_s30 + $0x268] sm:$0xff] }
  0x5a   : > { %313 = vst [vmem:[%s2223_s5 + $0x98] sm:$0xff] %v312_v51  ;;  %v354_v8 = vld [vmem:[%s2218_s30 + $0x280] sm:$0xff]  ;;  %v356_v9 = vld [vmem:[%s2218_s30 + $0x288] sm:$0xff] }
  0x5b   : > { %315 = vst [vmem:[%s2223_s5 + $0xa0] sm:$0xff] %v314_v52  ;;  %v358_v10 = vld [vmem:[%s2218_s30 + $0x2a0] sm:$0xff]  ;;  %v360_v11 = vld [vmem:[%s2218_s30 + $0x2a8] sm:$0xff] }
  0x5c   : > { %317 = vst [vmem:[%s2223_s5 + $0xa8] sm:$0xff] %v316_v53  ;;  %v362_v12 = vld [vmem:[%s2218_s30 + $0x2c0] sm:$0xff]  ;;  %v364_v13 = vld [vmem:[%s2218_s30 + $0x2c8] sm:$0xff] }
  0x5d   : > { %319 = vst [vmem:[%s2223_s5 + $0xb0] sm:$0xff] %v318_v54  ;;  %v366_v14 = vld [vmem:[%s2218_s30 + $0x2e0] sm:$0xff]  ;;  %v368_v15 = vld [vmem:[%s2218_s30 + $0x2e8] sm:$0xff] }
  0x5e   : > { %321 = vst [vmem:[%s2223_s5 + $0xb8] sm:$0xff] %v320_v55  ;;  %v370_v16 = vld [vmem:[%s2218_s30 + $0x300] sm:$0xff]  ;;  %v372_v17 = vld [vmem:[%s2218_s30 + $0x308] sm:$0xff] }
  0x5f   : > { %323 = vst [vmem:[%s2223_s5 + $0xc0] sm:$0xff] %v322_v56  ;;  %v374_v18 = vld [vmem:[%s2218_s30 + $0x320] sm:$0xff]  ;;  %v376_v19 = vld [vmem:[%s2218_s30 + $0x328] sm:$0xff] }
  0x60   : > { %325 = vst [vmem:[%s2223_s5 + $0xc8] sm:$0xff] %v324_v57  ;;  %v378_v20 = vld [vmem:[%s2218_s30 + $0x340] sm:$0xff]  ;;  %v380_v21 = vld [vmem:[%s2218_s30 + $0x348] sm:$0xff] }
  0x61   : > { %327 = vst [vmem:[%s2223_s5 + $0xd0] sm:$0xff] %v326_v58  ;;  %v382_v22 = vld [vmem:[%s2218_s30 + $0x360] sm:$0xff]  ;;  %v384_v23 = vld [vmem:[%s2218_s30 + $0x368] sm:$0xff] }
  0x62   : > { %329 = vst [vmem:[%s2223_s5 + $0xd8] sm:$0xff] %v328_v59  ;;  %v386_v24 = vld [vmem:[%s2218_s30 + $0x380] sm:$0xff]  ;;  %v388_v25 = vld [vmem:[%s2218_s30 + $0x388] sm:$0xff] }
  0x63   : > { %331 = vst [vmem:[%s2223_s5 + $0xe0] sm:$0xff] %v330_v60  ;;  %v390_v26 = vld [vmem:[%s2218_s30 + $0x3a0] sm:$0xff]  ;;  %v392_v27 = vld [vmem:[%s2218_s30 + $0x3a8] sm:$0xff] }
  0x64   : > { %333 = vst [vmem:[%s2223_s5 + $0xe8] sm:$0xff] %v332_v61  ;;  %v394_v28 = vld [vmem:[%s2218_s30 + $0x3c0] sm:$0xff]  ;;  %v396_v29 = vld [vmem:[%s2218_s30 + $0x3c8] sm:$0xff] }
  0x65   : > { %335 = vst [vmem:[%s2223_s5 + $0xf0] sm:$0xff] %v334_v62  ;;  %v398_v30 = vld [vmem:[%s2218_s30 + $0x3e0] sm:$0xff]  ;;  %v400_v31 = vld [vmem:[%s2218_s30 + $0x3e8] sm:$0xff] }
  0x66   : > { %337 = vst [vmem:[%s2223_s5 + $0xf8] sm:$0xff] %v336_v63  ;;  %v402_v32 = vld [vmem:[%s2218_s30 + $0x400] sm:$0xff]  ;;  %v404_v33 = vld [vmem:[%s2218_s30 + $0x408] sm:$0xff] }
  0x67   : > { %339 = vst [vmem:[%s2223_s5 + $0x100] sm:$0xff] %v338_v0  ;;  %v406_v34 = vld [vmem:[%s2218_s30 + $0x420] sm:$0xff]  ;;  %v408_v35 = vld [vmem:[%s2218_s30 + $0x428] sm:$0xff] }
  0x68   : > { %341 = vst [vmem:[%s2223_s5 + $0x108] sm:$0xff] %v340_v1  ;;  %v410_v36 = vld [vmem:[%s2218_s30 + $0x440] sm:$0xff]  ;;  %v412_v37 = vld [vmem:[%s2218_s30 + $0x448] sm:$0xff] }
  0x69   : > { %343 = vst [vmem:[%s2223_s5 + $0x110] sm:$0xff] %v342_v2  ;;  %v414_v38 = vld [vmem:[%s2218_s30 + $0x460] sm:$0xff]  ;;  %v416_v39 = vld [vmem:[%s2218_s30 + $0x468] sm:$0xff] }
  0x6a   : > { %345 = vst [vmem:[%s2223_s5 + $0x118] sm:$0xff] %v344_v3  ;;  %v418_v40 = vld [vmem:[%s2218_s30 + $0x480] sm:$0xff]  ;;  %v420_v41 = vld [vmem:[%s2218_s30 + $0x488] sm:$0xff] }
  0x6b   : > { %347 = vst [vmem:[%s2223_s5 + $0x120] sm:$0xff] %v346_v4  ;;  %v422_v42 = vld [vmem:[%s2218_s30 + $0x4a0] sm:$0xff]  ;;  %v424_v43 = vld [vmem:[%s2218_s30 + $0x4a8] sm:$0xff] }
  0x6c   : > { %349 = vst [vmem:[%s2223_s5 + $0x128] sm:$0xff] %v348_v5  ;;  %v426_v44 = vld [vmem:[%s2218_s30 + $0x4c0] sm:$0xff]  ;;  %v428_v45 = vld [vmem:[%s2218_s30 + $0x4c8] sm:$0xff] }
  0x6d   : > { %351 = vst [vmem:[%s2223_s5 + $0x130] sm:$0xff] %v350_v6  ;;  %v430_v46 = vld [vmem:[%s2218_s30 + $0x4e0] sm:$0xff]  ;;  %v432_v47 = vld [vmem:[%s2218_s30 + $0x4e8] sm:$0xff] }
  0x6e   : > { %353 = vst [vmem:[%s2223_s5 + $0x138] sm:$0xff] %v352_v7  ;;  %v434_v48 = vld [vmem:[%s2218_s30 + $0x500] sm:$0xff]  ;;  %v436_v49 = vld [vmem:[%s2218_s30 + $0x508] sm:$0xff] }
  0x6f   : > { %355 = vst [vmem:[%s2223_s5 + $0x140] sm:$0xff] %v354_v8  ;;  %v438_v50 = vld [vmem:[%s2218_s30 + $0x520] sm:$0xff]  ;;  %v440_v51 = vld [vmem:[%s2218_s30 + $0x528] sm:$0xff] }
  0x70   : > { %357 = vst [vmem:[%s2223_s5 + $0x148] sm:$0xff] %v356_v9  ;;  %v442_v52 = vld [vmem:[%s2218_s30 + $0x540] sm:$0xff]  ;;  %v444_v53 = vld [vmem:[%s2218_s30 + $0x548] sm:$0xff] }
  0x71   : > { %359 = vst [vmem:[%s2223_s5 + $0x150] sm:$0xff] %v358_v10  ;;  %v446_v54 = vld [vmem:[%s2218_s30 + $0x560] sm:$0xff]  ;;  %v448_v55 = vld [vmem:[%s2218_s30 + $0x568] sm:$0xff] }
  0x72   : > { %361 = vst [vmem:[%s2223_s5 + $0x158] sm:$0xff] %v360_v11  ;;  %v450_v56 = vld [vmem:[%s2218_s30 + $0x580] sm:$0xff]  ;;  %v452_v57 = vld [vmem:[%s2218_s30 + $0x588] sm:$0xff] }
  0x73   : > { %363 = vst [vmem:[%s2223_s5 + $0x160] sm:$0xff] %v362_v12  ;;  %v454_v58 = vld [vmem:[%s2218_s30 + $0x5a0] sm:$0xff]  ;;  %v456_v59 = vld [vmem:[%s2218_s30 + $0x5a8] sm:$0xff] }
  0x74   : > { %365 = vst [vmem:[%s2223_s5 + $0x168] sm:$0xff] %v364_v13  ;;  %v458_v60 = vld [vmem:[%s2218_s30 + $0x5c0] sm:$0xff]  ;;  %v460_v61 = vld [vmem:[%s2218_s30 + $0x5c8] sm:$0xff] }
  0x75   : > { %367 = vst [vmem:[%s2223_s5 + $0x170] sm:$0xff] %v366_v14  ;;  %v462_v62 = vld [vmem:[%s2218_s30 + $0x5e0] sm:$0xff]  ;;  %v464_v63 = vld [vmem:[%s2218_s30 + $0x5e8] sm:$0xff] }
  0x76   : > { %369 = vst [vmem:[%s2223_s5 + $0x178] sm:$0xff] %v368_v15  ;;  %v466_v0 = vld [vmem:[%s2218_s30 + $0x600] sm:$0xff]  ;;  %v468_v1 = vld [vmem:[%s2218_s30 + $0x608] sm:$0xff] }
  0x77   : > { %371 = vst [vmem:[%s2223_s5 + $0x180] sm:$0xff] %v370_v16  ;;  %v470_v2 = vld [vmem:[%s2218_s30 + $0x620] sm:$0xff]  ;;  %v472_v3 = vld [vmem:[%s2218_s30 + $0x628] sm:$0xff] }
  0x78   : > { %373 = vst [vmem:[%s2223_s5 + $0x188] sm:$0xff] %v372_v17  ;;  %v474_v4 = vld [vmem:[%s2218_s30 + $0x640] sm:$0xff]  ;;  %v476_v5 = vld [vmem:[%s2218_s30 + $0x648] sm:$0xff] }
  0x79   : > { %375 = vst [vmem:[%s2223_s5 + $0x190] sm:$0xff] %v374_v18  ;;  %v478_v6 = vld [vmem:[%s2218_s30 + $0x660] sm:$0xff]  ;;  %v480_v7 = vld [vmem:[%s2218_s30 + $0x668] sm:$0xff] }
  0x7a   : > { %377 = vst [vmem:[%s2223_s5 + $0x198] sm:$0xff] %v376_v19  ;;  %v482_v8 = vld [vmem:[%s2218_s30 + $0x680] sm:$0xff]  ;;  %v484_v9 = vld [vmem:[%s2218_s30 + $0x688] sm:$0xff] }
  0x7b   : > { %379 = vst [vmem:[%s2223_s5 + $0x1a0] sm:$0xff] %v378_v20  ;;  %v486_v10 = vld [vmem:[%s2218_s30 + $0x6a0] sm:$0xff]  ;;  %v488_v11 = vld [vmem:[%s2218_s30 + $0x6a8] sm:$0xff] }
  0x7c   : > { %381 = vst [vmem:[%s2223_s5 + $0x1a8] sm:$0xff] %v380_v21  ;;  %v490_v12 = vld [vmem:[%s2218_s30 + $0x6c0] sm:$0xff]  ;;  %v492_v13 = vld [vmem:[%s2218_s30 + $0x6c8] sm:$0xff] }
  0x7d   : > { %383 = vst [vmem:[%s2223_s5 + $0x1b0] sm:$0xff] %v382_v22  ;;  %v494_v14 = vld [vmem:[%s2218_s30 + $0x6e0] sm:$0xff]  ;;  %v496_v15 = vld [vmem:[%s2218_s30 + $0x6e8] sm:$0xff] }
  0x7e   : > { %385 = vst [vmem:[%s2223_s5 + $0x1b8] sm:$0xff] %v384_v23  ;;  %v498_v16 = vld [vmem:[%s2218_s30 + $0x700] sm:$0xff]  ;;  %v500_v17 = vld [vmem:[%s2218_s30 + $0x708] sm:$0xff] }
  0x7f   : > { %387 = vst [vmem:[%s2223_s5 + $0x1c0] sm:$0xff] %v386_v24  ;;  %v502_v18 = vld [vmem:[%s2218_s30 + $0x720] sm:$0xff]  ;;  %v504_v19 = vld [vmem:[%s2218_s30 + $0x728] sm:$0xff] }
  0x80   : > { %389 = vst [vmem:[%s2223_s5 + $0x1c8] sm:$0xff] %v388_v25  ;;  %v506_v20 = vld [vmem:[%s2218_s30 + $0x740] sm:$0xff]  ;;  %v508_v21 = vld [vmem:[%s2218_s30 + $0x748] sm:$0xff] }
  0x81   : > { %391 = vst [vmem:[%s2223_s5 + $0x1d0] sm:$0xff] %v390_v26  ;;  %v510_v22 = vld [vmem:[%s2218_s30 + $0x760] sm:$0xff]  ;;  %v512_v23 = vld [vmem:[%s2218_s30 + $0x768] sm:$0xff] }
  0x82   : > { %393 = vst [vmem:[%s2223_s5 + $0x1d8] sm:$0xff] %v392_v27  ;;  %v514_v24 = vld [vmem:[%s2218_s30 + $0x780] sm:$0xff]  ;;  %v516_v25 = vld [vmem:[%s2218_s30 + $0x788] sm:$0xff] }
  0x83   : > { %395 = vst [vmem:[%s2223_s5 + $0x1e0] sm:$0xff] %v394_v28  ;;  %v518_v26 = vld [vmem:[%s2218_s30 + $0x7a0] sm:$0xff]  ;;  %v520_v27 = vld [vmem:[%s2218_s30 + $0x7a8] sm:$0xff] }
  0x84   : > { %397 = vst [vmem:[%s2223_s5 + $0x1e8] sm:$0xff] %v396_v29  ;;  %v522_v28 = vld [vmem:[%s2218_s30 + $0x7c0] sm:$0xff]  ;;  %v524_v29 = vld [vmem:[%s2218_s30 + $0x7c8] sm:$0xff] }
  0x85   : > { %399 = vst [vmem:[%s2223_s5 + $0x1f0] sm:$0xff] %v398_v30  ;;  %v526_v30 = vld [vmem:[%s2218_s30 + $0x7e0] sm:$0xff] }
  0x86   : > { %401 = vst [vmem:[%s2223_s5 + $0x1f8] sm:$0xff] %v400_v31  ;;  %v528_v31 = vld [vmem:[%s2218_s30 + $0x7e8] sm:$0xff] }
  0x87   : > { %403 = vst [vmem:[%s2223_s5 + $0x200] sm:$0xff] %v402_v32  ;;  %v530_v32 = vld [vmem:[%s2218_s30 + $0x800] sm:$0xff] }
  0x88   : > { %405 = vst [vmem:[%s2223_s5 + $0x208] sm:$0xff] %v404_v33  ;;  %v532_v33 = vld [vmem:[%s2218_s30 + $0x808] sm:$0xff] }
  0x89   : > { %407 = vst [vmem:[%s2223_s5 + $0x210] sm:$0xff] %v406_v34  ;;  %v534_v34 = vld [vmem:[%s2218_s30 + $0x820] sm:$0xff] }
  0x8a   : > { %409 = vst [vmem:[%s2223_s5 + $0x218] sm:$0xff] %v408_v35  ;;  %v536_v35 = vld [vmem:[%s2218_s30 + $0x828] sm:$0xff] }
  0x8b   : > { %411 = vst [vmem:[%s2223_s5 + $0x220] sm:$0xff] %v410_v36  ;;  %v538_v36 = vld [vmem:[%s2218_s30 + $0x840] sm:$0xff] }
  0x8c   : > { %413 = vst [vmem:[%s2223_s5 + $0x228] sm:$0xff] %v412_v37  ;;  %v540_v37 = vld [vmem:[%s2218_s30 + $0x848] sm:$0xff] }
  0x8d   : > { %415 = vst [vmem:[%s2223_s5 + $0x230] sm:$0xff] %v414_v38  ;;  %v542_v38 = vld [vmem:[%s2218_s30 + $0x860] sm:$0xff] }
  0x8e   : > { %417 = vst [vmem:[%s2223_s5 + $0x238] sm:$0xff] %v416_v39  ;;  %v544_v39 = vld [vmem:[%s2218_s30 + $0x868] sm:$0xff] }
  0x8f   : > { %419 = vst [vmem:[%s2223_s5 + $0x240] sm:$0xff] %v418_v40  ;;  %v546_v40 = vld [vmem:[%s2218_s30 + $0x880] sm:$0xff] }
  0x90   : > { %421 = vst [vmem:[%s2223_s5 + $0x248] sm:$0xff] %v420_v41  ;;  %v548_v41 = vld [vmem:[%s2218_s30 + $0x888] sm:$0xff] }
  0x91   : > { %423 = vst [vmem:[%s2223_s5 + $0x250] sm:$0xff] %v422_v42  ;;  %v550_v42 = vld [vmem:[%s2218_s30 + $0x8a0] sm:$0xff] }
  0x92   : > { %425 = vst [vmem:[%s2223_s5 + $0x258] sm:$0xff] %v424_v43  ;;  %v552_v43 = vld [vmem:[%s2218_s30 + $0x8a8] sm:$0xff] }
  0x93   : > { %427 = vst [vmem:[%s2223_s5 + $0x260] sm:$0xff] %v426_v44  ;;  %v554_v44 = vld [vmem:[%s2218_s30 + $0x8c0] sm:$0xff] }
  0x94   : > { %429 = vst [vmem:[%s2223_s5 + $0x268] sm:$0xff] %v428_v45  ;;  %v556_v45 = vld [vmem:[%s2218_s30 + $0x8c8] sm:$0xff] }
  0x95   : > { %431 = vst [vmem:[%s2223_s5 + $0x270] sm:$0xff] %v430_v46  ;;  %v558_v46 = vld [vmem:[%s2218_s30 + $0x8e0] sm:$0xff] }
  0x96   : > { %433 = vst [vmem:[%s2223_s5 + $0x278] sm:$0xff] %v432_v47  ;;  %v560_v47 = vld [vmem:[%s2218_s30 + $0x8e8] sm:$0xff] }
  0x97   : > { %435 = vst [vmem:[%s2223_s5 + $0x280] sm:$0xff] %v434_v48  ;;  %v562_v48 = vld [vmem:[%s2218_s30 + $0x900] sm:$0xff] }
  0x98   : > { %437 = vst [vmem:[%s2223_s5 + $0x288] sm:$0xff] %v436_v49  ;;  %v564_v49 = vld [vmem:[%s2218_s30 + $0x908] sm:$0xff] }
  0x99   : > { %439 = vst [vmem:[%s2223_s5 + $0x290] sm:$0xff] %v438_v50  ;;  %v566_v50 = vld [vmem:[%s2218_s30 + $0x920] sm:$0xff] }
  0x9a   : > { %441 = vst [vmem:[%s2223_s5 + $0x298] sm:$0xff] %v440_v51  ;;  %v568_v51 = vld [vmem:[%s2218_s30 + $0x928] sm:$0xff] }
  0x9b   : > { %443 = vst [vmem:[%s2223_s5 + $0x2a0] sm:$0xff] %v442_v52  ;;  %v570_v52 = vld [vmem:[%s2218_s30 + $0x940] sm:$0xff] }
  0x9c   : > { %445 = vst [vmem:[%s2223_s5 + $0x2a8] sm:$0xff] %v444_v53  ;;  %v572_v53 = vld [vmem:[%s2218_s30 + $0x948] sm:$0xff] }
  0x9d   : > { %447 = vst [vmem:[%s2223_s5 + $0x2b0] sm:$0xff] %v446_v54  ;;  %v574_v54 = vld [vmem:[%s2218_s30 + $0x960] sm:$0xff] }
  0x9e   : > { %449 = vst [vmem:[%s2223_s5 + $0x2b8] sm:$0xff] %v448_v55  ;;  %v576_v55 = vld [vmem:[%s2218_s30 + $0x968] sm:$0xff] }
  0x9f   : > { %451 = vst [vmem:[%s2223_s5 + $0x2c0] sm:$0xff] %v450_v56  ;;  %v578_v56 = vld [vmem:[%s2218_s30 + $0x980] sm:$0xff] }
  0xa0   : > { %453 = vst [vmem:[%s2223_s5 + $0x2c8] sm:$0xff] %v452_v57  ;;  %v580_v57 = vld [vmem:[%s2218_s30 + $0x988] sm:$0xff] }
  0xa1   : > { %455 = vst [vmem:[%s2223_s5 + $0x2d0] sm:$0xff] %v454_v58  ;;  %v582_v58 = vld [vmem:[%s2218_s30 + $0x9a0] sm:$0xff] }
  0xa2   : > { %457 = vst [vmem:[%s2223_s5 + $0x2d8] sm:$0xff] %v456_v59  ;;  %v584_v59 = vld [vmem:[%s2218_s30 + $0x9a8] sm:$0xff] }
  0xa3   : > { %459 = vst [vmem:[%s2223_s5 + $0x2e0] sm:$0xff] %v458_v60  ;;  %v586_v60 = vld [vmem:[%s2218_s30 + $0x9c0] sm:$0xff] }
  0xa4   : > { %461 = vst [vmem:[%s2223_s5 + $0x2e8] sm:$0xff] %v460_v61  ;;  %v588_v61 = vld [vmem:[%s2218_s30 + $0x9c8] sm:$0xff] }
  0xa5   : > { %463 = vst [vmem:[%s2223_s5 + $0x2f0] sm:$0xff] %v462_v62  ;;  %v590_v62 = vld [vmem:[%s2218_s30 + $0x9e0] sm:$0xff] }
  0xa6   : > { %465 = vst [vmem:[%s2223_s5 + $0x2f8] sm:$0xff] %v464_v63  ;;  %v592_v63 = vld [vmem:[%s2218_s30 + $0x9e8] sm:$0xff] }
  0xa7   : > { %467 = vst [vmem:[%s2223_s5 + $0x300] sm:$0xff] %v466_v0  ;;  %v594_v0 = vld [vmem:[%s2218_s30 + $0xa00] sm:$0xff] }
  0xa8   : > { %469 = vst [vmem:[%s2223_s5 + $0x308] sm:$0xff] %v468_v1  ;;  %v596_v1 = vld [vmem:[%s2218_s30 + $0xa08] sm:$0xff] }
  0xa9   : > { %471 = vst [vmem:[%s2223_s5 + $0x310] sm:$0xff] %v470_v2  ;;  %v598_v2 = vld [vmem:[%s2218_s30 + $0xa20] sm:$0xff] }
  0xaa   : > { %473 = vst [vmem:[%s2223_s5 + $0x318] sm:$0xff] %v472_v3  ;;  %v600_v3 = vld [vmem:[%s2218_s30 + $0xa28] sm:$0xff] }
  0xab   : > { %475 = vst [vmem:[%s2223_s5 + $0x320] sm:$0xff] %v474_v4  ;;  %v602_v4 = vld [vmem:[%s2218_s30 + $0xa40] sm:$0xff] }
  0xac   : > { %477 = vst [vmem:[%s2223_s5 + $0x328] sm:$0xff] %v476_v5  ;;  %v604_v5 = vld [vmem:[%s2218_s30 + $0xa48] sm:$0xff] }
  0xad   : > { %479 = vst [vmem:[%s2223_s5 + $0x330] sm:$0xff] %v478_v6  ;;  %v606_v6 = vld [vmem:[%s2218_s30 + $0xa60] sm:$0xff] }
  0xae   : > { %481 = vst [vmem:[%s2223_s5 + $0x338] sm:$0xff] %v480_v7  ;;  %v608_v7 = vld [vmem:[%s2218_s30 + $0xa68] sm:$0xff] }
  0xaf   : > { %483 = vst [vmem:[%s2223_s5 + $0x340] sm:$0xff] %v482_v8  ;;  %v610_v8 = vld [vmem:[%s2218_s30 + $0xa80] sm:$0xff] }
  0xb0   : > { %485 = vst [vmem:[%s2223_s5 + $0x348] sm:$0xff] %v484_v9  ;;  %v612_v9 = vld [vmem:[%s2218_s30 + $0xa88] sm:$0xff] }
  0xb1   : > { %487 = vst [vmem:[%s2223_s5 + $0x350] sm:$0xff] %v486_v10  ;;  %v614_v10 = vld [vmem:[%s2218_s30 + $0xaa0] sm:$0xff] }
  0xb2   : > { %489 = vst [vmem:[%s2223_s5 + $0x358] sm:$0xff] %v488_v11  ;;  %v616_v11 = vld [vmem:[%s2218_s30 + $0xaa8] sm:$0xff] }
  0xb3   : > { %491 = vst [vmem:[%s2223_s5 + $0x360] sm:$0xff] %v490_v12  ;;  %v618_v12 = vld [vmem:[%s2218_s30 + $0xac0] sm:$0xff] }
  0xb4   : > { %493 = vst [vmem:[%s2223_s5 + $0x368] sm:$0xff] %v492_v13  ;;  %v620_v13 = vld [vmem:[%s2218_s30 + $0xac8] sm:$0xff] }
  0xb5   : > { %495 = vst [vmem:[%s2223_s5 + $0x370] sm:$0xff] %v494_v14  ;;  %v622_v14 = vld [vmem:[%s2218_s30 + $0xae0] sm:$0xff] }
  0xb6   : > { %497 = vst [vmem:[%s2223_s5 + $0x378] sm:$0xff] %v496_v15  ;;  %v624_v15 = vld [vmem:[%s2218_s30 + $0xae8] sm:$0xff] }
  0xb7   : > { %499 = vst [vmem:[%s2223_s5 + $0x380] sm:$0xff] %v498_v16  ;;  %v626_v16 = vld [vmem:[%s2218_s30 + $0xb00] sm:$0xff] }
  0xb8   : > { %501 = vst [vmem:[%s2223_s5 + $0x388] sm:$0xff] %v500_v17  ;;  %v628_v17 = vld [vmem:[%s2218_s30 + $0xb08] sm:$0xff] }
  0xb9   : > { %503 = vst [vmem:[%s2223_s5 + $0x390] sm:$0xff] %v502_v18  ;;  %v630_v18 = vld [vmem:[%s2218_s30 + $0xb20] sm:$0xff] }
  0xba   : > { %505 = vst [vmem:[%s2223_s5 + $0x398] sm:$0xff] %v504_v19  ;;  %v632_v19 = vld [vmem:[%s2218_s30 + $0xb28] sm:$0xff] }
  0xbb   : > { %507 = vst [vmem:[%s2223_s5 + $0x3a0] sm:$0xff] %v506_v20  ;;  %v634_v20 = vld [vmem:[%s2218_s30 + $0xb40] sm:$0xff] }
  0xbc   : > { %509 = vst [vmem:[%s2223_s5 + $0x3a8] sm:$0xff] %v508_v21  ;;  %v636_v21 = vld [vmem:[%s2218_s30 + $0xb48] sm:$0xff] }
  0xbd   : > { %511 = vst [vmem:[%s2223_s5 + $0x3b0] sm:$0xff] %v510_v22  ;;  %v638_v22 = vld [vmem:[%s2218_s30 + $0xb60] sm:$0xff] }
  0xbe   : > { %513 = vst [vmem:[%s2223_s5 + $0x3b8] sm:$0xff] %v512_v23  ;;  %v640_v23 = vld [vmem:[%s2218_s30 + $0xb68] sm:$0xff] }
  0xbf   : > { %515 = vst [vmem:[%s2223_s5 + $0x3c0] sm:$0xff] %v514_v24  ;;  %v642_v24 = vld [vmem:[%s2218_s30 + $0xb80] sm:$0xff] }
  0xc0   : > { %517 = vst [vmem:[%s2223_s5 + $0x3c8] sm:$0xff] %v516_v25  ;;  %v644_v25 = vld [vmem:[%s2218_s30 + $0xb88] sm:$0xff] }
  0xc1   : > { %519 = vst [vmem:[%s2223_s5 + $0x3d0] sm:$0xff] %v518_v26  ;;  %v646_v26 = vld [vmem:[%s2218_s30 + $0xba0] sm:$0xff] }
  0xc2   : > { %521 = vst [vmem:[%s2223_s5 + $0x3d8] sm:$0xff] %v520_v27  ;;  %v648_v27 = vld [vmem:[%s2218_s30 + $0xba8] sm:$0xff] }
  0xc3   : > { %523 = vst [vmem:[%s2223_s5 + $0x3e0] sm:$0xff] %v522_v28  ;;  %v650_v28 = vld [vmem:[%s2218_s30 + $0xbc0] sm:$0xff] }
  0xc4   : > { %525 = vst [vmem:[%s2223_s5 + $0x3e8] sm:$0xff] %v524_v29  ;;  %v652_v29 = vld [vmem:[%s2218_s30 + $0xbc8] sm:$0xff] }
  0xc5   : > { %527 = vst [vmem:[%s2223_s5 + $0x3f0] sm:$0xff] %v526_v30  ;;  %v654_v30 = vld [vmem:[%s2218_s30 + $0xbe0] sm:$0xff] }
  0xc6   : > { %529 = vst [vmem:[%s2223_s5 + $0x3f8] sm:$0xff] %v528_v31  ;;  %v656_v31 = vld [vmem:[%s2218_s30 + $0xbe8] sm:$0xff] }
  0xc7   : > { %531 = vst [vmem:[%s2223_s5 + $0x400] sm:$0xff] %v530_v32  ;;  %v658_v32 = vld [vmem:[%s2218_s30 + $0xc00] sm:$0xff] }
  0xc8   : > { %533 = vst [vmem:[%s2223_s5 + $0x408] sm:$0xff] %v532_v33  ;;  %v660_v33 = vld [vmem:[%s2218_s30 + $0xc08] sm:$0xff] }
  0xc9   : > { %535 = vst [vmem:[%s2223_s5 + $0x410] sm:$0xff] %v534_v34  ;;  %v662_v34 = vld [vmem:[%s2218_s30 + $0xc20] sm:$0xff] }
  0xca   : > { %537 = vst [vmem:[%s2223_s5 + $0x418] sm:$0xff] %v536_v35  ;;  %v664_v35 = vld [vmem:[%s2218_s30 + $0xc28] sm:$0xff] }
  0xcb   : > { %539 = vst [vmem:[%s2223_s5 + $0x420] sm:$0xff] %v538_v36  ;;  %v666_v36 = vld [vmem:[%s2218_s30 + $0xc40] sm:$0xff] }
  0xcc   : > { %541 = vst [vmem:[%s2223_s5 + $0x428] sm:$0xff] %v540_v37  ;;  %v668_v37 = vld [vmem:[%s2218_s30 + $0xc48] sm:$0xff] }
  0xcd   : > { %543 = vst [vmem:[%s2223_s5 + $0x430] sm:$0xff] %v542_v38  ;;  %v670_v38 = vld [vmem:[%s2218_s30 + $0xc60] sm:$0xff] }
  0xce   : > { %545 = vst [vmem:[%s2223_s5 + $0x438] sm:$0xff] %v544_v39  ;;  %v672_v39 = vld [vmem:[%s2218_s30 + $0xc68] sm:$0xff] }
  0xcf   : > { %547 = vst [vmem:[%s2223_s5 + $0x440] sm:$0xff] %v546_v40  ;;  %v674_v40 = vld [vmem:[%s2218_s30 + $0xc80] sm:$0xff] }
  0xd0   : > { %549 = vst [vmem:[%s2223_s5 + $0x448] sm:$0xff] %v548_v41  ;;  %v676_v41 = vld [vmem:[%s2218_s30 + $0xc88] sm:$0xff] }
  0xd1   : > { %551 = vst [vmem:[%s2223_s5 + $0x450] sm:$0xff] %v550_v42  ;;  %v678_v42 = vld [vmem:[%s2218_s30 + $0xca0] sm:$0xff] }
  0xd2   : > { %553 = vst [vmem:[%s2223_s5 + $0x458] sm:$0xff] %v552_v43  ;;  %v680_v43 = vld [vmem:[%s2218_s30 + $0xca8] sm:$0xff] }
  0xd3   : > { %555 = vst [vmem:[%s2223_s5 + $0x460] sm:$0xff] %v554_v44  ;;  %v682_v44 = vld [vmem:[%s2218_s30 + $0xcc0] sm:$0xff] }
  0xd4   : > { %557 = vst [vmem:[%s2223_s5 + $0x468] sm:$0xff] %v556_v45  ;;  %v684_v45 = vld [vmem:[%s2218_s30 + $0xcc8] sm:$0xff] }
  0xd5   : > { %559 = vst [vmem:[%s2223_s5 + $0x470] sm:$0xff] %v558_v46  ;;  %v686_v46 = vld [vmem:[%s2218_s30 + $0xce0] sm:$0xff] }
  0xd6   : > { %561 = vst [vmem:[%s2223_s5 + $0x478] sm:$0xff] %v560_v47  ;;  %v688_v47 = vld [vmem:[%s2218_s30 + $0xce8] sm:$0xff] }
  0xd7   : > { %563 = vst [vmem:[%s2223_s5 + $0x480] sm:$0xff] %v562_v48  ;;  %v690_v48 = vld [vmem:[%s2218_s30 + $0xd00] sm:$0xff] }
  0xd8   : > { %565 = vst [vmem:[%s2223_s5 + $0x488] sm:$0xff] %v564_v49  ;;  %v692_v49 = vld [vmem:[%s2218_s30 + $0xd08] sm:$0xff] }
  0xd9   : > { %567 = vst [vmem:[%s2223_s5 + $0x490] sm:$0xff] %v566_v50  ;;  %v694_v50 = vld [vmem:[%s2218_s30 + $0xd20] sm:$0xff] }
  0xda   : > { %569 = vst [vmem:[%s2223_s5 + $0x498] sm:$0xff] %v568_v51  ;;  %v696_v51 = vld [vmem:[%s2218_s30 + $0xd28] sm:$0xff] }
  0xdb   : > { %571 = vst [vmem:[%s2223_s5 + $0x4a0] sm:$0xff] %v570_v52  ;;  %v698_v52 = vld [vmem:[%s2218_s30 + $0xd40] sm:$0xff] }
  0xdc   : > { %573 = vst [vmem:[%s2223_s5 + $0x4a8] sm:$0xff] %v572_v53  ;;  %v700_v53 = vld [vmem:[%s2218_s30 + $0xd48] sm:$0xff] }
  0xdd   : > { %575 = vst [vmem:[%s2223_s5 + $0x4b0] sm:$0xff] %v574_v54  ;;  %v702_v54 = vld [vmem:[%s2218_s30 + $0xd60] sm:$0xff] }
  0xde   : > { %577 = vst [vmem:[%s2223_s5 + $0x4b8] sm:$0xff] %v576_v55  ;;  %v704_v55 = vld [vmem:[%s2218_s30 + $0xd68] sm:$0xff] }
  0xdf   : > { %579 = vst [vmem:[%s2223_s5 + $0x4c0] sm:$0xff] %v578_v56  ;;  %v706_v56 = vld [vmem:[%s2218_s30 + $0xd80] sm:$0xff] }
  0xe0   : > { %581 = vst [vmem:[%s2223_s5 + $0x4c8] sm:$0xff] %v580_v57  ;;  %v708_v57 = vld [vmem:[%s2218_s30 + $0xd88] sm:$0xff] }
  0xe1   : > { %583 = vst [vmem:[%s2223_s5 + $0x4d0] sm:$0xff] %v582_v58  ;;  %v710_v58 = vld [vmem:[%s2218_s30 + $0xda0] sm:$0xff] }
  0xe2   : > { %585 = vst [vmem:[%s2223_s5 + $0x4d8] sm:$0xff] %v584_v59  ;;  %v712_v59 = vld [vmem:[%s2218_s30 + $0xda8] sm:$0xff] }
  0xe3   : > { %587 = vst [vmem:[%s2223_s5 + $0x4e0] sm:$0xff] %v586_v60  ;;  %v714_v60 = vld [vmem:[%s2218_s30 + $0xdc0] sm:$0xff] }
  0xe4   : > { %589 = vst [vmem:[%s2223_s5 + $0x4e8] sm:$0xff] %v588_v61  ;;  %v716_v61 = vld [vmem:[%s2218_s30 + $0xdc8] sm:$0xff] }
  0xe5   : > { %591 = vst [vmem:[%s2223_s5 + $0x4f0] sm:$0xff] %v590_v62  ;;  %v718_v62 = vld [vmem:[%s2218_s30 + $0xde0] sm:$0xff] }
  0xe6   : > { %593 = vst [vmem:[%s2223_s5 + $0x4f8] sm:$0xff] %v592_v63  ;;  %v720_v63 = vld [vmem:[%s2218_s30 + $0xde8] sm:$0xff] }
  0xe7   : > { %595 = vst [vmem:[%s2223_s5 + $0x500] sm:$0xff] %v594_v0  ;;  %v722_v0 = vld [vmem:[%s2218_s30 + $0xe00] sm:$0xff] }
  0xe8   : > { %597 = vst [vmem:[%s2223_s5 + $0x508] sm:$0xff] %v596_v1  ;;  %v724_v1 = vld [vmem:[%s2218_s30 + $0xe08] sm:$0xff] }
  0xe9   : > { %599 = vst [vmem:[%s2223_s5 + $0x510] sm:$0xff] %v598_v2  ;;  %v726_v2 = vld [vmem:[%s2218_s30 + $0xe20] sm:$0xff] }
  0xea   : > { %601 = vst [vmem:[%s2223_s5 + $0x518] sm:$0xff] %v600_v3  ;;  %v728_v3 = vld [vmem:[%s2218_s30 + $0xe28] sm:$0xff] }
  0xeb   : > { %603 = vst [vmem:[%s2223_s5 + $0x520] sm:$0xff] %v602_v4  ;;  %v730_v4 = vld [vmem:[%s2218_s30 + $0xe40] sm:$0xff] }
  0xec   : > { %605 = vst [vmem:[%s2223_s5 + $0x528] sm:$0xff] %v604_v5  ;;  %v732_v5 = vld [vmem:[%s2218_s30 + $0xe48] sm:$0xff] }
  0xed   : > { %607 = vst [vmem:[%s2223_s5 + $0x530] sm:$0xff] %v606_v6  ;;  %v734_v6 = vld [vmem:[%s2218_s30 + $0xe60] sm:$0xff] }
  0xee   : > { %609 = vst [vmem:[%s2223_s5 + $0x538] sm:$0xff] %v608_v7  ;;  %v736_v7 = vld [vmem:[%s2218_s30 + $0xe68] sm:$0xff] }
  0xef   : > { %611 = vst [vmem:[%s2223_s5 + $0x540] sm:$0xff] %v610_v8  ;;  %v738_v8 = vld [vmem:[%s2218_s30 + $0xe80] sm:$0xff] }
  0xf0   : > { %613 = vst [vmem:[%s2223_s5 + $0x548] sm:$0xff] %v612_v9  ;;  %v740_v9 = vld [vmem:[%s2218_s30 + $0xe88] sm:$0xff] }
  0xf1   : > { %615 = vst [vmem:[%s2223_s5 + $0x550] sm:$0xff] %v614_v10  ;;  %v742_v10 = vld [vmem:[%s2218_s30 + $0xea0] sm:$0xff] }
  0xf2   : > { %617 = vst [vmem:[%s2223_s5 + $0x558] sm:$0xff] %v616_v11  ;;  %v744_v11 = vld [vmem:[%s2218_s30 + $0xea8] sm:$0xff] }
  0xf3   : > { %619 = vst [vmem:[%s2223_s5 + $0x560] sm:$0xff] %v618_v12  ;;  %v746_v12 = vld [vmem:[%s2218_s30 + $0xec0] sm:$0xff] }
  0xf4   : > { %621 = vst [vmem:[%s2223_s5 + $0x568] sm:$0xff] %v620_v13  ;;  %v748_v13 = vld [vmem:[%s2218_s30 + $0xec8] sm:$0xff] }
  0xf5   : > { %623 = vst [vmem:[%s2223_s5 + $0x570] sm:$0xff] %v622_v14  ;;  %v750_v14 = vld [vmem:[%s2218_s30 + $0xee0] sm:$0xff] }
  0xf6   : > { %625 = vst [vmem:[%s2223_s5 + $0x578] sm:$0xff] %v624_v15  ;;  %v752_v15 = vld [vmem:[%s2218_s30 + $0xee8] sm:$0xff] }
  0xf7   : > { %627 = vst [vmem:[%s2223_s5 + $0x580] sm:$0xff] %v626_v16  ;;  %v754_v16 = vld [vmem:[%s2218_s30 + $0xf00] sm:$0xff] }
  0xf8   : > { %629 = vst [vmem:[%s2223_s5 + $0x588] sm:$0xff] %v628_v17  ;;  %v756_v17 = vld [vmem:[%s2218_s30 + $0xf08] sm:$0xff] }
  0xf9   : > { %631 = vst [vmem:[%s2223_s5 + $0x590] sm:$0xff] %v630_v18  ;;  %v758_v18 = vld [vmem:[%s2218_s30 + $0xf20] sm:$0xff] }
  0xfa   : > { %633 = vst [vmem:[%s2223_s5 + $0x598] sm:$0xff] %v632_v19  ;;  %v760_v19 = vld [vmem:[%s2218_s30 + $0xf28] sm:$0xff] }
  0xfb   : > { %635 = vst [vmem:[%s2223_s5 + $0x5a0] sm:$0xff] %v634_v20  ;;  %v762_v20 = vld [vmem:[%s2218_s30 + $0xf40] sm:$0xff] }
  0xfc   : > { %637 = vst [vmem:[%s2223_s5 + $0x5a8] sm:$0xff] %v636_v21  ;;  %v764_v21 = vld [vmem:[%s2218_s30 + $0xf48] sm:$0xff] }
  0xfd   : > { %639 = vst [vmem:[%s2223_s5 + $0x5b0] sm:$0xff] %v638_v22  ;;  %v766_v22 = vld [vmem:[%s2218_s30 + $0xf60] sm:$0xff] }
  0xfe   : > { %641 = vst [vmem:[%s2223_s5 + $0x5b8] sm:$0xff] %v640_v23  ;;  %v768_v23 = vld [vmem:[%s2218_s30 + $0xf68] sm:$0xff] }
  0xff   : > { %643 = vst [vmem:[%s2223_s5 + $0x5c0] sm:$0xff] %v642_v24  ;;  %v770_v24 = vld [vmem:[%s2218_s30 + $0xf80] sm:$0xff] }
 0x100   : > { %645 = vst [vmem:[%s2223_s5 + $0x5c8] sm:$0xff] %v644_v25  ;;  %v772_v25 = vld [vmem:[%s2218_s30 + $0xf88] sm:$0xff] }
 0x101   : > { %647 = vst [vmem:[%s2223_s5 + $0x5d0] sm:$0xff] %v646_v26  ;;  %v774_v26 = vld [vmem:[%s2218_s30 + $0xfa0] sm:$0xff] }
 0x102   : > { %649 = vst [vmem:[%s2223_s5 + $0x5d8] sm:$0xff] %v648_v27  ;;  %v776_v27 = vld [vmem:[%s2218_s30 + $0xfa8] sm:$0xff] }
 0x103   : > { %651 = vst [vmem:[%s2223_s5 + $0x5e0] sm:$0xff] %v650_v28  ;;  %v778_v28 = vld [vmem:[%s2218_s30 + $0xfc0] sm:$0xff] }
 0x104   : > { %653 = vst [vmem:[%s2223_s5 + $0x5e8] sm:$0xff] %v652_v29  ;;  %v780_v29 = vld [vmem:[%s2218_s30 + $0xfc8] sm:$0xff] }
 0x105   : > { %655 = vst [vmem:[%s2223_s5 + $0x5f0] sm:$0xff] %v654_v30  ;;  %v782_v30 = vld [vmem:[%s2218_s30 + $0xfe0] sm:$0xff] }
 0x106   : > { %657 = vst [vmem:[%s2223_s5 + $0x5f8] sm:$0xff] %v656_v31  ;;  %v784_v31 = vld [vmem:[%s2218_s30 + $0xfe8] sm:$0xff] }
 0x107   : > { %659 = vst [vmem:[%s2223_s5 + $0x600] sm:$0xff] %v658_v32 }
 0x108   : > { %661 = vst [vmem:[%s2223_s5 + $0x608] sm:$0xff] %v660_v33 }
 0x109   : > { %663 = vst [vmem:[%s2223_s5 + $0x610] sm:$0xff] %v662_v34 }
 0x10a   : > { %665 = vst [vmem:[%s2223_s5 + $0x618] sm:$0xff] %v664_v35 }
 0x10b   : > { %667 = vst [vmem:[%s2223_s5 + $0x620] sm:$0xff] %v666_v36 }
 0x10c   : > { %669 = vst [vmem:[%s2223_s5 + $0x628] sm:$0xff] %v668_v37 }
 0x10d   : > { %671 = vst [vmem:[%s2223_s5 + $0x630] sm:$0xff] %v670_v38 }
 0x10e   : > { %673 = vst [vmem:[%s2223_s5 + $0x638] sm:$0xff] %v672_v39 }
 0x10f   : > { %675 = vst [vmem:[%s2223_s5 + $0x640] sm:$0xff] %v674_v40 }
 0x110   : > { %677 = vst [vmem:[%s2223_s5 + $0x648] sm:$0xff] %v676_v41 }
 0x111   : > { %679 = vst [vmem:[%s2223_s5 + $0x650] sm:$0xff] %v678_v42 }
 0x112   : > { %681 = vst [vmem:[%s2223_s5 + $0x658] sm:$0xff] %v680_v43 }
 0x113   : > { %683 = vst [vmem:[%s2223_s5 + $0x660] sm:$0xff] %v682_v44 }
 0x114   : > { %685 = vst [vmem:[%s2223_s5 + $0x668] sm:$0xff] %v684_v45 }
 0x115   : > { %687 = vst [vmem:[%s2223_s5 + $0x670] sm:$0xff] %v686_v46 }
 0x116   : > { %689 = vst [vmem:[%s2223_s5 + $0x678] sm:$0xff] %v688_v47 }
 0x117   : > { %691 = vst [vmem:[%s2223_s5 + $0x680] sm:$0xff] %v690_v48 }
 0x118   : > { %693 = vst [vmem:[%s2223_s5 + $0x688] sm:$0xff] %v692_v49 }
 0x119   : > { %695 = vst [vmem:[%s2223_s5 + $0x690] sm:$0xff] %v694_v50 }
 0x11a   : > { %697 = vst [vmem:[%s2223_s5 + $0x698] sm:$0xff] %v696_v51 }
 0x11b   : > { %699 = vst [vmem:[%s2223_s5 + $0x6a0] sm:$0xff] %v698_v52 }
 0x11c   : > { %701 = vst [vmem:[%s2223_s5 + $0x6a8] sm:$0xff] %v700_v53 }
 0x11d   : > { %703 = vst [vmem:[%s2223_s5 + $0x6b0] sm:$0xff] %v702_v54 }
 0x11e   : > { %705 = vst [vmem:[%s2223_s5 + $0x6b8] sm:$0xff] %v704_v55 }
 0x11f   : > { %707 = vst [vmem:[%s2223_s5 + $0x6c0] sm:$0xff] %v706_v56 }
 0x120   : > { %709 = vst [vmem:[%s2223_s5 + $0x6c8] sm:$0xff] %v708_v57 }
 0x121   : > { %711 = vst [vmem:[%s2223_s5 + $0x6d0] sm:$0xff] %v710_v58 }
 0x122   : > { %713 = vst [vmem:[%s2223_s5 + $0x6d8] sm:$0xff] %v712_v59 }
 0x123   : > { %715 = vst [vmem:[%s2223_s5 + $0x6e0] sm:$0xff] %v714_v60 }
 0x124   : > { %717 = vst [vmem:[%s2223_s5 + $0x6e8] sm:$0xff] %v716_v61 }
 0x125   : > { %719 = vst [vmem:[%s2223_s5 + $0x6f0] sm:$0xff] %v718_v62 }
 0x126   : > { %721 = vst [vmem:[%s2223_s5 + $0x6f8] sm:$0xff] %v720_v63 }
 0x127   : > { %723 = vst [vmem:[%s2223_s5 + $0x700] sm:$0xff] %v722_v0 }
 0x128   : > { %725 = vst [vmem:[%s2223_s5 + $0x708] sm:$0xff] %v724_v1 }
 0x129   : > { %727 = vst [vmem:[%s2223_s5 + $0x710] sm:$0xff] %v726_v2 }
 0x12a   : > { %729 = vst [vmem:[%s2223_s5 + $0x718] sm:$0xff] %v728_v3 }
 0x12b   : > { %731 = vst [vmem:[%s2223_s5 + $0x720] sm:$0xff] %v730_v4 }
 0x12c   : > { %733 = vst [vmem:[%s2223_s5 + $0x728] sm:$0xff] %v732_v5 }
 0x12d   : > { %735 = vst [vmem:[%s2223_s5 + $0x730] sm:$0xff] %v734_v6 }
 0x12e   : > { %737 = vst [vmem:[%s2223_s5 + $0x738] sm:$0xff] %v736_v7 }
 0x12f   : > { %739 = vst [vmem:[%s2223_s5 + $0x740] sm:$0xff] %v738_v8 }
 0x130   : > { %741 = vst [vmem:[%s2223_s5 + $0x748] sm:$0xff] %v740_v9 }
 0x131   : > { %743 = vst [vmem:[%s2223_s5 + $0x750] sm:$0xff] %v742_v10 }
 0x132   : > { %745 = vst [vmem:[%s2223_s5 + $0x758] sm:$0xff] %v744_v11 }
 0x133   : > { %747 = vst [vmem:[%s2223_s5 + $0x760] sm:$0xff] %v746_v12 }
 0x134   : > { %749 = vst [vmem:[%s2223_s5 + $0x768] sm:$0xff] %v748_v13 }
 0x135   : > { %751 = vst [vmem:[%s2223_s5 + $0x770] sm:$0xff] %v750_v14 }
 0x136   : > { %753 = vst [vmem:[%s2223_s5 + $0x778] sm:$0xff] %v752_v15 }
 0x137   : > { %755 = vst [vmem:[%s2223_s5 + $0x780] sm:$0xff] %v754_v16 }
 0x138   : > { %757 = vst [vmem:[%s2223_s5 + $0x788] sm:$0xff] %v756_v17 }
 0x139   : > { %759 = vst [vmem:[%s2223_s5 + $0x790] sm:$0xff] %v758_v18 }
 0x13a   : > { %761 = vst [vmem:[%s2223_s5 + $0x798] sm:$0xff] %v760_v19 }
 0x13b   : > { %763 = vst [vmem:[%s2223_s5 + $0x7a0] sm:$0xff] %v762_v20 }
 0x13c   : > { %765 = vst [vmem:[%s2223_s5 + $0x7a8] sm:$0xff] %v764_v21 }
 0x13d   : > { %767 = vst [vmem:[%s2223_s5 + $0x7b0] sm:$0xff] %v766_v22 }
 0x13e   : > { %769 = vst [vmem:[%s2223_s5 + $0x7b8] sm:$0xff] %v768_v23 }
 0x13f   : > { %771 = vst [vmem:[%s2223_s5 + $0x7c0] sm:$0xff] %v770_v24 }
 0x140   : > { %773 = vst [vmem:[%s2223_s5 + $0x7c8] sm:$0xff] %v772_v25 }
 0x141   : > { %775 = vst [vmem:[%s2223_s5 + $0x7d0] sm:$0xff] %v774_v26 }
 0x142   : > { %777 = vst [vmem:[%s2223_s5 + $0x7d8] sm:$0xff] %v776_v27 }
 0x143   : > { %779 = vst [vmem:[%s2223_s5 + $0x7e0] sm:$0xff] %v778_v28 }
 0x144   : > { %781 = vst [vmem:[%s2223_s5 + $0x7e8] sm:$0xff] %v780_v29 }
 0x145   : > { %783 = vst [vmem:[%s2223_s5 + $0x7f0] sm:$0xff] %v782_v30 }
 0x146   : > { %785 = vst [vmem:[%s2223_s5 + $0x7f8] sm:$0xff] %v784_v31 }
 0x147 PF: > { %p1824_p0 = scmp.ge.s32.totalorder %s2013_s21, 1  ;;  %p798_p1 = scmp.lt.s32.totalorder %s2013_s21, 9 }
 0x149   : > { %p799_p2 = pnand %p1824_p0, %p798_p1 }
 0x14a   : > { %s805_s22 = sand.u32 (!%p799_p2), 1, %s1989_s16   ;;  %s812_s27 = sand.u32 (!%p799_p2), 1, %s1981_s14  }
 0x14b   : > { %802 = sbr.rel (%p799_p2) target bundleno = 686 (0x2ae), region = 70  ;;  %s1825_s4 = sshll.u32 (!%p799_p2), %s805_s22, 8 }
 0x14c   : > { %s1826_s6 = sshll.u32 (!%p799_p2), %s812_s27, 11  ;;  %s839_s10 = sand.u32 (!%p799_p2), 1, %s1973_s12  }
 0x14d   : > { %s1827_s11 = sshll.u32 (!%p799_p2), %s839_s10, 6  ;;  %s2739_s25 = scalar_lea.vmem (!%p799_p2), [#allocation3], %s1825_s4 }
 0x14e   : > { %s2741_s26 = scalar_lea.vmem (!%p799_p2), [#allocation4], %s1826_s6  ;;  %s2743_s28 = scalar_lea.vmem (!%p799_p2), [#allocation5], %s1827_s11 }
 0x14f   : > { %p1828_p3 = scmp.ne.s32.totalorder (!%p799_p2), %s1997_s18, 0 }
 0x151   : > { %856 = sbr.rel (%p1828_p3) target bundleno = 351 (0x15f), region = 82 }
 0x156   : > { %v2015_v32 = vmov 0.0  }
 0x157   : > { %857 = vst [vmem:[#allocation2 + $0x30] sm:$0xff] %v2015_v32 }
 0x158   : > { %858 = vst [vmem:[#allocation2] sm:$0xff] %v2015_v32 }
 0x159   : > { %859 = vst [vmem:[#allocation2 + $0x18] sm:$0xff] %v2015_v32 }
 0x15a   : > { %860 = vst [vmem:[#allocation2 + $0x10] sm:$0xff] %v2015_v32 }
 0x15b   : > { %861 = vst [vmem:[#allocation2 + $0x8] sm:$0xff] %v2015_v32 }
 0x15c   : > { %862 = vst [vmem:[#allocation2 + $0x20] sm:$0xff] %v2015_v32 }
 0x15d   : > { %863 = vst [vmem:[#allocation2 + $0x28] sm:$0xff] %v2015_v32 }
 0x15e   : > { %864 = vst [vmem:[#allocation2 + $0x38] sm:$0xff] %v2015_v32 }
 0x15f PF: > { %v935_v33 = vld [vmem:[%s2741_s26 + $0xf0] sm:$0xff]  ;;  %v933_v35 = vld [vmem:[%s2741_s26 + $0xe0] sm:$0xff]  ;;  %p1829_p4 = scmp.ne.s32.totalorder %s1997_s18, 3 }
 0x160   : > { %v999_v34 = vld [vmem:[%s2741_s26 + $0x2f0] sm:$0xff]  ;;  %1161 = vmatpush.msra.mxu0 %v935_v33  ;;  %v997_v37 = vld [vmem:[%s2741_s26 + $0x2e0] sm:$0xff] }
 0x161   : > { %1219 = vmatpush.msra.mxu2 %v999_v34  ;;  %v967_v36 = vld [vmem:[%s2741_s26 + $0x1f0] sm:$0xff]  ;;  %v965_v40 = vld [vmem:[%s2741_s26 + $0x1e0] sm:$0xff] }
 0x162   : > { %v1031_v38 = vld [vmem:[%s2741_s26 + $0x3f0] sm:$0xff]  ;;  %1190 = vmatpush.msra.mxu1 %v967_v36  ;;  %1162 = vmatpush.msra.mxu0 %v933_v35  ;;  %v1029_v42 = vld [vmem:[%s2741_s26 + $0x3e0] sm:$0xff] }
 0x163   : > { %1248 = vmatpush.msra.mxu3 %v1031_v38  ;;  %v931_v39 = vld [vmem:[%s2741_s26 + $0xd0] sm:$0xff]  ;;  %1220 = vmatpush.msra.mxu2 %v997_v37  ;;  %v929_v44 = vld [vmem:[%s2741_s26 + $0xc0] sm:$0xff]  ;;  %v2821_v37 = vld [vmem:[%s2739_s25 + $0x8] sm:$0xff] }
 0x164   : > { %v995_v41 = vld [vmem:[%s2741_s26 + $0x2d0] sm:$0xff]  ;;  %1191 = vmatpush.msra.mxu1 %v965_v40  ;;  %v993_v45 = vld [vmem:[%s2741_s26 + $0x2c0] sm:$0xff]  ;;  %1163 = vmatpush.msra.mxu0 %v931_v39  ;;  %v2824_v38 = vld [vmem:[%s2739_s25 + $0x18] sm:$0xff] }
 0x165   : > { %v963_v43 = vld [vmem:[%s2741_s26 + $0x1d0] sm:$0xff]  ;;  %1249 = vmatpush.msra.mxu3 %v1029_v42  ;;  %1221 = vmatpush.msra.mxu2 %v995_v41  ;;  %v961_v47 = vld [vmem:[%s2741_s26 + $0x1c0] sm:$0xff] }
 0x166   : > { %v1027_v46 = vld [vmem:[%s2741_s26 + $0x3d0] sm:$0xff]  ;;  %v1025_v48 = vld [vmem:[%s2741_s26 + $0x3c0] sm:$0xff]  ;;  %1192 = vmatpush.msra.mxu1 %v963_v43  ;;  %1164 = vmatpush.msra.mxu0 %v929_v44 }
 0x167   : > { %1250 = vmatpush.msra.mxu3 %v1027_v46  ;;  %v927_v49 = vld [vmem:[%s2741_s26 + $0xb0] sm:$0xff]  ;;  %1222 = vmatpush.msra.mxu2 %v993_v45  ;;  %v925_v53 = vld [vmem:[%s2741_s26 + $0xa0] sm:$0xff] }
 0x168   : > { %v991_v50 = vld [vmem:[%s2741_s26 + $0x2b0] sm:$0xff]  ;;  %1193 = vmatpush.msra.mxu1 %v961_v47  ;;  %v989_v54 = vld [vmem:[%s2741_s26 + $0x2a0] sm:$0xff]  ;;  %1165 = vmatpush.msra.mxu0 %v927_v49 }
 0x169   : > { %v959_v51 = vld [vmem:[%s2741_s26 + $0x1b0] sm:$0xff]  ;;  %1251 = vmatpush.msra.mxu3 %v1025_v48  ;;  %1223 = vmatpush.msra.mxu2 %v991_v50  ;;  %v957_v55 = vld [vmem:[%s2741_s26 + $0x1a0] sm:$0xff] }
 0x16a   : > { %v1023_v52 = vld [vmem:[%s2741_s26 + $0x3b0] sm:$0xff]  ;;  %v1021_v56 = vld [vmem:[%s2741_s26 + $0x3a0] sm:$0xff]  ;;  %1194 = vmatpush.msra.mxu1 %v959_v51  ;;  %1166 = vmatpush.msra.mxu0 %v925_v53 }
 0x16b   : > { %1252 = vmatpush.msra.mxu3 %v1023_v52  ;;  %v923_v57 = vld [vmem:[%s2741_s26 + $0x90] sm:$0xff]  ;;  %1224 = vmatpush.msra.mxu2 %v989_v54  ;;  %v921_v61 = vld [vmem:[%s2741_s26 + $0x80] sm:$0xff] }
 0x16c   : > { %v987_v58 = vld [vmem:[%s2741_s26 + $0x290] sm:$0xff]  ;;  %1195 = vmatpush.msra.mxu1 %v957_v55  ;;  %v985_v62 = vld [vmem:[%s2741_s26 + $0x280] sm:$0xff]  ;;  %1167 = vmatpush.msra.mxu0 %v923_v57  ;;  %v2853_v57 = vld [vmem:[%s2739_s25 + $0x48] sm:$0xff] }
 0x16d   : > { %v955_v59 = vld [vmem:[%s2741_s26 + $0x190] sm:$0xff]  ;;  %1253 = vmatpush.msra.mxu3 %v1021_v56  ;;  %1225 = vmatpush.msra.mxu2 %v987_v58  ;;  %v953_v63 = vld [vmem:[%s2741_s26 + $0x180] sm:$0xff]  ;;  %v2856_v58 = vld [vmem:[%s2739_s25 + $0x58] sm:$0xff] }
 0x16e   : > { %v1019_v60 = vld [vmem:[%s2741_s26 + $0x390] sm:$0xff]  ;;  %v1017_v0 = vld [vmem:[%s2741_s26 + $0x380] sm:$0xff]  ;;  %1196 = vmatpush.msra.mxu1 %v955_v59  ;;  %1168 = vmatpush.msra.mxu0 %v921_v61 }
 0x16f   : > { %1254 = vmatpush.msra.mxu3 %v1019_v60  ;;  %v919_v1 = vld [vmem:[%s2741_s26 + $0x70] sm:$0xff]  ;;  %1226 = vmatpush.msra.mxu2 %v985_v62  ;;  %v917_v5 = vld [vmem:[%s2741_s26 + $0x60] sm:$0xff] }
 0x170   : > { %v983_v2 = vld [vmem:[%s2741_s26 + $0x270] sm:$0xff]  ;;  %1197 = vmatpush.msra.mxu1 %v953_v63  ;;  %v981_v6 = vld [vmem:[%s2741_s26 + $0x260] sm:$0xff]  ;;  %1169 = vmatpush.msra.mxu0 %v919_v1 }
 0x171   : > { %v951_v3 = vld [vmem:[%s2741_s26 + $0x170] sm:$0xff]  ;;  %1255 = vmatpush.msra.mxu3 %v1017_v0  ;;  %1227 = vmatpush.msra.mxu2 %v983_v2  ;;  %v949_v7 = vld [vmem:[%s2741_s26 + $0x160] sm:$0xff] }
 0x172   : > { %v1015_v4 = vld [vmem:[%s2741_s26 + $0x370] sm:$0xff]  ;;  %v1013_v8 = vld [vmem:[%s2741_s26 + $0x360] sm:$0xff]  ;;  %1198 = vmatpush.msra.mxu1 %v951_v3  ;;  %1170 = vmatpush.msra.mxu0 %v917_v5 }
 0x173   : > { %1256 = vmatpush.msra.mxu3 %v1015_v4  ;;  %v915_v9 = vld [vmem:[%s2741_s26 + $0x50] sm:$0xff]  ;;  %1228 = vmatpush.msra.mxu2 %v981_v6  ;;  %v913_v13 = vld [vmem:[%s2741_s26 + $0x40] sm:$0xff] }
 0x174   : > { %v979_v10 = vld [vmem:[%s2741_s26 + $0x250] sm:$0xff]  ;;  %1199 = vmatpush.msra.mxu1 %v949_v7  ;;  %v977_v14 = vld [vmem:[%s2741_s26 + $0x240] sm:$0xff]  ;;  %1171 = vmatpush.msra.mxu0 %v915_v9 }
 0x175   : > { %v947_v11 = vld [vmem:[%s2741_s26 + $0x150] sm:$0xff]  ;;  %1257 = vmatpush.msra.mxu3 %v1013_v8  ;;  %1229 = vmatpush.msra.mxu2 %v979_v10  ;;  %v945_v15 = vld [vmem:[%s2741_s26 + $0x140] sm:$0xff] }
 0x176   : > { %v1011_v12 = vld [vmem:[%s2741_s26 + $0x350] sm:$0xff]  ;;  %v1009_v16 = vld [vmem:[%s2741_s26 + $0x340] sm:$0xff]  ;;  %1200 = vmatpush.msra.mxu1 %v947_v11  ;;  %1172 = vmatpush.msra.mxu0 %v913_v13  ;;  %v2885_v13 = vld [vmem:[%s2739_s25 + $0x88] sm:$0xff] }
 0x177   : > { %1258 = vmatpush.msra.mxu3 %v1011_v12  ;;  %v911_v17 = vld [vmem:[%s2741_s26 + $0x30] sm:$0xff]  ;;  %1230 = vmatpush.msra.mxu2 %v977_v14  ;;  %v909_v21 = vld [vmem:[%s2741_s26 + $0x20] sm:$0xff]  ;;  %v2888_v14 = vld [vmem:[%s2739_s25 + $0x98] sm:$0xff] }
 0x178   : > { %v975_v18 = vld [vmem:[%s2741_s26 + $0x230] sm:$0xff]  ;;  %1201 = vmatpush.msra.mxu1 %v945_v15  ;;  %v973_v22 = vld [vmem:[%s2741_s26 + $0x220] sm:$0xff]  ;;  %1173 = vmatpush.msra.mxu0 %v911_v17 }
 0x179   : > { %v943_v19 = vld [vmem:[%s2741_s26 + $0x130] sm:$0xff]  ;;  %1259 = vmatpush.msra.mxu3 %v1009_v16  ;;  %1231 = vmatpush.msra.mxu2 %v975_v18  ;;  %v941_v23 = vld [vmem:[%s2741_s26 + $0x120] sm:$0xff] }
 0x17a   : > { %v1007_v20 = vld [vmem:[%s2741_s26 + $0x330] sm:$0xff]  ;;  %v1005_v24 = vld [vmem:[%s2741_s26 + $0x320] sm:$0xff]  ;;  %1202 = vmatpush.msra.mxu1 %v943_v19  ;;  %1174 = vmatpush.msra.mxu0 %v909_v21 }
 0x17b   : > { %1260 = vmatpush.msra.mxu3 %v1007_v20  ;;  %v907_v25 = vld [vmem:[%s2741_s26 + $0x10] sm:$0xff]  ;;  %1232 = vmatpush.msra.mxu2 %v973_v22  ;;  %v905_v29 = vld [vmem:[%s2741_s26] sm:$0xff] }
 0x17c   : > { %v971_v26 = vld [vmem:[%s2741_s26 + $0x210] sm:$0xff]  ;;  %1203 = vmatpush.msra.mxu1 %v941_v23  ;;  %v969_v30 = vld [vmem:[%s2741_s26 + $0x200] sm:$0xff]  ;;  %1175 = vmatpush.msra.mxu0 %v907_v25 }
 0x17d   : > { %v939_v27 = vld [vmem:[%s2741_s26 + $0x110] sm:$0xff]  ;;  %1261 = vmatpush.msra.mxu3 %v1005_v24  ;;  %1233 = vmatpush.msra.mxu2 %v971_v26  ;;  %v2809_v31 = vld [vmem:[%s2739_s25] sm:$0xff] }
 0x17e   : > { %v1003_v28 = vld [vmem:[%s2741_s26 + $0x310] sm:$0xff]  ;;  %1204 = vmatpush.msra.mxu1 %v939_v27  ;;  %v937_v34 = vld [vmem:[%s2741_s26 + $0x100] sm:$0xff]  ;;  %1176 = vmatpush.msra.mxu0 %v905_v29 }
 0x17f   : > { %v2812_v32 = vld [vmem:[%s2739_s25 + $0x10] sm:$0xff]  ;;  %1262 = vmatpush.msra.mxu3 %v1003_v28  ;;  %1234 = vmatpush.msra.mxu2 %v969_v30  ;;  %v1001_v35 = vld [vmem:[%s2741_s26 + $0x300] sm:$0xff] }
 0x180   : > { %v1127_v33 = vld [vmem:[%s2741_s26 + $0x6f0] sm:$0xff]  ;;  %1177 = vmatmul.f32.vlgmr.msra.gmra.mxu0 %v2809_v31  ;;  %1235 = vmatmul.f32.vlgmr.msra.gmra.mxu2 %v2812_v32  ;;  %v1125_v39 = vld [vmem:[%s2741_s26 + $0x6e0] sm:$0xff] }
 0x181   : > { %v1063_v36 = vld [vmem:[%s2741_s26 + $0x4f0] sm:$0xff]  ;;  %1335 = vmatpush.msrb.mxu2 %v1127_v33  ;;  %1205 = vmatpush.msra.mxu1 %v937_v34  ;;  %v1061_v41 = vld [vmem:[%s2741_s26 + $0x4e0] sm:$0xff] }
 0x182   : > { %v1159_v40 = vld [vmem:[%s2741_s26 + $0x7f0] sm:$0xff]  ;;  %1263 = vmatpush.msra.mxu3 %v1001_v35  ;;  %1277 = vmatpush.msrb.mxu0 %v1063_v36  ;;  %v1157_v44 = vld [vmem:[%s2741_s26 + $0x7e0] sm:$0xff]  ;;  %v2917_v35 = vld [vmem:[%s2739_s25 + $0xc8] sm:$0xff] }
 0x183   : > { %v1095_v42 = vld [vmem:[%s2741_s26 + $0x5f0] sm:$0xff]  ;;  %1206 = vmatmul.f32.vlgmr.msra.gmra.mxu1 %v2821_v37  ;;  %1264 = vmatmul.f32.vlgmr.msra.gmra.mxu3 %v2824_v38  ;;  %v1093_v46 = vld [vmem:[%s2741_s26 + $0x5e0] sm:$0xff]  ;;  %v2920_v36 = vld [vmem:[%s2739_s25 + $0xd8] sm:$0xff] }
 0x184   : > { %v1123_v43 = vld [vmem:[%s2741_s26 + $0x6d0] sm:$0xff]  ;;  %1336 = vmatpush.msrb.mxu2 %v1125_v39  ;;  %1364 = vmatpush.msrb.mxu3 %v1159_v40  ;;  %v1121_v47 = vld [vmem:[%s2741_s26 + $0x6c0] sm:$0xff] }
 0x185   : > { %v1059_v45 = vld [vmem:[%s2741_s26 + $0x4d0] sm:$0xff]  ;;  %1278 = vmatpush.msrb.mxu0 %v1061_v41  ;;  %1306 = vmatpush.msrb.mxu1 %v1095_v42  ;;  %v1057_v49 = vld [vmem:[%s2741_s26 + $0x4c0] sm:$0xff] }
 0x186   : > { %v1155_v48 = vld [vmem:[%s2741_s26 + $0x7d0] sm:$0xff]  ;;  %1337 = vmatpush.msrb.mxu2 %v1123_v43  ;;  %1365 = vmatpush.msrb.mxu3 %v1157_v44  ;;  %v2841_v51 = vld [vmem:[%s2739_s25 + $0x40] sm:$0xff] }
 0x187   : > { %v1091_v50 = vld [vmem:[%s2741_s26 + $0x5d0] sm:$0xff]  ;;  %1279 = vmatpush.msrb.mxu0 %v1059_v45  ;;  %1307 = vmatpush.msrb.mxu1 %v1093_v46  ;;  %v1153_v54 = vld [vmem:[%s2741_s26 + $0x7c0] sm:$0xff] }
 0x188   : > { %v2844_v52 = vld [vmem:[%s2739_s25 + $0x50] sm:$0xff]  ;;  %1338 = vmatpush.msrb.mxu2 %v1121_v47  ;;  %1366 = vmatpush.msrb.mxu3 %v1155_v48  ;;  %v1089_v56 = vld [vmem:[%s2741_s26 + $0x5c0] sm:$0xff] }
 0x189   : > { %v1119_v53 = vld [vmem:[%s2741_s26 + $0x6b0] sm:$0xff]  ;;  %1280 = vmatpush.msrb.mxu0 %v1057_v49  ;;  %1308 = vmatpush.msrb.mxu1 %v1091_v50  ;;  %v1117_v59 = vld [vmem:[%s2741_s26 + $0x6a0] sm:$0xff] }
 0x18a   : > { %v1055_v55 = vld [vmem:[%s2741_s26 + $0x4b0] sm:$0xff]  ;;  %1180 = vmatmul.f32.gmra.mxu0 %v2841_v51  ;;  %1238 = vmatmul.f32.gmra.mxu2 %v2844_v52  ;;  %v1053_v61 = vld [vmem:[%s2741_s26 + $0x4a0] sm:$0xff] }
 0x18b   : > { %1339 = vmatpush.msrb.mxu2 %v1119_v53  ;;  %1367 = vmatpush.msrb.mxu3 %v1153_v54  ;;  %v1151_v60 = vld [vmem:[%s2741_s26 + $0x7b0] sm:$0xff]  ;;  %v1149_v0 = vld [vmem:[%s2741_s26 + $0x7a0] sm:$0xff] }
 0x18c   : > { %1281 = vmatpush.msrb.mxu0 %v1055_v55  ;;  %1309 = vmatpush.msrb.mxu1 %v1089_v56  ;;  %v1087_v62 = vld [vmem:[%s2741_s26 + $0x5b0] sm:$0xff]  ;;  %v1085_v2 = vld [vmem:[%s2741_s26 + $0x5a0] sm:$0xff]  ;;  %v1000_v56 = vld [vmem:[%s2741_s26 + $0x2f8] sm:$0xff] }
 0x18d   : > { %1209 = vmatmul.f32.gmra.mxu1 %v2853_v57  ;;  %1267 = vmatmul.f32.gmra.mxu3 %v2856_v58  ;;  %v1115_v63 = vld [vmem:[%s2741_s26 + $0x690] sm:$0xff]  ;;  %v1113_v3 = vld [vmem:[%s2741_s26 + $0x680] sm:$0xff] }
 0x18e   : > { %1340 = vmatpush.msrb.mxu2 %v1117_v59  ;;  %1368 = vmatpush.msrb.mxu3 %v1151_v60  ;;  %v1051_v1 = vld [vmem:[%s2741_s26 + $0x490] sm:$0xff]  ;;  %v1049_v5 = vld [vmem:[%s2741_s26 + $0x480] sm:$0xff]  ;;  %v936_v60 = vld [vmem:[%s2741_s26 + $0xf8] sm:$0xff] }
 0x18f   : > { %1282 = vmatpush.msrb.mxu0 %v1053_v61  ;;  %1310 = vmatpush.msrb.mxu1 %v1087_v62  ;;  %v1147_v4 = vld [vmem:[%s2741_s26 + $0x790] sm:$0xff]  ;;  %v2873_v7 = vld [vmem:[%s2739_s25 + $0x80] sm:$0xff]  ;;  %v2949_v61 = vld [vmem:[%s2739_s25 + $0x28] sm:$0xff] }
 0x190   : > { %1341 = vmatpush.msrb.mxu2 %v1115_v63  ;;  %1369 = vmatpush.msrb.mxu3 %v1149_v0  ;;  %v1083_v6 = vld [vmem:[%s2741_s26 + $0x590] sm:$0xff]  ;;  %v1145_v10 = vld [vmem:[%s2741_s26 + $0x780] sm:$0xff]  ;;  %v2952_v62 = vld [vmem:[%s2739_s25 + $0x38] sm:$0xff] }
 0x191   : > { %1283 = vmatpush.msrb.mxu0 %v1051_v1  ;;  %1311 = vmatpush.msrb.mxu1 %v1085_v2  ;;  %v2876_v8 = vld [vmem:[%s2739_s25 + $0x90] sm:$0xff]  ;;  %v1081_v12 = vld [vmem:[%s2741_s26 + $0x580] sm:$0xff]  ;;  %v998_v63 = vld [vmem:[%s2741_s26 + $0x2e8] sm:$0xff] }
 0x192   : > { %1342 = vmatpush.msrb.mxu2 %v1113_v3  ;;  %1370 = vmatpush.msrb.mxu3 %v1147_v4  ;;  %v1111_v9 = vld [vmem:[%s2741_s26 + $0x670] sm:$0xff]  ;;  %v1109_v15 = vld [vmem:[%s2741_s26 + $0x660] sm:$0xff]  ;;  %v1032_v0 = vld [vmem:[%s2741_s26 + $0x3f8] sm:$0xff] }
 0x193   : > { %1284 = vmatpush.msrb.mxu0 %v1049_v5  ;;  %1312 = vmatpush.msrb.mxu1 %v1083_v6  ;;  %v1047_v11 = vld [vmem:[%s2741_s26 + $0x470] sm:$0xff]  ;;  %v1045_v17 = vld [vmem:[%s2741_s26 + $0x460] sm:$0xff]  ;;  %v934_v1 = vld [vmem:[%s2741_s26 + $0xe8] sm:$0xff] }
 0x194   : > { %1183 = vmatmul.f32.gmra.mxu0 %v2873_v7  ;;  %1241 = vmatmul.f32.gmra.mxu2 %v2876_v8  ;;  %v1143_v16 = vld [vmem:[%s2741_s26 + $0x770] sm:$0xff]  ;;  %v1141_v20 = vld [vmem:[%s2741_s26 + $0x760] sm:$0xff]  ;;  %v968_v2 = vld [vmem:[%s2741_s26 + $0x1f8] sm:$0xff] }
 0x195   : > { %1343 = vmatpush.msrb.mxu2 %v1111_v9  ;;  %1371 = vmatpush.msrb.mxu3 %v1145_v10  ;;  %v1079_v18 = vld [vmem:[%s2741_s26 + $0x570] sm:$0xff]  ;;  %v1077_v22 = vld [vmem:[%s2741_s26 + $0x560] sm:$0xff]  ;;  %v996_v3 = vld [vmem:[%s2741_s26 + $0x2d8] sm:$0xff] }
 0x196   : > { %1285 = vmatpush.msrb.mxu0 %v1047_v11  ;;  %1313 = vmatpush.msrb.mxu1 %v1081_v12  ;;  %v1107_v19 = vld [vmem:[%s2741_s26 + $0x650] sm:$0xff]  ;;  %v1105_v23 = vld [vmem:[%s2741_s26 + $0x640] sm:$0xff]  ;;  %v1030_v4 = vld [vmem:[%s2741_s26 + $0x3e8] sm:$0xff] }
 0x197   : > { %1212 = vmatmul.f32.gmra.mxu1 %v2885_v13  ;;  %1270 = vmatmul.f32.gmra.mxu3 %v2888_v14  ;;  %v1043_v21 = vld [vmem:[%s2741_s26 + $0x450] sm:$0xff]  ;;  %v1041_v25 = vld [vmem:[%s2741_s26 + $0x440] sm:$0xff]  ;;  %v932_v5 = vld [vmem:[%s2741_s26 + $0xd8] sm:$0xff] }
 0x198   : > { %1344 = vmatpush.msrb.mxu2 %v1109_v15  ;;  %1372 = vmatpush.msrb.mxu3 %v1143_v16  ;;  %v1139_v24 = vld [vmem:[%s2741_s26 + $0x750] sm:$0xff]  ;;  %v2905_v27 = vld [vmem:[%s2739_s25 + $0xc0] sm:$0xff]  ;;  %v966_v6 = vld [vmem:[%s2741_s26 + $0x1e8] sm:$0xff] }
 0x199   : > { %1286 = vmatpush.msrb.mxu0 %v1045_v17  ;;  %1314 = vmatpush.msrb.mxu1 %v1079_v18  ;;  %v1075_v26 = vld [vmem:[%s2741_s26 + $0x550] sm:$0xff]  ;;  %v1137_v30 = vld [vmem:[%s2741_s26 + $0x740] sm:$0xff]  ;;  %v994_v9 = vld [vmem:[%s2741_s26 + $0x2c8] sm:$0xff] }
 0x19a   : > { %1345 = vmatpush.msrb.mxu2 %v1107_v19  ;;  %1373 = vmatpush.msrb.mxu3 %v1141_v20  ;;  %v2908_v28 = vld [vmem:[%s2739_s25 + $0xd0] sm:$0xff]  ;;  %v1073_v34 = vld [vmem:[%s2741_s26 + $0x540] sm:$0xff]  ;;  %v1028_v10 = vld [vmem:[%s2741_s26 + $0x3d8] sm:$0xff] }
 0x19b   : > { %1287 = vmatpush.msrb.mxu0 %v1043_v21  ;;  %1315 = vmatpush.msrb.mxu1 %v1077_v22  ;;  %v1103_v29 = vld [vmem:[%s2741_s26 + $0x630] sm:$0xff]  ;;  %v1101_v39 = vld [vmem:[%s2741_s26 + $0x620] sm:$0xff]  ;;  %v930_v11 = vld [vmem:[%s2741_s26 + $0xc8] sm:$0xff] }
 0x19c   : > { %1346 = vmatpush.msrb.mxu2 %v1105_v23  ;;  %1374 = vmatpush.msrb.mxu3 %v1139_v24  ;;  %v1039_v33 = vld [vmem:[%s2741_s26 + $0x430] sm:$0xff]  ;;  %v1037_v41 = vld [vmem:[%s2741_s26 + $0x420] sm:$0xff]  ;;  %v964_v12 = vld [vmem:[%s2741_s26 + $0x1d8] sm:$0xff] }
 0x19d   : > { %1288 = vmatpush.msrb.mxu0 %v1041_v25  ;;  %1316 = vmatpush.msrb.mxu1 %v1075_v26  ;;  %v1135_v40 = vld [vmem:[%s2741_s26 + $0x730] sm:$0xff]  ;;  %v1133_v44 = vld [vmem:[%s2741_s26 + $0x720] sm:$0xff]  ;;  %v992_v17 = vld [vmem:[%s2741_s26 + $0x2b8] sm:$0xff] }
 0x19e   : > { %1186 = vmatmul.f32.gmra.mxu0 %v2905_v27  ;;  %1244 = vmatmul.f32.gmra.mxu2 %v2908_v28  ;;  %v1071_v42 = vld [vmem:[%s2741_s26 + $0x530] sm:$0xff]  ;;  %v1069_v46 = vld [vmem:[%s2741_s26 + $0x520] sm:$0xff]  ;;  %v1026_v18 = vld [vmem:[%s2741_s26 + $0x3c8] sm:$0xff] }
 0x19f   : > { %1347 = vmatpush.msrb.mxu2 %v1103_v29  ;;  %1375 = vmatpush.msrb.mxu3 %v1137_v30  ;;  %v1099_v43 = vld [vmem:[%s2741_s26 + $0x610] sm:$0xff]  ;;  %v1097_v47 = vld [vmem:[%s2741_s26 + $0x600] sm:$0xff]  ;;  %v928_v19 = vld [vmem:[%s2741_s26 + $0xb8] sm:$0xff] }
 0x1a0   : > { %1289 = vmatpush.msrb.mxu0 %v1039_v33  ;;  %1317 = vmatpush.msrb.mxu1 %v1073_v34  ;;  %v1035_v45 = vld [vmem:[%s2741_s26 + $0x410] sm:$0xff]  ;;  %v1033_v49 = vld [vmem:[%s2741_s26 + $0x400] sm:$0xff]  ;;  %v962_v20 = vld [vmem:[%s2741_s26 + $0x1c8] sm:$0xff] }
 0x1a1   : > { %1215 = vmatmul.f32.gmra.mxu1 %v2917_v35  ;;  %1273 = vmatmul.f32.gmra.mxu3 %v2920_v36  ;;  %v1131_v48 = vld [vmem:[%s2741_s26 + $0x710] sm:$0xff]  ;;  %v2937_v53 = vld [vmem:[%s2739_s25 + $0x20] sm:$0xff]  ;;  %v2981_v21 = vld [vmem:[%s2739_s25 + $0x68] sm:$0xff] }
 0x1a2   : > { %1348 = vmatpush.msrb.mxu2 %v1101_v39  ;;  %1376 = vmatpush.msrb.mxu3 %v1135_v40  ;;  %v1067_v50 = vld [vmem:[%s2741_s26 + $0x510] sm:$0xff]  ;;  %v1129_v55 = vld [vmem:[%s2741_s26 + $0x700] sm:$0xff]  ;;  %v2984_v22 = vld [vmem:[%s2739_s25 + $0x78] sm:$0xff] }
 0x1a3   : > { %1290 = vmatpush.msrb.mxu0 %v1037_v41  ;;  %1318 = vmatpush.msrb.mxu1 %v1071_v42  ;;  %v2940_v54 = vld [vmem:[%s2739_s25 + $0x30] sm:$0xff]  ;;  %v1065_v59 = vld [vmem:[%s2741_s26 + $0x500] sm:$0xff]  ;;  %v990_v23 = vld [vmem:[%s2741_s26 + $0x2a8] sm:$0xff] }
 0x1a4   : > { %1349 = vmatpush.msrb.mxu2 %v1099_v43  ;;  %1377 = vmatpush.msrb.mxu3 %v1133_v44  ;;  %v2969_v15 = vld [vmem:[%s2739_s25 + $0x60] sm:$0xff]  ;;  %v2972_v16 = vld [vmem:[%s2739_s25 + $0x70] sm:$0xff]  ;;  %v1024_v24 = vld [vmem:[%s2741_s26 + $0x3b8] sm:$0xff] }
 0x1a5   : > { %1291 = vmatpush.msrb.mxu0 %v1035_v45  ;;  %1319 = vmatpush.msrb.mxu1 %v1069_v46  ;;  %v926_v25 = vld [vmem:[%s2741_s26 + $0xa8] sm:$0xff]  ;;  %v960_v26 = vld [vmem:[%s2741_s26 + $0x1b8] sm:$0xff]  ;;  %v3001_v43 = vld [vmem:[%s2739_s25 + $0xa0] sm:$0xff] }
 0x1a6   : > { %1350 = vmatpush.msrb.mxu2 %v1097_v47  ;;  %1378 = vmatpush.msrb.mxu3 %v1131_v48  ;;  %v988_v29 = vld [vmem:[%s2741_s26 + $0x298] sm:$0xff]  ;;  %v1022_v30 = vld [vmem:[%s2741_s26 + $0x3a8] sm:$0xff]  ;;  %v3004_v44 = vld [vmem:[%s2739_s25 + $0xb0] sm:$0xff] }
 0x1a7   : > { %1292 = vmatpush.msrb.mxu0 %v1033_v49  ;;  %1320 = vmatpush.msrb.mxu1 %v1067_v50  ;;  %v924_v33 = vld [vmem:[%s2741_s26 + $0x98] sm:$0xff]  ;;  %v958_v34 = vld [vmem:[%s2741_s26 + $0x1a8] sm:$0xff] }
 0x1a8   : > { %1293 = vmatmul.f32.vlgmr.msrb.gmra.mxu0 %v2937_v53  ;;  %1351 = vmatmul.f32.vlgmr.msrb.gmra.mxu2 %v2940_v54  ;;  %v986_v39 = vld [vmem:[%s2741_s26 + $0x288] sm:$0xff]  ;;  %v1020_v40 = vld [vmem:[%s2741_s26 + $0x398] sm:$0xff] }
 0x1a9   : > { %1379 = vmatpush.msrb.mxu3 %v1129_v55  ;;  %1451 = vmatpush.msra.mxu2 %v1000_v56  ;;  %v922_v41 = vld [vmem:[%s2741_s26 + $0x88] sm:$0xff]  ;;  %v956_v42 = vld [vmem:[%s2741_s26 + $0x198] sm:$0xff] }
 0x1aa   : > { %1321 = vmatpush.msrb.mxu1 %v1065_v59  ;;  %1393 = vmatpush.msra.mxu0 %v936_v60  ;;  %v984_v45 = vld [vmem:[%s2741_s26 + $0x278] sm:$0xff]  ;;  %v1018_v46 = vld [vmem:[%s2741_s26 + $0x388] sm:$0xff] }
 0x1ab   : > { %1322 = vmatmul.f32.vlgmr.msrb.gmra.mxu1 %v2949_v61  ;;  %1380 = vmatmul.f32.vlgmr.msrb.gmra.mxu3 %v2952_v62  ;;  %v920_v47 = vld [vmem:[%s2741_s26 + $0x78] sm:$0xff]  ;;  %v954_v48 = vld [vmem:[%s2741_s26 + $0x188] sm:$0xff] }
 0x1ac   : > { %1452 = vmatpush.msra.mxu2 %v998_v63  ;;  %1480 = vmatpush.msra.mxu3 %v1032_v0  ;;  %v3013_v49 = vld [vmem:[%s2739_s25 + $0xa8] sm:$0xff]  ;;  %v3016_v50 = vld [vmem:[%s2739_s25 + $0xb8] sm:$0xff] }
 0x1ad   : > { %1394 = vmatpush.msra.mxu0 %v934_v1  ;;  %1422 = vmatpush.msra.mxu1 %v968_v2  ;;  %v982_v55 = vld [vmem:[%s2741_s26 + $0x268] sm:$0xff]  ;;  %v1016_v56 = vld [vmem:[%s2741_s26 + $0x378] sm:$0xff] }
 0x1ae   : > { %1453 = vmatpush.msra.mxu2 %v996_v3  ;;  %1481 = vmatpush.msra.mxu3 %v1030_v4  ;;  %v918_v59 = vld [vmem:[%s2741_s26 + $0x68] sm:$0xff]  ;;  %v952_v60 = vld [vmem:[%s2741_s26 + $0x178] sm:$0xff] }
 0x1af   : > { %1395 = vmatpush.msra.mxu0 %v932_v5  ;;  %1423 = vmatpush.msra.mxu1 %v966_v6  ;;  %v980_v63 = vld [vmem:[%s2741_s26 + $0x258] sm:$0xff]  ;;  %v1014_v0 = vld [vmem:[%s2741_s26 + $0x368] sm:$0xff] }
 0x1b0   : > { %1454 = vmatpush.msra.mxu2 %v994_v9  ;;  %1482 = vmatpush.msra.mxu3 %v1028_v10  ;;  %v916_v1 = vld [vmem:[%s2741_s26 + $0x58] sm:$0xff]  ;;  %v950_v2 = vld [vmem:[%s2741_s26 + $0x168] sm:$0xff]  ;;  %v3033_v9 = vld [vmem:[%s2739_s25 + $0xe0] sm:$0xff] }
 0x1b1   : > { %1396 = vmatpush.msra.mxu0 %v930_v11  ;;  %1424 = vmatpush.msra.mxu1 %v964_v12  ;;  %v978_v3 = vld [vmem:[%s2741_s26 + $0x248] sm:$0xff]  ;;  %v1012_v4 = vld [vmem:[%s2741_s26 + $0x358] sm:$0xff]  ;;  %v3036_v10 = vld [vmem:[%s2739_s25 + $0xf0] sm:$0xff] }
 0x1b2   : > { %1296 = vmatmul.f32.gmra.mxu0 %v2969_v15  ;;  %1354 = vmatmul.f32.gmra.mxu2 %v2972_v16  ;;  %v914_v5 = vld [vmem:[%s2741_s26 + $0x48] sm:$0xff]  ;;  %v948_v6 = vld [vmem:[%s2741_s26 + $0x158] sm:$0xff] }
 0x1b3   : > { %1455 = vmatpush.msra.mxu2 %v992_v17  ;;  %1483 = vmatpush.msra.mxu3 %v1026_v18  ;;  %v976_v11 = vld [vmem:[%s2741_s26 + $0x238] sm:$0xff]  ;;  %v1010_v12 = vld [vmem:[%s2741_s26 + $0x348] sm:$0xff] }
 0x1b4   : > { %1397 = vmatpush.msra.mxu0 %v928_v19  ;;  %1425 = vmatpush.msra.mxu1 %v962_v20  ;;  %v912_v17 = vld [vmem:[%s2741_s26 + $0x38] sm:$0xff]  ;;  %v946_v18 = vld [vmem:[%s2741_s26 + $0x148] sm:$0xff] }
 0x1b5   : > { %1325 = vmatmul.f32.gmra.mxu1 %v2981_v21  ;;  %1383 = vmatmul.f32.gmra.mxu3 %v2984_v22  ;;  %v3045_v19 = vld [vmem:[%s2739_s25 + $0xe8] sm:$0xff]  ;;  %v3048_v20 = vld [vmem:[%s2739_s25 + $0xf8] sm:$0xff] }
 0x1b6   : > { %1456 = vmatpush.msra.mxu2 %v990_v23  ;;  %1484 = vmatpush.msra.mxu3 %v1024_v24  ;;  %v974_v23 = vld [vmem:[%s2741_s26 + $0x228] sm:$0xff]  ;;  %v1008_v24 = vld [vmem:[%s2741_s26 + $0x338] sm:$0xff] }
 0x1b7   : > { %1398 = vmatpush.msra.mxu0 %v926_v25  ;;  %1426 = vmatpush.msra.mxu1 %v960_v26  ;;  %v910_v25 = vld [vmem:[%s2741_s26 + $0x28] sm:$0xff]  ;;  %v944_v26 = vld [vmem:[%s2741_s26 + $0x138] sm:$0xff] }
 0x1b8   : > { %1457 = vmatpush.msra.mxu2 %v988_v29  ;;  %1485 = vmatpush.msra.mxu3 %v1022_v30  ;;  %v972_v29 = vld [vmem:[%s2741_s26 + $0x218] sm:$0xff]  ;;  %v1006_v30 = vld [vmem:[%s2741_s26 + $0x328] sm:$0xff] }
 0x1b9   : > { %1399 = vmatpush.msra.mxu0 %v924_v33  ;;  %1427 = vmatpush.msra.mxu1 %v958_v34  ;;  %v908_v33 = vld [vmem:[%s2741_s26 + $0x18] sm:$0xff]  ;;  %v942_v34 = vld [vmem:[%s2741_s26 + $0x128] sm:$0xff] }
 0x1ba   : > { %1458 = vmatpush.msra.mxu2 %v986_v39  ;;  %1486 = vmatpush.msra.mxu3 %v1020_v40  ;;  %v970_v39 = vld [vmem:[%s2741_s26 + $0x208] sm:$0xff]  ;;  %v1004_v40 = vld [vmem:[%s2741_s26 + $0x318] sm:$0xff] }
 0x1bb   : > { %1400 = vmatpush.msra.mxu0 %v922_v41  ;;  %1428 = vmatpush.msra.mxu1 %v956_v42  ;;  %v906_v41 = vld [vmem:[%s2741_s26 + $0x8] sm:$0xff]  ;;  %v940_v42 = vld [vmem:[%s2741_s26 + $0x118] sm:$0xff] }
 0x1bc   : > { %1299 = vmatmul.f32.gmra.mxu0 %v3001_v43  ;;  %1357 = vmatmul.f32.gmra.mxu2 %v3004_v44 }
 0x1bd   : > { %1459 = vmatpush.msra.mxu2 %v984_v45  ;;  %1487 = vmatpush.msra.mxu3 %v1018_v46  ;;  %v1002_v45 = vld [vmem:[%s2741_s26 + $0x308] sm:$0xff]  ;;  %v1128_v46 = vld [vmem:[%s2741_s26 + $0x6f8] sm:$0xff] }
 0x1be   : > { %1401 = vmatpush.msra.mxu0 %v920_v47  ;;  %1429 = vmatpush.msra.mxu1 %v954_v48  ;;  %v938_v47 = vld [vmem:[%s2741_s26 + $0x108] sm:$0xff]  ;;  %v1064_v48 = vld [vmem:[%s2741_s26 + $0x4f8] sm:$0xff] }
 0x1bf   : > { %1328 = vmatmul.f32.gmra.mxu1 %v3013_v49  ;;  %1386 = vmatmul.f32.gmra.mxu3 %v3016_v50 }
 0x1c0   : > { %1460 = vmatpush.msra.mxu2 %v982_v55  ;;  %1488 = vmatpush.msra.mxu3 %v1016_v56  ;;  %v1126_v55 = vld [vmem:[%s2741_s26 + $0x6e8] sm:$0xff]  ;;  %v1160_v56 = vld [vmem:[%s2741_s26 + $0x7f8] sm:$0xff] }
 0x1c1   : > { %1402 = vmatpush.msra.mxu0 %v918_v59  ;;  %1430 = vmatpush.msra.mxu1 %v952_v60  ;;  %v1062_v59 = vld [vmem:[%s2741_s26 + $0x4e8] sm:$0xff]  ;;  %v1096_v60 = vld [vmem:[%s2741_s26 + $0x5f8] sm:$0xff] }
 0x1c2   : > { %1461 = vmatpush.msra.mxu2 %v980_v63  ;;  %1489 = vmatpush.msra.mxu3 %v1014_v0  ;;  %v1158_v63 = vld [vmem:[%s2741_s26 + $0x7e8] sm:$0xff] }
 0x1c3   : > { %1403 = vmatpush.msra.mxu0 %v916_v1  ;;  %1431 = vmatpush.msra.mxu1 %v950_v2  ;;  %v1094_v0 = vld [vmem:[%s2741_s26 + $0x5e8] sm:$0xff]  ;;  %v1156_v2 = vld [vmem:[%s2741_s26 + $0x7d8] sm:$0xff] }
 0x1c4   : > { %1462 = vmatpush.msra.mxu2 %v978_v3  ;;  %1490 = vmatpush.msra.mxu3 %v1012_v4  ;;  %v1122_v1 = vld [vmem:[%s2741_s26 + $0x6c8] sm:$0xff] }
 0x1c5   : > { %1404 = vmatpush.msra.mxu0 %v914_v5  ;;  %1432 = vmatpush.msra.mxu1 %v948_v6  ;;  %v1058_v3 = vld [vmem:[%s2741_s26 + $0x4c8] sm:$0xff]  ;;  %v1056_v5 = vld [vmem:[%s2741_s26 + $0x4b8] sm:$0xff] }
 0x1c6   : > { %1302 = vmatmul.f32.gmra.mxu0 %v3033_v9  ;;  %1360 = vmatmul.f32.gmra.mxu2 %v3036_v10  ;;  %v1154_v4 = vld [vmem:[%s2741_s26 + $0x7c8] sm:$0xff] }
 0x1c7   : > { %1463 = vmatpush.msra.mxu2 %v976_v11  ;;  %1491 = vmatpush.msra.mxu3 %v1010_v12  ;;  %v1090_v6 = vld [vmem:[%s2741_s26 + $0x5c8] sm:$0xff]  ;;  %v1152_v12 = vld [vmem:[%s2741_s26 + $0x7b8] sm:$0xff] }
 0x1c8   : > { %1405 = vmatpush.msra.mxu0 %v912_v17  ;;  %1433 = vmatpush.msra.mxu1 %v946_v18  ;;  %v1118_v11 = vld [vmem:[%s2741_s26 + $0x6a8] sm:$0xff]  ;;  %v1088_v18 = vld [vmem:[%s2741_s26 + $0x5b8] sm:$0xff] }
 0x1c9   : > { %1331 = vmatmul.f32.gmra.mxu1 %v3045_v19  ;;  %1389 = vmatmul.f32.gmra.mxu3 %v3048_v20  ;;  %v1054_v17 = vld [vmem:[%s2741_s26 + $0x4a8] sm:$0xff] }
 0x1ca   : > { %1464 = vmatpush.msra.mxu2 %v974_v23  ;;  %1492 = vmatpush.msra.mxu3 %v1008_v24  ;;  %v1150_v23 = vld [vmem:[%s2741_s26 + $0x7a8] sm:$0xff] }
 0x1cb   : > { %1406 = vmatpush.msra.mxu0 %v910_v25  ;;  %1434 = vmatpush.msra.mxu1 %v944_v26  ;;  %v1086_v24 = vld [vmem:[%s2741_s26 + $0x5a8] sm:$0xff]  ;;  %v1148_v26 = vld [vmem:[%s2741_s26 + $0x798] sm:$0xff] }
 0x1cc   : > { %1465 = vmatpush.msra.mxu2 %v972_v29  ;;  %1493 = vmatpush.msra.mxu3 %v1006_v30  ;;  %v1114_v25 = vld [vmem:[%s2741_s26 + $0x688] sm:$0xff] }
 0x1cd   : > { %1407 = vmatpush.msra.mxu0 %v908_v33  ;;  %1435 = vmatpush.msra.mxu1 %v942_v34  ;;  %v1050_v29 = vld [vmem:[%s2741_s26 + $0x488] sm:$0xff]  ;;  %v1048_v33 = vld [vmem:[%s2741_s26 + $0x478] sm:$0xff] }
 0x1ce   : > { %1466 = vmatpush.msra.mxu2 %v970_v39  ;;  %1494 = vmatpush.msra.mxu3 %v1004_v40  ;;  %v1146_v30 = vld [vmem:[%s2741_s26 + $0x788] sm:$0xff]  ;;  %v1144_v40 = vld [vmem:[%s2741_s26 + $0x778] sm:$0xff] }
 0x1cf   : > { %1408 = vmatpush.msra.mxu0 %v906_v41  ;;  %1436 = vmatpush.msra.mxu1 %v940_v42  ;;  %v1082_v34 = vld [vmem:[%s2741_s26 + $0x588] sm:$0xff]  ;;  %v1080_v42 = vld [vmem:[%s2741_s26 + $0x578] sm:$0xff] }
 0x1d0   : > { %1409 = vmatmul.f32.vlgmr.msra.gmra.mxu0 %v2809_v31  ;;  %1467 = vmatmul.f32.vlgmr.msra.gmra.mxu2 %v2812_v32  ;;  %v1124_v31 = vld [vmem:[%s2741_s26 + $0x6d8] sm:$0xff]  ;;  %v1110_v39 = vld [vmem:[%s2741_s26 + $0x668] sm:$0xff] }
 0x1d1   : > { %1495 = vmatpush.msra.mxu3 %v1002_v45  ;;  %1567 = vmatpush.msrb.mxu2 %v1128_v46  ;;  %v1060_v32 = vld [vmem:[%s2741_s26 + $0x4d8] sm:$0xff]  ;;  %v1046_v41 = vld [vmem:[%s2741_s26 + $0x468] sm:$0xff] }
 0x1d2   : > { %1437 = vmatpush.msra.mxu1 %v938_v47  ;;  %1509 = vmatpush.msrb.mxu0 %v1064_v48  ;;  %v1142_v45 = vld [vmem:[%s2741_s26 + $0x768] sm:$0xff]  ;;  %v1140_v48 = vld [vmem:[%s2741_s26 + $0x758] sm:$0xff] }
 0x1d3   : > { %1438 = vmatmul.f32.vlgmr.msra.gmra.mxu1 %v2821_v37  ;;  %1496 = vmatmul.f32.vlgmr.msra.gmra.mxu3 %v2824_v38  ;;  %v1092_v37 = vld [vmem:[%s2741_s26 + $0x5d8] sm:$0xff]  ;;  %v1078_v46 = vld [vmem:[%s2741_s26 + $0x568] sm:$0xff] }
 0x1d4   : > { %1568 = vmatpush.msrb.mxu2 %v1126_v55  ;;  %1596 = vmatpush.msrb.mxu3 %v1160_v56  ;;  %v1120_v38 = vld [vmem:[%s2741_s26 + $0x6b8] sm:$0xff]  ;;  %v1106_v47 = vld [vmem:[%s2741_s26 + $0x648] sm:$0xff] }
 0x1d5   : > { %1510 = vmatpush.msrb.mxu0 %v1062_v59  ;;  %1538 = vmatpush.msrb.mxu1 %v1096_v60  ;;  %v1042_v55 = vld [vmem:[%s2741_s26 + $0x448] sm:$0xff]  ;;  %v1040_v59 = vld [vmem:[%s2741_s26 + $0x438] sm:$0xff] }
 0x1d6   : > { %1569 = vmatpush.msrb.mxu2 %v1124_v31  ;;  %1597 = vmatpush.msrb.mxu3 %v1158_v63  ;;  %v1138_v56 = vld [vmem:[%s2741_s26 + $0x748] sm:$0xff]  ;;  %v1136_v63 = vld [vmem:[%s2741_s26 + $0x738] sm:$0xff] }
 0x1d7   : > { %1511 = vmatpush.msrb.mxu0 %v1060_v32  ;;  %1539 = vmatpush.msrb.mxu1 %v1094_v0  ;;  %v1074_v60 = vld [vmem:[%s2741_s26 + $0x548] sm:$0xff]  ;;  %v1072_v0 = vld [vmem:[%s2741_s26 + $0x538] sm:$0xff] }
 0x1d8   : > { %1570 = vmatpush.msrb.mxu2 %v1122_v1  ;;  %1598 = vmatpush.msrb.mxu3 %v1156_v2  ;;  %v1102_v31 = vld [vmem:[%s2741_s26 + $0x628] sm:$0xff] }
 0x1d9   : > { %1512 = vmatpush.msrb.mxu0 %v1058_v3  ;;  %1540 = vmatpush.msrb.mxu1 %v1092_v37  ;;  %v1038_v32 = vld [vmem:[%s2741_s26 + $0x428] sm:$0xff]  ;;  %v1132_v37 = vld [vmem:[%s2741_s26 + $0x718] sm:$0xff] }
 0x1da   : > { %1412 = vmatmul.f32.gmra.mxu0 %v2841_v51  ;;  %1470 = vmatmul.f32.gmra.mxu2 %v2844_v52  ;;  %v1116_v51 = vld [vmem:[%s2741_s26 + $0x698] sm:$0xff]  ;;  %v1134_v1 = vld [vmem:[%s2741_s26 + $0x728] sm:$0xff] }
 0x1db   : > { %1571 = vmatpush.msrb.mxu2 %v1120_v38  ;;  %1599 = vmatpush.msrb.mxu3 %v1154_v4  ;;  %v1052_v52 = vld [vmem:[%s2741_s26 + $0x498] sm:$0xff]  ;;  %v1070_v2 = vld [vmem:[%s2741_s26 + $0x528] sm:$0xff] }
 0x1dc   : > { %1513 = vmatpush.msrb.mxu0 %v1056_v5  ;;  %1541 = vmatpush.msrb.mxu1 %v1090_v6  ;;  %v1098_v3 = vld [vmem:[%s2741_s26 + $0x608] sm:$0xff]  ;;  %v1068_v4 = vld [vmem:[%s2741_s26 + $0x518] sm:$0xff] }
 0x1dd   : > { %1441 = vmatmul.f32.gmra.mxu1 %v2853_v57  ;;  %1499 = vmatmul.f32.gmra.mxu3 %v2856_v58  ;;  %v1084_v57 = vld [vmem:[%s2741_s26 + $0x598] sm:$0xff]  ;;  %v1034_v38 = vld [vmem:[%s2741_s26 + $0x408] sm:$0xff] }
 0x1de   : > { %1572 = vmatpush.msrb.mxu2 %v1118_v11  ;;  %1600 = vmatpush.msrb.mxu3 %v1152_v12  ;;  %v1112_v58 = vld [vmem:[%s2741_s26 + $0x678] sm:$0xff] }
 0x1df   : > { %1514 = vmatpush.msrb.mxu0 %v1054_v17  ;;  %1542 = vmatpush.msrb.mxu1 %v1088_v18 }
 0x1e0   : > { %1573 = vmatpush.msrb.mxu2 %v1116_v51  ;;  %1601 = vmatpush.msrb.mxu3 %v1150_v23 }
 0x1e1   : > { %1515 = vmatpush.msrb.mxu0 %v1052_v52  ;;  %1543 = vmatpush.msrb.mxu1 %v1086_v24 }
 0x1e2   : > { %1574 = vmatpush.msrb.mxu2 %v1114_v25  ;;  %1602 = vmatpush.msrb.mxu3 %v1148_v26 }
 0x1e3   : > { %1516 = vmatpush.msrb.mxu0 %v1050_v29  ;;  %1544 = vmatpush.msrb.mxu1 %v1084_v57 }
 0x1e4   : > { %1415 = vmatmul.f32.gmra.mxu0 %v2873_v7  ;;  %1473 = vmatmul.f32.gmra.mxu2 %v2876_v8  ;;  %v1108_v7 = vld [vmem:[%s2741_s26 + $0x658] sm:$0xff] }
 0x1e5   : > { %1575 = vmatpush.msrb.mxu2 %v1112_v58  ;;  %1603 = vmatpush.msrb.mxu3 %v1146_v30  ;;  %v1044_v8 = vld [vmem:[%s2741_s26 + $0x458] sm:$0xff] }
 0x1e6   : > { %1517 = vmatpush.msrb.mxu0 %v1048_v33  ;;  %1545 = vmatpush.msrb.mxu1 %v1082_v34 }
 0x1e7   : > { %1444 = vmatmul.f32.gmra.mxu1 %v2885_v13  ;;  %1502 = vmatmul.f32.gmra.mxu3 %v2888_v14  ;;  %v1076_v13 = vld [vmem:[%s2741_s26 + $0x558] sm:$0xff] }
 0x1e8   : > { %1576 = vmatpush.msrb.mxu2 %v1110_v39  ;;  %1604 = vmatpush.msrb.mxu3 %v1144_v40  ;;  %v1104_v14 = vld [vmem:[%s2741_s26 + $0x638] sm:$0xff] }
 0x1e9   : > { %1518 = vmatpush.msrb.mxu0 %v1046_v41  ;;  %1546 = vmatpush.msrb.mxu1 %v1080_v42 }
 0x1ea   : > { %1577 = vmatpush.msrb.mxu2 %v1108_v7  ;;  %1605 = vmatpush.msrb.mxu3 %v1142_v45 }
 0x1eb   : > { %1519 = vmatpush.msrb.mxu0 %v1044_v8  ;;  %1547 = vmatpush.msrb.mxu1 %v1078_v46  ;;  %v867_v46 = vld [vmem:[#allocation2 + $0x18] sm:$0xff] }
 0x1ec   : > { %1578 = vmatpush.msrb.mxu2 %v1106_v47  ;;  %1606 = vmatpush.msrb.mxu3 %v1140_v48 }
 0x1ed   : > { %1520 = vmatpush.msrb.mxu0 %v1042_v55  ;;  %1548 = vmatpush.msrb.mxu1 %v1076_v13 }
 0x1ee   : > { %1418 = vmatmul.f32.gmra.mxu0 %v2905_v27  ;;  %1476 = vmatmul.f32.gmra.mxu2 %v2908_v28  ;;  %v1100_v27 = vld [vmem:[%s2741_s26 + $0x618] sm:$0xff] }
 0x1ef   : > { %1579 = vmatpush.msrb.mxu2 %v1104_v14  ;;  %1607 = vmatpush.msrb.mxu3 %v1138_v56  ;;  %v1036_v28 = vld [vmem:[%s2741_s26 + $0x418] sm:$0xff] }
 0x1f0   : > { %1521 = vmatpush.msrb.mxu0 %v1040_v59  ;;  %1549 = vmatpush.msrb.mxu1 %v1074_v60 }
 0x1f1   : > { %1447 = vmatmul.f32.gmra.mxu1 %v2917_v35  ;;  %1505 = vmatmul.f32.gmra.mxu3 %v2920_v36  ;;  %v1130_v35 = vld [vmem:[%s2741_s26 + $0x708] sm:$0xff] }
 0x1f2   : > { %1580 = vmatpush.msrb.mxu2 %v1102_v31  ;;  %1608 = vmatpush.msrb.mxu3 %v1136_v63  ;;  %v1066_v36 = vld [vmem:[%s2741_s26 + $0x508] sm:$0xff] }
 0x1f3   : > { %1522 = vmatpush.msrb.mxu0 %v1038_v32  ;;  %1550 = vmatpush.msrb.mxu1 %v1072_v0 }
 0x1f4   : > { %1581 = vmatpush.msrb.mxu2 %v1100_v27  ;;  %1609 = vmatpush.msrb.mxu3 %v1134_v1  ;;  %v869_v27 = vld [vmem:[#allocation2 + $0x8] sm:$0xff] }
 0x1f5   : > { %1523 = vmatpush.msrb.mxu0 %v1036_v28  ;;  %1551 = vmatpush.msrb.mxu1 %v1070_v2 }
 0x1f6   : > { %1582 = vmatpush.msrb.mxu2 %v1098_v3  ;;  %1610 = vmatpush.msrb.mxu3 %v1132_v37 }
 0x1f7   : > { %1524 = vmatpush.msrb.mxu0 %v1034_v38  ;;  %1552 = vmatpush.msrb.mxu1 %v1068_v4 }
 0x1f8   : > { %1525 = vmatmul.f32.vlgmr.msrb.gmra.mxu0 %v2937_v53  ;;  %1583 = vmatmul.f32.vlgmr.msrb.gmra.mxu2 %v2940_v54 }
 0x1f9   : > { %1611 = vmatpush.msrb.mxu3 %v1130_v35  ;;  %1553 = vmatpush.msrb.mxu1 %v1066_v36 }
 0x1fa   : > { %1554 = vmatmul.f32.vlgmr.msrb.gmra.mxu1 %v2949_v61  ;;  %1612 = vmatmul.f32.vlgmr.msrb.gmra.mxu3 %v2952_v62 }
 0x1fd   : > { %v1178_v5 = vpop.f32.mrf.mxu0 }
 0x200   : > { %1528 = vmatmul.f32.gmra.mxu0 %v2969_v15  ;;  %1586 = vmatmul.f32.gmra.mxu2 %v2972_v16  ;;  %v1207_v6 = vpop.f32.mrf.mxu1 }
 0x202   : > { %1557 = vmatmul.f32.gmra.mxu1 %v2981_v21  ;;  %1615 = vmatmul.f32.gmra.mxu3 %v2984_v22 }
 0x203   : > { %v1236_v11 = vpop.f32.mrf.mxu2 }
 0x206   : > { %v1265_v53 = vpop.f32.mrf.mxu3 }
 0x207   : > { %v1181_v12 = vpop.f32.mrf.mxu0 }
 0x208   : > { %1531 = vmatmul.f32.gmra.mxu0 %v3001_v43  ;;  %1589 = vmatmul.f32.gmra.mxu2 %v3004_v44  ;;  %v1208_v44 = vadd.f32 %v1207_v6, %v1178_v5  ;;  %v871_v5 = vld [vmem:[#allocation2 + $0x28] sm:$0xff] }
 0x20a   : > { %1560 = vmatmul.f32.gmra.mxu1 %v3013_v49  ;;  %1618 = vmatmul.f32.gmra.mxu3 %v3016_v50  ;;  %v1210_v54 = vpop.f32.mrf.mxu1  ;;  %v1237_v17 = vadd.f32 %v1236_v11, %v1208_v44 }
 0x20b   : > { %v1211_v52 = vadd.f32 %v1210_v54, %v1181_v12 }
 0x20c   : > { %v1266_v18 = vadd.f32 %v1265_v53, %v1237_v17 }
 0x20d   : > { %v1239_v61 = vpop.f32.mrf.mxu2 }
 0x20e   : > { %v1240_v24 = vadd.f32 %v1239_v61, %v1211_v52 }
 0x210   : > { %1534 = vmatmul.f32.gmra.mxu0 %v3033_v9  ;;  %1592 = vmatmul.f32.gmra.mxu2 %v3036_v10  ;;  %v1268_v62 = vpop.f32.mrf.mxu3 }
 0x211   : > { %v1184_v15 = vpop.f32.mrf.mxu0  ;;  %v1269_v29 = vadd.f32 %v1268_v62, %v1240_v24 }
 0x212   : > { %1563 = vmatmul.f32.gmra.mxu1 %v3045_v19  ;;  %1621 = vmatmul.f32.gmra.mxu3 %v3048_v20  ;;  %v865_v20 = vld [vmem:[#allocation2 + $0x30] sm:$0xff] }
 0x214   : > { %v1213_v16 = vpop.f32.mrf.mxu1 }
 0x215   : > { %v1214_v39 = vadd.f32 %v1213_v16, %v1184_v15 }
 0x217   : > { %v1242_v21 = vpop.f32.mrf.mxu2 }
 0x218   : > { %v1243_v41 = vadd.f32 %v1242_v21, %v1214_v39 }
 0x21a   : > { %v1271_v22 = vpop.f32.mrf.mxu3 }
 0x21b   : > { %v1187_v43 = vpop.f32.mrf.mxu0  ;;  %v1272_v8 = vadd.f32 %v1271_v22, %v1243_v41 }
 0x21e   : > { %v1216_v49 = vpop.f32.mrf.mxu1 }
 0x21f   : > { %v1217_v56 = vadd.f32 %v1216_v49, %v1187_v43 }
 0x221   : > { %v1245_v50 = vpop.f32.mrf.mxu2 }
 0x222   : > { %v1246_v60 = vadd.f32 %v1245_v50, %v1217_v56 }
 0x224   : > { %v1274_v51 = vpop.f32.mrf.mxu3 }
 0x225   : > { %v1294_v23 = vpop.f32.mrf.mxu0  ;;  %v1275_v0 = vadd.f32 %v1274_v51, %v1246_v60 }
 0x226   : > { %v1295_v9 = vadd.f32 %v1294_v23, %v1266_v18 }
 0x228   : > { %v1323_v10 = vpop.f32.mrf.mxu1 }
 0x229   : > { %v1324_v25 = vadd.f32 %v1323_v10, %v1295_v9 }
 0x22b   : > { %v1352_v26 = vpop.f32.mrf.mxu2 }
 0x22c   : > { %v1353_v19 = vadd.f32 %v1352_v26, %v1324_v25 }
 0x22e   : > { %v1381_v57 = vpop.f32.mrf.mxu3 }
 0x22f   : > { %v1297_v58 = vpop.f32.mrf.mxu0  ;;  %v1382_v30 = vadd.f32 %v1381_v57, %v1353_v19 }
 0x230   : > { %v1298_v33 = vadd.f32 %v1297_v58, %v1269_v29 }
 0x231   : > { %v1625_v34 = vadd.f32 %v1382_v30, %v865_v20 }
 0x232   : > { %v1326_v40 = vpop.f32.mrf.mxu1 }
 0x233   : > { %1633 = vst [vmem:[#allocation2 + $0x30] sm:$0xff] %v1625_v34  ;;  %v1327_v42 = vadd.f32 %v1326_v40, %v1298_v33  ;;  %v866_v34 = vld [vmem:[#allocation2] sm:$0xff] }
 0x235   : > { %v1355_v7 = vpop.f32.mrf.mxu2 }
 0x236   : > { %v1356_v45 = vadd.f32 %v1355_v7, %v1327_v42 }
 0x238   : > { %v1384_v47 = vpop.f32.mrf.mxu3 }
 0x239   : > { %v1300_v48 = vpop.f32.mrf.mxu0  ;;  %v1385_v55 = vadd.f32 %v1384_v47, %v1356_v45 }
 0x23a   : > { %v1301_v13 = vadd.f32 %v1300_v48, %v1272_v8 }
 0x23b   : > { %v1627_v14 = vadd.f32 %v1385_v55, %v867_v46 }
 0x23c   : > { %v1329_v59 = vpop.f32.mrf.mxu1 }
 0x23d   : > { %1635 = vst [vmem:[#allocation2 + $0x18] sm:$0xff] %v1627_v14  ;;  %v1330_v31 = vadd.f32 %v1329_v59, %v1301_v13  ;;  %v868_v14 = vld [vmem:[#allocation2 + $0x10] sm:$0xff] }
 0x23f   : > { %v1358_v63 = vpop.f32.mrf.mxu2 }
 0x240   : > { %v1359_v32 = vadd.f32 %v1358_v63, %v1330_v31 }
 0x242   : > { %v1387_v1 = vpop.f32.mrf.mxu3 }
 0x243   : > { %v1303_v28 = vpop.f32.mrf.mxu0  ;;  %v1388_v2 = vadd.f32 %v1387_v1, %v1359_v32 }
 0x244   : > { %v1304_v3 = vadd.f32 %v1303_v28, %v1275_v0 }
 0x245   : > { %v1629_v37 = vadd.f32 %v1388_v2, %v869_v27 }
 0x246   : > { %v1332_v38 = vpop.f32.mrf.mxu1 }
 0x247   : > { %1637 = vst [vmem:[#allocation2 + $0x8] sm:$0xff] %v1629_v37  ;;  %v1333_v4 = vadd.f32 %v1332_v38, %v1304_v3  ;;  %v870_v37 = vld [vmem:[#allocation2 + $0x20] sm:$0xff] }
 0x249   : > { %v1361_v35 = vpop.f32.mrf.mxu2 }
 0x24a   : > { %v1362_v36 = vadd.f32 %v1361_v35, %v1333_v4 }
 0x24c   : > { %v1390_v6 = vpop.f32.mrf.mxu3 }
 0x24d   : > { %v1391_v11 = vadd.f32 %v1390_v6, %v1362_v36  ;;  %v1410_v53 = vpop.f32.mrf.mxu0 }
 0x24f   : > { %v1631_v12 = vadd.f32 %v1391_v11, %v871_v5 }
 0x250   : > { %v1439_v54 = vpop.f32.mrf.mxu1 }
 0x251   : > { %1639 = vst [vmem:[#allocation2 + $0x28] sm:$0xff] %v1631_v12  ;;  %v1440_v18 = vadd.f32 %v1439_v54, %v1410_v53  ;;  %v872_v12 = vld [vmem:[#allocation2 + $0x38] sm:$0xff] }
 0x253   : > { %v1468_v61 = vpop.f32.mrf.mxu2 }
 0x254   : > { %v1469_v23 = vadd.f32 %v1468_v61, %v1440_v18 }
 0x256   : > { %v1497_v62 = vpop.f32.mrf.mxu3 }
 0x257   : > { %v1413_v15 = vpop.f32.mrf.mxu0  ;;  %v1498_v52 = vadd.f32 %v1497_v62, %v1469_v23 }
 0x25a   : > { %v1442_v16 = vpop.f32.mrf.mxu1 }
 0x25b   : > { %v1443_v25 = vadd.f32 %v1442_v16, %v1413_v15 }
 0x25d   : > { %v1471_v21 = vpop.f32.mrf.mxu2 }
 0x25e   : > { %v1472_v29 = vadd.f32 %v1471_v21, %v1443_v25 }
 0x260   : > { %v1500_v22 = vpop.f32.mrf.mxu3 }
 0x261   : > { %v1416_v43 = vpop.f32.mrf.mxu0  ;;  %v1501_v58 = vadd.f32 %v1500_v22, %v1472_v29 }
 0x264   : > { %v1445_v44 = vpop.f32.mrf.mxu1 }
 0x265   : > { %v1446_v40 = vadd.f32 %v1445_v44, %v1416_v43 }
 0x267   : > { %v1474_v49 = vpop.f32.mrf.mxu2 }
 0x268   : > { %v1475_v45 = vadd.f32 %v1474_v49, %v1446_v40 }
 0x26a   : > { %v1503_v17 = vpop.f32.mrf.mxu3 }
 0x26b   : > { %v1419_v50 = vpop.f32.mrf.mxu0  ;;  %v1504_v48 = vadd.f32 %v1503_v17, %v1475_v45 }
 0x26e   : > { %v1448_v51 = vpop.f32.mrf.mxu1 }
 0x26f   : > { %v1449_v59 = vadd.f32 %v1448_v51, %v1419_v50 }
 0x271   : > { %v1477_v9 = vpop.f32.mrf.mxu2 }
 0x272   : > { %v1478_v32 = vadd.f32 %v1477_v9, %v1449_v59 }
 0x274   : > { %v1506_v10 = vpop.f32.mrf.mxu3 }
 0x275   : > { %v1526_v24 = vpop.f32.mrf.mxu0  ;;  %v1507_v28 = vadd.f32 %v1506_v10, %v1478_v32 }
 0x276   : > { %v1527_v26 = vadd.f32 %v1526_v24, %v1498_v52 }
 0x277   : > { %v1555_v19 = vpop.f32.mrf.mxu1 }
 0x278   : > { %v1556_v20 = vadd.f32 %v1555_v19, %v1527_v26 }
 0x27b   : > { %v1584_v57 = vpop.f32.mrf.mxu2 }
 0x27c   : > { %v1585_v30 = vadd.f32 %v1584_v57, %v1556_v20 }
 0x27d   : > { %v1529_v33 = vpop.f32.mrf.mxu0  ;;  %v1613_v39 = vpop.f32.mrf.mxu3 }
 0x27e   : > { %v1530_v41 = vadd.f32 %v1529_v33, %v1501_v58  ;;  %v1614_v42 = vadd.f32 %v1613_v39, %v1585_v30 }
 0x27f   : > { %v1558_v7 = vpop.f32.mrf.mxu1 }
 0x280   : > { %v1626_v8 = vadd.f32 %v1614_v42, %v866_v34  ;;  %v1559_v46 = vadd.f32 %v1558_v7, %v1530_v41 }
 0x282   : > { %1634 = vst [vmem:[#allocation2] sm:$0xff] %v1626_v8 }
 0x283   : > { %v1587_v47 = vpop.f32.mrf.mxu2 }
 0x284   : > { %v1588_v55 = vadd.f32 %v1587_v47, %v1559_v46 }
 0x285   : > { %v1532_v13 = vpop.f32.mrf.mxu0  ;;  %v1616_v56 = vpop.f32.mrf.mxu3 }
 0x286   : > { %v1533_v60 = vadd.f32 %v1532_v13, %v1504_v48  ;;  %v1617_v31 = vadd.f32 %v1616_v56, %v1588_v55 }
 0x287   : > { %v1561_v63 = vpop.f32.mrf.mxu1 }
 0x288   : > { %v1628_v0 = vadd.f32 %v1617_v31, %v868_v14  ;;  %v1562_v27 = vadd.f32 %v1561_v63, %v1533_v60 }
 0x28a   : > { %1636 = vst [vmem:[#allocation2 + $0x10] sm:$0xff] %v1628_v0 }
 0x28b   : > { %v1590_v1 = vpop.f32.mrf.mxu2 }
 0x28c   : > { %v1591_v2 = vadd.f32 %v1590_v1, %v1562_v27 }
 0x28d   : > { %v1535_v3 = vpop.f32.mrf.mxu0  ;;  %v1619_v38 = vpop.f32.mrf.mxu3 }
 0x28e   : > { %v1536_v4 = vadd.f32 %v1535_v3, %v1507_v28  ;;  %v1620_v35 = vadd.f32 %v1619_v38, %v1591_v2 }
 0x28f   : > { %v1564_v36 = vpop.f32.mrf.mxu1 }
 0x290   : > { %v1630_v5 = vadd.f32 %v1620_v35, %v870_v37  ;;  %v1565_v6 = vadd.f32 %v1564_v36, %v1536_v4 }
 0x292   : > { %1638 = vst [vmem:[#allocation2 + $0x20] sm:$0xff] %v1630_v5 }
 0x293   : > { %v1593_v11 = vpop.f32.mrf.mxu2 }
 0x294   : > { %v1594_v53 = vadd.f32 %v1593_v11, %v1565_v6 }
 0x295   : > { %v1622_v54 = vpop.f32.mrf.mxu3 }
 0x296   : > { %v1623_v61 = vadd.f32 %v1622_v54, %v1594_v53  ;;  %1644 = sbr.rel (%p1829_p4) target bundleno = 676 (0x2a4), region = 86 }
 0x298   : > { %v1632_v62 = vadd.f32 %v1623_v61, %v872_v12 }
 0x29a   : > { %1640 = vst [vmem:[#allocation2 + $0x38] sm:$0xff] %v1632_v62 }
 0x29b   : > { %v1645_v15 = vld [vmem:[#allocation2 + $0x30] sm:$0xff]  ;;  %v1646_v16 = vld [vmem:[#allocation2] sm:$0xff]  ;;  %v1647_v21 = vld [vmem:[#allocation2 + $0x18] sm:$0xff] }
 0x29c   : > { %1653 = vst [vmem:[%s2743_s28] sm:$0xff] %v1645_v15  ;;  %v1648_v22 = vld [vmem:[#allocation2 + $0x10] sm:$0xff]  ;;  %v1649_v43 = vld [vmem:[#allocation2 + $0x8] sm:$0xff]  ;;  %v1650_v44 = vld [vmem:[#allocation2 + $0x20] sm:$0xff] }
 0x29d   : > { %1654 = vst [vmem:[%s2743_s28 + $0x8] sm:$0xff] %v1646_v16  ;;  %v1651_v49 = vld [vmem:[#allocation2 + $0x28] sm:$0xff] }
 0x29e   : > { %1655 = vst [vmem:[%s2743_s28 + $0x10] sm:$0xff] %v1647_v21 }
 0x29f   : > { %1656 = vst [vmem:[%s2743_s28 + $0x18] sm:$0xff] %v1648_v22 }
 0x2a0   : > { %1657 = vst [vmem:[%s2743_s28 + $0x20] sm:$0xff] %v1649_v43 }
 0x2a1   : > { %v1652_v17 = vld [vmem:[#allocation2 + $0x38] sm:$0xff]  ;;  %1658 = vst [vmem:[%s2743_s28 + $0x28] sm:$0xff] %v1650_v44 }
 0x2a2   : > { %1659 = vst [vmem:[%s2743_s28 + $0x30] sm:$0xff] %v1651_v49 }
 0x2a3   : > { %1660 = vst [vmem:[%s2743_s28 + $0x38] sm:$0xff] %v1652_v17 }
 0x2a4 PF: > { %1667 = sbr.rel (!%p2130_p12) target bundleno = 686 (0x2ae), region = 90  ;;  %s1837_s12 = sshll.u32 (%p2130_p12), %s2001_s19, 4  ;;  %v1686_v50 = vld [vmem:[%s2743_s28] sm:$0xff] (%p2130_p12)  ;;  %v1688_v18 = vld [vmem:[%s2743_s28 + $0x8] sm:$0xff] (%p2130_p12) }
 0x2a5   : > { %s1673_s18 = scalar_lea.vmem (%p2130_p12), %s3221_s3, %s1837_s12  ;;  %v1690_v51 = vld [vmem:[%s2743_s28 + $0x10] sm:$0xff] (%p2130_p12) }
 0x2a6   : > { %1687 = vst [vmem:[%s1673_s18] sm:$0xff] (%p2130_p12), %v1686_v50  ;;  %v1692_v23 = vld [vmem:[%s2743_s28 + $0x18] sm:$0xff] (%p2130_p12) }
 0x2a7   : > { %1689 = vst [vmem:[%s1673_s18 + $0x8] sm:$0xff] (%p2130_p12), %v1688_v18  ;;  %v1694_v9 = vld [vmem:[%s2743_s28 + $0x20] sm:$0xff] (%p2130_p12) }
 0x2a8   : > { %1691 = vst [vmem:[%s1673_s18 + $0x20] sm:$0xff] (%p2130_p12), %v1690_v51  ;;  %v1696_v52 = vld [vmem:[%s2743_s28 + $0x28] sm:$0xff] (%p2130_p12) }
 0x2a9   : > { %1693 = vst [vmem:[%s1673_s18 + $0x28] sm:$0xff] %v1692_v23  ;;  %v1698_v10 = vld [vmem:[%s2743_s28 + $0x30] sm:$0xff] }
 0x2aa   : > { %1695 = vst [vmem:[%s1673_s18 + $0x40] sm:$0xff] %v1694_v9  ;;  %v1700_v24 = vld [vmem:[%s2743_s28 + $0x38] sm:$0xff] }
 0x2ab   : > { %1697 = vst [vmem:[%s1673_s18 + $0x48] sm:$0xff] %v1696_v52 }
 0x2ac   : > { %1699 = vst [vmem:[%s1673_s18 + $0x60] sm:$0xff] %v1698_v10 }
 0x2ad   : > { %1701 = vst [vmem:[%s1673_s18 + $0x68] sm:$0xff] %v1700_v24 }
 0x2ae PF: > { %s13_s21 = sadd.s32 1, %s2013_s21   ;;  %s3225_s12 = smov %s1977_s13 }
 0x2af   : > { %p10_p5 = scmp.ge.s32.totalorder %s13_s21, 10   ;;  %s3226_s13 = smov %s2128_s8 }
 0x2b0   : > { %s3227_s14 = smov %s1985_s15  ;;  %s3228_s15 = smov %s2125_s7 }
 0x2b1   : > { %s3229_s16 = smov %s1993_s17  ;;  %s3230_s17 = smov %s2111_s29 }
 0x2b2   : > { %s3231_s18 = smov %s2005_s2  ;;  %s3232_s19 = smov %s2009_s20 }
 0x2b3   : > { %s3233_s2 = smov %s3236_s23  ;;  %s3234_s20 = smov %s3240_s24 }
 0x2b4   :  { %12 = sbr.rel (!%p10_p5) target bundleno = 6 (0x6), region = 155 }

// kernel: discriminator_forward.21
= control target key start
LH: loop header
LB: loop body
LE: loop exit
PB: predicated region body
PF: predicated region fallthrough
CT: control target
= control target key end

     0   :  { %s729_s18 = smov 0   ;;  %s919_s0 = inlined_call_operand.vmem [shape: f32[2,8192], index: 0, kind: input, shape index: {}]   ;;  %s920_s1 = inlined_call_operand.vmem [shape: f32[8192,64], index: 1, kind: input, shape index: {}]   ;;  %s921_s2 = inlined_call_operand.vmem [shape: f32[1,64], index: 2, kind: input, shape index: {}]   ;;  %s922_s3 = inlined_call_operand.vmem [shape: f32[64,2], index: 3, kind: input, shape index: {}]   ;;  %s923_s4 = inlined_call_operand.vmem [shape: f32[1,2], index: 4, kind: input, shape index: {}]   ;;  %s924_s5 = inlined_call_operand.vmem [shape: f32[2,2], index: 5, kind: output, shape index: {}]  }
   0x1 LB: > { %s735_s19 = sadd.s32 4294967295, %s696_s18   ;;  %p665_p0 = scmp.ge.s32.totalorder %s696_s18, 1  ;;  %s696_s18 = sphi %s729_s18, %s15_s18  }
   0x2   : > { %p194_p1 = scmp.lt.s32.totalorder %s696_s18, 9 }
   0x4   : > { %p195_p2 = pnand %p665_p0, %p194_p1 }
   0x5   : > { %s666_s20 = sshll.u32 (!%p195_p2), %s735_s19, 3  ;;  %s668_s21 = sshll.u32 (!%p195_p2), %s735_s19, 7 }
   0x6   : > { %198 = sbr.rel (%p195_p2) target bundleno = 402 (0x192), region = 40  ;;  %p223_p3 = scmp.lt.s32.totalorder (!%p195_p2), %s666_s20, 63 }
   0x7   : > { %p229_p4 = scmp.lt.s32.totalorder (!%p195_p2), %s668_s21, 1023  ;;  %p670_p5 = scmp.ne.s32.totalorder (!%p195_p2), %s735_s19, 0 }
   0xb   : > { %s926_s20 = smov (!%p223_p3, %s666_s20), 63  ;;  %s928_s21 = smov (!%p229_p4, %s668_s21), 1023 }
   0xc   : > { %s667_s22 = sshll.u32 %s926_s20, 1  ;;  %s669_s26 = sshll.u32 %s928_s21, 3 }
   0xd   : > { %s744_s25 = scalar_lea.vmem %s919_s0, %s667_s22  ;;  %s749_s29 = scalar_lea.vmem %s920_s1, %s669_s26 }
   0xe   : > { %237 = sbr.rel (%p670_p5) target bundleno = 21 (0x15), region = 44 }
  0x13   : > { %vm238_vm0 = vcmask 517120   ;;  %v698_v0 = vmov 0.0  }
  0x14   : > { %239 = vst.msk [vmem:[#allocation2] sm:$0x3] %vm238_vm0, %v698_v0 }
  0x15 PF: > { %v258_v1 = vld [vmem:[%s749_s29 + $0x78] sm:$0xff]  ;;  %v257_v3 = vld [vmem:[%s749_s29 + $0x70] sm:$0xff]  ;;  %v256_v7 = vld [vmem:[%s749_s29 + $0x68] sm:$0xff]  ;;  %vm553_vm1 = vcmask 517120   ;;  %p671_p6 = scmp.ne.s32.totalorder %s735_s19, 7 }
  0x16   : > { %v290_v2 = vld [vmem:[%s749_s29 + $0x178] sm:$0xff]  ;;  %392 = vmatpush.msra.mxu0 %v258_v1  ;;  %v289_v5 = vld [vmem:[%s749_s29 + $0x170] sm:$0xff]  ;;  %v288_v9 = vld [vmem:[%s749_s29 + $0x168] sm:$0xff] }
  0x17   : > { %432 = vmatpush.msra.mxu2 %v290_v2  ;;  %v274_v4 = vld [vmem:[%s749_s29 + $0xf8] sm:$0xff]  ;;  %v273_v8 = vld [vmem:[%s749_s29 + $0xf0] sm:$0xff]  ;;  %v272_v11 = vld [vmem:[%s749_s29 + $0xe8] sm:$0xff] }
  0x18   : > { %v306_v6 = vld [vmem:[%s749_s29 + $0x1f8] sm:$0xff]  ;;  %412 = vmatpush.msra.mxu1 %v274_v4  ;;  %393 = vmatpush.msra.mxu0 %v257_v3  ;;  %v305_v10 = vld [vmem:[%s749_s29 + $0x1f0] sm:$0xff]  ;;  %v255_v12 = vld [vmem:[%s749_s29 + $0x60] sm:$0xff] }
  0x19   : > { %452 = vmatpush.msra.mxu3 %v306_v6  ;;  %433 = vmatpush.msra.mxu2 %v289_v5  ;;  %v287_v13 = vld [vmem:[%s749_s29 + $0x160] sm:$0xff]  ;;  %v304_v14 = vld [vmem:[%s749_s29 + $0x1e8] sm:$0xff]  ;;  %v254_v17 = vld [vmem:[%s749_s29 + $0x58] sm:$0xff] }
  0x1a   : > { %413 = vmatpush.msra.mxu1 %v273_v8  ;;  %394 = vmatpush.msra.mxu0 %v256_v7  ;;  %v271_v15 = vld [vmem:[%s749_s29 + $0xe0] sm:$0xff]  ;;  %v286_v18 = vld [vmem:[%s749_s29 + $0x158] sm:$0xff]  ;;  %v253_v21 = vld [vmem:[%s749_s29 + $0x50] sm:$0xff] }
  0x1b   : > { %453 = vmatpush.msra.mxu3 %v305_v10  ;;  %434 = vmatpush.msra.mxu2 %v288_v9  ;;  %v303_v16 = vld [vmem:[%s749_s29 + $0x1e0] sm:$0xff]  ;;  %v270_v19 = vld [vmem:[%s749_s29 + $0xd8] sm:$0xff]  ;;  %v285_v22 = vld [vmem:[%s749_s29 + $0x150] sm:$0xff] }
  0x1c   : > { %414 = vmatpush.msra.mxu1 %v272_v11  ;;  %395 = vmatpush.msra.mxu0 %v255_v12  ;;  %v302_v20 = vld [vmem:[%s749_s29 + $0x1d8] sm:$0xff]  ;;  %v269_v23 = vld [vmem:[%s749_s29 + $0xd0] sm:$0xff]  ;;  %v252_v25 = vld [vmem:[%s749_s29 + $0x48] sm:$0xff] }
  0x1d   : > { %454 = vmatpush.msra.mxu3 %v304_v14  ;;  %435 = vmatpush.msra.mxu2 %v287_v13  ;;  %v301_v24 = vld [vmem:[%s749_s29 + $0x1d0] sm:$0xff]  ;;  %v284_v26 = vld [vmem:[%s749_s29 + $0x148] sm:$0xff]  ;;  %v251_v29 = vld [vmem:[%s749_s29 + $0x40] sm:$0xff] }
  0x1e   : > { %415 = vmatpush.msra.mxu1 %v271_v15  ;;  %396 = vmatpush.msra.mxu0 %v254_v17  ;;  %v268_v27 = vld [vmem:[%s749_s29 + $0xc8] sm:$0xff]  ;;  %v283_v30 = vld [vmem:[%s749_s29 + $0x140] sm:$0xff]  ;;  %v250_v33 = vld [vmem:[%s749_s29 + $0x38] sm:$0xff] }
  0x1f   : > { %455 = vmatpush.msra.mxu3 %v303_v16  ;;  %436 = vmatpush.msra.mxu2 %v286_v18  ;;  %v300_v28 = vld [vmem:[%s749_s29 + $0x1c8] sm:$0xff]  ;;  %v267_v31 = vld [vmem:[%s749_s29 + $0xc0] sm:$0xff]  ;;  %v282_v34 = vld [vmem:[%s749_s29 + $0x138] sm:$0xff] }
  0x20   : > { %416 = vmatpush.msra.mxu1 %v270_v19  ;;  %397 = vmatpush.msra.mxu0 %v253_v21  ;;  %v299_v32 = vld [vmem:[%s749_s29 + $0x1c0] sm:$0xff]  ;;  %v266_v35 = vld [vmem:[%s749_s29 + $0xb8] sm:$0xff]  ;;  %v249_v37 = vld [vmem:[%s749_s29 + $0x30] sm:$0xff] }
  0x21   : > { %456 = vmatpush.msra.mxu3 %v302_v20  ;;  %437 = vmatpush.msra.mxu2 %v285_v22  ;;  %v298_v36 = vld [vmem:[%s749_s29 + $0x1b8] sm:$0xff]  ;;  %v281_v38 = vld [vmem:[%s749_s29 + $0x130] sm:$0xff]  ;;  %v248_v41 = vld [vmem:[%s749_s29 + $0x28] sm:$0xff] }
  0x22   : > { %417 = vmatpush.msra.mxu1 %v269_v23  ;;  %398 = vmatpush.msra.mxu0 %v252_v25  ;;  %v265_v39 = vld [vmem:[%s749_s29 + $0xb0] sm:$0xff]  ;;  %v280_v42 = vld [vmem:[%s749_s29 + $0x128] sm:$0xff]  ;;  %v247_v45 = vld [vmem:[%s749_s29 + $0x20] sm:$0xff] }
  0x23   : > { %457 = vmatpush.msra.mxu3 %v301_v24  ;;  %438 = vmatpush.msra.mxu2 %v284_v26  ;;  %v297_v40 = vld [vmem:[%s749_s29 + $0x1b0] sm:$0xff]  ;;  %v264_v43 = vld [vmem:[%s749_s29 + $0xa8] sm:$0xff]  ;;  %v279_v46 = vld [vmem:[%s749_s29 + $0x120] sm:$0xff] }
  0x24   : > { %418 = vmatpush.msra.mxu1 %v268_v27  ;;  %399 = vmatpush.msra.mxu0 %v251_v29  ;;  %v296_v44 = vld [vmem:[%s749_s29 + $0x1a8] sm:$0xff]  ;;  %v263_v47 = vld [vmem:[%s749_s29 + $0xa0] sm:$0xff]  ;;  %v246_v49 = vld [vmem:[%s749_s29 + $0x18] sm:$0xff] }
  0x25   : > { %458 = vmatpush.msra.mxu3 %v300_v28  ;;  %439 = vmatpush.msra.mxu2 %v283_v30  ;;  %v295_v48 = vld [vmem:[%s749_s29 + $0x1a0] sm:$0xff]  ;;  %v278_v50 = vld [vmem:[%s749_s29 + $0x118] sm:$0xff]  ;;  %v245_v53 = vld [vmem:[%s749_s29 + $0x10] sm:$0xff] }
  0x26   : > { %419 = vmatpush.msra.mxu1 %v267_v31  ;;  %400 = vmatpush.msra.mxu0 %v250_v33  ;;  %v262_v51 = vld [vmem:[%s749_s29 + $0x98] sm:$0xff]  ;;  %v277_v54 = vld [vmem:[%s749_s29 + $0x110] sm:$0xff]  ;;  %v244_v57 = vld [vmem:[%s749_s29 + $0x8] sm:$0xff] }
  0x27   : > { %459 = vmatpush.msra.mxu3 %v299_v32  ;;  %440 = vmatpush.msra.mxu2 %v282_v34  ;;  %v294_v52 = vld [vmem:[%s749_s29 + $0x198] sm:$0xff]  ;;  %v261_v55 = vld [vmem:[%s749_s29 + $0x90] sm:$0xff]  ;;  %v276_v58 = vld [vmem:[%s749_s29 + $0x108] sm:$0xff] }
  0x28   : > { %420 = vmatpush.msra.mxu1 %v266_v35  ;;  %401 = vmatpush.msra.mxu0 %v249_v37  ;;  %v293_v56 = vld [vmem:[%s749_s29 + $0x190] sm:$0xff]  ;;  %v260_v59 = vld [vmem:[%s749_s29 + $0x88] sm:$0xff]  ;;  %v243_v61 = vld [vmem:[%s749_s29] sm:$0xff] }
  0x29   : > { %460 = vmatpush.msra.mxu3 %v298_v36  ;;  %441 = vmatpush.msra.mxu2 %v281_v38  ;;  %v292_v60 = vld [vmem:[%s749_s29 + $0x188] sm:$0xff]  ;;  %v275_v62 = vld [vmem:[%s749_s29 + $0x100] sm:$0xff]  ;;  %v322_v63 = vld [vmem:[%s749_s29 + $0x278] sm:$0xff] }
  0x2a   : > { %421 = vmatpush.msra.mxu1 %v265_v39  ;;  %402 = vmatpush.msra.mxu0 %v248_v41  ;;  %v354_v0 = vld [vmem:[%s749_s29 + $0x378] sm:$0xff]  ;;  %v259_v1 = vld [vmem:[%s749_s29 + $0x80] sm:$0xff]  ;;  %v321_v3 = vld [vmem:[%s749_s29 + $0x270] sm:$0xff] }
  0x2b   : > { %461 = vmatpush.msra.mxu3 %v297_v40  ;;  %442 = vmatpush.msra.mxu2 %v280_v42  ;;  %v291_v2 = vld [vmem:[%s749_s29 + $0x180] sm:$0xff]  ;;  %v338_v4 = vld [vmem:[%s749_s29 + $0x2f8] sm:$0xff]  ;;  %v353_v5 = vld [vmem:[%s749_s29 + $0x370] sm:$0xff] }
  0x2c   : > { %422 = vmatpush.msra.mxu1 %v264_v43  ;;  %403 = vmatpush.msra.mxu0 %v247_v45  ;;  %v370_v6 = vld [vmem:[%s749_s29 + $0x3f8] sm:$0xff]  ;;  %v320_v7 = vld [vmem:[%s749_s29 + $0x268] sm:$0xff]  ;;  %v337_v8 = vld [vmem:[%s749_s29 + $0x2f0] sm:$0xff] }
  0x2d   : > { %462 = vmatpush.msra.mxu3 %v296_v44  ;;  %443 = vmatpush.msra.mxu2 %v279_v46  ;;  %v352_v9 = vld [vmem:[%s749_s29 + $0x368] sm:$0xff]  ;;  %v369_v10 = vld [vmem:[%s749_s29 + $0x3f0] sm:$0xff]  ;;  %v319_v11 = vld [vmem:[%s749_s29 + $0x260] sm:$0xff] }
  0x2e   : > { %423 = vmatpush.msra.mxu1 %v263_v47  ;;  %404 = vmatpush.msra.mxu0 %v246_v49  ;;  %v336_v12 = vld [vmem:[%s749_s29 + $0x2e8] sm:$0xff]  ;;  %v241_v13 = vld [vmem:[%s744_s25] sm:$0xff]  ;;  %v318_v16 = vld [vmem:[%s749_s29 + $0x258] sm:$0xff] }
  0x2f   : > { %463 = vmatpush.msra.mxu3 %v295_v48  ;;  %444 = vmatpush.msra.mxu2 %v278_v50  ;;  %v351_v14 = vld [vmem:[%s749_s29 + $0x360] sm:$0xff]  ;;  %v368_v15 = vld [vmem:[%s749_s29 + $0x3e8] sm:$0xff]  ;;  %373 = vst [vmem:[#allocation1] ss:$4 sm:$0xff] %v241_v13  ;;  %v350_v18 = vld [vmem:[%s749_s29 + $0x358] sm:$0xff] }
  0x30   : > { %424 = vmatpush.msra.mxu1 %v262_v51  ;;  %405 = vmatpush.msra.mxu0 %v245_v53  ;;  %v335_v17 = vld [vmem:[%s749_s29 + $0x2e0] sm:$0xff]  ;;  %v317_v20 = vld [vmem:[%s749_s29 + $0x250] sm:$0xff]  ;;  %v334_v21 = vld [vmem:[%s749_s29 + $0x2d8] sm:$0xff] }
  0x31   : > { %464 = vmatpush.msra.mxu3 %v294_v52  ;;  %445 = vmatpush.msra.mxu2 %v277_v54  ;;  %v367_v19 = vld [vmem:[%s749_s29 + $0x3e0] sm:$0xff]  ;;  %v349_v22 = vld [vmem:[%s749_s29 + $0x350] sm:$0xff]  ;;  %v366_v23 = vld [vmem:[%s749_s29 + $0x3d8] sm:$0xff] }
  0x32   : > { %425 = vmatpush.msra.mxu1 %v261_v55  ;;  %406 = vmatpush.msra.mxu0 %v244_v57  ;;  %v316_v24 = vld [vmem:[%s749_s29 + $0x248] sm:$0xff]  ;;  %v333_v25 = vld [vmem:[%s749_s29 + $0x2d0] sm:$0xff]  ;;  %v315_v29 = vld [vmem:[%s749_s29 + $0x240] sm:$0xff] }
  0x33   : > { %465 = vmatpush.msra.mxu3 %v293_v56  ;;  %446 = vmatpush.msra.mxu2 %v276_v58  ;;  %v348_v26 = vld [vmem:[%s749_s29 + $0x348] sm:$0xff]  ;;  %v365_v27 = vld [vmem:[%s749_s29 + $0x3d0] sm:$0xff]  ;;  %v347_v31 = vld [vmem:[%s749_s29 + $0x340] sm:$0xff] }
  0x34   : > { %426 = vmatpush.msra.mxu1 %v260_v59  ;;  %407 = vmatpush.msra.mxu0 %v243_v61  ;;  %v242_v28 = vld [vmem:[%s744_s25 + $0x8] sm:$0xff]  ;;  %v314_v33 = vld [vmem:[%s749_s29 + $0x238] sm:$0xff]  ;;  %v331_v34 = vld [vmem:[%s749_s29 + $0x2c0] sm:$0xff] }
  0x35   : > { %466 = vmatpush.msra.mxu3 %v292_v60  ;;  %447 = vmatpush.msra.mxu2 %v275_v62  ;;  %v332_v30 = vld [vmem:[%s749_s29 + $0x2c8] sm:$0xff]  ;;  %375 = vst [vmem:[#allocation1 + $0x20] ss:$4 sm:$0xff] %v242_v28  ;;  %v346_v35 = vld [vmem:[%s749_s29 + $0x338] sm:$0xff]  ;;  %v363_v36 = vld [vmem:[%s749_s29 + $0x3c0] sm:$0xff] }
  0x36   : > { %472 = vmatpush.msrb.mxu0 %v322_v63  ;;  %427 = vmatpush.msra.mxu1 %v259_v1  ;;  %v364_v32 = vld [vmem:[%s749_s29 + $0x3c8] sm:$0xff]  ;;  %v313_v37 = vld [vmem:[%s749_s29 + $0x230] sm:$0xff]  ;;  %v330_v38 = vld [vmem:[%s749_s29 + $0x2b8] sm:$0xff] }
  0x37   : > { %512 = vmatpush.msrb.mxu2 %v354_v0  ;;  %467 = vmatpush.msra.mxu3 %v291_v2  ;;  %v345_v39 = vld [vmem:[%s749_s29 + $0x330] sm:$0xff]  ;;  %v362_v40 = vld [vmem:[%s749_s29 + $0x3b8] sm:$0xff]  ;;  %v312_v41 = vld [vmem:[%s749_s29 + $0x228] sm:$0xff] }
  0x38   : > { %473 = vmatpush.msrb.mxu0 %v321_v3  ;;  %492 = vmatpush.msrb.mxu1 %v338_v4  ;;  %v329_v42 = vld [vmem:[%s749_s29 + $0x2b0] sm:$0xff]  ;;  %v344_v43 = vld [vmem:[%s749_s29 + $0x328] sm:$0xff]  ;;  %v311_v46 = vld [vmem:[%s749_s29 + $0x220] sm:$0xff] }
  0x39   : > { %513 = vmatpush.msrb.mxu2 %v353_v5  ;;  %532 = vmatpush.msrb.mxu3 %v370_v6  ;;  %v361_v44 = vld [vmem:[%s749_s29 + $0x3b0] sm:$0xff]  ;;  %v328_v47 = vld [vmem:[%s749_s29 + $0x2a8] sm:$0xff]  ;;  %v343_v48 = vld [vmem:[%s749_s29 + $0x320] sm:$0xff] }
  0x3a   : > { %474 = vmatpush.msrb.mxu0 %v320_v7  ;;  %493 = vmatpush.msrb.mxu1 %v337_v8  ;;  %v378_v45 = vld.sshfl [vmem:[#allocation1 + $0x10] sm:$0xff pattern:$0x73625140]  ;;  %v360_v49 = vld [vmem:[%s749_s29 + $0x3a8] sm:$0xff]  ;;  %v310_v52 = vld [vmem:[%s749_s29 + $0x218] sm:$0xff] }
  0x3b   : > { %514 = vmatpush.msrb.mxu2 %v352_v9  ;;  %533 = vmatpush.msrb.mxu3 %v369_v10  ;;  %v376_v50 = vld.sshfl [vmem:[#allocation1] sm:$0xff pattern:$0x73625140]  ;;  %v379_v51 = vld.sshfl [vmem:[#allocation1 + $0x18] sm:$0xff pattern:$0x73625140] }
  0x3c   : > { %475 = vmatpush.msrb.mxu0 %v319_v11  ;;  %494 = vmatpush.msrb.mxu1 %v336_v12  ;;  %v327_v53 = vld [vmem:[%s749_s29 + $0x2a0] sm:$0xff]  ;;  %v342_v54 = vld [vmem:[%s749_s29 + $0x318] sm:$0xff]  ;;  %v377_v56 = vld.sshfl [vmem:[#allocation1 + $0x8] sm:$0xff pattern:$0x73625140] }
  0x3d   : > { %515 = vmatpush.msrb.mxu2 %v351_v14  ;;  %534 = vmatpush.msrb.mxu3 %v368_v15  ;;  %v359_v55 = vld [vmem:[%s749_s29 + $0x3a0] sm:$0xff]  ;;  %v309_v57 = vld [vmem:[%s749_s29 + $0x210] sm:$0xff]  ;;  %v326_v58 = vld [vmem:[%s749_s29 + $0x298] sm:$0xff] }
  0x3e   : > { %476 = vmatpush.msrb.mxu0 %v318_v16  ;;  %495 = vmatpush.msrb.mxu1 %v335_v17  ;;  %v341_v59 = vld [vmem:[%s749_s29 + $0x310] sm:$0xff]  ;;  %v358_v60 = vld [vmem:[%s749_s29 + $0x398] sm:$0xff]  ;;  %v308_v61 = vld [vmem:[%s749_s29 + $0x208] sm:$0xff] }
  0x3f   : > { %516 = vmatpush.msrb.mxu2 %v350_v18  ;;  %535 = vmatpush.msrb.mxu3 %v367_v19  ;;  %v325_v62 = vld [vmem:[%s749_s29 + $0x290] sm:$0xff]  ;;  %v340_v63 = vld [vmem:[%s749_s29 + $0x308] sm:$0xff]  ;;  %v307_v1 = vld [vmem:[%s749_s29 + $0x200] sm:$0xff] }
  0x40   : > { %477 = vmatpush.msrb.mxu0 %v317_v20  ;;  %496 = vmatpush.msrb.mxu1 %v334_v21  ;;  %v357_v0 = vld [vmem:[%s749_s29 + $0x390] sm:$0xff]  ;;  %v324_v2 = vld [vmem:[%s749_s29 + $0x288] sm:$0xff]  ;;  %v339_v3 = vld [vmem:[%s749_s29 + $0x300] sm:$0xff] }
  0x41   : > { %517 = vmatpush.msrb.mxu2 %v349_v22  ;;  %536 = vmatpush.msrb.mxu3 %v366_v23  ;;  %v356_v4 = vld [vmem:[%s749_s29 + $0x388] sm:$0xff]  ;;  %v380_v5 = vld.sshfl [vmem:[#allocation1 + $0x20] sm:$0xff pattern:$0x73625140] }
  0x42   : > { %478 = vmatpush.msrb.mxu0 %v316_v24  ;;  %497 = vmatpush.msrb.mxu1 %v333_v25  ;;  %v382_v6 = vld.sshfl [vmem:[#allocation1 + $0x30] sm:$0xff pattern:$0x73625140]  ;;  %v323_v7 = vld [vmem:[%s749_s29 + $0x280] sm:$0xff]  ;;  %v240_v24 = vld [vmem:[#allocation2] sm:$0x3] }
  0x43   : > { %518 = vmatpush.msrb.mxu2 %v348_v26  ;;  %537 = vmatpush.msrb.mxu3 %v365_v27  ;;  %v355_v8 = vld [vmem:[%s749_s29 + $0x380] sm:$0xff]  ;;  %v381_v9 = vld.sshfl [vmem:[#allocation1 + $0x28] sm:$0xff pattern:$0x73625140] }
  0x44   : > { %479 = vmatpush.msrb.mxu0 %v315_v29  ;;  %498 = vmatpush.msrb.mxu1 %v332_v30  ;;  %v383_v10 = vld.sshfl [vmem:[#allocation1 + $0x38] sm:$0xff pattern:$0x73625140] }
  0x45   : > { %519 = vmatpush.msrb.mxu2 %v347_v31  ;;  %538 = vmatpush.msrb.mxu3 %v364_v32 }
  0x46   : > { %480 = vmatpush.msrb.mxu0 %v314_v33  ;;  %499 = vmatpush.msrb.mxu1 %v331_v34 }
  0x47   : > { %520 = vmatpush.msrb.mxu2 %v346_v35  ;;  %539 = vmatpush.msrb.mxu3 %v363_v36 }
  0x48   : > { %481 = vmatpush.msrb.mxu0 %v313_v37  ;;  %500 = vmatpush.msrb.mxu1 %v330_v38 }
  0x49   : > { %521 = vmatpush.msrb.mxu2 %v345_v39  ;;  %540 = vmatpush.msrb.mxu3 %v362_v40 }
  0x4a   : > { %482 = vmatpush.msrb.mxu0 %v312_v41  ;;  %501 = vmatpush.msrb.mxu1 %v329_v42 }
  0x4b   : > { %522 = vmatpush.msrb.mxu2 %v344_v43  ;;  %541 = vmatpush.msrb.mxu3 %v361_v44 }
  0x4c   : > { %448 = vmatmul.f32.vlgmr.msra.gmra.mxu2 %v378_v45  ;;  %483 = vmatpush.msrb.mxu0 %v311_v46 }
  0x4d   : > { %502 = vmatpush.msrb.mxu1 %v328_v47  ;;  %523 = vmatpush.msrb.mxu2 %v343_v48 }
  0x4e   : > { %542 = vmatpush.msrb.mxu3 %v360_v49  ;;  %408 = vmatmul.f32.vlgmr.msra.gmra.mxu0 %v376_v50 }
  0x4f   : > { %468 = vmatmul.f32.vlgmr.msra.gmra.mxu3 %v379_v51  ;;  %484 = vmatpush.msrb.mxu0 %v310_v52 }
  0x50   : > { %503 = vmatpush.msrb.mxu1 %v327_v53  ;;  %524 = vmatpush.msrb.mxu2 %v342_v54 }
  0x51   : > { %543 = vmatpush.msrb.mxu3 %v359_v55  ;;  %428 = vmatmul.f32.vlgmr.msra.gmra.mxu1 %v377_v56 }
  0x52   : > { %485 = vmatpush.msrb.mxu0 %v309_v57  ;;  %504 = vmatpush.msrb.mxu1 %v326_v58 }
  0x53   : > { %525 = vmatpush.msrb.mxu2 %v341_v59  ;;  %544 = vmatpush.msrb.mxu3 %v358_v60 }
  0x54   : > { %486 = vmatpush.msrb.mxu0 %v308_v61  ;;  %505 = vmatpush.msrb.mxu1 %v325_v62 }
  0x55   : > { %526 = vmatpush.msrb.mxu2 %v340_v63  ;;  %545 = vmatpush.msrb.mxu3 %v357_v0 }
  0x56   : > { %487 = vmatpush.msrb.mxu0 %v307_v1  ;;  %506 = vmatpush.msrb.mxu1 %v324_v2 }
  0x57   : > { %527 = vmatpush.msrb.mxu2 %v339_v3  ;;  %546 = vmatpush.msrb.mxu3 %v356_v4 }
  0x58   : > { %488 = vmatmul.f32.vlgmr.msrb.gmra.mxu0 %v380_v5  ;;  %528 = vmatmul.f32.vlgmr.msrb.gmra.mxu2 %v382_v6 }
  0x59   : > { %507 = vmatpush.msrb.mxu1 %v323_v7  ;;  %547 = vmatpush.msrb.mxu3 %v355_v8 }
  0x5a   : > { %508 = vmatmul.f32.vlgmr.msrb.gmra.mxu1 %v381_v9  ;;  %548 = vmatmul.f32.vlgmr.msrb.gmra.mxu3 %v383_v10 }
  0xcb   : > { %v409_v11 = vpop.f32.mrf.mxu0 }
  0xce   : > { %v429_v12 = vpop.f32.mrf.mxu1 }
  0xcf   : > { %v430_v13 = vadd.f32 %v429_v12, %v409_v11  ;;  %v449_v14 = vpop.f32.mrf.mxu2 }
  0xd1   : > { %v450_v15 = vadd.f32 %v449_v14, %v430_v13 }
  0xd2   : > { %v469_v16 = vpop.f32.mrf.mxu3 }
  0xd3   : > { %v470_v17 = vadd.f32 %v469_v16, %v450_v15 }
  0xd5   : > { %v489_v18 = vpop.f32.mrf.mxu0 }
  0xd6   : > { %v490_v19 = vadd.f32 %v489_v18, %v470_v17 }
  0xd7   : > { %v509_v20 = vpop.f32.mrf.mxu1 }
  0xd8   : > { %v510_v21 = vadd.f32 %v509_v20, %v490_v19 }
  0xdb   : > { %v529_v22 = vpop.f32.mrf.mxu2 }
  0xdc   : > { %v530_v23 = vadd.f32 %v529_v22, %v510_v21 }
  0xdd   : > { %v549_v25 = vpop.f32.mrf.mxu3 }
  0xde   : > { %v550_v26 = vadd.f32 %v549_v25, %v530_v23  ;;  %558 = sbr.rel (%p671_p6) target bundleno = 402 (0x192), region = 48 }
  0xe0   : > { %v552_v27 = vadd.f32 %v550_v26, %v240_v24 }
  0xe2   : > { %554 = vst.msk [vmem:[#allocation2] sm:$0x3] %vm553_vm1, %v552_v27 }
  0xe3   : > { %v572_v28 = vld [vmem:[%s922_s3 + $0x38] sm:$0xff]  ;;  %v571_v29 = vld [vmem:[%s922_s3 + $0x30] sm:$0xff]  ;;  %v570_v30 = vld [vmem:[%s922_s3 + $0x28] sm:$0xff]  ;;  %vm577_vm2 = vcmask 523264   ;;  %vm620_vm6 = vcmask 9216  }
  0xe4   : > { %589 = vmatpush.msra.mxu0 %v572_v28  ;;  %v569_v31 = vld [vmem:[%s922_s3 + $0x20] sm:$0xff]  ;;  %v568_v32 = vld [vmem:[%s922_s3 + $0x18] sm:$0xff]  ;;  %v567_v33 = vld [vmem:[%s922_s3 + $0x10] sm:$0xff] }
  0xe5   : > { %v684_v34 = vld [vmem:[%s921_s2] ss:$0 sm:$0xff]  ;;  %v566_v36 = vld [vmem:[%s922_s3 + $0x8] sm:$0xff] }
  0xe6   : > { %590 = vmatpush.msra.mxu0 %v571_v29  ;;  %v565_v37 = vld [vmem:[%s922_s3] sm:$0xff] }
  0xe7   : > { %v685_v39 = vld [vmem:[%s923_s4] ss:$0 sm:$0xff] }
  0xe8   : > { %591 = vmatpush.msra.mxu0 %v570_v30 }
  0xe9   : > { %v559_v35 = vld [vmem:[#allocation2] sm:$0x3] }
  0xea   : > { %592 = vmatpush.msra.mxu0 %v569_v31  ;;  %v564_v38 = vadd.f32 %v684_v34, %v559_v35 }
  0xec   : > { %593 = vmatpush.msra.mxu0 %v568_v32 }
  0xee   : > { %594 = vmatpush.msra.mxu0 %v567_v33 }
  0xf0   : > { %595 = vmatpush.msra.mxu0 %v566_v36 }
  0xf2   : > { %596 = vmatpush.msra.mxu0 %v565_v37 }
  0xf3   : > { %672 = vmatmul.msk.f32.vlgmr.msra.gmra.mxu0 %vm577_vm2, %v564_v38 }
 0x170   : > { %v598_v40 = vpop.f32.mrf.mxu0 }
 0x171   : > { %v599_v41 = vadd.f32 %v685_v39, %v598_v40 }
 0x173   : > { %v601_v42 = vsub.f32 0.0, %v599_v41 }
 0x175   : > { %v602_v43 = vmul.f32 1.442695, %v601_v42 }
 0x177   : > { %686 = vpow2.f32 %v602_v43 }
 0x17d   : > { %v687_v44 = vpop.eup %686 }
 0x17e   : > { %v604_v45 = vadd.f32 1.0, %v687_v44 }
 0x180   : > { %688 = vrcp.f32 %v604_v45  ;;  %v616_v49 = vand.u32 2147483648, %v604_v45  ;;  %v614_v51 = vand.u32 2147483647, %v604_v45  ;;  %vm610_vm4 = vweird.f32 %v604_v45 }
 0x182   : > { %v617_v53 = vor.u32 1.1754944e-38, %v616_v49  ;;  %vm615_vm7 = vcmp.eq.f32.partialorder %v614_v51, 8.507059e+37 }
 0x186   : > { %v689_v46 = vpop.eup %688 }
 0x187   : > { %v606_v47 = vmul.f32 %v689_v46, %v604_v45  ;;  %vm611_vm3 = vweird.f32 %v689_v46 }
 0x188   : > { %vm612_vm5 = vmor %vm610_vm4, %vm611_vm3 }
 0x189   : > { %v607_v48 = vsub.f32 1.0, %v606_v47 }
 0x18b   : > { %v608_v50 = vmul.f32 %v689_v46, %v607_v48 }
 0x18d   : > { %v609_v52 = vadd.f32 %v689_v46, %v608_v50 }
 0x18f   : > { %v613_v54 = vsel %vm612_vm5, %v689_v46, %v609_v52 }
 0x190   : > { %v618_v55 = vsel %vm615_vm7, %v617_v53, %v613_v54 }
 0x191   : > { %621 = vst.msk [vmem:[%s924_s5] sm:$0x3] %vm620_vm6, %v618_v55 }
 0x192 PF: > { %s15_s18 = sadd.s32 1, %s696_s18  }
 0x193   : > { %p12_p7 = scmp.ge.s32.totalorder %s15_s18, 10  }
 0x195   :  { %14 = sbr.rel (!%p12_p7) target bundleno = 1 (0x1), region = 78 }

</bundles_post_ra>
